<compile_context>
chip_gen: v5e
topology: v5e:2x2
jax: 0.10.0
libtpu: 0.0.40
codegen_flags: <defaults>
</compile_context>

<pallas_src>
import jax
import jax.numpy as jnp
from jax import lax
from jax.experimental import pallas as pl
from jax.experimental.pallas import tpu as pltpu


# ---------------------------------------------------------------------------
# Fused dense-block kernel (BN-ReLU-Conv3x3 x L layers, concat kept in VMEM)
# ---------------------------------------------------------------------------

def _make_dense_block_kernel(C0, growth, L, Wp, Pp, preact, passthrough):
    # Padded-carry layout: pixels are flattened (H+2)*(W+2) per image with a zero ring.
    # A 3x3/pad=1 conv output at flat position p needs h[p + dy*Wp + dx - (Wp+1)];
    # we stage h in a tap buffer with a zero halo of E = Wp+1 columns on each side so
    # all 9 taps become static forward slices of that buffer.
    E = Wp + 1
    Cmax = C0 + (L - 1) * growth
    offs = tuple(dy * Wp + dx for dy in range(3) for dx in range(3))
    per = 4 if preact else 2

    def kernel(*refs):
        x_ref, mask_ref = refs[0], refs[1]
        lrefs = refs[2:2 + per * L]
        out_ref = refs[2 + per * L]
        feat = refs[3 + per * L]      # raw (pre-BN) features [x, z_1, ...] (Cmax, Pp)
        hbuf = refs[4 + per * L]      # haloed post-BN-ReLU tap buffer (Cmax, Pp + 2E)

        x = x_ref[0]                  # (C0, Pp) bf16, zero ring by construction
        feat[:C0, :] = x
        if passthrough:
            out_ref[0, :C0, :] = x    # down-path concat: copy input channels through
        m = mask_ref[...]             # (1, Pp) f32 interior mask (1 inside, 0 on ring)

        # Zero the halo columns once: border taps read genuine zeros (no wrap garbage).
        hbuf[:, :E] = jnp.zeros((Cmax, E), jnp.bfloat16)
        hbuf[:, E + Pp:] = jnp.zeros((Cmax, E), jnp.bfloat16)

        for l in range(L):
            cin = C0 + l * growth
            if preact:
                s_ref, t_ref, w_ref, b_ref = lrefs[per * l:per * l + 4]
                f = feat[:cin, :].astype(jnp.float32)
                # BN (folded) + ReLU, re-masked so the padding ring stays exactly zero.
                h = (jnp.maximum(f * s_ref[...] + t_ref[...], 0.0) * m).astype(jnp.bfloat16)
            else:  # first conv: no BN/ReLU before the convolution
                w_ref, b_ref = lrefs[per * l:per * l + 2]
                h = feat[:cin, :]
            hbuf[:cin, E:E + Pp] = h

            # 9 accumulating MXU matmuls, one per tap; taps are static lane-offset
            # reads of the haloed VMEM buffer (no HBM patch matrix).
            acc = jnp.zeros((growth, Pp), jnp.float32)
            for t in range(9):
                acc = acc + jnp.dot(w_ref[t], hbuf[:cin, offs[t]:offs[t] + Pp],
                                    preferred_element_type=jnp.float32)
            z = ((acc + b_ref[...]) * m).astype(jnp.bfloat16)   # zero ring preserved

            obase = (C0 + l * growth) if passthrough else (l * growth)
            out_ref[0, obase:obase + growth, :] = z
            if l + 1 < L:                                       # feed the next layer
                feat[C0 + l * growth:C0 + (l + 1) * growth, :] = z
            # Dropout(p=0.2) is identity at inference.

    return kernel


def _dense_block_call(x, mask, layers, *, Wp, preact=True, passthrough=True):
    # x: (N, C0, Pp) bf16 padded-carry; mask: (1, Pp) f32; layers: list of param dicts.
    N, C0, Pp = x.shape
    L = len(layers)
    growth = layers[0]["conv"]["w"].shape[1]
    Cout = (C0 if passthrough else 0) + L * growth
    Cmax = C0 + (L - 1) * growth
    Pe = Pp + 2 * (Wp + 1)

    kernel = _make_dense_block_kernel(C0, growth, L, Wp, Pp, preact, passthrough)

    in_specs = [pl.BlockSpec((1, C0, Pp), lambda n: (n, 0, 0)),
                pl.BlockSpec((1, Pp), lambda n: (0, 0))]
    args = [x, mask]
    for p in layers:
        cin = p["conv"]["w"].shape[2]
        if preact:
            in_specs += [pl.BlockSpec((cin, 1), lambda n: (0, 0)),
                         pl.BlockSpec((cin, 1), lambda n: (0, 0))]
            args += [p["bn"]["scale"], p["bn"]["shift"]]
        in_specs += [pl.BlockSpec((9, growth, cin), lambda n: (0, 0, 0)),
                     pl.BlockSpec((growth, 1), lambda n: (0, 0))]
        args += [p["conv"]["w"], p["conv"]["b"]]

    return pl.pallas_call(
        kernel,
        out_shape=jax.ShapeDtypeStruct((N, Cout, Pp), jnp.bfloat16),
        grid=(N,),
        in_specs=in_specs,
        out_specs=pl.BlockSpec((1, Cout, Pp), lambda n: (n, 0, 0)),
        scratch_shapes=[pltpu.VMEM((Cmax, Pp), jnp.bfloat16),
                        pltpu.VMEM((Cmax, Pe), jnp.bfloat16)],
        compiler_params=pltpu.CompilerParams(dimension_semantics=("parallel",)),
    )(*args)


# ---------------------------------------------------------------------------
# Fused TransitionDown kernel (BN - ReLU - Conv1x1 - [Dropout] - MaxPool 2x2)
# ---------------------------------------------------------------------------

def _td_kernel(c_ref, s_ref, t_ref, w_ref, b_ref, o_ref):
    # c_ref: (1, 4, C, Mo) pooling-window corners; s/t: (C,1); w: (C,C); b: (C,1)
    acc = None
    for k in range(4):   # one MXU matmul per corner, max-reduce on the VPU
        h = jnp.maximum(c_ref[0, k].astype(jnp.float32) * s_ref[...] + t_ref[...], 0.0)
        d = jnp.dot(w_ref[...], h.astype(jnp.bfloat16), preferred_element_type=jnp.float32)
        acc = d if acc is None else jnp.maximum(acc, d)
    o_ref[0] = (acc + b_ref[...]).astype(o_ref.dtype)


def _td_call(corners, scale, shift, w, b):
    N, _, C, Mo = corners.shape
    return pl.pallas_call(
        _td_kernel,
        out_shape=jax.ShapeDtypeStruct((N, C, Mo), jnp.bfloat16),
        grid=(N,),
        in_specs=[pl.BlockSpec((1, 4, C, Mo), lambda n: (n, 0, 0, 0)),
                  pl.BlockSpec((C, 1), lambda n: (0, 0)),
                  pl.BlockSpec((C, 1), lambda n: (0, 0)),
                  pl.BlockSpec((C, C), lambda n: (0, 0)),
                  pl.BlockSpec((C, 1), lambda n: (0, 0))],
        out_specs=pl.BlockSpec((1, C, Mo), lambda n: (n, 0, 0)),
        compiler_params=pltpu.CompilerParams(dimension_semantics=("parallel",)),
    )(corners, scale, shift, w, b)


# ---------------------------------------------------------------------------
# Generic (K x M) matmul + bias kernel (TransitionUp phase matmul, last 1x1 conv)
# ---------------------------------------------------------------------------

def _mm_kernel(x_ref, w_ref, b_ref, o_ref):
    acc = jnp.dot(w_ref[...], x_ref[0], preferred_element_type=jnp.float32)
    o_ref[0] = (acc + b_ref[...]).astype(o_ref.dtype)


def _mm_call(x, w, b, out_dtype=jnp.bfloat16):
    N, K, M = x.shape
    Cout = w.shape[0]
    return pl.pallas_call(
        _mm_kernel,
        out_shape=jax.ShapeDtypeStruct((N, Cout, M), out_dtype),
        grid=(N,),
        in_specs=[pl.BlockSpec((1, K, M), lambda n: (n, 0, 0)),
                  pl.BlockSpec((Cout, K), lambda n: (0, 0)),
                  pl.BlockSpec((Cout, 1), lambda n: (0, 0))],
        out_specs=pl.BlockSpec((1, Cout, M), lambda n: (n, 0, 0)),
        compiler_params=pltpu.CompilerParams(dimension_semantics=("parallel",)),
    )(x, w, b)


# ---------------------------------------------------------------------------
# Layout helpers (padded-carry) and the remaining XLA glue
# ---------------------------------------------------------------------------

def _pad_carry(x):
    # (N, C, H, W) -> (N, C, (H+2)*(W+2)) bf16 with a zero ring around each image.
    N, C, H, W = x.shape
    xp = jnp.pad(x, ((0, 0), (0, 0), (1, 1), (1, 1)))
    return xp.reshape(N, C, (H + 2) * (W + 2)).astype(jnp.bfloat16)


def _interior_mask(H, W):
    m = jnp.zeros((H + 2, W + 2), jnp.float32).at[1:H + 1, 1:W + 1].set(1.0)
    return m.reshape(1, (H + 2) * (W + 2))


def _transition_down(p, x, H, W):
    # BN - ReLU - Conv1x1 - Dropout - MaxPool(2), fused in one kernel; the 2x2 corner
    # gather and the re-pad are XLA glue on the smallest tensors of the network.
    # TODO(synk): pull the corner gather / padded-layout writeback into the kernel.
    N, C, _ = x.shape
    Hp, Wp = H + 2, W + 2
    Ho, Wo = H // 2, W // 2
    x4 = x.reshape(N, C, Hp, Wp)
    corners = jnp.stack([x4[:, :, 1 + r:1 + 2 * Ho:2, 1 + c:1 + 2 * Wo:2]
                         for r in range(2) for c in range(2)], axis=1)    # (N,4,C,Ho,Wo)
    corners = corners.reshape(N, 4, C, Ho * Wo)
    out = _td_call(corners, p["bn"]["scale"], p["bn"]["shift"],
                   p["conv"]["w"], p["conv"]["b"])                        # (N, C, Ho*Wo)
    return _pad_carry(out.reshape(N, C, Ho, Wo)), Ho, Wo


def _transition_up(p, x, skip, H, W, Hs, Ws):
    # Phase-decomposed ConvTranspose2d(k=3, s=2): one matmul with K=4*Cin, N=4*Cout.
    N = x.shape[0]
    Cin = p["w"].shape[1] // 4
    Cout = p["w"].shape[0] // 4
    Hp, Wp = H + 2, W + 2
    x4 = x.reshape(N, Cin, Hp, Wp)          # zero ring doubles as the top/left pad
    taps = jnp.concatenate([x4[:, :, r:r + H, c:c + W]
                            for r in range(2) for c in range(2)], axis=1)  # (N,4Cin,H,W)
    taps = taps.reshape(N, 4 * Cin, H * W)
    out = _mm_call(taps, p["w"], p["b"], out_dtype=jnp.bfloat16)           # (N,4Cout,H*W)
    out = out.reshape(N, 2, 2, Cout, H, W)
    # TODO(synk): write the 4 sub-pixel phases to strided destinations from the kernel
    # instead of this XLA interleave pass, and fold the crop into the index math.
    out = jnp.transpose(out, (0, 3, 4, 1, 5, 2)).reshape(N, Cout, 2 * H, 2 * W)
    off_h = (2 * H + 1 - Hs) // 2
    off_w = (2 * W + 1 - Ws) // 2
    # TODO(synk): an odd-sized skip (Hs == 2H+1) would need the dropped last row/col.
    out = out[:, :, off_h:off_h + Hs, off_w:off_w + Ws]
    # TODO(synk): the up/skip channel concat could be folded into the next dense-block
    # kernel by giving it two input refs.
    return jnp.concatenate([_pad_carry(out), skip], axis=1)


# ---------------------------------------------------------------------------
# Parameter initialization (deterministic, synthetic; stored in kernel layout)
# ---------------------------------------------------------------------------

def _conv3x3_init(key, cin, cout):
    kw, kb = jax.random.split(key)
    std = (2.0 / (9 * cin)) ** 0.5
    w = std * jax.random.normal(kw, (cout, cin, 3, 3), jnp.float32)       # OIHW
    w_taps = jnp.transpose(w, (2, 3, 0, 1)).reshape(9, cout, cin)         # tap-major
    b = 0.01 * jax.random.normal(kb, (cout,), jnp.float32)
    return {"w": w_taps.astype(jnp.bfloat16), "b": b.reshape(cout, 1)}


def _conv1x1_init(key, cin, cout):
    kw, kb = jax.random.split(key)
    std = (2.0 / cin) ** 0.5
    w = std * jax.random.normal(kw, (cout, cin), jnp.float32)
    b = 0.01 * jax.random.normal(kb, (cout,), jnp.float32)
    return {"w": w.astype(jnp.bfloat16), "b": b.reshape(cout, 1)}


def _bn_init(key, c):
    k1, k2, k3, k4 = jax.random.split(key, 4)
    gamma = 1.0 + 0.1 * jax.random.normal(k1, (c,), jnp.float32)
    beta = 0.1 * jax.random.normal(k2, (c,), jnp.float32)
    mean = 0.1 * jax.random.normal(k3, (c,), jnp.float32)
    var = 1.0 + 0.1 * jax.random.uniform(k4, (c,), jnp.float32)
    scale = gamma * lax.rsqrt(var + 1e-5)
    shift = beta - mean * scale
    return {"scale": scale.reshape(c, 1), "shift": shift.reshape(c, 1)}


def _dense_layer_init(key, cin, growth):
    kb, kc = jax.random.split(key)
    return {"bn": _bn_init(kb, cin), "conv": _conv3x3_init(kc, cin, growth)}


def _trans_down_init(key, c):
    kb, kc = jax.random.split(key)
    return {"bn": _bn_init(kb, c), "conv": _conv1x1_init(kc, c, c)}


def _build_convT_phase_weights(w_t):
    # w_t: PyTorch ConvTranspose2d weight (Cin, Cout, 3, 3) -> (4*Cout, 4*Cin).
    # Rows: output sub-pixel phases [ee, eo, oe, oo]; cols: the 4 input taps
    # x[a-1,b-1], x[a-1,b], x[a,b-1], x[a,b].
    cin, cout = w_t.shape[0], w_t.shape[1]
    z = jnp.zeros((cout, cin), w_t.dtype)
    wt = lambda kh, kw: w_t[:, :, kh, kw].T
    rows = [
        jnp.concatenate([wt(2, 2), wt(2, 0), wt(0, 2), wt(0, 0)], axis=1),
        jnp.concatenate([z,        wt(2, 1), z,        wt(0, 1)], axis=1),
        jnp.concatenate([z,        z,        wt(1, 2), wt(1, 0)], axis=1),
        jnp.concatenate([z,        z,        z,        wt(1, 1)], axis=1),
    ]
    return jnp.concatenate(rows, axis=0)


def _trans_up_init(key, cin, cout):
    kw, kb = jax.random.split(key)
    std = (2.0 / (9 * cin)) ** 0.5
    w_t = std * jax.random.normal(kw, (cin, cout, 3, 3), jnp.float32)
    b = 0.01 * jax.random.normal(kb, (cout,), jnp.float32)
    return {"w": _build_convT_phase_weights(w_t).astype(jnp.bfloat16),
            "b": jnp.tile(b, 4).reshape(4 * cout, 1)}


def init_fcdensenet(key, in_channels=3, n_classes=1, n_filter_first_conv=16,
                    n_pool=2, growth_rate=4, n_layers_per_block=2):
    keys = iter(jax.random.split(key, 256))
    nk = lambda: next(keys)

    down_list = [n_layers_per_block] * n_pool
    up_list = [n_layers_per_block] * n_pool
    bottleneck_layers = n_layers_per_block

    params = {"first_conv": {"conv": _conv3x3_init(nk(), in_channels, n_filter_first_conv)}}
    cur = n_filter_first_conv
    skip_ch = []
    params["down_blocks"], params["trans_down"] = [], []
    for i in range(n_pool):
        blk, c = [], cur
        for _ in range(down_list[i]):
            blk.append(_dense_layer_init(nk(), c, growth_rate))
            c += growth_rate
        params["down_blocks"].append(blk)
        cur += growth_rate * down_list[i]
        skip_ch.insert(0, cur)
        params["trans_down"].append(_trans_down_init(nk(), cur))

    blk, c = [], cur
    for _ in range(bottleneck_layers):
        blk.append(_dense_layer_init(nk(), c, growth_rate))
        c += growth_rate
    params["bottleneck"] = blk
    prev_out = bottleneck_layers * growth_rate

    params["trans_up"], params["up_blocks"] = [], []
    for i in range(n_pool - 1):
        params["trans_up"].append(_trans_up_init(nk(), prev_out, prev_out))
        cur = prev_out + skip_ch[i]
        blk, c = [], cur
        for _ in range(up_list[i]):
            blk.append(_dense_layer_init(nk(), c, growth_rate))
            c += growth_rate
        params["up_blocks"].append(blk)
        prev_out = growth_rate * up_list[i]

    params["trans_up"].append(_trans_up_init(nk(), prev_out, prev_out))
    cur = prev_out + skip_ch[-1]
    blk, c = [], cur
    for _ in range(up_list[-1]):
        blk.append(_dense_layer_init(nk(), c, growth_rate))
        c += growth_rate
    params["up_blocks"].append(blk)
    cur += growth_rate * up_list[-1]

    params["last_conv"] = _conv1x1_init(nk(), cur, n_classes)
    return params


# ---------------------------------------------------------------------------
# Forward pass (padded-carry layout (N, C, (H+2)*(W+2)) internally)
# ---------------------------------------------------------------------------

def fcdensenet_apply(params, x_nchw):
    N, _, H, W = x_nchw.shape
    x = _pad_carry(x_nchw.astype(jnp.bfloat16))

    # First conv (no BN/ReLU before it) -- same fused kernel with preact=False.
    x = _dense_block_call(x, _interior_mask(H, W), [params["first_conv"]],
                          Wp=W + 2, preact=False, passthrough=False)

    skips, sizes = [], []
    h, w_ = H, W
    n_pool = len(params["down_blocks"])
    for i in range(n_pool):
        x = _dense_block_call(x, _interior_mask(h, w_), params["down_blocks"][i],
                              Wp=w_ + 2, preact=True, passthrough=True)
        skips.append(x)
        sizes.append((h, w_))
        x, h, w_ = _transition_down(params["trans_down"][i], x, h, w_)

    # Bottleneck returns only the newly created feature maps.
    x = _dense_block_call(x, _interior_mask(h, w_), params["bottleneck"],
                          Wp=w_ + 2, preact=True, passthrough=False)

    for i in range(n_pool):
        skip = skips.pop()
        hs, ws = sizes.pop()
        x = _transition_up(params["trans_up"][i], x, skip, h, w_, hs, ws)
        h, w_ = hs, ws
        x = _dense_block_call(x, _interior_mask(h, w_), params["up_blocks"][i],
                              Wp=w_ + 2, preact=True,
                              passthrough=(i == n_pool - 1))

    # Last 1x1 conv over the padded flat (lane-dense), then drop the padding ring.
    out = _mm_call(x, params["last_conv"]["w"], params["last_conv"]["b"],
                   out_dtype=jnp.float32)                      # (N, 1, (h+2)*(w+2))
    out = out.reshape(N, 1, h + 2, w_ + 2)[:, :, 1:h + 1, 1:w_ + 1]
    # The module defines nn.Softmax but forward() does not apply it; we match forward().
    return out


# ---------------------------------------------------------------------------

if __name__ == "__main__":
    key = jax.random.PRNGKey(0)
    kx, kp = jax.random.split(key)
    # Small shapes consistent with the module: batch=2, in_channels=3, 16x16 spatial.
    x = jax.random.normal(kx, (2, 3, 16, 16), jnp.float32)     # NCHW, like PyTorch
    params = init_fcdensenet(kp, in_channels=3, n_classes=1,
                             n_filter_first_conv=16, n_pool=2,
                             growth_rate=4, n_layers_per_block=2)
    fwd = jax.jit(fcdensenet_apply)
    out = jax.block_until_ready(fwd(params, x))
    assert out.shape == (2, 1, 16, 16), out.shape
    assert bool(jnp.all(jnp.isfinite(out)))
    print("KERNEL_OK")
</pallas_src>

<mosaic_0001>
module attributes {stable_mosaic.version = 11 : i64} {
  func.func @kernel(%arg0: i32, %arg1: memref<1x3x324xbf16, #tpu.memory_space<vmem>>, %arg2: memref<1x324xf32, #tpu.memory_space<vmem>>, %arg3: memref<9x16x3xbf16, #tpu.memory_space<vmem>>, %arg4: memref<16x1xf32, #tpu.memory_space<vmem>>, %arg5: memref<1x16x324xbf16, #tpu.memory_space<vmem>>, %arg6: memref<3x324xbf16, #tpu.memory_space<vmem>>, %arg7: memref<3x362xbf16, #tpu.memory_space<vmem>>) attributes {dimension_semantics = [#tpu.dimension_semantics<parallel>], iteration_bounds = array<i64: 2>, scalar_prefetch = 0 : i64, scratch_operands = 2 : i64, tpu.core_type = #tpu.core_type<tc>, window_params = [{transform_indices = @transform_0, window_bounds = array<i64: 1, 3, 324>}, {pipeline_mode = #tpu.pipeline_mode<synchronous>, transform_indices = @transform_1, window_bounds = array<i64: 1, 324>}, {pipeline_mode = #tpu.pipeline_mode<synchronous>, transform_indices = @transform_2, window_bounds = array<i64: 9, 16, 3>}, {pipeline_mode = #tpu.pipeline_mode<synchronous>, transform_indices = @transform_3, window_bounds = array<i64: 16, 1>}, {transform_indices = @transform_4, window_bounds = array<i64: 1, 16, 324>}]} {
    %c0 = arith.constant 0 : index
    %c0_0 = arith.constant 0 : index
    %c0_1 = arith.constant 0 : index
    %0 = vector.load %arg1[%c0, %c0_0, %c0_1] : memref<1x3x324xbf16, #tpu.memory_space<vmem>>, vector<1x3x324xbf16>
    %1 = vector.shape_cast %0 : vector<1x3x324xbf16> to vector<3x324xbf16>
    %c0_2 = arith.constant 0 : index
    %c0_3 = arith.constant 0 : index
    %2 = vector.load %arg6[%c0_2, %c0_3] : memref<3x324xbf16, #tpu.memory_space<vmem>>, vector<3x324xbf16>
    tpu.vector_store %arg6[%c0_2, %c0_3], %1 {strides = array<i32>} : memref<3x324xbf16, #tpu.memory_space<vmem>>, vector<3x324xbf16>,
    %c0_4 = arith.constant 0 : index
    %c0_5 = arith.constant 0 : index
    %3 = vector.load %arg2[%c0_4, %c0_5] : memref<1x324xf32, #tpu.memory_space<vmem>>, vector<1x324xf32>
    %cst = arith.constant 0.000000e+00 : bf16
    %4 = vector.broadcast %cst : bf16 to vector<3x19xbf16>
    %c0_6 = arith.constant 0 : index
    %c0_7 = arith.constant 0 : index
    %5 = vector.load %arg7[%c0_6, %c0_7] : memref<3x362xbf16, #tpu.memory_space<vmem>>, vector<3x19xbf16>
    tpu.vector_store %arg7[%c0_6, %c0_7], %4 {strides = array<i32>} : memref<3x362xbf16, #tpu.memory_space<vmem>>, vector<3x19xbf16>,
    %cst_8 = arith.constant 0.000000e+00 : bf16
    %6 = vector.broadcast %cst_8 : bf16 to vector<3x19xbf16>
    %c0_9 = arith.constant 0 : index
    %c343 = arith.constant 343 : index
    %7 = vector.load %arg7[%c0_9, %c343] : memref<3x362xbf16, #tpu.memory_space<vmem>>, vector<3x19xbf16>
    tpu.vector_store %arg7[%c0_9, %c343], %6 {strides = array<i32>} : memref<3x362xbf16, #tpu.memory_space<vmem>>, vector<3x19xbf16>,
    %c0_10 = arith.constant 0 : index
    %c0_11 = arith.constant 0 : index
    %8 = vector.load %arg6[%c0_10, %c0_11] : memref<3x324xbf16, #tpu.memory_space<vmem>>, vector<3x324xbf16>
    %c0_12 = arith.constant 0 : index
    %c19 = arith.constant 19 : index
    %9 = vector.load %arg7[%c0_12, %c19] : memref<3x362xbf16, #tpu.memory_space<vmem>>, vector<3x324xbf16>
    tpu.vector_store %arg7[%c0_12, %c19], %8 {strides = array<i32>} : memref<3x362xbf16, #tpu.memory_space<vmem>>, vector<3x324xbf16>,
    %cst_13 = arith.constant 0.000000e+00 : f32
    %10 = vector.broadcast %cst_13 : f32 to vector<16x324xf32>
    %c0_14 = arith.constant 0 : index
    %c0_15 = arith.constant 0 : index
    %c0_16 = arith.constant 0 : index
    %11 = vector.load %arg3[%c0_14, %c0_15, %c0_16] : memref<9x16x3xbf16, #tpu.memory_space<vmem>>, vector<1x16x3xbf16>
    %12 = vector.shape_cast %11 : vector<1x16x3xbf16> to vector<16x3xbf16>
    %c0_17 = arith.constant 0 : index
    %c0_18 = arith.constant 0 : index
    %13 = vector.load %arg7[%c0_17, %c0_18] : memref<3x362xbf16, #tpu.memory_space<vmem>>, vector<3x324xbf16>
    %cst_19 = arith.constant dense<0.000000e+00> : vector<16x324xf32>
    %14 = tpu.matmul %12, %13, %cst_19 {dimension_numbers = #tpu.dot_dimension_numbers<[1], [0], [0], [1], [0, 0, 1, 1], [], []>} : vector<16x3xbf16>, vector<3x324xbf16>, vector<16x324xf32> -> vector<16x324xf32>
    %15 = arith.addf %10, %14 : vector<16x324xf32>
    %c1 = arith.constant 1 : index
    %c0_20 = arith.constant 0 : index
    %c0_21 = arith.constant 0 : index
    %16 = vector.load %arg3[%c1, %c0_20, %c0_21] : memref<9x16x3xbf16, #tpu.memory_space<vmem>>, vector<1x16x3xbf16>
    %17 = vector.shape_cast %16 : vector<1x16x3xbf16> to vector<16x3xbf16>
    %c0_22 = arith.constant 0 : index
    %c1_23 = arith.constant 1 : index
    %18 = vector.load %arg7[%c0_22, %c1_23] : memref<3x362xbf16, #tpu.memory_space<vmem>>, vector<3x324xbf16>
    %cst_24 = arith.constant dense<0.000000e+00> : vector<16x324xf32>
    %19 = tpu.matmul %17, %18, %cst_24 {dimension_numbers = #tpu.dot_dimension_numbers<[1], [0], [0], [1], [0, 0, 1, 1], [], []>} : vector<16x3xbf16>, vector<3x324xbf16>, vector<16x324xf32> -> vector<16x324xf32>
    %20 = arith.addf %15, %19 : vector<16x324xf32>
    %c2 = arith.constant 2 : index
    %c0_25 = arith.constant 0 : index
    %c0_26 = arith.constant 0 : index
    %21 = vector.load %arg3[%c2, %c0_25, %c0_26] : memref<9x16x3xbf16, #tpu.memory_space<vmem>>, vector<1x16x3xbf16>
    %22 = vector.shape_cast %21 : vector<1x16x3xbf16> to vector<16x3xbf16>
    %c0_27 = arith.constant 0 : index
    %c2_28 = arith.constant 2 : index
    %23 = vector.load %arg7[%c0_27, %c2_28] : memref<3x362xbf16, #tpu.memory_space<vmem>>, vector<3x324xbf16>
    %cst_29 = arith.constant dense<0.000000e+00> : vector<16x324xf32>
    %24 = tpu.matmul %22, %23, %cst_29 {dimension_numbers = #tpu.dot_dimension_numbers<[1], [0], [0], [1], [0, 0, 1, 1], [], []>} : vector<16x3xbf16>, vector<3x324xbf16>, vector<16x324xf32> -> vector<16x324xf32>
    %25 = arith.addf %20, %24 : vector<16x324xf32>
    %c3 = arith.constant 3 : index
    %c0_30 = arith.constant 0 : index
    %c0_31 = arith.constant 0 : index
    %26 = vector.load %arg3[%c3, %c0_30, %c0_31] : memref<9x16x3xbf16, #tpu.memory_space<vmem>>, vector<1x16x3xbf16>
    %27 = vector.shape_cast %26 : vector<1x16x3xbf16> to vector<16x3xbf16>
    %c0_32 = arith.constant 0 : index
    %c18 = arith.constant 18 : index
    %28 = vector.load %arg7[%c0_32, %c18] : memref<3x362xbf16, #tpu.memory_space<vmem>>, vector<3x324xbf16>
    %cst_33 = arith.constant dense<0.000000e+00> : vector<16x324xf32>
    %29 = tpu.matmul %27, %28, %cst_33 {dimension_numbers = #tpu.dot_dimension_numbers<[1], [0], [0], [1], [0, 0, 1, 1], [], []>} : vector<16x3xbf16>, vector<3x324xbf16>, vector<16x324xf32> -> vector<16x324xf32>
    %30 = arith.addf %25, %29 : vector<16x324xf32>
    %c4 = arith.constant 4 : index
    %c0_34 = arith.constant 0 : index
    %c0_35 = arith.constant 0 : index
    %31 = vector.load %arg3[%c4, %c0_34, %c0_35] : memref<9x16x3xbf16, #tpu.memory_space<vmem>>, vector<1x16x3xbf16>
    %32 = vector.shape_cast %31 : vector<1x16x3xbf16> to vector<16x3xbf16>
    %c0_36 = arith.constant 0 : index
    %c19_37 = arith.constant 19 : index
    %33 = vector.load %arg7[%c0_36, %c19_37] : memref<3x362xbf16, #tpu.memory_space<vmem>>, vector<3x324xbf16>
    %cst_38 = arith.constant dense<0.000000e+00> : vector<16x324xf32>
    %34 = tpu.matmul %32, %33, %cst_38 {dimension_numbers = #tpu.dot_dimension_numbers<[1], [0], [0], [1], [0, 0, 1, 1], [], []>} : vector<16x3xbf16>, vector<3x324xbf16>, vector<16x324xf32> -> vector<16x324xf32>
    %35 = arith.addf %30, %34 : vector<16x324xf32>
    %c5 = arith.constant 5 : index
    %c0_39 = arith.constant 0 : index
    %c0_40 = arith.constant 0 : index
    %36 = vector.load %arg3[%c5, %c0_39, %c0_40] : memref<9x16x3xbf16, #tpu.memory_space<vmem>>, vector<1x16x3xbf16>
    %37 = vector.shape_cast %36 : vector<1x16x3xbf16> to vector<16x3xbf16>
    %c0_41 = arith.constant 0 : index
    %c20 = arith.constant 20 : index
    %38 = vector.load %arg7[%c0_41, %c20] : memref<3x362xbf16, #tpu.memory_space<vmem>>, vector<3x324xbf16>
    %cst_42 = arith.constant dense<0.000000e+00> : vector<16x324xf32>
    %39 = tpu.matmul %37, %38, %cst_42 {dimension_numbers = #tpu.dot_dimension_numbers<[1], [0], [0], [1], [0, 0, 1, 1], [], []>} : vector<16x3xbf16>, vector<3x324xbf16>, vector<16x324xf32> -> vector<16x324xf32>
    %40 = arith.addf %35, %39 : vector<16x324xf32>
    %c6 = arith.constant 6 : index
    %c0_43 = arith.constant 0 : index
    %c0_44 = arith.constant 0 : index
    %41 = vector.load %arg3[%c6, %c0_43, %c0_44] : memref<9x16x3xbf16, #tpu.memory_space<vmem>>, vector<1x16x3xbf16>
    %42 = vector.shape_cast %41 : vector<1x16x3xbf16> to vector<16x3xbf16>
    %c0_45 = arith.constant 0 : index
    %c36 = arith.constant 36 : index
    %43 = vector.load %arg7[%c0_45, %c36] : memref<3x362xbf16, #tpu.memory_space<vmem>>, vector<3x324xbf16>
    %cst_46 = arith.constant dense<0.000000e+00> : vector<16x324xf32>
    %44 = tpu.matmul %42, %43, %cst_46 {dimension_numbers = #tpu.dot_dimension_numbers<[1], [0], [0], [1], [0, 0, 1, 1], [], []>} : vector<16x3xbf16>, vector<3x324xbf16>, vector<16x324xf32> -> vector<16x324xf32>
    %45 = arith.addf %40, %44 : vector<16x324xf32>
    %c7 = arith.constant 7 : index
    %c0_47 = arith.constant 0 : index
    %c0_48 = arith.constant 0 : index
    %46 = vector.load %arg3[%c7, %c0_47, %c0_48] : memref<9x16x3xbf16, #tpu.memory_space<vmem>>, vector<1x16x3xbf16>
    %47 = vector.shape_cast %46 : vector<1x16x3xbf16> to vector<16x3xbf16>
    %c0_49 = arith.constant 0 : index
    %c37 = arith.constant 37 : index
    %48 = vector.load %arg7[%c0_49, %c37] : memref<3x362xbf16, #tpu.memory_space<vmem>>, vector<3x324xbf16>
    %cst_50 = arith.constant dense<0.000000e+00> : vector<16x324xf32>
    %49 = tpu.matmul %47, %48, %cst_50 {dimension_numbers = #tpu.dot_dimension_numbers<[1], [0], [0], [1], [0, 0, 1, 1], [], []>} : vector<16x3xbf16>, vector<3x324xbf16>, vector<16x324xf32> -> vector<16x324xf32>
    %50 = arith.addf %45, %49 : vector<16x324xf32>
    %c8 = arith.constant 8 : index
    %c0_51 = arith.constant 0 : index
    %c0_52 = arith.constant 0 : index
    %51 = vector.load %arg3[%c8, %c0_51, %c0_52] : memref<9x16x3xbf16, #tpu.memory_space<vmem>>, vector<1x16x3xbf16>
    %52 = vector.shape_cast %51 : vector<1x16x3xbf16> to vector<16x3xbf16>
    %c0_53 = arith.constant 0 : index
    %c38 = arith.constant 38 : index
    %53 = vector.load %arg7[%c0_53, %c38] : memref<3x362xbf16, #tpu.memory_space<vmem>>, vector<3x324xbf16>
    %cst_54 = arith.constant dense<0.000000e+00> : vector<16x324xf32>
    %54 = tpu.matmul %52, %53, %cst_54 {dimension_numbers = #tpu.dot_dimension_numbers<[1], [0], [0], [1], [0, 0, 1, 1], [], []>} : vector<16x3xbf16>, vector<3x324xbf16>, vector<16x324xf32> -> vector<16x324xf32>
    %55 = arith.addf %50, %54 : vector<16x324xf32>
    %c0_55 = arith.constant 0 : index
    %c0_56 = arith.constant 0 : index
    %56 = vector.load %arg4[%c0_55, %c0_56] : memref<16x1xf32, #tpu.memory_space<vmem>>, vector<16x1xf32>
    %57 = vector.broadcast %56 : vector<16x1xf32> to vector<16x324xf32>
    %58 = arith.addf %55, %57 : vector<16x324xf32>
    %59 = vector.broadcast %3 : vector<1x324xf32> to vector<16x324xf32>
    %60 = arith.mulf %58, %59 : vector<16x324xf32>
    %61 = arith.truncf %60 : vector<16x324xf32> to vector<16x324xbf16>
    %c0_57 = arith.constant 0 : index
    %c0_58 = arith.constant 0 : index
    %c0_59 = arith.constant 0 : index
    %62 = vector.load %arg5[%c0_57, %c0_58, %c0_59] : memref<1x16x324xbf16, #tpu.memory_space<vmem>>, vector<1x16x324xbf16>
    %63 = vector.shape_cast %62 : vector<1x16x324xbf16> to vector<16x324xbf16>
    %64 = vector.shape_cast %61 : vector<16x324xbf16> to vector<1x16x324xbf16>
    tpu.vector_store %arg5[%c0_57, %c0_58, %c0_59], %64 {strides = array<i32>} : memref<1x16x324xbf16, #tpu.memory_space<vmem>>, vector<1x16x324xbf16>,
    return
  }
  func.func @transform_0(%arg0: i32) -> (i32, i32, i32) {
    %c0_i32 = arith.constant 0 : i32
    %c0_i32_0 = arith.constant 0 : i32
    %c0_i32_1 = arith.constant 0 : i32
    return %arg0, %c0_i32, %c0_i32_0 : i32, i32, i32
  }
  func.func @transform_1(%arg0: i32) -> (i32, i32) {
    %c0_i32 = arith.constant 0 : i32
    %c0_i32_0 = arith.constant 0 : i32
    %c0_i32_1 = arith.constant 0 : i32
    return %c0_i32, %c0_i32_0 : i32, i32
  }
  func.func @transform_2(%arg0: i32) -> (i32, i32, i32) {
    %c0_i32 = arith.constant 0 : i32
    %c0_i32_0 = arith.constant 0 : i32
    %c0_i32_1 = arith.constant 0 : i32
    %c0_i32_2 = arith.constant 0 : i32
    return %c0_i32, %c0_i32_0, %c0_i32_1 : i32, i32, i32
  }
  func.func @transform_3(%arg0: i32) -> (i32, i32) {
    %c0_i32 = arith.constant 0 : i32
    %c0_i32_0 = arith.constant 0 : i32
    %c0_i32_1 = arith.constant 0 : i32
    return %c0_i32, %c0_i32_0 : i32, i32
  }
  func.func @transform_4(%arg0: i32) -> (i32, i32, i32) {
    %c0_i32 = arith.constant 0 : i32
    %c0_i32_0 = arith.constant 0 : i32
    %c0_i32_1 = arith.constant 0 : i32
    return %arg0, %c0_i32, %c0_i32_0 : i32, i32, i32
  }
}

module attributes {stable_mosaic.version = 11 : i64} {
  func.func @kernel(%arg0: i32, %arg1: memref<1x16x324xbf16, #tpu.memory_space<vmem>>, %arg2: memref<1x324xf32, #tpu.memory_space<vmem>>, %arg3: memref<16x1xf32, #tpu.memory_space<vmem>>, %arg4: memref<16x1xf32, #tpu.memory_space<vmem>>, %arg5: memref<9x4x16xbf16, #tpu.memory_space<vmem>>, %arg6: memref<4x1xf32, #tpu.memory_space<vmem>>, %arg7: memref<20x1xf32, #tpu.memory_space<vmem>>, %arg8: memref<20x1xf32, #tpu.memory_space<vmem>>, %arg9: memref<9x4x20xbf16, #tpu.memory_space<vmem>>, %arg10: memref<4x1xf32, #tpu.memory_space<vmem>>, %arg11: memref<1x24x324xbf16, #tpu.memory_space<vmem>>, %arg12: memref<20x324xbf16, #tpu.memory_space<vmem>>, %arg13: memref<20x362xbf16, #tpu.memory_space<vmem>>) attributes {dimension_semantics = [#tpu.dimension_semantics<parallel>], iteration_bounds = array<i64: 2>, scalar_prefetch = 0 : i64, scratch_operands = 2 : i64, tpu.core_type = #tpu.core_type<tc>, window_params = [{transform_indices = @transform_0, window_bounds = array<i64: 1, 16, 324>}, {pipeline_mode = #tpu.pipeline_mode<synchronous>, transform_indices = @transform_1, window_bounds = array<i64: 1, 324>}, {pipeline_mode = #tpu.pipeline_mode<synchronous>, transform_indices = @transform_2, window_bounds = array<i64: 16, 1>}, {pipeline_mode = #tpu.pipeline_mode<synchronous>, transform_indices = @transform_3, window_bounds = array<i64: 16, 1>}, {pipeline_mode = #tpu.pipeline_mode<synchronous>, transform_indices = @transform_4, window_bounds = array<i64: 9, 4, 16>}, {pipeline_mode = #tpu.pipeline_mode<synchronous>, transform_indices = @transform_5, window_bounds = array<i64: 4, 1>}, {pipeline_mode = #tpu.pipeline_mode<synchronous>, transform_indices = @transform_6, window_bounds = array<i64: 20, 1>}, {pipeline_mode = #tpu.pipeline_mode<synchronous>, transform_indices = @transform_7, window_bounds = array<i64: 20, 1>}, {pipeline_mode = #tpu.pipeline_mode<synchronous>, transform_indices = @transform_8, window_bounds = array<i64: 9, 4, 20>}, {pipeline_mode = #tpu.pipeline_mode<synchronous>, transform_indices = @transform_9, window_bounds = array<i64: 4, 1>}, {transform_indices = @transform_10, window_bounds = array<i64: 1, 24, 324>}]} {
    %c0 = arith.constant 0 : index
    %c0_0 = arith.constant 0 : index
    %c0_1 = arith.constant 0 : index
    %0 = vector.load %arg1[%c0, %c0_0, %c0_1] : memref<1x16x324xbf16, #tpu.memory_space<vmem>>, vector<1x16x324xbf16>
    %1 = vector.shape_cast %0 : vector<1x16x324xbf16> to vector<16x324xbf16>
    %c0_2 = arith.constant 0 : index
    %c0_3 = arith.constant 0 : index
    %2 = vector.load %arg12[%c0_2, %c0_3] : memref<20x324xbf16, #tpu.memory_space<vmem>>, vector<16x324xbf16>
    tpu.vector_store %arg12[%c0_2, %c0_3], %1 {strides = array<i32>} : memref<20x324xbf16, #tpu.memory_space<vmem>>, vector<16x324xbf16>,
    %c0_4 = arith.constant 0 : index
    %c0_5 = arith.constant 0 : index
    %c0_6 = arith.constant 0 : index
    %3 = vector.load %arg11[%c0_4, %c0_5, %c0_6] : memref<1x24x324xbf16, #tpu.memory_space<vmem>>, vector<1x16x324xbf16>
    %4 = vector.shape_cast %3 : vector<1x16x324xbf16> to vector<16x324xbf16>
    %5 = vector.shape_cast %1 : vector<16x324xbf16> to vector<1x16x324xbf16>
    tpu.vector_store %arg11[%c0_4, %c0_5, %c0_6], %5 {strides = array<i32>} : memref<1x24x324xbf16, #tpu.memory_space<vmem>>, vector<1x16x324xbf16>,
    %c0_7 = arith.constant 0 : index
    %c0_8 = arith.constant 0 : index
    %6 = vector.load %arg2[%c0_7, %c0_8] : memref<1x324xf32, #tpu.memory_space<vmem>>, vector<1x324xf32>
    %cst = arith.constant 0.000000e+00 : bf16
    %7 = vector.broadcast %cst : bf16 to vector<20x19xbf16>
    %c0_9 = arith.constant 0 : index
    %c0_10 = arith.constant 0 : index
    %8 = vector.load %arg13[%c0_9, %c0_10] : memref<20x362xbf16, #tpu.memory_space<vmem>>, vector<20x19xbf16>
    tpu.vector_store %arg13[%c0_9, %c0_10], %7 {strides = array<i32>} : memref<20x362xbf16, #tpu.memory_space<vmem>>, vector<20x19xbf16>,
    %cst_11 = arith.constant 0.000000e+00 : bf16
    %9 = vector.broadcast %cst_11 : bf16 to vector<20x19xbf16>
    %c0_12 = arith.constant 0 : index
    %c343 = arith.constant 343 : index
    %10 = vector.load %arg13[%c0_12, %c343] : memref<20x362xbf16, #tpu.memory_space<vmem>>, vector<20x19xbf16>
    tpu.vector_store %arg13[%c0_12, %c343], %9 {strides = array<i32>} : memref<20x362xbf16, #tpu.memory_space<vmem>>, vector<20x19xbf16>,
    %c0_13 = arith.constant 0 : index
    %c0_14 = arith.constant 0 : index
    %11 = vector.load %arg12[%c0_13, %c0_14] : memref<20x324xbf16, #tpu.memory_space<vmem>>, vector<16x324xbf16>
    %12 = arith.extf %11 : vector<16x324xbf16> to vector<16x324xf32>
    %c0_15 = arith.constant 0 : index
    %c0_16 = arith.constant 0 : index
    %13 = vector.load %arg3[%c0_15, %c0_16] : memref<16x1xf32, #tpu.memory_space<vmem>>, vector<16x1xf32>
    %14 = vector.broadcast %13 : vector<16x1xf32> to vector<16x324xf32>
    %15 = arith.mulf %12, %14 : vector<16x324xf32>
    %c0_17 = arith.constant 0 : index
    %c0_18 = arith.constant 0 : index
    %16 = vector.load %arg4[%c0_17, %c0_18] : memref<16x1xf32, #tpu.memory_space<vmem>>, vector<16x1xf32>
    %17 = vector.broadcast %16 : vector<16x1xf32> to vector<16x324xf32>
    %18 = arith.addf %15, %17 : vector<16x324xf32>
    %cst_19 = arith.constant 0.000000e+00 : f32
    %19 = vector.broadcast %cst_19 : f32 to vector<16x324xf32>
    %20 = arith.maximumf %18, %19 : vector<16x324xf32>
    %21 = vector.broadcast %6 : vector<1x324xf32> to vector<16x324xf32>
    %22 = arith.mulf %20, %21 : vector<16x324xf32>
    %23 = arith.truncf %22 : vector<16x324xf32> to vector<16x324xbf16>
    %c0_20 = arith.constant 0 : index
    %c19 = arith.constant 19 : index
    %24 = vector.load %arg13[%c0_20, %c19] : memref<20x362xbf16, #tpu.memory_space<vmem>>, vector<16x324xbf16>
    tpu.vector_store %arg13[%c0_20, %c19], %23 {strides = array<i32>} : memref<20x362xbf16, #tpu.memory_space<vmem>>, vector<16x324xbf16>,
    %cst_21 = arith.constant 0.000000e+00 : f32
    %25 = vector.broadcast %cst_21 : f32 to vector<4x324xf32>
    %c0_22 = arith.constant 0 : index
    %c0_23 = arith.constant 0 : index
    %c0_24 = arith.constant 0 : index
    %26 = vector.load %arg5[%c0_22, %c0_23, %c0_24] : memref<9x4x16xbf16, #tpu.memory_space<vmem>>, vector<1x4x16xbf16>
    %27 = vector.shape_cast %26 : vector<1x4x16xbf16> to vector<4x16xbf16>
    %c0_25 = arith.constant 0 : index
    %c0_26 = arith.constant 0 : index
    %28 = vector.load %arg13[%c0_25, %c0_26] : memref<20x362xbf16, #tpu.memory_space<vmem>>, vector<16x324xbf16>
    %cst_27 = arith.constant dense<0.000000e+00> : vector<4x324xf32>
    %29 = tpu.matmul %27, %28, %cst_27 {dimension_numbers = #tpu.dot_dimension_numbers<[1], [0], [0], [1], [0, 0, 1, 1], [], []>} : vector<4x16xbf16>, vector<16x324xbf16>, vector<4x324xf32> -> vector<4x324xf32>
    %30 = arith.addf %25, %29 : vector<4x324xf32>
    %c1 = arith.constant 1 : index
    %c0_28 = arith.constant 0 : index
    %c0_29 = arith.constant 0 : index
    %31 = vector.load %arg5[%c1, %c0_28, %c0_29] : memref<9x4x16xbf16, #tpu.memory_space<vmem>>, vector<1x4x16xbf16>
    %32 = vector.shape_cast %31 : vector<1x4x16xbf16> to vector<4x16xbf16>
    %c0_30 = arith.constant 0 : index
    %c1_31 = arith.constant 1 : index
    %33 = vector.load %arg13[%c0_30, %c1_31] : memref<20x362xbf16, #tpu.memory_space<vmem>>, vector<16x324xbf16>
    %cst_32 = arith.constant dense<0.000000e+00> : vector<4x324xf32>
    %34 = tpu.matmul %32, %33, %cst_32 {dimension_numbers = #tpu.dot_dimension_numbers<[1], [0], [0], [1], [0, 0, 1, 1], [], []>} : vector<4x16xbf16>, vector<16x324xbf16>, vector<4x324xf32> -> vector<4x324xf32>
    %35 = arith.addf %30, %34 : vector<4x324xf32>
    %c2 = arith.constant 2 : index
    %c0_33 = arith.constant 0 : index
    %c0_34 = arith.constant 0 : index
    %36 = vector.load %arg5[%c2, %c0_33, %c0_34] : memref<9x4x16xbf16, #tpu.memory_space<vmem>>, vector<1x4x16xbf16>
    %37 = vector.shape_cast %36 : vector<1x4x16xbf16> to vector<4x16xbf16>
    %c0_35 = arith.constant 0 : index
    %c2_36 = arith.constant 2 : index
    %38 = vector.load %arg13[%c0_35, %c2_36] : memref<20x362xbf16, #tpu.memory_space<vmem>>, vector<16x324xbf16>
    %cst_37 = arith.constant dense<0.000000e+00> : vector<4x324xf32>
    %39 = tpu.matmul %37, %38, %cst_37 {dimension_numbers = #tpu.dot_dimension_numbers<[1], [0], [0], [1], [0, 0, 1, 1], [], []>} : vector<4x16xbf16>, vector<16x324xbf16>, vector<4x324xf32> -> vector<4x324xf32>
    %40 = arith.addf %35, %39 : vector<4x324xf32>
    %c3 = arith.constant 3 : index
    %c0_38 = arith.constant 0 : index
    %c0_39 = arith.constant 0 : index
    %41 = vector.load %arg5[%c3, %c0_38, %c0_39] : memref<9x4x16xbf16, #tpu.memory_space<vmem>>, vector<1x4x16xbf16>
    %42 = vector.shape_cast %41 : vector<1x4x16xbf16> to vector<4x16xbf16>
    %c0_40 = arith.constant 0 : index
    %c18 = arith.constant 18 : index
    %43 = vector.load %arg13[%c0_40, %c18] : memref<20x362xbf16, #tpu.memory_space<vmem>>, vector<16x324xbf16>
    %cst_41 = arith.constant dense<0.000000e+00> : vector<4x324xf32>
    %44 = tpu.matmul %42, %43, %cst_41 {dimension_numbers = #tpu.dot_dimension_numbers<[1], [0], [0], [1], [0, 0, 1, 1], [], []>} : vector<4x16xbf16>, vector<16x324xbf16>, vector<4x324xf32> -> vector<4x324xf32>
    %45 = arith.addf %40, %44 : vector<4x324xf32>
    %c4 = arith.constant 4 : index
    %c0_42 = arith.constant 0 : index
    %c0_43 = arith.constant 0 : index
    %46 = vector.load %arg5[%c4, %c0_42, %c0_43] : memref<9x4x16xbf16, #tpu.memory_space<vmem>>, vector<1x4x16xbf16>
    %47 = vector.shape_cast %46 : vector<1x4x16xbf16> to vector<4x16xbf16>
    %c0_44 = arith.constant 0 : index
    %c19_45 = arith.constant 19 : index
    %48 = vector.load %arg13[%c0_44, %c19_45] : memref<20x362xbf16, #tpu.memory_space<vmem>>, vector<16x324xbf16>
    %cst_46 = arith.constant dense<0.000000e+00> : vector<4x324xf32>
    %49 = tpu.matmul %47, %48, %cst_46 {dimension_numbers = #tpu.dot_dimension_numbers<[1], [0], [0], [1], [0, 0, 1, 1], [], []>} : vector<4x16xbf16>, vector<16x324xbf16>, vector<4x324xf32> -> vector<4x324xf32>
    %50 = arith.addf %45, %49 : vector<4x324xf32>
    %c5 = arith.constant 5 : index
    %c0_47 = arith.constant 0 : index
    %c0_48 = arith.constant 0 : index
    %51 = vector.load %arg5[%c5, %c0_47, %c0_48] : memref<9x4x16xbf16, #tpu.memory_space<vmem>>, vector<1x4x16xbf16>
    %52 = vector.shape_cast %51 : vector<1x4x16xbf16> to vector<4x16xbf16>
    %c0_49 = arith.constant 0 : index
    %c20 = arith.constant 20 : index
    %53 = vector.load %arg13[%c0_49, %c20] : memref<20x362xbf16, #tpu.memory_space<vmem>>, vector<16x324xbf16>
    %cst_50 = arith.constant dense<0.000000e+00> : vector<4x324xf32>
    %54 = tpu.matmul %52, %53, %cst_50 {dimension_numbers = #tpu.dot_dimension_numbers<[1], [0], [0], [1], [0, 0, 1, 1], [], []>} : vector<4x16xbf16>, vector<16x324xbf16>, vector<4x324xf32> -> vector<4x324xf32>
    %55 = arith.addf %50, %54 : vector<4x324xf32>
    %c6 = arith.constant 6 : index
    %c0_51 = arith.constant 0 : index
    %c0_52 = arith.constant 0 : index
    %56 = vector.load %arg5[%c6, %c0_51, %c0_52] : memref<9x4x16xbf16, #tpu.memory_space<vmem>>, vector<1x4x16xbf16>
    %57 = vector.shape_cast %56 : vector<1x4x16xbf16> to vector<4x16xbf16>
    %c0_53 = arith.constant 0 : index
    %c36 = arith.constant 36 : index
    %58 = vector.load %arg13[%c0_53, %c36] : memref<20x362xbf16, #tpu.memory_space<vmem>>, vector<16x324xbf16>
    %cst_54 = arith.constant dense<0.000000e+00> : vector<4x324xf32>
    %59 = tpu.matmul %57, %58, %cst_54 {dimension_numbers = #tpu.dot_dimension_numbers<[1], [0], [0], [1], [0, 0, 1, 1], [], []>} : vector<4x16xbf16>, vector<16x324xbf16>, vector<4x324xf32> -> vector<4x324xf32>
    %60 = arith.addf %55, %59 : vector<4x324xf32>
    %c7 = arith.constant 7 : index
    %c0_55 = arith.constant 0 : index
    %c0_56 = arith.constant 0 : index
    %61 = vector.load %arg5[%c7, %c0_55, %c0_56] : memref<9x4x16xbf16, #tpu.memory_space<vmem>>, vector<1x4x16xbf16>
    %62 = vector.shape_cast %61 : vector<1x4x16xbf16> to vector<4x16xbf16>
    %c0_57 = arith.constant 0 : index
    %c37 = arith.constant 37 : index
    %63 = vector.load %arg13[%c0_57, %c37] : memref<20x362xbf16, #tpu.memory_space<vmem>>, vector<16x324xbf16>
    %cst_58 = arith.constant dense<0.000000e+00> : vector<4x324xf32>
    %64 = tpu.matmul %62, %63, %cst_58 {dimension_numbers = #tpu.dot_dimension_numbers<[1], [0], [0], [1], [0, 0, 1, 1], [], []>} : vector<4x16xbf16>, vector<16x324xbf16>, vector<4x324xf32> -> vector<4x324xf32>
    %65 = arith.addf %60, %64 : vector<4x324xf32>
    %c8 = arith.constant 8 : index
    %c0_59 = arith.constant 0 : index
    %c0_60 = arith.constant 0 : index
    %66 = vector.load %arg5[%c8, %c0_59, %c0_60] : memref<9x4x16xbf16, #tpu.memory_space<vmem>>, vector<1x4x16xbf16>
    %67 = vector.shape_cast %66 : vector<1x4x16xbf16> to vector<4x16xbf16>
    %c0_61 = arith.constant 0 : index
    %c38 = arith.constant 38 : index
    %68 = vector.load %arg13[%c0_61, %c38] : memref<20x362xbf16, #tpu.memory_space<vmem>>, vector<16x324xbf16>
    %cst_62 = arith.constant dense<0.000000e+00> : vector<4x324xf32>
    %69 = tpu.matmul %67, %68, %cst_62 {dimension_numbers = #tpu.dot_dimension_numbers<[1], [0], [0], [1], [0, 0, 1, 1], [], []>} : vector<4x16xbf16>, vector<16x324xbf16>, vector<4x324xf32> -> vector<4x324xf32>
    %70 = arith.addf %65, %69 : vector<4x324xf32>
    %c0_63 = arith.constant 0 : index
    %c0_64 = arith.constant 0 : index
    %71 = vector.load %arg6[%c0_63, %c0_64] : memref<4x1xf32, #tpu.memory_space<vmem>>, vector<4x1xf32>
    %72 = vector.broadcast %71 : vector<4x1xf32> to vector<4x324xf32>
    %73 = arith.addf %70, %72 : vector<4x324xf32>
    %74 = vector.broadcast %6 : vector<1x324xf32> to vector<4x324xf32>
    %75 = arith.mulf %73, %74 : vector<4x324xf32>
    %76 = arith.truncf %75 : vector<4x324xf32> to vector<4x324xbf16>
    %c0_65 = arith.constant 0 : index
    %c16 = arith.constant 16 : index
    %c0_66 = arith.constant 0 : index
    %77 = vector.load %arg11[%c0_65, %c16, %c0_66] : memref<1x24x324xbf16, #tpu.memory_space<vmem>>, vector<1x4x324xbf16>
    %78 = vector.shape_cast %77 : vector<1x4x324xbf16> to vector<4x324xbf16>
    %79 = vector.shape_cast %76 : vector<4x324xbf16> to vector<1x4x324xbf16>
    tpu.vector_store %arg11[%c0_65, %c16, %c0_66], %79 {strides = array<i32>} : memref<1x24x324xbf16, #tpu.memory_space<vmem>>, vector<1x4x324xbf16>,
    %c16_67 = arith.constant 16 : index
    %c0_68 = arith.constant 0 : index
    %80 = vector.load %arg12[%c16_67, %c0_68] : memref<20x324xbf16, #tpu.memory_space<vmem>>, vector<4x324xbf16>
    tpu.vector_store %arg12[%c16_67, %c0_68], %76 {strides = array<i32>} : memref<20x324xbf16, #tpu.memory_space<vmem>>, vector<4x324xbf16>,
    %c0_69 = arith.constant 0 : index
    %c0_70 = arith.constant 0 : index
    %81 = vector.load %arg12[%c0_69, %c0_70] : memref<20x324xbf16, #tpu.memory_space<vmem>>, vector<20x324xbf16>
    %82 = arith.extf %81 : vector<20x324xbf16> to vector<20x324xf32>
    %c0_71 = arith.constant 0 : index
    %c0_72 = arith.constant 0 : index
    %83 = vector.load %arg7[%c0_71, %c0_72] : memref<20x1xf32, #tpu.memory_space<vmem>>, vector<20x1xf32>
    %84 = vector.broadcast %83 : vector<20x1xf32> to vector<20x324xf32>
    %85 = arith.mulf %82, %84 : vector<20x324xf32>
    %c0_73 = arith.constant 0 : index
    %c0_74 = arith.constant 0 : index
    %86 = vector.load %arg8[%c0_73, %c0_74] : memref<20x1xf32, #tpu.memory_space<vmem>>, vector<20x1xf32>
    %87 = vector.broadcast %86 : vector<20x1xf32> to vector<20x324xf32>
    %88 = arith.addf %85, %87 : vector<20x324xf32>
    %cst_75 = arith.constant 0.000000e+00 : f32
    %89 = vector.broadcast %cst_75 : f32 to vector<20x324xf32>
    %90 = arith.maximumf %88, %89 : vector<20x324xf32>
    %91 = vector.broadcast %6 : vector<1x324xf32> to vector<20x324xf32>
    %92 = arith.mulf %90, %91 : vector<20x324xf32>
    %93 = arith.truncf %92 : vector<20x324xf32> to vector<20x324xbf16>
    %c0_76 = arith.constant 0 : index
    %c19_77 = arith.constant 19 : index
    %94 = vector.load %arg13[%c0_76, %c19_77] : memref<20x362xbf16, #tpu.memory_space<vmem>>, vector<20x324xbf16>
    tpu.vector_store %arg13[%c0_76, %c19_77], %93 {strides = array<i32>} : memref<20x362xbf16, #tpu.memory_space<vmem>>, vector<20x324xbf16>,
    %cst_78 = arith.constant 0.000000e+00 : f32
    %95 = vector.broadcast %cst_78 : f32 to vector<4x324xf32>
    %c0_79 = arith.constant 0 : index
    %c0_80 = arith.constant 0 : index
    %c0_81 = arith.constant 0 : index
    %96 = vector.load %arg9[%c0_79, %c0_80, %c0_81] : memref<9x4x20xbf16, #tpu.memory_space<vmem>>, vector<1x4x20xbf16>
    %97 = vector.shape_cast %96 : vector<1x4x20xbf16> to vector<4x20xbf16>
    %c0_82 = arith.constant 0 : index
    %c0_83 = arith.constant 0 : index
    %98 = vector.load %arg13[%c0_82, %c0_83] : memref<20x362xbf16, #tpu.memory_space<vmem>>, vector<20x324xbf16>
    %cst_84 = arith.constant dense<0.000000e+00> : vector<4x324xf32>
    %99 = tpu.matmul %97, %98, %cst_84 {dimension_numbers = #tpu.dot_dimension_numbers<[1], [0], [0], [1], [0, 0, 1, 1], [], []>} : vector<4x20xbf16>, vector<20x324xbf16>, vector<4x324xf32> -> vector<4x324xf32>
    %100 = arith.addf %95, %99 : vector<4x324xf32>
    %c1_85 = arith.constant 1 : index
    %c0_86 = arith.constant 0 : index
    %c0_87 = arith.constant 0 : index
    %101 = vector.load %arg9[%c1_85, %c0_86, %c0_87] : memref<9x4x20xbf16, #tpu.memory_space<vmem>>, vector<1x4x20xbf16>
    %102 = vector.shape_cast %101 : vector<1x4x20xbf16> to vector<4x20xbf16>
    %c0_88 = arith.constant 0 : index
    %c1_89 = arith.constant 1 : index
    %103 = vector.load %arg13[%c0_88, %c1_89] : memref<20x362xbf16, #tpu.memory_space<vmem>>, vector<20x324xbf16>
    %cst_90 = arith.constant dense<0.000000e+00> : vector<4x324xf32>
    %104 = tpu.matmul %102, %103, %cst_90 {dimension_numbers = #tpu.dot_dimension_numbers<[1], [0], [0], [1], [0, 0, 1, 1], [], []>} : vector<4x20xbf16>, vector<20x324xbf16>, vector<4x324xf32> -> vector<4x324xf32>
    %105 = arith.addf %100, %104 : vector<4x324xf32>
    %c2_91 = arith.constant 2 : index
    %c0_92 = arith.constant 0 : index
    %c0_93 = arith.constant 0 : index
    %106 = vector.load %arg9[%c2_91, %c0_92, %c0_93] : memref<9x4x20xbf16, #tpu.memory_space<vmem>>, vector<1x4x20xbf16>
    %107 = vector.shape_cast %106 : vector<1x4x20xbf16> to vector<4x20xbf16>
    %c0_94 = arith.constant 0 : index
    %c2_95 = arith.constant 2 : index
    %108 = vector.load %arg13[%c0_94, %c2_95] : memref<20x362xbf16, #tpu.memory_space<vmem>>, vector<20x324xbf16>
    %cst_96 = arith.constant dense<0.000000e+00> : vector<4x324xf32>
    %109 = tpu.matmul %107, %108, %cst_96 {dimension_numbers = #tpu.dot_dimension_numbers<[1], [0], [0], [1], [0, 0, 1, 1], [], []>} : vector<4x20xbf16>, vector<20x324xbf16>, vector<4x324xf32> -> vector<4x324xf32>
    %110 = arith.addf %105, %109 : vector<4x324xf32>
    %c3_97 = arith.constant 3 : index
    %c0_98 = arith.constant 0 : index
    %c0_99 = arith.constant 0 : index
    %111 = vector.load %arg9[%c3_97, %c0_98, %c0_99] : memref<9x4x20xbf16, #tpu.memory_space<vmem>>, vector<1x4x20xbf16>
    %112 = vector.shape_cast %111 : vector<1x4x20xbf16> to vector<4x20xbf16>
    %c0_100 = arith.constant 0 : index
    %c18_101 = arith.constant 18 : index
    %113 = vector.load %arg13[%c0_100, %c18_101] : memref<20x362xbf16, #tpu.memory_space<vmem>>, vector<20x324xbf16>
    %cst_102 = arith.constant dense<0.000000e+00> : vector<4x324xf32>
    %114 = tpu.matmul %112, %113, %cst_102 {dimension_numbers = #tpu.dot_dimension_numbers<[1], [0], [0], [1], [0, 0, 1, 1], [], []>} : vector<4x20xbf16>, vector<20x324xbf16>, vector<4x324xf32> -> vector<4x324xf32>
    %115 = arith.addf %110, %114 : vector<4x324xf32>
    %c4_103 = arith.constant 4 : index
    %c0_104 = arith.constant 0 : index
    %c0_105 = arith.constant 0 : index
    %116 = vector.load %arg9[%c4_103, %c0_104, %c0_105] : memref<9x4x20xbf16, #tpu.memory_space<vmem>>, vector<1x4x20xbf16>
    %117 = vector.shape_cast %116 : vector<1x4x20xbf16> to vector<4x20xbf16>
    %c0_106 = arith.constant 0 : index
    %c19_107 = arith.constant 19 : index
    %118 = vector.load %arg13[%c0_106, %c19_107] : memref<20x362xbf16, #tpu.memory_space<vmem>>, vector<20x324xbf16>
    %cst_108 = arith.constant dense<0.000000e+00> : vector<4x324xf32>
    %119 = tpu.matmul %117, %118, %cst_108 {dimension_numbers = #tpu.dot_dimension_numbers<[1], [0], [0], [1], [0, 0, 1, 1], [], []>} : vector<4x20xbf16>, vector<20x324xbf16>, vector<4x324xf32> -> vector<4x324xf32>
    %120 = arith.addf %115, %119 : vector<4x324xf32>
    %c5_109 = arith.constant 5 : index
    %c0_110 = arith.constant 0 : index
    %c0_111 = arith.constant 0 : index
    %121 = vector.load %arg9[%c5_109, %c0_110, %c0_111] : memref<9x4x20xbf16, #tpu.memory_space<vmem>>, vector<1x4x20xbf16>
    %122 = vector.shape_cast %121 : vector<1x4x20xbf16> to vector<4x20xbf16>
    %c0_112 = arith.constant 0 : index
    %c20_113 = arith.constant 20 : index
    %123 = vector.load %arg13[%c0_112, %c20_113] : memref<20x362xbf16, #tpu.memory_space<vmem>>, vector<20x324xbf16>
    %cst_114 = arith.constant dense<0.000000e+00> : vector<4x324xf32>
    %124 = tpu.matmul %122, %123, %cst_114 {dimension_numbers = #tpu.dot_dimension_numbers<[1], [0], [0], [1], [0, 0, 1, 1], [], []>} : vector<4x20xbf16>, vector<20x324xbf16>, vector<4x324xf32> -> vector<4x324xf32>
    %125 = arith.addf %120, %124 : vector<4x324xf32>
    %c6_115 = arith.constant 6 : index
    %c0_116 = arith.constant 0 : index
    %c0_117 = arith.constant 0 : index
    %126 = vector.load %arg9[%c6_115, %c0_116, %c0_117] : memref<9x4x20xbf16, #tpu.memory_space<vmem>>, vector<1x4x20xbf16>
    %127 = vector.shape_cast %126 : vector<1x4x20xbf16> to vector<4x20xbf16>
    %c0_118 = arith.constant 0 : index
    %c36_119 = arith.constant 36 : index
    %128 = vector.load %arg13[%c0_118, %c36_119] : memref<20x362xbf16, #tpu.memory_space<vmem>>, vector<20x324xbf16>
    %cst_120 = arith.constant dense<0.000000e+00> : vector<4x324xf32>
    %129 = tpu.matmul %127, %128, %cst_120 {dimension_numbers = #tpu.dot_dimension_numbers<[1], [0], [0], [1], [0, 0, 1, 1], [], []>} : vector<4x20xbf16>, vector<20x324xbf16>, vector<4x324xf32> -> vector<4x324xf32>
    %130 = arith.addf %125, %129 : vector<4x324xf32>
    %c7_121 = arith.constant 7 : index
    %c0_122 = arith.constant 0 : index
    %c0_123 = arith.constant 0 : index
    %131 = vector.load %arg9[%c7_121, %c0_122, %c0_123] : memref<9x4x20xbf16, #tpu.memory_space<vmem>>, vector<1x4x20xbf16>
    %132 = vector.shape_cast %131 : vector<1x4x20xbf16> to vector<4x20xbf16>
    %c0_124 = arith.constant 0 : index
    %c37_125 = arith.constant 37 : index
    %133 = vector.load %arg13[%c0_124, %c37_125] : memref<20x362xbf16, #tpu.memory_space<vmem>>, vector<20x324xbf16>
    %cst_126 = arith.constant dense<0.000000e+00> : vector<4x324xf32>
    %134 = tpu.matmul %132, %133, %cst_126 {dimension_numbers = #tpu.dot_dimension_numbers<[1], [0], [0], [1], [0, 0, 1, 1], [], []>} : vector<4x20xbf16>, vector<20x324xbf16>, vector<4x324xf32> -> vector<4x324xf32>
    %135 = arith.addf %130, %134 : vector<4x324xf32>
    %c8_127 = arith.constant 8 : index
    %c0_128 = arith.constant 0 : index
    %c0_129 = arith.constant 0 : index
    %136 = vector.load %arg9[%c8_127, %c0_128, %c0_129] : memref<9x4x20xbf16, #tpu.memory_space<vmem>>, vector<1x4x20xbf16>
    %137 = vector.shape_cast %136 : vector<1x4x20xbf16> to vector<4x20xbf16>
    %c0_130 = arith.constant 0 : index
    %c38_131 = arith.constant 38 : index
    %138 = vector.load %arg13[%c0_130, %c38_131] : memref<20x362xbf16, #tpu.memory_space<vmem>>, vector<20x324xbf16>
    %cst_132 = arith.constant dense<0.000000e+00> : vector<4x324xf32>
    %139 = tpu.matmul %137, %138, %cst_132 {dimension_numbers = #tpu.dot_dimension_numbers<[1], [0], [0], [1], [0, 0, 1, 1], [], []>} : vector<4x20xbf16>, vector<20x324xbf16>, vector<4x324xf32> -> vector<4x324xf32>
    %140 = arith.addf %135, %139 : vector<4x324xf32>
    %c0_133 = arith.constant 0 : index
    %c0_134 = arith.constant 0 : index
    %141 = vector.load %arg10[%c0_133, %c0_134] : memref<4x1xf32, #tpu.memory_space<vmem>>, vector<4x1xf32>
    %142 = vector.broadcast %141 : vector<4x1xf32> to vector<4x324xf32>
    %143 = arith.addf %140, %142 : vector<4x324xf32>
    %144 = vector.broadcast %6 : vector<1x324xf32> to vector<4x324xf32>
    %145 = arith.mulf %143, %144 : vector<4x324xf32>
    %146 = arith.truncf %145 : vector<4x324xf32> to vector<4x324xbf16>
    %c0_135 = arith.constant 0 : index
    %c20_136 = arith.constant 20 : index
    %c0_137 = arith.constant 0 : index
    %147 = vector.load %arg11[%c0_135, %c20_136, %c0_137] : memref<1x24x324xbf16, #tpu.memory_space<vmem>>, vector<1x4x324xbf16>
    %148 = vector.shape_cast %147 : vector<1x4x324xbf16> to vector<4x324xbf16>
    %149 = vector.shape_cast %146 : vector<4x324xbf16> to vector<1x4x324xbf16>
    tpu.vector_store %arg11[%c0_135, %c20_136, %c0_137], %149 {strides = array<i32>} : memref<1x24x324xbf16, #tpu.memory_space<vmem>>, vector<1x4x324xbf16>,
    return
  }
  func.func @transform_0(%arg0: i32) -> (i32, i32, i32) {
    %c0_i32 = arith.constant 0 : i32
    %c0_i32_0 = arith.constant 0 : i32
    %c0_i32_1 = arith.constant 0 : i32
    return %arg0, %c0_i32, %c0_i32_0 : i32, i32, i32
  }
  func.func @transform_1(%arg0: i32) -> (i32, i32) {
    %c0_i32 = arith.constant 0 : i32
    %c0_i32_0 = arith.constant 0 : i32
    %c0_i32_1 = arith.constant 0 : i32
    return %c0_i32, %c0_i32_0 : i32, i32
  }
  func.func @transform_2(%arg0: i32) -> (i32, i32) {
    %c0_i32 = arith.constant 0 : i32
    %c0_i32_0 = arith.constant 0 : i32
    %c0_i32_1 = arith.constant 0 : i32
    return %c0_i32, %c0_i32_0 : i32, i32
  }
  func.func @transform_3(%arg0: i32) -> (i32, i32) {
    %c0_i32 = arith.constant 0 : i32
    %c0_i32_0 = arith.constant 0 : i32
    %c0_i32_1 = arith.constant 0 : i32
    return %c0_i32, %c0_i32_0 : i32, i32
  }
  func.func @transform_4(%arg0: i32) -> (i32, i32, i32) {
    %c0_i32 = arith.constant 0 : i32
    %c0_i32_0 = arith.constant 0 : i32
    %c0_i32_1 = arith.constant 0 : i32
    %c0_i32_2 = arith.constant 0 : i32
    return %c0_i32, %c0_i32_0, %c0_i32_1 : i32, i32, i32
  }
  func.func @transform_5(%arg0: i32) -> (i32, i32) {
    %c0_i32 = arith.constant 0 : i32
    %c0_i32_0 = arith.constant 0 : i32
    %c0_i32_1 = arith.constant 0 : i32
    return %c0_i32, %c0_i32_0 : i32, i32
  }
  func.func @transform_6(%arg0: i32) -> (i32, i32) {
    %c0_i32 = arith.constant 0 : i32
    %c0_i32_0 = arith.constant 0 : i32
    %c0_i32_1 = arith.constant 0 : i32
    return %c0_i32, %c0_i32_0 : i32, i32
  }
  func.func @transform_7(%arg0: i32) -> (i32, i32) {
    %c0_i32 = arith.constant 0 : i32
    %c0_i32_0 = arith.constant 0 : i32
    %c0_i32_1 = arith.constant 0 : i32
    return %c0_i32, %c0_i32_0 : i32, i32
  }
  func.func @transform_8(%arg0: i32) -> (i32, i32, i32) {
    %c0_i32 = arith.constant 0 : i32
    %c0_i32_0 = arith.constant 0 : i32
    %c0_i32_1 = arith.constant 0 : i32
    %c0_i32_2 = arith.constant 0 : i32
    return %c0_i32, %c0_i32_0, %c0_i32_1 : i32, i32, i32
  }
  func.func @transform_9(%arg0: i32) -> (i32, i32) {
    %c0_i32 = arith.constant 0 : i32
    %c0_i32_0 = arith.constant 0 : i32
    %c0_i32_1 = arith.constant 0 : i32
    return %c0_i32, %c0_i32_0 : i32, i32
  }
  func.func @transform_10(%arg0: i32) -> (i32, i32, i32) {
    %c0_i32 = arith.constant 0 : i32
    %c0_i32_0 = arith.constant 0 : i32
    %c0_i32_1 = arith.constant 0 : i32
    return %arg0, %c0_i32, %c0_i32_0 : i32, i32, i32
  }
}

module attributes {stable_mosaic.version = 11 : i64} {
  func.func @_td_kernel(%arg0: i32, %arg1: memref<1x4x24x64xbf16, #tpu.memory_space<vmem>>, %arg2: memref<24x1xf32, #tpu.memory_space<vmem>>, %arg3: memref<24x1xf32, #tpu.memory_space<vmem>>, %arg4: memref<24x24xbf16, #tpu.memory_space<vmem>>, %arg5: memref<24x1xf32, #tpu.memory_space<vmem>>, %arg6: memref<1x24x64xbf16, #tpu.memory_space<vmem>>) attributes {dimension_semantics = [#tpu.dimension_semantics<parallel>], iteration_bounds = array<i64: 2>, scalar_prefetch = 0 : i64, scratch_operands = 0 : i64, tpu.core_type = #tpu.core_type<tc>, window_params = [{transform_indices = @transform_0, window_bounds = array<i64: 1, 4, 24, 64>}, {pipeline_mode = #tpu.pipeline_mode<synchronous>, transform_indices = @transform_1, window_bounds = array<i64: 24, 1>}, {pipeline_mode = #tpu.pipeline_mode<synchronous>, transform_indices = @transform_2, window_bounds = array<i64: 24, 1>}, {pipeline_mode = #tpu.pipeline_mode<synchronous>, transform_indices = @transform_3, window_bounds = array<i64: 24, 24>}, {pipeline_mode = #tpu.pipeline_mode<synchronous>, transform_indices = @transform_4, window_bounds = array<i64: 24, 1>}, {transform_indices = @transform_5, window_bounds = array<i64: 1, 24, 64>}]} {
    %c0 = arith.constant 0 : index
    %c0_0 = arith.constant 0 : index
    %c0_1 = arith.constant 0 : index
    %c0_2 = arith.constant 0 : index
    %0 = vector.load %arg1[%c0, %c0_0, %c0_1, %c0_2] : memref<1x4x24x64xbf16, #tpu.memory_space<vmem>>, vector<1x1x24x64xbf16>
    %1 = vector.shape_cast %0 : vector<1x1x24x64xbf16> to vector<24x64xbf16>
    %2 = arith.extf %1 : vector<24x64xbf16> to vector<24x64xf32>
    %c0_3 = arith.constant 0 : index
    %c0_4 = arith.constant 0 : index
    %3 = vector.load %arg2[%c0_3, %c0_4] : memref<24x1xf32, #tpu.memory_space<vmem>>, vector<24x1xf32>
    %4 = vector.broadcast %3 : vector<24x1xf32> to vector<24x64xf32>
    %5 = arith.mulf %2, %4 : vector<24x64xf32>
    %c0_5 = arith.constant 0 : index
    %c0_6 = arith.constant 0 : index
    %6 = vector.load %arg3[%c0_5, %c0_6] : memref<24x1xf32, #tpu.memory_space<vmem>>, vector<24x1xf32>
    %7 = vector.broadcast %6 : vector<24x1xf32> to vector<24x64xf32>
    %8 = arith.addf %5, %7 : vector<24x64xf32>
    %cst = arith.constant 0.000000e+00 : f32
    %9 = vector.broadcast %cst : f32 to vector<24x64xf32>
    %10 = arith.maximumf %8, %9 : vector<24x64xf32>
    %c0_7 = arith.constant 0 : index
    %c0_8 = arith.constant 0 : index
    %11 = vector.load %arg4[%c0_7, %c0_8] : memref<24x24xbf16, #tpu.memory_space<vmem>>, vector<24x24xbf16>
    %12 = arith.truncf %10 : vector<24x64xf32> to vector<24x64xbf16>
    %cst_9 = arith.constant dense<0.000000e+00> : vector<24x64xf32>
    %13 = tpu.matmul %11, %12, %cst_9 {dimension_numbers = #tpu.dot_dimension_numbers<[1], [0], [0], [1], [0, 0, 1, 1], [], []>} : vector<24x24xbf16>, vector<24x64xbf16>, vector<24x64xf32> -> vector<24x64xf32>
    %c0_10 = arith.constant 0 : index
    %c1 = arith.constant 1 : index
    %c0_11 = arith.constant 0 : index
    %c0_12 = arith.constant 0 : index
    %14 = vector.load %arg1[%c0_10, %c1, %c0_11, %c0_12] : memref<1x4x24x64xbf16, #tpu.memory_space<vmem>>, vector<1x1x24x64xbf16>
    %15 = vector.shape_cast %14 : vector<1x1x24x64xbf16> to vector<24x64xbf16>
    %16 = arith.extf %15 : vector<24x64xbf16> to vector<24x64xf32>
    %c0_13 = arith.constant 0 : index
    %c0_14 = arith.constant 0 : index
    %17 = vector.load %arg2[%c0_13, %c0_14] : memref<24x1xf32, #tpu.memory_space<vmem>>, vector<24x1xf32>
    %18 = vector.broadcast %17 : vector<24x1xf32> to vector<24x64xf32>
    %19 = arith.mulf %16, %18 : vector<24x64xf32>
    %c0_15 = arith.constant 0 : index
    %c0_16 = arith.constant 0 : index
    %20 = vector.load %arg3[%c0_15, %c0_16] : memref<24x1xf32, #tpu.memory_space<vmem>>, vector<24x1xf32>
    %21 = vector.broadcast %20 : vector<24x1xf32> to vector<24x64xf32>
    %22 = arith.addf %19, %21 : vector<24x64xf32>
    %cst_17 = arith.constant 0.000000e+00 : f32
    %23 = vector.broadcast %cst_17 : f32 to vector<24x64xf32>
    %24 = arith.maximumf %22, %23 : vector<24x64xf32>
    %c0_18 = arith.constant 0 : index
    %c0_19 = arith.constant 0 : index
    %25 = vector.load %arg4[%c0_18, %c0_19] : memref<24x24xbf16, #tpu.memory_space<vmem>>, vector<24x24xbf16>
    %26 = arith.truncf %24 : vector<24x64xf32> to vector<24x64xbf16>
    %cst_20 = arith.constant dense<0.000000e+00> : vector<24x64xf32>
    %27 = tpu.matmul %25, %26, %cst_20 {dimension_numbers = #tpu.dot_dimension_numbers<[1], [0], [0], [1], [0, 0, 1, 1], [], []>} : vector<24x24xbf16>, vector<24x64xbf16>, vector<24x64xf32> -> vector<24x64xf32>
    %28 = arith.maximumf %13, %27 : vector<24x64xf32>
    %c0_21 = arith.constant 0 : index
    %c2 = arith.constant 2 : index
    %c0_22 = arith.constant 0 : index
    %c0_23 = arith.constant 0 : index
    %29 = vector.load %arg1[%c0_21, %c2, %c0_22, %c0_23] : memref<1x4x24x64xbf16, #tpu.memory_space<vmem>>, vector<1x1x24x64xbf16>
    %30 = vector.shape_cast %29 : vector<1x1x24x64xbf16> to vector<24x64xbf16>
    %31 = arith.extf %30 : vector<24x64xbf16> to vector<24x64xf32>
    %c0_24 = arith.constant 0 : index
    %c0_25 = arith.constant 0 : index
    %32 = vector.load %arg2[%c0_24, %c0_25] : memref<24x1xf32, #tpu.memory_space<vmem>>, vector<24x1xf32>
    %33 = vector.broadcast %32 : vector<24x1xf32> to vector<24x64xf32>
    %34 = arith.mulf %31, %33 : vector<24x64xf32>
    %c0_26 = arith.constant 0 : index
    %c0_27 = arith.constant 0 : index
    %35 = vector.load %arg3[%c0_26, %c0_27] : memref<24x1xf32, #tpu.memory_space<vmem>>, vector<24x1xf32>
    %36 = vector.broadcast %35 : vector<24x1xf32> to vector<24x64xf32>
    %37 = arith.addf %34, %36 : vector<24x64xf32>
    %cst_28 = arith.constant 0.000000e+00 : f32
    %38 = vector.broadcast %cst_28 : f32 to vector<24x64xf32>
    %39 = arith.maximumf %37, %38 : vector<24x64xf32>
    %c0_29 = arith.constant 0 : index
    %c0_30 = arith.constant 0 : index
    %40 = vector.load %arg4[%c0_29, %c0_30] : memref<24x24xbf16, #tpu.memory_space<vmem>>, vector<24x24xbf16>
    %41 = arith.truncf %39 : vector<24x64xf32> to vector<24x64xbf16>
    %cst_31 = arith.constant dense<0.000000e+00> : vector<24x64xf32>
    %42 = tpu.matmul %40, %41, %cst_31 {dimension_numbers = #tpu.dot_dimension_numbers<[1], [0], [0], [1], [0, 0, 1, 1], [], []>} : vector<24x24xbf16>, vector<24x64xbf16>, vector<24x64xf32> -> vector<24x64xf32>
    %43 = arith.maximumf %28, %42 : vector<24x64xf32>
    %c0_32 = arith.constant 0 : index
    %c3 = arith.constant 3 : index
    %c0_33 = arith.constant 0 : index
    %c0_34 = arith.constant 0 : index
    %44 = vector.load %arg1[%c0_32, %c3, %c0_33, %c0_34] : memref<1x4x24x64xbf16, #tpu.memory_space<vmem>>, vector<1x1x24x64xbf16>
    %45 = vector.shape_cast %44 : vector<1x1x24x64xbf16> to vector<24x64xbf16>
    %46 = arith.extf %45 : vector<24x64xbf16> to vector<24x64xf32>
    %c0_35 = arith.constant 0 : index
    %c0_36 = arith.constant 0 : index
    %47 = vector.load %arg2[%c0_35, %c0_36] : memref<24x1xf32, #tpu.memory_space<vmem>>, vector<24x1xf32>
    %48 = vector.broadcast %47 : vector<24x1xf32> to vector<24x64xf32>
    %49 = arith.mulf %46, %48 : vector<24x64xf32>
    %c0_37 = arith.constant 0 : index
    %c0_38 = arith.constant 0 : index
    %50 = vector.load %arg3[%c0_37, %c0_38] : memref<24x1xf32, #tpu.memory_space<vmem>>, vector<24x1xf32>
    %51 = vector.broadcast %50 : vector<24x1xf32> to vector<24x64xf32>
    %52 = arith.addf %49, %51 : vector<24x64xf32>
    %cst_39 = arith.constant 0.000000e+00 : f32
    %53 = vector.broadcast %cst_39 : f32 to vector<24x64xf32>
    %54 = arith.maximumf %52, %53 : vector<24x64xf32>
    %c0_40 = arith.constant 0 : index
    %c0_41 = arith.constant 0 : index
    %55 = vector.load %arg4[%c0_40, %c0_41] : memref<24x24xbf16, #tpu.memory_space<vmem>>, vector<24x24xbf16>
    %56 = arith.truncf %54 : vector<24x64xf32> to vector<24x64xbf16>
    %cst_42 = arith.constant dense<0.000000e+00> : vector<24x64xf32>
    %57 = tpu.matmul %55, %56, %cst_42 {dimension_numbers = #tpu.dot_dimension_numbers<[1], [0], [0], [1], [0, 0, 1, 1], [], []>} : vector<24x24xbf16>, vector<24x64xbf16>, vector<24x64xf32> -> vector<24x64xf32>
    %58 = arith.maximumf %43, %57 : vector<24x64xf32>
    %c0_43 = arith.constant 0 : index
    %c0_44 = arith.constant 0 : index
    %59 = vector.load %arg5[%c0_43, %c0_44] : memref<24x1xf32, #tpu.memory_space<vmem>>, vector<24x1xf32>
    %60 = vector.broadcast %59 : vector<24x1xf32> to vector<24x64xf32>
    %61 = arith.addf %58, %60 : vector<24x64xf32>
    %62 = arith.truncf %61 : vector<24x64xf32> to vector<24x64xbf16>
    %c0_45 = arith.constant 0 : index
    %c0_46 = arith.constant 0 : index
    %c0_47 = arith.constant 0 : index
    %63 = vector.load %arg6[%c0_45, %c0_46, %c0_47] : memref<1x24x64xbf16, #tpu.memory_space<vmem>>, vector<1x24x64xbf16>
    %64 = vector.shape_cast %63 : vector<1x24x64xbf16> to vector<24x64xbf16>
    %65 = vector.shape_cast %62 : vector<24x64xbf16> to vector<1x24x64xbf16>
    tpu.vector_store %arg6[%c0_45, %c0_46, %c0_47], %65 {strides = array<i32>} : memref<1x24x64xbf16, #tpu.memory_space<vmem>>, vector<1x24x64xbf16>,
    return
  }
  func.func @transform_0(%arg0: i32) -> (i32, i32, i32, i32) {
    %c0_i32 = arith.constant 0 : i32
    %c0_i32_0 = arith.constant 0 : i32
    %c0_i32_1 = arith.constant 0 : i32
    %c0_i32_2 = arith.constant 0 : i32
    return %arg0, %c0_i32, %c0_i32_0, %c0_i32_1 : i32, i32, i32, i32
  }
  func.func @transform_1(%arg0: i32) -> (i32, i32) {
    %c0_i32 = arith.constant 0 : i32
    %c0_i32_0 = arith.constant 0 : i32
    %c0_i32_1 = arith.constant 0 : i32
    return %c0_i32, %c0_i32_0 : i32, i32
  }
  func.func @transform_2(%arg0: i32) -> (i32, i32) {
    %c0_i32 = arith.constant 0 : i32
    %c0_i32_0 = arith.constant 0 : i32
    %c0_i32_1 = arith.constant 0 : i32
    return %c0_i32, %c0_i32_0 : i32, i32
  }
  func.func @transform_3(%arg0: i32) -> (i32, i32) {
    %c0_i32 = arith.constant 0 : i32
    %c0_i32_0 = arith.constant 0 : i32
    %c0_i32_1 = arith.constant 0 : i32
    return %c0_i32, %c0_i32_0 : i32, i32
  }
  func.func @transform_4(%arg0: i32) -> (i32, i32) {
    %c0_i32 = arith.constant 0 : i32
    %c0_i32_0 = arith.constant 0 : i32
    %c0_i32_1 = arith.constant 0 : i32
    return %c0_i32, %c0_i32_0 : i32, i32
  }
  func.func @transform_5(%arg0: i32) -> (i32, i32, i32) {
    %c0_i32 = arith.constant 0 : i32
    %c0_i32_0 = arith.constant 0 : i32
    %c0_i32_1 = arith.constant 0 : i32
    return %arg0, %c0_i32, %c0_i32_0 : i32, i32, i32
  }
}

module attributes {stable_mosaic.version = 11 : i64} {
  func.func @kernel(%arg0: i32, %arg1: memref<1x24x100xbf16, #tpu.memory_space<vmem>>, %arg2: memref<1x100xf32, #tpu.memory_space<vmem>>, %arg3: memref<24x1xf32, #tpu.memory_space<vmem>>, %arg4: memref<24x1xf32, #tpu.memory_space<vmem>>, %arg5: memref<9x4x24xbf16, #tpu.memory_space<vmem>>, %arg6: memref<4x1xf32, #tpu.memory_space<vmem>>, %arg7: memref<28x1xf32, #tpu.memory_space<vmem>>, %arg8: memref<28x1xf32, #tpu.memory_space<vmem>>, %arg9: memref<9x4x28xbf16, #tpu.memory_space<vmem>>, %arg10: memref<4x1xf32, #tpu.memory_space<vmem>>, %arg11: memref<1x32x100xbf16, #tpu.memory_space<vmem>>, %arg12: memref<28x100xbf16, #tpu.memory_space<vmem>>, %arg13: memref<28x122xbf16, #tpu.memory_space<vmem>>) attributes {dimension_semantics = [#tpu.dimension_semantics<parallel>], iteration_bounds = array<i64: 2>, scalar_prefetch = 0 : i64, scratch_operands = 2 : i64, tpu.core_type = #tpu.core_type<tc>, window_params = [{transform_indices = @transform_0, window_bounds = array<i64: 1, 24, 100>}, {pipeline_mode = #tpu.pipeline_mode<synchronous>, transform_indices = @transform_1, window_bounds = array<i64: 1, 100>}, {pipeline_mode = #tpu.pipeline_mode<synchronous>, transform_indices = @transform_2, window_bounds = array<i64: 24, 1>}, {pipeline_mode = #tpu.pipeline_mode<synchronous>, transform_indices = @transform_3, window_bounds = array<i64: 24, 1>}, {pipeline_mode = #tpu.pipeline_mode<synchronous>, transform_indices = @transform_4, window_bounds = array<i64: 9, 4, 24>}, {pipeline_mode = #tpu.pipeline_mode<synchronous>, transform_indices = @transform_5, window_bounds = array<i64: 4, 1>}, {pipeline_mode = #tpu.pipeline_mode<synchronous>, transform_indices = @transform_6, window_bounds = array<i64: 28, 1>}, {pipeline_mode = #tpu.pipeline_mode<synchronous>, transform_indices = @transform_7, window_bounds = array<i64: 28, 1>}, {pipeline_mode = #tpu.pipeline_mode<synchronous>, transform_indices = @transform_8, window_bounds = array<i64: 9, 4, 28>}, {pipeline_mode = #tpu.pipeline_mode<synchronous>, transform_indices = @transform_9, window_bounds = array<i64: 4, 1>}, {transform_indices = @transform_10, window_bounds = array<i64: 1, 32, 100>}]} {
    %c0 = arith.constant 0 : index
    %c0_0 = arith.constant 0 : index
    %c0_1 = arith.constant 0 : index
    %0 = vector.load %arg1[%c0, %c0_0, %c0_1] : memref<1x24x100xbf16, #tpu.memory_space<vmem>>, vector<1x24x100xbf16>
    %1 = vector.shape_cast %0 : vector<1x24x100xbf16> to vector<24x100xbf16>
    %c0_2 = arith.constant 0 : index
    %c0_3 = arith.constant 0 : index
    %2 = vector.load %arg12[%c0_2, %c0_3] : memref<28x100xbf16, #tpu.memory_space<vmem>>, vector<24x100xbf16>
    tpu.vector_store %arg12[%c0_2, %c0_3], %1 {strides = array<i32>} : memref<28x100xbf16, #tpu.memory_space<vmem>>, vector<24x100xbf16>,
    %c0_4 = arith.constant 0 : index
    %c0_5 = arith.constant 0 : index
    %c0_6 = arith.constant 0 : index
    %3 = vector.load %arg11[%c0_4, %c0_5, %c0_6] : memref<1x32x100xbf16, #tpu.memory_space<vmem>>, vector<1x24x100xbf16>
    %4 = vector.shape_cast %3 : vector<1x24x100xbf16> to vector<24x100xbf16>
    %5 = vector.shape_cast %1 : vector<24x100xbf16> to vector<1x24x100xbf16>
    tpu.vector_store %arg11[%c0_4, %c0_5, %c0_6], %5 {strides = array<i32>} : memref<1x32x100xbf16, #tpu.memory_space<vmem>>, vector<1x24x100xbf16>,
    %c0_7 = arith.constant 0 : index
    %c0_8 = arith.constant 0 : index
    %6 = vector.load %arg2[%c0_7, %c0_8] : memref<1x100xf32, #tpu.memory_space<vmem>>, vector<1x100xf32>
    %cst = arith.constant 0.000000e+00 : bf16
    %7 = vector.broadcast %cst : bf16 to vector<28x11xbf16>
    %c0_9 = arith.constant 0 : index
    %c0_10 = arith.constant 0 : index
    %8 = vector.load %arg13[%c0_9, %c0_10] : memref<28x122xbf16, #tpu.memory_space<vmem>>, vector<28x11xbf16>
    tpu.vector_store %arg13[%c0_9, %c0_10], %7 {strides = array<i32>} : memref<28x122xbf16, #tpu.memory_space<vmem>>, vector<28x11xbf16>,
    %cst_11 = arith.constant 0.000000e+00 : bf16
    %9 = vector.broadcast %cst_11 : bf16 to vector<28x11xbf16>
    %c0_12 = arith.constant 0 : index
    %c111 = arith.constant 111 : index
    %10 = vector.load %arg13[%c0_12, %c111] : memref<28x122xbf16, #tpu.memory_space<vmem>>, vector<28x11xbf16>
    tpu.vector_store %arg13[%c0_12, %c111], %9 {strides = array<i32>} : memref<28x122xbf16, #tpu.memory_space<vmem>>, vector<28x11xbf16>,
    %c0_13 = arith.constant 0 : index
    %c0_14 = arith.constant 0 : index
    %11 = vector.load %arg12[%c0_13, %c0_14] : memref<28x100xbf16, #tpu.memory_space<vmem>>, vector<24x100xbf16>
    %12 = arith.extf %11 : vector<24x100xbf16> to vector<24x100xf32>
    %c0_15 = arith.constant 0 : index
    %c0_16 = arith.constant 0 : index
    %13 = vector.load %arg3[%c0_15, %c0_16] : memref<24x1xf32, #tpu.memory_space<vmem>>, vector<24x1xf32>
    %14 = vector.broadcast %13 : vector<24x1xf32> to vector<24x100xf32>
    %15 = arith.mulf %12, %14 : vector<24x100xf32>
    %c0_17 = arith.constant 0 : index
    %c0_18 = arith.constant 0 : index
    %16 = vector.load %arg4[%c0_17, %c0_18] : memref<24x1xf32, #tpu.memory_space<vmem>>, vector<24x1xf32>
    %17 = vector.broadcast %16 : vector<24x1xf32> to vector<24x100xf32>
    %18 = arith.addf %15, %17 : vector<24x100xf32>
    %cst_19 = arith.constant 0.000000e+00 : f32
    %19 = vector.broadcast %cst_19 : f32 to vector<24x100xf32>
    %20 = arith.maximumf %18, %19 : vector<24x100xf32>
    %21 = vector.broadcast %6 : vector<1x100xf32> to vector<24x100xf32>
    %22 = arith.mulf %20, %21 : vector<24x100xf32>
    %23 = arith.truncf %22 : vector<24x100xf32> to vector<24x100xbf16>
    %c0_20 = arith.constant 0 : index
    %c11 = arith.constant 11 : index
    %24 = vector.load %arg13[%c0_20, %c11] : memref<28x122xbf16, #tpu.memory_space<vmem>>, vector<24x100xbf16>
    tpu.vector_store %arg13[%c0_20, %c11], %23 {strides = array<i32>} : memref<28x122xbf16, #tpu.memory_space<vmem>>, vector<24x100xbf16>,
    %cst_21 = arith.constant 0.000000e+00 : f32
    %25 = vector.broadcast %cst_21 : f32 to vector<4x100xf32>
    %c0_22 = arith.constant 0 : index
    %c0_23 = arith.constant 0 : index
    %c0_24 = arith.constant 0 : index
    %26 = vector.load %arg5[%c0_22, %c0_23, %c0_24] : memref<9x4x24xbf16, #tpu.memory_space<vmem>>, vector<1x4x24xbf16>
    %27 = vector.shape_cast %26 : vector<1x4x24xbf16> to vector<4x24xbf16>
    %c0_25 = arith.constant 0 : index
    %c0_26 = arith.constant 0 : index
    %28 = vector.load %arg13[%c0_25, %c0_26] : memref<28x122xbf16, #tpu.memory_space<vmem>>, vector<24x100xbf16>
    %cst_27 = arith.constant dense<0.000000e+00> : vector<4x100xf32>
    %29 = tpu.matmul %27, %28, %cst_27 {dimension_numbers = #tpu.dot_dimension_numbers<[1], [0], [0], [1], [0, 0, 1, 1], [], []>} : vector<4x24xbf16>, vector<24x100xbf16>, vector<4x100xf32> -> vector<4x100xf32>
    %30 = arith.addf %25, %29 : vector<4x100xf32>
    %c1 = arith.constant 1 : index
    %c0_28 = arith.constant 0 : index
    %c0_29 = arith.constant 0 : index
    %31 = vector.load %arg5[%c1, %c0_28, %c0_29] : memref<9x4x24xbf16, #tpu.memory_space<vmem>>, vector<1x4x24xbf16>
    %32 = vector.shape_cast %31 : vector<1x4x24xbf16> to vector<4x24xbf16>
    %c0_30 = arith.constant 0 : index
    %c1_31 = arith.constant 1 : index
    %33 = vector.load %arg13[%c0_30, %c1_31] : memref<28x122xbf16, #tpu.memory_space<vmem>>, vector<24x100xbf16>
    %cst_32 = arith.constant dense<0.000000e+00> : vector<4x100xf32>
    %34 = tpu.matmul %32, %33, %cst_32 {dimension_numbers = #tpu.dot_dimension_numbers<[1], [0], [0], [1], [0, 0, 1, 1], [], []>} : vector<4x24xbf16>, vector<24x100xbf16>, vector<4x100xf32> -> vector<4x100xf32>
    %35 = arith.addf %30, %34 : vector<4x100xf32>
    %c2 = arith.constant 2 : index
    %c0_33 = arith.constant 0 : index
    %c0_34 = arith.constant 0 : index
    %36 = vector.load %arg5[%c2, %c0_33, %c0_34] : memref<9x4x24xbf16, #tpu.memory_space<vmem>>, vector<1x4x24xbf16>
    %37 = vector.shape_cast %36 : vector<1x4x24xbf16> to vector<4x24xbf16>
    %c0_35 = arith.constant 0 : index
    %c2_36 = arith.constant 2 : index
    %38 = vector.load %arg13[%c0_35, %c2_36] : memref<28x122xbf16, #tpu.memory_space<vmem>>, vector<24x100xbf16>
    %cst_37 = arith.constant dense<0.000000e+00> : vector<4x100xf32>
    %39 = tpu.matmul %37, %38, %cst_37 {dimension_numbers = #tpu.dot_dimension_numbers<[1], [0], [0], [1], [0, 0, 1, 1], [], []>} : vector<4x24xbf16>, vector<24x100xbf16>, vector<4x100xf32> -> vector<4x100xf32>
    %40 = arith.addf %35, %39 : vector<4x100xf32>
    %c3 = arith.constant 3 : index
    %c0_38 = arith.constant 0 : index
    %c0_39 = arith.constant 0 : index
    %41 = vector.load %arg5[%c3, %c0_38, %c0_39] : memref<9x4x24xbf16, #tpu.memory_space<vmem>>, vector<1x4x24xbf16>
    %42 = vector.shape_cast %41 : vector<1x4x24xbf16> to vector<4x24xbf16>
    %c0_40 = arith.constant 0 : index
    %c10 = arith.constant 10 : index
    %43 = vector.load %arg13[%c0_40, %c10] : memref<28x122xbf16, #tpu.memory_space<vmem>>, vector<24x100xbf16>
    %cst_41 = arith.constant dense<0.000000e+00> : vector<4x100xf32>
    %44 = tpu.matmul %42, %43, %cst_41 {dimension_numbers = #tpu.dot_dimension_numbers<[1], [0], [0], [1], [0, 0, 1, 1], [], []>} : vector<4x24xbf16>, vector<24x100xbf16>, vector<4x100xf32> -> vector<4x100xf32>
    %45 = arith.addf %40, %44 : vector<4x100xf32>
    %c4 = arith.constant 4 : index
    %c0_42 = arith.constant 0 : index
    %c0_43 = arith.constant 0 : index
    %46 = vector.load %arg5[%c4, %c0_42, %c0_43] : memref<9x4x24xbf16, #tpu.memory_space<vmem>>, vector<1x4x24xbf16>
    %47 = vector.shape_cast %46 : vector<1x4x24xbf16> to vector<4x24xbf16>
    %c0_44 = arith.constant 0 : index
    %c11_45 = arith.constant 11 : index
    %48 = vector.load %arg13[%c0_44, %c11_45] : memref<28x122xbf16, #tpu.memory_space<vmem>>, vector<24x100xbf16>
    %cst_46 = arith.constant dense<0.000000e+00> : vector<4x100xf32>
    %49 = tpu.matmul %47, %48, %cst_46 {dimension_numbers = #tpu.dot_dimension_numbers<[1], [0], [0], [1], [0, 0, 1, 1], [], []>} : vector<4x24xbf16>, vector<24x100xbf16>, vector<4x100xf32> -> vector<4x100xf32>
    %50 = arith.addf %45, %49 : vector<4x100xf32>
    %c5 = arith.constant 5 : index
    %c0_47 = arith.constant 0 : index
    %c0_48 = arith.constant 0 : index
    %51 = vector.load %arg5[%c5, %c0_47, %c0_48] : memref<9x4x24xbf16, #tpu.memory_space<vmem>>, vector<1x4x24xbf16>
    %52 = vector.shape_cast %51 : vector<1x4x24xbf16> to vector<4x24xbf16>
    %c0_49 = arith.constant 0 : index
    %c12 = arith.constant 12 : index
    %53 = vector.load %arg13[%c0_49, %c12] : memref<28x122xbf16, #tpu.memory_space<vmem>>, vector<24x100xbf16>
    %cst_50 = arith.constant dense<0.000000e+00> : vector<4x100xf32>
    %54 = tpu.matmul %52, %53, %cst_50 {dimension_numbers = #tpu.dot_dimension_numbers<[1], [0], [0], [1], [0, 0, 1, 1], [], []>} : vector<4x24xbf16>, vector<24x100xbf16>, vector<4x100xf32> -> vector<4x100xf32>
    %55 = arith.addf %50, %54 : vector<4x100xf32>
    %c6 = arith.constant 6 : index
    %c0_51 = arith.constant 0 : index
    %c0_52 = arith.constant 0 : index
    %56 = vector.load %arg5[%c6, %c0_51, %c0_52] : memref<9x4x24xbf16, #tpu.memory_space<vmem>>, vector<1x4x24xbf16>
    %57 = vector.shape_cast %56 : vector<1x4x24xbf16> to vector<4x24xbf16>
    %c0_53 = arith.constant 0 : index
    %c20 = arith.constant 20 : index
    %58 = vector.load %arg13[%c0_53, %c20] : memref<28x122xbf16, #tpu.memory_space<vmem>>, vector<24x100xbf16>
    %cst_54 = arith.constant dense<0.000000e+00> : vector<4x100xf32>
    %59 = tpu.matmul %57, %58, %cst_54 {dimension_numbers = #tpu.dot_dimension_numbers<[1], [0], [0], [1], [0, 0, 1, 1], [], []>} : vector<4x24xbf16>, vector<24x100xbf16>, vector<4x100xf32> -> vector<4x100xf32>
    %60 = arith.addf %55, %59 : vector<4x100xf32>
    %c7 = arith.constant 7 : index
    %c0_55 = arith.constant 0 : index
    %c0_56 = arith.constant 0 : index
    %61 = vector.load %arg5[%c7, %c0_55, %c0_56] : memref<9x4x24xbf16, #tpu.memory_space<vmem>>, vector<1x4x24xbf16>
    %62 = vector.shape_cast %61 : vector<1x4x24xbf16> to vector<4x24xbf16>
    %c0_57 = arith.constant 0 : index
    %c21 = arith.constant 21 : index
    %63 = vector.load %arg13[%c0_57, %c21] : memref<28x122xbf16, #tpu.memory_space<vmem>>, vector<24x100xbf16>
    %cst_58 = arith.constant dense<0.000000e+00> : vector<4x100xf32>
    %64 = tpu.matmul %62, %63, %cst_58 {dimension_numbers = #tpu.dot_dimension_numbers<[1], [0], [0], [1], [0, 0, 1, 1], [], []>} : vector<4x24xbf16>, vector<24x100xbf16>, vector<4x100xf32> -> vector<4x100xf32>
    %65 = arith.addf %60, %64 : vector<4x100xf32>
    %c8 = arith.constant 8 : index
    %c0_59 = arith.constant 0 : index
    %c0_60 = arith.constant 0 : index
    %66 = vector.load %arg5[%c8, %c0_59, %c0_60] : memref<9x4x24xbf16, #tpu.memory_space<vmem>>, vector<1x4x24xbf16>
    %67 = vector.shape_cast %66 : vector<1x4x24xbf16> to vector<4x24xbf16>
    %c0_61 = arith.constant 0 : index
    %c22 = arith.constant 22 : index
    %68 = vector.load %arg13[%c0_61, %c22] : memref<28x122xbf16, #tpu.memory_space<vmem>>, vector<24x100xbf16>
    %cst_62 = arith.constant dense<0.000000e+00> : vector<4x100xf32>
    %69 = tpu.matmul %67, %68, %cst_62 {dimension_numbers = #tpu.dot_dimension_numbers<[1], [0], [0], [1], [0, 0, 1, 1], [], []>} : vector<4x24xbf16>, vector<24x100xbf16>, vector<4x100xf32> -> vector<4x100xf32>
    %70 = arith.addf %65, %69 : vector<4x100xf32>
    %c0_63 = arith.constant 0 : index
    %c0_64 = arith.constant 0 : index
    %71 = vector.load %arg6[%c0_63, %c0_64] : memref<4x1xf32, #tpu.memory_space<vmem>>, vector<4x1xf32>
    %72 = vector.broadcast %71 : vector<4x1xf32> to vector<4x100xf32>
    %73 = arith.addf %70, %72 : vector<4x100xf32>
    %74 = vector.broadcast %6 : vector<1x100xf32> to vector<4x100xf32>
    %75 = arith.mulf %73, %74 : vector<4x100xf32>
    %76 = arith.truncf %75 : vector<4x100xf32> to vector<4x100xbf16>
    %c0_65 = arith.constant 0 : index
    %c24 = arith.constant 24 : index
    %c0_66 = arith.constant 0 : index
    %77 = vector.load %arg11[%c0_65, %c24, %c0_66] : memref<1x32x100xbf16, #tpu.memory_space<vmem>>, vector<1x4x100xbf16>
    %78 = vector.shape_cast %77 : vector<1x4x100xbf16> to vector<4x100xbf16>
    %79 = vector.shape_cast %76 : vector<4x100xbf16> to vector<1x4x100xbf16>
    tpu.vector_store %arg11[%c0_65, %c24, %c0_66], %79 {strides = array<i32>} : memref<1x32x100xbf16, #tpu.memory_space<vmem>>, vector<1x4x100xbf16>,
    %c24_67 = arith.constant 24 : index
    %c0_68 = arith.constant 0 : index
    %80 = vector.load %arg12[%c24_67, %c0_68] : memref<28x100xbf16, #tpu.memory_space<vmem>>, vector<4x100xbf16>
    tpu.vector_store %arg12[%c24_67, %c0_68], %76 {strides = array<i32>} : memref<28x100xbf16, #tpu.memory_space<vmem>>, vector<4x100xbf16>,
    %c0_69 = arith.constant 0 : index
    %c0_70 = arith.constant 0 : index
    %81 = vector.load %arg12[%c0_69, %c0_70] : memref<28x100xbf16, #tpu.memory_space<vmem>>, vector<28x100xbf16>
    %82 = arith.extf %81 : vector<28x100xbf16> to vector<28x100xf32>
    %c0_71 = arith.constant 0 : index
    %c0_72 = arith.constant 0 : index
    %83 = vector.load %arg7[%c0_71, %c0_72] : memref<28x1xf32, #tpu.memory_space<vmem>>, vector<28x1xf32>
    %84 = vector.broadcast %83 : vector<28x1xf32> to vector<28x100xf32>
    %85 = arith.mulf %82, %84 : vector<28x100xf32>
    %c0_73 = arith.constant 0 : index
    %c0_74 = arith.constant 0 : index
    %86 = vector.load %arg8[%c0_73, %c0_74] : memref<28x1xf32, #tpu.memory_space<vmem>>, vector<28x1xf32>
    %87 = vector.broadcast %86 : vector<28x1xf32> to vector<28x100xf32>
    %88 = arith.addf %85, %87 : vector<28x100xf32>
    %cst_75 = arith.constant 0.000000e+00 : f32
    %89 = vector.broadcast %cst_75 : f32 to vector<28x100xf32>
    %90 = arith.maximumf %88, %89 : vector<28x100xf32>
    %91 = vector.broadcast %6 : vector<1x100xf32> to vector<28x100xf32>
    %92 = arith.mulf %90, %91 : vector<28x100xf32>
    %93 = arith.truncf %92 : vector<28x100xf32> to vector<28x100xbf16>
    %c0_76 = arith.constant 0 : index
    %c11_77 = arith.constant 11 : index
    %94 = vector.load %arg13[%c0_76, %c11_77] : memref<28x122xbf16, #tpu.memory_space<vmem>>, vector<28x100xbf16>
    tpu.vector_store %arg13[%c0_76, %c11_77], %93 {strides = array<i32>} : memref<28x122xbf16, #tpu.memory_space<vmem>>, vector<28x100xbf16>,
    %cst_78 = arith.constant 0.000000e+00 : f32
    %95 = vector.broadcast %cst_78 : f32 to vector<4x100xf32>
    %c0_79 = arith.constant 0 : index
    %c0_80 = arith.constant 0 : index
    %c0_81 = arith.constant 0 : index
    %96 = vector.load %arg9[%c0_79, %c0_80, %c0_81] : memref<9x4x28xbf16, #tpu.memory_space<vmem>>, vector<1x4x28xbf16>
    %97 = vector.shape_cast %96 : vector<1x4x28xbf16> to vector<4x28xbf16>
    %c0_82 = arith.constant 0 : index
    %c0_83 = arith.constant 0 : index
    %98 = vector.load %arg13[%c0_82, %c0_83] : memref<28x122xbf16, #tpu.memory_space<vmem>>, vector<28x100xbf16>
    %cst_84 = arith.constant dense<0.000000e+00> : vector<4x100xf32>
    %99 = tpu.matmul %97, %98, %cst_84 {dimension_numbers = #tpu.dot_dimension_numbers<[1], [0], [0], [1], [0, 0, 1, 1], [], []>} : vector<4x28xbf16>, vector<28x100xbf16>, vector<4x100xf32> -> vector<4x100xf32>
    %100 = arith.addf %95, %99 : vector<4x100xf32>
    %c1_85 = arith.constant 1 : index
    %c0_86 = arith.constant 0 : index
    %c0_87 = arith.constant 0 : index
    %101 = vector.load %arg9[%c1_85, %c0_86, %c0_87] : memref<9x4x28xbf16, #tpu.memory_space<vmem>>, vector<1x4x28xbf16>
    %102 = vector.shape_cast %101 : vector<1x4x28xbf16> to vector<4x28xbf16>
    %c0_88 = arith.constant 0 : index
    %c1_89 = arith.constant 1 : index
    %103 = vector.load %arg13[%c0_88, %c1_89] : memref<28x122xbf16, #tpu.memory_space<vmem>>, vector<28x100xbf16>
    %cst_90 = arith.constant dense<0.000000e+00> : vector<4x100xf32>
    %104 = tpu.matmul %102, %103, %cst_90 {dimension_numbers = #tpu.dot_dimension_numbers<[1], [0], [0], [1], [0, 0, 1, 1], [], []>} : vector<4x28xbf16>, vector<28x100xbf16>, vector<4x100xf32> -> vector<4x100xf32>
    %105 = arith.addf %100, %104 : vector<4x100xf32>
    %c2_91 = arith.constant 2 : index
    %c0_92 = arith.constant 0 : index
    %c0_93 = arith.constant 0 : index
    %106 = vector.load %arg9[%c2_91, %c0_92, %c0_93] : memref<9x4x28xbf16, #tpu.memory_space<vmem>>, vector<1x4x28xbf16>
    %107 = vector.shape_cast %106 : vector<1x4x28xbf16> to vector<4x28xbf16>
    %c0_94 = arith.constant 0 : index
    %c2_95 = arith.constant 2 : index
    %108 = vector.load %arg13[%c0_94, %c2_95] : memref<28x122xbf16, #tpu.memory_space<vmem>>, vector<28x100xbf16>
    %cst_96 = arith.constant dense<0.000000e+00> : vector<4x100xf32>
    %109 = tpu.matmul %107, %108, %cst_96 {dimension_numbers = #tpu.dot_dimension_numbers<[1], [0], [0], [1], [0, 0, 1, 1], [], []>} : vector<4x28xbf16>, vector<28x100xbf16>, vector<4x100xf32> -> vector<4x100xf32>
    %110 = arith.addf %105, %109 : vector<4x100xf32>
    %c3_97 = arith.constant 3 : index
    %c0_98 = arith.constant 0 : index
    %c0_99 = arith.constant 0 : index
    %111 = vector.load %arg9[%c3_97, %c0_98, %c0_99] : memref<9x4x28xbf16, #tpu.memory_space<vmem>>, vector<1x4x28xbf16>
    %112 = vector.shape_cast %111 : vector<1x4x28xbf16> to vector<4x28xbf16>
    %c0_100 = arith.constant 0 : index
    %c10_101 = arith.constant 10 : index
    %113 = vector.load %arg13[%c0_100, %c10_101] : memref<28x122xbf16, #tpu.memory_space<vmem>>, vector<28x100xbf16>
    %cst_102 = arith.constant dense<0.000000e+00> : vector<4x100xf32>
    %114 = tpu.matmul %112, %113, %cst_102 {dimension_numbers = #tpu.dot_dimension_numbers<[1], [0], [0], [1], [0, 0, 1, 1], [], []>} : vector<4x28xbf16>, vector<28x100xbf16>, vector<4x100xf32> -> vector<4x100xf32>
    %115 = arith.addf %110, %114 : vector<4x100xf32>
    %c4_103 = arith.constant 4 : index
    %c0_104 = arith.constant 0 : index
    %c0_105 = arith.constant 0 : index
    %116 = vector.load %arg9[%c4_103, %c0_104, %c0_105] : memref<9x4x28xbf16, #tpu.memory_space<vmem>>, vector<1x4x28xbf16>
    %117 = vector.shape_cast %116 : vector<1x4x28xbf16> to vector<4x28xbf16>
    %c0_106 = arith.constant 0 : index
    %c11_107 = arith.constant 11 : index
    %118 = vector.load %arg13[%c0_106, %c11_107] : memref<28x122xbf16, #tpu.memory_space<vmem>>, vector<28x100xbf16>
    %cst_108 = arith.constant dense<0.000000e+00> : vector<4x100xf32>
    %119 = tpu.matmul %117, %118, %cst_108 {dimension_numbers = #tpu.dot_dimension_numbers<[1], [0], [0], [1], [0, 0, 1, 1], [], []>} : vector<4x28xbf16>, vector<28x100xbf16>, vector<4x100xf32> -> vector<4x100xf32>
    %120 = arith.addf %115, %119 : vector<4x100xf32>
    %c5_109 = arith.constant 5 : index
    %c0_110 = arith.constant 0 : index
    %c0_111 = arith.constant 0 : index
    %121 = vector.load %arg9[%c5_109, %c0_110, %c0_111] : memref<9x4x28xbf16, #tpu.memory_space<vmem>>, vector<1x4x28xbf16>
    %122 = vector.shape_cast %121 : vector<1x4x28xbf16> to vector<4x28xbf16>
    %c0_112 = arith.constant 0 : index
    %c12_113 = arith.constant 12 : index
    %123 = vector.load %arg13[%c0_112, %c12_113] : memref<28x122xbf16, #tpu.memory_space<vmem>>, vector<28x100xbf16>
    %cst_114 = arith.constant dense<0.000000e+00> : vector<4x100xf32>
    %124 = tpu.matmul %122, %123, %cst_114 {dimension_numbers = #tpu.dot_dimension_numbers<[1], [0], [0], [1], [0, 0, 1, 1], [], []>} : vector<4x28xbf16>, vector<28x100xbf16>, vector<4x100xf32> -> vector<4x100xf32>
    %125 = arith.addf %120, %124 : vector<4x100xf32>
    %c6_115 = arith.constant 6 : index
    %c0_116 = arith.constant 0 : index
    %c0_117 = arith.constant 0 : index
    %126 = vector.load %arg9[%c6_115, %c0_116, %c0_117] : memref<9x4x28xbf16, #tpu.memory_space<vmem>>, vector<1x4x28xbf16>
    %127 = vector.shape_cast %126 : vector<1x4x28xbf16> to vector<4x28xbf16>
    %c0_118 = arith.constant 0 : index
    %c20_119 = arith.constant 20 : index
    %128 = vector.load %arg13[%c0_118, %c20_119] : memref<28x122xbf16, #tpu.memory_space<vmem>>, vector<28x100xbf16>
    %cst_120 = arith.constant dense<0.000000e+00> : vector<4x100xf32>
    %129 = tpu.matmul %127, %128, %cst_120 {dimension_numbers = #tpu.dot_dimension_numbers<[1], [0], [0], [1], [0, 0, 1, 1], [], []>} : vector<4x28xbf16>, vector<28x100xbf16>, vector<4x100xf32> -> vector<4x100xf32>
    %130 = arith.addf %125, %129 : vector<4x100xf32>
    %c7_121 = arith.constant 7 : index
    %c0_122 = arith.constant 0 : index
    %c0_123 = arith.constant 0 : index
    %131 = vector.load %arg9[%c7_121, %c0_122, %c0_123] : memref<9x4x28xbf16, #tpu.memory_space<vmem>>, vector<1x4x28xbf16>
    %132 = vector.shape_cast %131 : vector<1x4x28xbf16> to vector<4x28xbf16>
    %c0_124 = arith.constant 0 : index
    %c21_125 = arith.constant 21 : index
    %133 = vector.load %arg13[%c0_124, %c21_125] : memref<28x122xbf16, #tpu.memory_space<vmem>>, vector<28x100xbf16>
    %cst_126 = arith.constant dense<0.000000e+00> : vector<4x100xf32>
    %134 = tpu.matmul %132, %133, %cst_126 {dimension_numbers = #tpu.dot_dimension_numbers<[1], [0], [0], [1], [0, 0, 1, 1], [], []>} : vector<4x28xbf16>, vector<28x100xbf16>, vector<4x100xf32> -> vector<4x100xf32>
    %135 = arith.addf %130, %134 : vector<4x100xf32>
    %c8_127 = arith.constant 8 : index
    %c0_128 = arith.constant 0 : index
    %c0_129 = arith.constant 0 : index
    %136 = vector.load %arg9[%c8_127, %c0_128, %c0_129] : memref<9x4x28xbf16, #tpu.memory_space<vmem>>, vector<1x4x28xbf16>
    %137 = vector.shape_cast %136 : vector<1x4x28xbf16> to vector<4x28xbf16>
    %c0_130 = arith.constant 0 : index
    %c22_131 = arith.constant 22 : index
    %138 = vector.load %arg13[%c0_130, %c22_131] : memref<28x122xbf16, #tpu.memory_space<vmem>>, vector<28x100xbf16>
    %cst_132 = arith.constant dense<0.000000e+00> : vector<4x100xf32>
    %139 = tpu.matmul %137, %138, %cst_132 {dimension_numbers = #tpu.dot_dimension_numbers<[1], [0], [0], [1], [0, 0, 1, 1], [], []>} : vector<4x28xbf16>, vector<28x100xbf16>, vector<4x100xf32> -> vector<4x100xf32>
    %140 = arith.addf %135, %139 : vector<4x100xf32>
    %c0_133 = arith.constant 0 : index
    %c0_134 = arith.constant 0 : index
    %141 = vector.load %arg10[%c0_133, %c0_134] : memref<4x1xf32, #tpu.memory_space<vmem>>, vector<4x1xf32>
    %142 = vector.broadcast %141 : vector<4x1xf32> to vector<4x100xf32>
    %143 = arith.addf %140, %142 : vector<4x100xf32>
    %144 = vector.broadcast %6 : vector<1x100xf32> to vector<4x100xf32>
    %145 = arith.mulf %143, %144 : vector<4x100xf32>
    %146 = arith.truncf %145 : vector<4x100xf32> to vector<4x100xbf16>
    %c0_135 = arith.constant 0 : index
    %c28 = arith.constant 28 : index
    %c0_136 = arith.constant 0 : index
    %147 = vector.load %arg11[%c0_135, %c28, %c0_136] : memref<1x32x100xbf16, #tpu.memory_space<vmem>>, vector<1x4x100xbf16>
    %148 = vector.shape_cast %147 : vector<1x4x100xbf16> to vector<4x100xbf16>
    %149 = vector.shape_cast %146 : vector<4x100xbf16> to vector<1x4x100xbf16>
    tpu.vector_store %arg11[%c0_135, %c28, %c0_136], %149 {strides = array<i32>} : memref<1x32x100xbf16, #tpu.memory_space<vmem>>, vector<1x4x100xbf16>,
    return
  }
  func.func @transform_0(%arg0: i32) -> (i32, i32, i32) {
    %c0_i32 = arith.constant 0 : i32
    %c0_i32_0 = arith.constant 0 : i32
    %c0_i32_1 = arith.constant 0 : i32
    return %arg0, %c0_i32, %c0_i32_0 : i32, i32, i32
  }
  func.func @transform_1(%arg0: i32) -> (i32, i32) {
    %c0_i32 = arith.constant 0 : i32
    %c0_i32_0 = arith.constant 0 : i32
    %c0_i32_1 = arith.constant 0 : i32
    return %c0_i32, %c0_i32_0 : i32, i32
  }
  func.func @transform_2(%arg0: i32) -> (i32, i32) {
    %c0_i32 = arith.constant 0 : i32
    %c0_i32_0 = arith.constant 0 : i32
    %c0_i32_1 = arith.constant 0 : i32
    return %c0_i32, %c0_i32_0 : i32, i32
  }
  func.func @transform_3(%arg0: i32) -> (i32, i32) {
    %c0_i32 = arith.constant 0 : i32
    %c0_i32_0 = arith.constant 0 : i32
    %c0_i32_1 = arith.constant 0 : i32
    return %c0_i32, %c0_i32_0 : i32, i32
  }
  func.func @transform_4(%arg0: i32) -> (i32, i32, i32) {
    %c0_i32 = arith.constant 0 : i32
    %c0_i32_0 = arith.constant 0 : i32
    %c0_i32_1 = arith.constant 0 : i32
    %c0_i32_2 = arith.constant 0 : i32
    return %c0_i32, %c0_i32_0, %c0_i32_1 : i32, i32, i32
  }
  func.func @transform_5(%arg0: i32) -> (i32, i32) {
    %c0_i32 = arith.constant 0 : i32
    %c0_i32_0 = arith.constant 0 : i32
    %c0_i32_1 = arith.constant 0 : i32
    return %c0_i32, %c0_i32_0 : i32, i32
  }
  func.func @transform_6(%arg0: i32) -> (i32, i32) {
    %c0_i32 = arith.constant 0 : i32
    %c0_i32_0 = arith.constant 0 : i32
    %c0_i32_1 = arith.constant 0 : i32
    return %c0_i32, %c0_i32_0 : i32, i32
  }
  func.func @transform_7(%arg0: i32) -> (i32, i32) {
    %c0_i32 = arith.constant 0 : i32
    %c0_i32_0 = arith.constant 0 : i32
    %c0_i32_1 = arith.constant 0 : i32
    return %c0_i32, %c0_i32_0 : i32, i32
  }
  func.func @transform_8(%arg0: i32) -> (i32, i32, i32) {
    %c0_i32 = arith.constant 0 : i32
    %c0_i32_0 = arith.constant 0 : i32
    %c0_i32_1 = arith.constant 0 : i32
    %c0_i32_2 = arith.constant 0 : i32
    return %c0_i32, %c0_i32_0, %c0_i32_1 : i32, i32, i32
  }
  func.func @transform_9(%arg0: i32) -> (i32, i32) {
    %c0_i32 = arith.constant 0 : i32
    %c0_i32_0 = arith.constant 0 : i32
    %c0_i32_1 = arith.constant 0 : i32
    return %c0_i32, %c0_i32_0 : i32, i32
  }
  func.func @transform_10(%arg0: i32) -> (i32, i32, i32) {
    %c0_i32 = arith.constant 0 : i32
    %c0_i32_0 = arith.constant 0 : i32
    %c0_i32_1 = arith.constant 0 : i32
    return %arg0, %c0_i32, %c0_i32_0 : i32, i32, i32
  }
}

module attributes {stable_mosaic.version = 11 : i64} {
  func.func @_td_kernel(%arg0: i32, %arg1: memref<1x4x32x16xbf16, #tpu.memory_space<vmem>>, %arg2: memref<32x1xf32, #tpu.memory_space<vmem>>, %arg3: memref<32x1xf32, #tpu.memory_space<vmem>>, %arg4: memref<32x32xbf16, #tpu.memory_space<vmem>>, %arg5: memref<32x1xf32, #tpu.memory_space<vmem>>, %arg6: memref<1x32x16xbf16, #tpu.memory_space<vmem>>) attributes {dimension_semantics = [#tpu.dimension_semantics<parallel>], iteration_bounds = array<i64: 2>, scalar_prefetch = 0 : i64, scratch_operands = 0 : i64, tpu.core_type = #tpu.core_type<tc>, window_params = [{transform_indices = @transform_0, window_bounds = array<i64: 1, 4, 32, 16>}, {pipeline_mode = #tpu.pipeline_mode<synchronous>, transform_indices = @transform_1, window_bounds = array<i64: 32, 1>}, {pipeline_mode = #tpu.pipeline_mode<synchronous>, transform_indices = @transform_2, window_bounds = array<i64: 32, 1>}, {pipeline_mode = #tpu.pipeline_mode<synchronous>, transform_indices = @transform_3, window_bounds = array<i64: 32, 32>}, {pipeline_mode = #tpu.pipeline_mode<synchronous>, transform_indices = @transform_4, window_bounds = array<i64: 32, 1>}, {transform_indices = @transform_5, window_bounds = array<i64: 1, 32, 16>}]} {
    %c0 = arith.constant 0 : index
    %c0_0 = arith.constant 0 : index
    %c0_1 = arith.constant 0 : index
    %c0_2 = arith.constant 0 : index
    %0 = vector.load %arg1[%c0, %c0_0, %c0_1, %c0_2] : memref<1x4x32x16xbf16, #tpu.memory_space<vmem>>, vector<1x1x32x16xbf16>
    %1 = vector.shape_cast %0 : vector<1x1x32x16xbf16> to vector<32x16xbf16>
    %2 = arith.extf %1 : vector<32x16xbf16> to vector<32x16xf32>
    %c0_3 = arith.constant 0 : index
    %c0_4 = arith.constant 0 : index
    %3 = vector.load %arg2[%c0_3, %c0_4] : memref<32x1xf32, #tpu.memory_space<vmem>>, vector<32x1xf32>
    %4 = vector.broadcast %3 : vector<32x1xf32> to vector<32x16xf32>
    %5 = arith.mulf %2, %4 : vector<32x16xf32>
    %c0_5 = arith.constant 0 : index
    %c0_6 = arith.constant 0 : index
    %6 = vector.load %arg3[%c0_5, %c0_6] : memref<32x1xf32, #tpu.memory_space<vmem>>, vector<32x1xf32>
    %7 = vector.broadcast %6 : vector<32x1xf32> to vector<32x16xf32>
    %8 = arith.addf %5, %7 : vector<32x16xf32>
    %cst = arith.constant 0.000000e+00 : f32
    %9 = vector.broadcast %cst : f32 to vector<32x16xf32>
    %10 = arith.maximumf %8, %9 : vector<32x16xf32>
    %c0_7 = arith.constant 0 : index
    %c0_8 = arith.constant 0 : index
    %11 = vector.load %arg4[%c0_7, %c0_8] : memref<32x32xbf16, #tpu.memory_space<vmem>>, vector<32x32xbf16>
    %12 = arith.truncf %10 : vector<32x16xf32> to vector<32x16xbf16>
    %cst_9 = arith.constant dense<0.000000e+00> : vector<32x16xf32>
    %13 = tpu.matmul %11, %12, %cst_9 {dimension_numbers = #tpu.dot_dimension_numbers<[1], [0], [0], [1], [0, 0, 1, 1], [], []>} : vector<32x32xbf16>, vector<32x16xbf16>, vector<32x16xf32> -> vector<32x16xf32>
    %c0_10 = arith.constant 0 : index
    %c1 = arith.constant 1 : index
    %c0_11 = arith.constant 0 : index
    %c0_12 = arith.constant 0 : index
    %14 = vector.load %arg1[%c0_10, %c1, %c0_11, %c0_12] : memref<1x4x32x16xbf16, #tpu.memory_space<vmem>>, vector<1x1x32x16xbf16>
    %15 = vector.shape_cast %14 : vector<1x1x32x16xbf16> to vector<32x16xbf16>
    %16 = arith.extf %15 : vector<32x16xbf16> to vector<32x16xf32>
    %c0_13 = arith.constant 0 : index
    %c0_14 = arith.constant 0 : index
    %17 = vector.load %arg2[%c0_13, %c0_14] : memref<32x1xf32, #tpu.memory_space<vmem>>, vector<32x1xf32>
    %18 = vector.broadcast %17 : vector<32x1xf32> to vector<32x16xf32>
    %19 = arith.mulf %16, %18 : vector<32x16xf32>
    %c0_15 = arith.constant 0 : index
    %c0_16 = arith.constant 0 : index
    %20 = vector.load %arg3[%c0_15, %c0_16] : memref<32x1xf32, #tpu.memory_space<vmem>>, vector<32x1xf32>
    %21 = vector.broadcast %20 : vector<32x1xf32> to vector<32x16xf32>
    %22 = arith.addf %19, %21 : vector<32x16xf32>
    %cst_17 = arith.constant 0.000000e+00 : f32
    %23 = vector.broadcast %cst_17 : f32 to vector<32x16xf32>
    %24 = arith.maximumf %22, %23 : vector<32x16xf32>
    %c0_18 = arith.constant 0 : index
    %c0_19 = arith.constant 0 : index
    %25 = vector.load %arg4[%c0_18, %c0_19] : memref<32x32xbf16, #tpu.memory_space<vmem>>, vector<32x32xbf16>
    %26 = arith.truncf %24 : vector<32x16xf32> to vector<32x16xbf16>
    %cst_20 = arith.constant dense<0.000000e+00> : vector<32x16xf32>
    %27 = tpu.matmul %25, %26, %cst_20 {dimension_numbers = #tpu.dot_dimension_numbers<[1], [0], [0], [1], [0, 0, 1, 1], [], []>} : vector<32x32xbf16>, vector<32x16xbf16>, vector<32x16xf32> -> vector<32x16xf32>
    %28 = arith.maximumf %13, %27 : vector<32x16xf32>
    %c0_21 = arith.constant 0 : index
    %c2 = arith.constant 2 : index
    %c0_22 = arith.constant 0 : index
    %c0_23 = arith.constant 0 : index
    %29 = vector.load %arg1[%c0_21, %c2, %c0_22, %c0_23] : memref<1x4x32x16xbf16, #tpu.memory_space<vmem>>, vector<1x1x32x16xbf16>
    %30 = vector.shape_cast %29 : vector<1x1x32x16xbf16> to vector<32x16xbf16>
    %31 = arith.extf %30 : vector<32x16xbf16> to vector<32x16xf32>
    %c0_24 = arith.constant 0 : index
    %c0_25 = arith.constant 0 : index
    %32 = vector.load %arg2[%c0_24, %c0_25] : memref<32x1xf32, #tpu.memory_space<vmem>>, vector<32x1xf32>
    %33 = vector.broadcast %32 : vector<32x1xf32> to vector<32x16xf32>
    %34 = arith.mulf %31, %33 : vector<32x16xf32>
    %c0_26 = arith.constant 0 : index
    %c0_27 = arith.constant 0 : index
    %35 = vector.load %arg3[%c0_26, %c0_27] : memref<32x1xf32, #tpu.memory_space<vmem>>, vector<32x1xf32>
    %36 = vector.broadcast %35 : vector<32x1xf32> to vector<32x16xf32>
    %37 = arith.addf %34, %36 : vector<32x16xf32>
    %cst_28 = arith.constant 0.000000e+00 : f32
    %38 = vector.broadcast %cst_28 : f32 to vector<32x16xf32>
    %39 = arith.maximumf %37, %38 : vector<32x16xf32>
    %c0_29 = arith.constant 0 : index
    %c0_30 = arith.constant 0 : index
    %40 = vector.load %arg4[%c0_29, %c0_30] : memref<32x32xbf16, #tpu.memory_space<vmem>>, vector<32x32xbf16>
    %41 = arith.truncf %39 : vector<32x16xf32> to vector<32x16xbf16>
    %cst_31 = arith.constant dense<0.000000e+00> : vector<32x16xf32>
    %42 = tpu.matmul %40, %41, %cst_31 {dimension_numbers = #tpu.dot_dimension_numbers<[1], [0], [0], [1], [0, 0, 1, 1], [], []>} : vector<32x32xbf16>, vector<32x16xbf16>, vector<32x16xf32> -> vector<32x16xf32>
    %43 = arith.maximumf %28, %42 : vector<32x16xf32>
    %c0_32 = arith.constant 0 : index
    %c3 = arith.constant 3 : index
    %c0_33 = arith.constant 0 : index
    %c0_34 = arith.constant 0 : index
    %44 = vector.load %arg1[%c0_32, %c3, %c0_33, %c0_34] : memref<1x4x32x16xbf16, #tpu.memory_space<vmem>>, vector<1x1x32x16xbf16>
    %45 = vector.shape_cast %44 : vector<1x1x32x16xbf16> to vector<32x16xbf16>
    %46 = arith.extf %45 : vector<32x16xbf16> to vector<32x16xf32>
    %c0_35 = arith.constant 0 : index
    %c0_36 = arith.constant 0 : index
    %47 = vector.load %arg2[%c0_35, %c0_36] : memref<32x1xf32, #tpu.memory_space<vmem>>, vector<32x1xf32>
    %48 = vector.broadcast %47 : vector<32x1xf32> to vector<32x16xf32>
    %49 = arith.mulf %46, %48 : vector<32x16xf32>
    %c0_37 = arith.constant 0 : index
    %c0_38 = arith.constant 0 : index
    %50 = vector.load %arg3[%c0_37, %c0_38] : memref<32x1xf32, #tpu.memory_space<vmem>>, vector<32x1xf32>
    %51 = vector.broadcast %50 : vector<32x1xf32> to vector<32x16xf32>
    %52 = arith.addf %49, %51 : vector<32x16xf32>
    %cst_39 = arith.constant 0.000000e+00 : f32
    %53 = vector.broadcast %cst_39 : f32 to vector<32x16xf32>
    %54 = arith.maximumf %52, %53 : vector<32x16xf32>
    %c0_40 = arith.constant 0 : index
    %c0_41 = arith.constant 0 : index
    %55 = vector.load %arg4[%c0_40, %c0_41] : memref<32x32xbf16, #tpu.memory_space<vmem>>, vector<32x32xbf16>
    %56 = arith.truncf %54 : vector<32x16xf32> to vector<32x16xbf16>
    %cst_42 = arith.constant dense<0.000000e+00> : vector<32x16xf32>
    %57 = tpu.matmul %55, %56, %cst_42 {dimension_numbers = #tpu.dot_dimension_numbers<[1], [0], [0], [1], [0, 0, 1, 1], [], []>} : vector<32x32xbf16>, vector<32x16xbf16>, vector<32x16xf32> -> vector<32x16xf32>
    %58 = arith.maximumf %43, %57 : vector<32x16xf32>
    %c0_43 = arith.constant 0 : index
    %c0_44 = arith.constant 0 : index
    %59 = vector.load %arg5[%c0_43, %c0_44] : memref<32x1xf32, #tpu.memory_space<vmem>>, vector<32x1xf32>
    %60 = vector.broadcast %59 : vector<32x1xf32> to vector<32x16xf32>
    %61 = arith.addf %58, %60 : vector<32x16xf32>
    %62 = arith.truncf %61 : vector<32x16xf32> to vector<32x16xbf16>
    %c0_45 = arith.constant 0 : index
    %c0_46 = arith.constant 0 : index
    %c0_47 = arith.constant 0 : index
    %63 = vector.load %arg6[%c0_45, %c0_46, %c0_47] : memref<1x32x16xbf16, #tpu.memory_space<vmem>>, vector<1x32x16xbf16>
    %64 = vector.shape_cast %63 : vector<1x32x16xbf16> to vector<32x16xbf16>
    %65 = vector.shape_cast %62 : vector<32x16xbf16> to vector<1x32x16xbf16>
    tpu.vector_store %arg6[%c0_45, %c0_46, %c0_47], %65 {strides = array<i32>} : memref<1x32x16xbf16, #tpu.memory_space<vmem>>, vector<1x32x16xbf16>,
    return
  }
  func.func @transform_0(%arg0: i32) -> (i32, i32, i32, i32) {
    %c0_i32 = arith.constant 0 : i32
    %c0_i32_0 = arith.constant 0 : i32
    %c0_i32_1 = arith.constant 0 : i32
    %c0_i32_2 = arith.constant 0 : i32
    return %arg0, %c0_i32, %c0_i32_0, %c0_i32_1 : i32, i32, i32, i32
  }
  func.func @transform_1(%arg0: i32) -> (i32, i32) {
    %c0_i32 = arith.constant 0 : i32
    %c0_i32_0 = arith.constant 0 : i32
    %c0_i32_1 = arith.constant 0 : i32
    return %c0_i32, %c0_i32_0 : i32, i32
  }
  func.func @transform_2(%arg0: i32) -> (i32, i32) {
    %c0_i32 = arith.constant 0 : i32
    %c0_i32_0 = arith.constant 0 : i32
    %c0_i32_1 = arith.constant 0 : i32
    return %c0_i32, %c0_i32_0 : i32, i32
  }
  func.func @transform_3(%arg0: i32) -> (i32, i32) {
    %c0_i32 = arith.constant 0 : i32
    %c0_i32_0 = arith.constant 0 : i32
    %c0_i32_1 = arith.constant 0 : i32
    return %c0_i32, %c0_i32_0 : i32, i32
  }
  func.func @transform_4(%arg0: i32) -> (i32, i32) {
    %c0_i32 = arith.constant 0 : i32
    %c0_i32_0 = arith.constant 0 : i32
    %c0_i32_1 = arith.constant 0 : i32
    return %c0_i32, %c0_i32_0 : i32, i32
  }
  func.func @transform_5(%arg0: i32) -> (i32, i32, i32) {
    %c0_i32 = arith.constant 0 : i32
    %c0_i32_0 = arith.constant 0 : i32
    %c0_i32_1 = arith.constant 0 : i32
    return %arg0, %c0_i32, %c0_i32_0 : i32, i32, i32
  }
}

module attributes {stable_mosaic.version = 11 : i64} {
  func.func @kernel(%arg0: i32, %arg1: memref<1x32x36xbf16, #tpu.memory_space<vmem>>, %arg2: memref<1x36xf32, #tpu.memory_space<vmem>>, %arg3: memref<32x1xf32, #tpu.memory_space<vmem>>, %arg4: memref<32x1xf32, #tpu.memory_space<vmem>>, %arg5: memref<9x4x32xbf16, #tpu.memory_space<vmem>>, %arg6: memref<4x1xf32, #tpu.memory_space<vmem>>, %arg7: memref<36x1xf32, #tpu.memory_space<vmem>>, %arg8: memref<36x1xf32, #tpu.memory_space<vmem>>, %arg9: memref<9x4x36xbf16, #tpu.memory_space<vmem>>, %arg10: memref<4x1xf32, #tpu.memory_space<vmem>>, %arg11: memref<1x8x36xbf16, #tpu.memory_space<vmem>>, %arg12: memref<36x36xbf16, #tpu.memory_space<vmem>>, %arg13: memref<36x50xbf16, #tpu.memory_space<vmem>>) attributes {dimension_semantics = [#tpu.dimension_semantics<parallel>], iteration_bounds = array<i64: 2>, scalar_prefetch = 0 : i64, scratch_operands = 2 : i64, tpu.core_type = #tpu.core_type<tc>, window_params = [{transform_indices = @transform_0, window_bounds = array<i64: 1, 32, 36>}, {pipeline_mode = #tpu.pipeline_mode<synchronous>, transform_indices = @transform_1, window_bounds = array<i64: 1, 36>}, {pipeline_mode = #tpu.pipeline_mode<synchronous>, transform_indices = @transform_2, window_bounds = array<i64: 32, 1>}, {pipeline_mode = #tpu.pipeline_mode<synchronous>, transform_indices = @transform_3, window_bounds = array<i64: 32, 1>}, {pipeline_mode = #tpu.pipeline_mode<synchronous>, transform_indices = @transform_4, window_bounds = array<i64: 9, 4, 32>}, {pipeline_mode = #tpu.pipeline_mode<synchronous>, transform_indices = @transform_5, window_bounds = array<i64: 4, 1>}, {pipeline_mode = #tpu.pipeline_mode<synchronous>, transform_indices = @transform_6, window_bounds = array<i64: 36, 1>}, {pipeline_mode = #tpu.pipeline_mode<synchronous>, transform_indices = @transform_7, window_bounds = array<i64: 36, 1>}, {pipeline_mode = #tpu.pipeline_mode<synchronous>, transform_indices = @transform_8, window_bounds = array<i64: 9, 4, 36>}, {pipeline_mode = #tpu.pipeline_mode<synchronous>, transform_indices = @transform_9, window_bounds = array<i64: 4, 1>}, {transform_indices = @transform_10, window_bounds = array<i64: 1, 8, 36>}]} {
    %c0 = arith.constant 0 : index
    %c0_0 = arith.constant 0 : index
    %c0_1 = arith.constant 0 : index
    %0 = vector.load %arg1[%c0, %c0_0, %c0_1] : memref<1x32x36xbf16, #tpu.memory_space<vmem>>, vector<1x32x36xbf16>
    %1 = vector.shape_cast %0 : vector<1x32x36xbf16> to vector<32x36xbf16>
    %c0_2 = arith.constant 0 : index
    %c0_3 = arith.constant 0 : index
    %2 = vector.load %arg12[%c0_2, %c0_3] : memref<36x36xbf16, #tpu.memory_space<vmem>>, vector<32x36xbf16>
    tpu.vector_store %arg12[%c0_2, %c0_3], %1 {strides = array<i32>} : memref<36x36xbf16, #tpu.memory_space<vmem>>, vector<32x36xbf16>,
    %c0_4 = arith.constant 0 : index
    %c0_5 = arith.constant 0 : index
    %3 = vector.load %arg2[%c0_4, %c0_5] : memref<1x36xf32, #tpu.memory_space<vmem>>, vector<1x36xf32>
    %cst = arith.constant 0.000000e+00 : bf16
    %4 = vector.broadcast %cst : bf16 to vector<36x7xbf16>
    %c0_6 = arith.constant 0 : index
    %c0_7 = arith.constant 0 : index
    %5 = vector.load %arg13[%c0_6, %c0_7] : memref<36x50xbf16, #tpu.memory_space<vmem>>, vector<36x7xbf16>
    tpu.vector_store %arg13[%c0_6, %c0_7], %4 {strides = array<i32>} : memref<36x50xbf16, #tpu.memory_space<vmem>>, vector<36x7xbf16>,
    %cst_8 = arith.constant 0.000000e+00 : bf16
    %6 = vector.broadcast %cst_8 : bf16 to vector<36x7xbf16>
    %c0_9 = arith.constant 0 : index
    %c43 = arith.constant 43 : index
    %7 = vector.load %arg13[%c0_9, %c43] : memref<36x50xbf16, #tpu.memory_space<vmem>>, vector<36x7xbf16>
    tpu.vector_store %arg13[%c0_9, %c43], %6 {strides = array<i32>} : memref<36x50xbf16, #tpu.memory_space<vmem>>, vector<36x7xbf16>,
    %c0_10 = arith.constant 0 : index
    %c0_11 = arith.constant 0 : index
    %8 = vector.load %arg12[%c0_10, %c0_11] : memref<36x36xbf16, #tpu.memory_space<vmem>>, vector<32x36xbf16>
    %9 = arith.extf %8 : vector<32x36xbf16> to vector<32x36xf32>
    %c0_12 = arith.constant 0 : index
    %c0_13 = arith.constant 0 : index
    %10 = vector.load %arg3[%c0_12, %c0_13] : memref<32x1xf32, #tpu.memory_space<vmem>>, vector<32x1xf32>
    %11 = vector.broadcast %10 : vector<32x1xf32> to vector<32x36xf32>
    %12 = arith.mulf %9, %11 : vector<32x36xf32>
    %c0_14 = arith.constant 0 : index
    %c0_15 = arith.constant 0 : index
    %13 = vector.load %arg4[%c0_14, %c0_15] : memref<32x1xf32, #tpu.memory_space<vmem>>, vector<32x1xf32>
    %14 = vector.broadcast %13 : vector<32x1xf32> to vector<32x36xf32>
    %15 = arith.addf %12, %14 : vector<32x36xf32>
    %cst_16 = arith.constant 0.000000e+00 : f32
    %16 = vector.broadcast %cst_16 : f32 to vector<32x36xf32>
    %17 = arith.maximumf %15, %16 : vector<32x36xf32>
    %18 = vector.broadcast %3 : vector<1x36xf32> to vector<32x36xf32>
    %19 = arith.mulf %17, %18 : vector<32x36xf32>
    %20 = arith.truncf %19 : vector<32x36xf32> to vector<32x36xbf16>
    %c0_17 = arith.constant 0 : index
    %c7 = arith.constant 7 : index
    %21 = vector.load %arg13[%c0_17, %c7] : memref<36x50xbf16, #tpu.memory_space<vmem>>, vector<32x36xbf16>
    tpu.vector_store %arg13[%c0_17, %c7], %20 {strides = array<i32>} : memref<36x50xbf16, #tpu.memory_space<vmem>>, vector<32x36xbf16>,
    %cst_18 = arith.constant 0.000000e+00 : f32
    %22 = vector.broadcast %cst_18 : f32 to vector<4x36xf32>
    %c0_19 = arith.constant 0 : index
    %c0_20 = arith.constant 0 : index
    %c0_21 = arith.constant 0 : index
    %23 = vector.load %arg5[%c0_19, %c0_20, %c0_21] : memref<9x4x32xbf16, #tpu.memory_space<vmem>>, vector<1x4x32xbf16>
    %24 = vector.shape_cast %23 : vector<1x4x32xbf16> to vector<4x32xbf16>
    %c0_22 = arith.constant 0 : index
    %c0_23 = arith.constant 0 : index
    %25 = vector.load %arg13[%c0_22, %c0_23] : memref<36x50xbf16, #tpu.memory_space<vmem>>, vector<32x36xbf16>
    %cst_24 = arith.constant dense<0.000000e+00> : vector<4x36xf32>
    %26 = tpu.matmul %24, %25, %cst_24 {dimension_numbers = #tpu.dot_dimension_numbers<[1], [0], [0], [1], [0, 0, 1, 1], [], []>} : vector<4x32xbf16>, vector<32x36xbf16>, vector<4x36xf32> -> vector<4x36xf32>
    %27 = arith.addf %22, %26 : vector<4x36xf32>
    %c1 = arith.constant 1 : index
    %c0_25 = arith.constant 0 : index
    %c0_26 = arith.constant 0 : index
    %28 = vector.load %arg5[%c1, %c0_25, %c0_26] : memref<9x4x32xbf16, #tpu.memory_space<vmem>>, vector<1x4x32xbf16>
    %29 = vector.shape_cast %28 : vector<1x4x32xbf16> to vector<4x32xbf16>
    %c0_27 = arith.constant 0 : index
    %c1_28 = arith.constant 1 : index
    %30 = vector.load %arg13[%c0_27, %c1_28] : memref<36x50xbf16, #tpu.memory_space<vmem>>, vector<32x36xbf16>
    %cst_29 = arith.constant dense<0.000000e+00> : vector<4x36xf32>
    %31 = tpu.matmul %29, %30, %cst_29 {dimension_numbers = #tpu.dot_dimension_numbers<[1], [0], [0], [1], [0, 0, 1, 1], [], []>} : vector<4x32xbf16>, vector<32x36xbf16>, vector<4x36xf32> -> vector<4x36xf32>
    %32 = arith.addf %27, %31 : vector<4x36xf32>
    %c2 = arith.constant 2 : index
    %c0_30 = arith.constant 0 : index
    %c0_31 = arith.constant 0 : index
    %33 = vector.load %arg5[%c2, %c0_30, %c0_31] : memref<9x4x32xbf16, #tpu.memory_space<vmem>>, vector<1x4x32xbf16>
    %34 = vector.shape_cast %33 : vector<1x4x32xbf16> to vector<4x32xbf16>
    %c0_32 = arith.constant 0 : index
    %c2_33 = arith.constant 2 : index
    %35 = vector.load %arg13[%c0_32, %c2_33] : memref<36x50xbf16, #tpu.memory_space<vmem>>, vector<32x36xbf16>
    %cst_34 = arith.constant dense<0.000000e+00> : vector<4x36xf32>
    %36 = tpu.matmul %34, %35, %cst_34 {dimension_numbers = #tpu.dot_dimension_numbers<[1], [0], [0], [1], [0, 0, 1, 1], [], []>} : vector<4x32xbf16>, vector<32x36xbf16>, vector<4x36xf32> -> vector<4x36xf32>
    %37 = arith.addf %32, %36 : vector<4x36xf32>
    %c3 = arith.constant 3 : index
    %c0_35 = arith.constant 0 : index
    %c0_36 = arith.constant 0 : index
    %38 = vector.load %arg5[%c3, %c0_35, %c0_36] : memref<9x4x32xbf16, #tpu.memory_space<vmem>>, vector<1x4x32xbf16>
    %39 = vector.shape_cast %38 : vector<1x4x32xbf16> to vector<4x32xbf16>
    %c0_37 = arith.constant 0 : index
    %c6 = arith.constant 6 : index
    %40 = vector.load %arg13[%c0_37, %c6] : memref<36x50xbf16, #tpu.memory_space<vmem>>, vector<32x36xbf16>
    %cst_38 = arith.constant dense<0.000000e+00> : vector<4x36xf32>
    %41 = tpu.matmul %39, %40, %cst_38 {dimension_numbers = #tpu.dot_dimension_numbers<[1], [0], [0], [1], [0, 0, 1, 1], [], []>} : vector<4x32xbf16>, vector<32x36xbf16>, vector<4x36xf32> -> vector<4x36xf32>
    %42 = arith.addf %37, %41 : vector<4x36xf32>
    %c4 = arith.constant 4 : index
    %c0_39 = arith.constant 0 : index
    %c0_40 = arith.constant 0 : index
    %43 = vector.load %arg5[%c4, %c0_39, %c0_40] : memref<9x4x32xbf16, #tpu.memory_space<vmem>>, vector<1x4x32xbf16>
    %44 = vector.shape_cast %43 : vector<1x4x32xbf16> to vector<4x32xbf16>
    %c0_41 = arith.constant 0 : index
    %c7_42 = arith.constant 7 : index
    %45 = vector.load %arg13[%c0_41, %c7_42] : memref<36x50xbf16, #tpu.memory_space<vmem>>, vector<32x36xbf16>
    %cst_43 = arith.constant dense<0.000000e+00> : vector<4x36xf32>
    %46 = tpu.matmul %44, %45, %cst_43 {dimension_numbers = #tpu.dot_dimension_numbers<[1], [0], [0], [1], [0, 0, 1, 1], [], []>} : vector<4x32xbf16>, vector<32x36xbf16>, vector<4x36xf32> -> vector<4x36xf32>
    %47 = arith.addf %42, %46 : vector<4x36xf32>
    %c5 = arith.constant 5 : index
    %c0_44 = arith.constant 0 : index
    %c0_45 = arith.constant 0 : index
    %48 = vector.load %arg5[%c5, %c0_44, %c0_45] : memref<9x4x32xbf16, #tpu.memory_space<vmem>>, vector<1x4x32xbf16>
    %49 = vector.shape_cast %48 : vector<1x4x32xbf16> to vector<4x32xbf16>
    %c0_46 = arith.constant 0 : index
    %c8 = arith.constant 8 : index
    %50 = vector.load %arg13[%c0_46, %c8] : memref<36x50xbf16, #tpu.memory_space<vmem>>, vector<32x36xbf16>
    %cst_47 = arith.constant dense<0.000000e+00> : vector<4x36xf32>
    %51 = tpu.matmul %49, %50, %cst_47 {dimension_numbers = #tpu.dot_dimension_numbers<[1], [0], [0], [1], [0, 0, 1, 1], [], []>} : vector<4x32xbf16>, vector<32x36xbf16>, vector<4x36xf32> -> vector<4x36xf32>
    %52 = arith.addf %47, %51 : vector<4x36xf32>
    %c6_48 = arith.constant 6 : index
    %c0_49 = arith.constant 0 : index
    %c0_50 = arith.constant 0 : index
    %53 = vector.load %arg5[%c6_48, %c0_49, %c0_50] : memref<9x4x32xbf16, #tpu.memory_space<vmem>>, vector<1x4x32xbf16>
    %54 = vector.shape_cast %53 : vector<1x4x32xbf16> to vector<4x32xbf16>
    %c0_51 = arith.constant 0 : index
    %c12 = arith.constant 12 : index
    %55 = vector.load %arg13[%c0_51, %c12] : memref<36x50xbf16, #tpu.memory_space<vmem>>, vector<32x36xbf16>
    %cst_52 = arith.constant dense<0.000000e+00> : vector<4x36xf32>
    %56 = tpu.matmul %54, %55, %cst_52 {dimension_numbers = #tpu.dot_dimension_numbers<[1], [0], [0], [1], [0, 0, 1, 1], [], []>} : vector<4x32xbf16>, vector<32x36xbf16>, vector<4x36xf32> -> vector<4x36xf32>
    %57 = arith.addf %52, %56 : vector<4x36xf32>
    %c7_53 = arith.constant 7 : index
    %c0_54 = arith.constant 0 : index
    %c0_55 = arith.constant 0 : index
    %58 = vector.load %arg5[%c7_53, %c0_54, %c0_55] : memref<9x4x32xbf16, #tpu.memory_space<vmem>>, vector<1x4x32xbf16>
    %59 = vector.shape_cast %58 : vector<1x4x32xbf16> to vector<4x32xbf16>
    %c0_56 = arith.constant 0 : index
    %c13 = arith.constant 13 : index
    %60 = vector.load %arg13[%c0_56, %c13] : memref<36x50xbf16, #tpu.memory_space<vmem>>, vector<32x36xbf16>
    %cst_57 = arith.constant dense<0.000000e+00> : vector<4x36xf32>
    %61 = tpu.matmul %59, %60, %cst_57 {dimension_numbers = #tpu.dot_dimension_numbers<[1], [0], [0], [1], [0, 0, 1, 1], [], []>} : vector<4x32xbf16>, vector<32x36xbf16>, vector<4x36xf32> -> vector<4x36xf32>
    %62 = arith.addf %57, %61 : vector<4x36xf32>
    %c8_58 = arith.constant 8 : index
    %c0_59 = arith.constant 0 : index
    %c0_60 = arith.constant 0 : index
    %63 = vector.load %arg5[%c8_58, %c0_59, %c0_60] : memref<9x4x32xbf16, #tpu.memory_space<vmem>>, vector<1x4x32xbf16>
    %64 = vector.shape_cast %63 : vector<1x4x32xbf16> to vector<4x32xbf16>
    %c0_61 = arith.constant 0 : index
    %c14 = arith.constant 14 : index
    %65 = vector.load %arg13[%c0_61, %c14] : memref<36x50xbf16, #tpu.memory_space<vmem>>, vector<32x36xbf16>
    %cst_62 = arith.constant dense<0.000000e+00> : vector<4x36xf32>
    %66 = tpu.matmul %64, %65, %cst_62 {dimension_numbers = #tpu.dot_dimension_numbers<[1], [0], [0], [1], [0, 0, 1, 1], [], []>} : vector<4x32xbf16>, vector<32x36xbf16>, vector<4x36xf32> -> vector<4x36xf32>
    %67 = arith.addf %62, %66 : vector<4x36xf32>
    %c0_63 = arith.constant 0 : index
    %c0_64 = arith.constant 0 : index
    %68 = vector.load %arg6[%c0_63, %c0_64] : memref<4x1xf32, #tpu.memory_space<vmem>>, vector<4x1xf32>
    %69 = vector.broadcast %68 : vector<4x1xf32> to vector<4x36xf32>
    %70 = arith.addf %67, %69 : vector<4x36xf32>
    %71 = vector.broadcast %3 : vector<1x36xf32> to vector<4x36xf32>
    %72 = arith.mulf %70, %71 : vector<4x36xf32>
    %73 = arith.truncf %72 : vector<4x36xf32> to vector<4x36xbf16>
    %c0_65 = arith.constant 0 : index
    %c0_66 = arith.constant 0 : index
    %c0_67 = arith.constant 0 : index
    %74 = vector.load %arg11[%c0_65, %c0_66, %c0_67] : memref<1x8x36xbf16, #tpu.memory_space<vmem>>, vector<1x4x36xbf16>
    %75 = vector.shape_cast %74 : vector<1x4x36xbf16> to vector<4x36xbf16>
    %76 = vector.shape_cast %73 : vector<4x36xbf16> to vector<1x4x36xbf16>
    tpu.vector_store %arg11[%c0_65, %c0_66, %c0_67], %76 {strides = array<i32>} : memref<1x8x36xbf16, #tpu.memory_space<vmem>>, vector<1x4x36xbf16>,
    %c32 = arith.constant 32 : index
    %c0_68 = arith.constant 0 : index
    %77 = vector.load %arg12[%c32, %c0_68] : memref<36x36xbf16, #tpu.memory_space<vmem>>, vector<4x36xbf16>
    tpu.vector_store %arg12[%c32, %c0_68], %73 {strides = array<i32>} : memref<36x36xbf16, #tpu.memory_space<vmem>>, vector<4x36xbf16>,
    %c0_69 = arith.constant 0 : index
    %c0_70 = arith.constant 0 : index
    %78 = vector.load %arg12[%c0_69, %c0_70] : memref<36x36xbf16, #tpu.memory_space<vmem>>, vector<36x36xbf16>
    %79 = arith.extf %78 : vector<36x36xbf16> to vector<36x36xf32>
    %c0_71 = arith.constant 0 : index
    %c0_72 = arith.constant 0 : index
    %80 = vector.load %arg7[%c0_71, %c0_72] : memref<36x1xf32, #tpu.memory_space<vmem>>, vector<36x1xf32>
    %81 = vector.broadcast %80 : vector<36x1xf32> to vector<36x36xf32>
    %82 = arith.mulf %79, %81 : vector<36x36xf32>
    %c0_73 = arith.constant 0 : index
    %c0_74 = arith.constant 0 : index
    %83 = vector.load %arg8[%c0_73, %c0_74] : memref<36x1xf32, #tpu.memory_space<vmem>>, vector<36x1xf32>
    %84 = vector.broadcast %83 : vector<36x1xf32> to vector<36x36xf32>
    %85 = arith.addf %82, %84 : vector<36x36xf32>
    %cst_75 = arith.constant 0.000000e+00 : f32
    %86 = vector.broadcast %cst_75 : f32 to vector<36x36xf32>
    %87 = arith.maximumf %85, %86 : vector<36x36xf32>
    %88 = vector.broadcast %3 : vector<1x36xf32> to vector<36x36xf32>
    %89 = arith.mulf %87, %88 : vector<36x36xf32>
    %90 = arith.truncf %89 : vector<36x36xf32> to vector<36x36xbf16>
    %c0_76 = arith.constant 0 : index
    %c7_77 = arith.constant 7 : index
    %91 = vector.load %arg13[%c0_76, %c7_77] : memref<36x50xbf16, #tpu.memory_space<vmem>>, vector<36x36xbf16>
    tpu.vector_store %arg13[%c0_76, %c7_77], %90 {strides = array<i32>} : memref<36x50xbf16, #tpu.memory_space<vmem>>, vector<36x36xbf16>,
    %cst_78 = arith.constant 0.000000e+00 : f32
    %92 = vector.broadcast %cst_78 : f32 to vector<4x36xf32>
    %c0_79 = arith.constant 0 : index
    %c0_80 = arith.constant 0 : index
    %c0_81 = arith.constant 0 : index
    %93 = vector.load %arg9[%c0_79, %c0_80, %c0_81] : memref<9x4x36xbf16, #tpu.memory_space<vmem>>, vector<1x4x36xbf16>
    %94 = vector.shape_cast %93 : vector<1x4x36xbf16> to vector<4x36xbf16>
    %c0_82 = arith.constant 0 : index
    %c0_83 = arith.constant 0 : index
    %95 = vector.load %arg13[%c0_82, %c0_83] : memref<36x50xbf16, #tpu.memory_space<vmem>>, vector<36x36xbf16>
    %cst_84 = arith.constant dense<0.000000e+00> : vector<4x36xf32>
    %96 = tpu.matmul %94, %95, %cst_84 {dimension_numbers = #tpu.dot_dimension_numbers<[1], [0], [0], [1], [0, 0, 1, 1], [], []>} : vector<4x36xbf16>, vector<36x36xbf16>, vector<4x36xf32> -> vector<4x36xf32>
    %97 = arith.addf %92, %96 : vector<4x36xf32>
    %c1_85 = arith.constant 1 : index
    %c0_86 = arith.constant 0 : index
    %c0_87 = arith.constant 0 : index
    %98 = vector.load %arg9[%c1_85, %c0_86, %c0_87] : memref<9x4x36xbf16, #tpu.memory_space<vmem>>, vector<1x4x36xbf16>
    %99 = vector.shape_cast %98 : vector<1x4x36xbf16> to vector<4x36xbf16>
    %c0_88 = arith.constant 0 : index
    %c1_89 = arith.constant 1 : index
    %100 = vector.load %arg13[%c0_88, %c1_89] : memref<36x50xbf16, #tpu.memory_space<vmem>>, vector<36x36xbf16>
    %cst_90 = arith.constant dense<0.000000e+00> : vector<4x36xf32>
    %101 = tpu.matmul %99, %100, %cst_90 {dimension_numbers = #tpu.dot_dimension_numbers<[1], [0], [0], [1], [0, 0, 1, 1], [], []>} : vector<4x36xbf16>, vector<36x36xbf16>, vector<4x36xf32> -> vector<4x36xf32>
    %102 = arith.addf %97, %101 : vector<4x36xf32>
    %c2_91 = arith.constant 2 : index
    %c0_92 = arith.constant 0 : index
    %c0_93 = arith.constant 0 : index
    %103 = vector.load %arg9[%c2_91, %c0_92, %c0_93] : memref<9x4x36xbf16, #tpu.memory_space<vmem>>, vector<1x4x36xbf16>
    %104 = vector.shape_cast %103 : vector<1x4x36xbf16> to vector<4x36xbf16>
    %c0_94 = arith.constant 0 : index
    %c2_95 = arith.constant 2 : index
    %105 = vector.load %arg13[%c0_94, %c2_95] : memref<36x50xbf16, #tpu.memory_space<vmem>>, vector<36x36xbf16>
    %cst_96 = arith.constant dense<0.000000e+00> : vector<4x36xf32>
    %106 = tpu.matmul %104, %105, %cst_96 {dimension_numbers = #tpu.dot_dimension_numbers<[1], [0], [0], [1], [0, 0, 1, 1], [], []>} : vector<4x36xbf16>, vector<36x36xbf16>, vector<4x36xf32> -> vector<4x36xf32>
    %107 = arith.addf %102, %106 : vector<4x36xf32>
    %c3_97 = arith.constant 3 : index
    %c0_98 = arith.constant 0 : index
    %c0_99 = arith.constant 0 : index
    %108 = vector.load %arg9[%c3_97, %c0_98, %c0_99] : memref<9x4x36xbf16, #tpu.memory_space<vmem>>, vector<1x4x36xbf16>
    %109 = vector.shape_cast %108 : vector<1x4x36xbf16> to vector<4x36xbf16>
    %c0_100 = arith.constant 0 : index
    %c6_101 = arith.constant 6 : index
    %110 = vector.load %arg13[%c0_100, %c6_101] : memref<36x50xbf16, #tpu.memory_space<vmem>>, vector<36x36xbf16>
    %cst_102 = arith.constant dense<0.000000e+00> : vector<4x36xf32>
    %111 = tpu.matmul %109, %110, %cst_102 {dimension_numbers = #tpu.dot_dimension_numbers<[1], [0], [0], [1], [0, 0, 1, 1], [], []>} : vector<4x36xbf16>, vector<36x36xbf16>, vector<4x36xf32> -> vector<4x36xf32>
    %112 = arith.addf %107, %111 : vector<4x36xf32>
    %c4_103 = arith.constant 4 : index
    %c0_104 = arith.constant 0 : index
    %c0_105 = arith.constant 0 : index
    %113 = vector.load %arg9[%c4_103, %c0_104, %c0_105] : memref<9x4x36xbf16, #tpu.memory_space<vmem>>, vector<1x4x36xbf16>
    %114 = vector.shape_cast %113 : vector<1x4x36xbf16> to vector<4x36xbf16>
    %c0_106 = arith.constant 0 : index
    %c7_107 = arith.constant 7 : index
    %115 = vector.load %arg13[%c0_106, %c7_107] : memref<36x50xbf16, #tpu.memory_space<vmem>>, vector<36x36xbf16>
    %cst_108 = arith.constant dense<0.000000e+00> : vector<4x36xf32>
    %116 = tpu.matmul %114, %115, %cst_108 {dimension_numbers = #tpu.dot_dimension_numbers<[1], [0], [0], [1], [0, 0, 1, 1], [], []>} : vector<4x36xbf16>, vector<36x36xbf16>, vector<4x36xf32> -> vector<4x36xf32>
    %117 = arith.addf %112, %116 : vector<4x36xf32>
    %c5_109 = arith.constant 5 : index
    %c0_110 = arith.constant 0 : index
    %c0_111 = arith.constant 0 : index
    %118 = vector.load %arg9[%c5_109, %c0_110, %c0_111] : memref<9x4x36xbf16, #tpu.memory_space<vmem>>, vector<1x4x36xbf16>
    %119 = vector.shape_cast %118 : vector<1x4x36xbf16> to vector<4x36xbf16>
    %c0_112 = arith.constant 0 : index
    %c8_113 = arith.constant 8 : index
    %120 = vector.load %arg13[%c0_112, %c8_113] : memref<36x50xbf16, #tpu.memory_space<vmem>>, vector<36x36xbf16>
    %cst_114 = arith.constant dense<0.000000e+00> : vector<4x36xf32>
    %121 = tpu.matmul %119, %120, %cst_114 {dimension_numbers = #tpu.dot_dimension_numbers<[1], [0], [0], [1], [0, 0, 1, 1], [], []>} : vector<4x36xbf16>, vector<36x36xbf16>, vector<4x36xf32> -> vector<4x36xf32>
    %122 = arith.addf %117, %121 : vector<4x36xf32>
    %c6_115 = arith.constant 6 : index
    %c0_116 = arith.constant 0 : index
    %c0_117 = arith.constant 0 : index
    %123 = vector.load %arg9[%c6_115, %c0_116, %c0_117] : memref<9x4x36xbf16, #tpu.memory_space<vmem>>, vector<1x4x36xbf16>
    %124 = vector.shape_cast %123 : vector<1x4x36xbf16> to vector<4x36xbf16>
    %c0_118 = arith.constant 0 : index
    %c12_119 = arith.constant 12 : index
    %125 = vector.load %arg13[%c0_118, %c12_119] : memref<36x50xbf16, #tpu.memory_space<vmem>>, vector<36x36xbf16>
    %cst_120 = arith.constant dense<0.000000e+00> : vector<4x36xf32>
    %126 = tpu.matmul %124, %125, %cst_120 {dimension_numbers = #tpu.dot_dimension_numbers<[1], [0], [0], [1], [0, 0, 1, 1], [], []>} : vector<4x36xbf16>, vector<36x36xbf16>, vector<4x36xf32> -> vector<4x36xf32>
    %127 = arith.addf %122, %126 : vector<4x36xf32>
    %c7_121 = arith.constant 7 : index
    %c0_122 = arith.constant 0 : index
    %c0_123 = arith.constant 0 : index
    %128 = vector.load %arg9[%c7_121, %c0_122, %c0_123] : memref<9x4x36xbf16, #tpu.memory_space<vmem>>, vector<1x4x36xbf16>
    %129 = vector.shape_cast %128 : vector<1x4x36xbf16> to vector<4x36xbf16>
    %c0_124 = arith.constant 0 : index
    %c13_125 = arith.constant 13 : index
    %130 = vector.load %arg13[%c0_124, %c13_125] : memref<36x50xbf16, #tpu.memory_space<vmem>>, vector<36x36xbf16>
    %cst_126 = arith.constant dense<0.000000e+00> : vector<4x36xf32>
    %131 = tpu.matmul %129, %130, %cst_126 {dimension_numbers = #tpu.dot_dimension_numbers<[1], [0], [0], [1], [0, 0, 1, 1], [], []>} : vector<4x36xbf16>, vector<36x36xbf16>, vector<4x36xf32> -> vector<4x36xf32>
    %132 = arith.addf %127, %131 : vector<4x36xf32>
    %c8_127 = arith.constant 8 : index
    %c0_128 = arith.constant 0 : index
    %c0_129 = arith.constant 0 : index
    %133 = vector.load %arg9[%c8_127, %c0_128, %c0_129] : memref<9x4x36xbf16, #tpu.memory_space<vmem>>, vector<1x4x36xbf16>
    %134 = vector.shape_cast %133 : vector<1x4x36xbf16> to vector<4x36xbf16>
    %c0_130 = arith.constant 0 : index
    %c14_131 = arith.constant 14 : index
    %135 = vector.load %arg13[%c0_130, %c14_131] : memref<36x50xbf16, #tpu.memory_space<vmem>>, vector<36x36xbf16>
    %cst_132 = arith.constant dense<0.000000e+00> : vector<4x36xf32>
    %136 = tpu.matmul %134, %135, %cst_132 {dimension_numbers = #tpu.dot_dimension_numbers<[1], [0], [0], [1], [0, 0, 1, 1], [], []>} : vector<4x36xbf16>, vector<36x36xbf16>, vector<4x36xf32> -> vector<4x36xf32>
    %137 = arith.addf %132, %136 : vector<4x36xf32>
    %c0_133 = arith.constant 0 : index
    %c0_134 = arith.constant 0 : index
    %138 = vector.load %arg10[%c0_133, %c0_134] : memref<4x1xf32, #tpu.memory_space<vmem>>, vector<4x1xf32>
    %139 = vector.broadcast %138 : vector<4x1xf32> to vector<4x36xf32>
    %140 = arith.addf %137, %139 : vector<4x36xf32>
    %141 = vector.broadcast %3 : vector<1x36xf32> to vector<4x36xf32>
    %142 = arith.mulf %140, %141 : vector<4x36xf32>
    %143 = arith.truncf %142 : vector<4x36xf32> to vector<4x36xbf16>
    %c0_135 = arith.constant 0 : index
    %c4_136 = arith.constant 4 : index
    %c0_137 = arith.constant 0 : index
    %144 = vector.load %arg11[%c0_135, %c4_136, %c0_137] : memref<1x8x36xbf16, #tpu.memory_space<vmem>>, vector<1x4x36xbf16>
    %145 = vector.shape_cast %144 : vector<1x4x36xbf16> to vector<4x36xbf16>
    %146 = vector.shape_cast %143 : vector<4x36xbf16> to vector<1x4x36xbf16>
    tpu.vector_store %arg11[%c0_135, %c4_136, %c0_137], %146 {strides = array<i32>} : memref<1x8x36xbf16, #tpu.memory_space<vmem>>, vector<1x4x36xbf16>,
    return
  }
  func.func @transform_0(%arg0: i32) -> (i32, i32, i32) {
    %c0_i32 = arith.constant 0 : i32
    %c0_i32_0 = arith.constant 0 : i32
    %c0_i32_1 = arith.constant 0 : i32
    return %arg0, %c0_i32, %c0_i32_0 : i32, i32, i32
  }
  func.func @transform_1(%arg0: i32) -> (i32, i32) {
    %c0_i32 = arith.constant 0 : i32
    %c0_i32_0 = arith.constant 0 : i32
    %c0_i32_1 = arith.constant 0 : i32
    return %c0_i32, %c0_i32_0 : i32, i32
  }
  func.func @transform_2(%arg0: i32) -> (i32, i32) {
    %c0_i32 = arith.constant 0 : i32
    %c0_i32_0 = arith.constant 0 : i32
    %c0_i32_1 = arith.constant 0 : i32
    return %c0_i32, %c0_i32_0 : i32, i32
  }
  func.func @transform_3(%arg0: i32) -> (i32, i32) {
    %c0_i32 = arith.constant 0 : i32
    %c0_i32_0 = arith.constant 0 : i32
    %c0_i32_1 = arith.constant 0 : i32
    return %c0_i32, %c0_i32_0 : i32, i32
  }
  func.func @transform_4(%arg0: i32) -> (i32, i32, i32) {
    %c0_i32 = arith.constant 0 : i32
    %c0_i32_0 = arith.constant 0 : i32
    %c0_i32_1 = arith.constant 0 : i32
    %c0_i32_2 = arith.constant 0 : i32
    return %c0_i32, %c0_i32_0, %c0_i32_1 : i32, i32, i32
  }
  func.func @transform_5(%arg0: i32) -> (i32, i32) {
    %c0_i32 = arith.constant 0 : i32
    %c0_i32_0 = arith.constant 0 : i32
    %c0_i32_1 = arith.constant 0 : i32
    return %c0_i32, %c0_i32_0 : i32, i32
  }
  func.func @transform_6(%arg0: i32) -> (i32, i32) {
    %c0_i32 = arith.constant 0 : i32
    %c0_i32_0 = arith.constant 0 : i32
    %c0_i32_1 = arith.constant 0 : i32
    return %c0_i32, %c0_i32_0 : i32, i32
  }
  func.func @transform_7(%arg0: i32) -> (i32, i32) {
    %c0_i32 = arith.constant 0 : i32
    %c0_i32_0 = arith.constant 0 : i32
    %c0_i32_1 = arith.constant 0 : i32
    return %c0_i32, %c0_i32_0 : i32, i32
  }
  func.func @transform_8(%arg0: i32) -> (i32, i32, i32) {
    %c0_i32 = arith.constant 0 : i32
    %c0_i32_0 = arith.constant 0 : i32
    %c0_i32_1 = arith.constant 0 : i32
    %c0_i32_2 = arith.constant 0 : i32
    return %c0_i32, %c0_i32_0, %c0_i32_1 : i32, i32, i32
  }
  func.func @transform_9(%arg0: i32) -> (i32, i32) {
    %c0_i32 = arith.constant 0 : i32
    %c0_i32_0 = arith.constant 0 : i32
    %c0_i32_1 = arith.constant 0 : i32
    return %c0_i32, %c0_i32_0 : i32, i32
  }
  func.func @transform_10(%arg0: i32) -> (i32, i32, i32) {
    %c0_i32 = arith.constant 0 : i32
    %c0_i32_0 = arith.constant 0 : i32
    %c0_i32_1 = arith.constant 0 : i32
    return %arg0, %c0_i32, %c0_i32_0 : i32, i32, i32
  }
}

module attributes {stable_mosaic.version = 11 : i64} {
  func.func @_mm_kernel(%arg0: i32, %arg1: memref<1x32x16xbf16, #tpu.memory_space<vmem>>, %arg2: memref<32x32xbf16, #tpu.memory_space<vmem>>, %arg3: memref<32x1xf32, #tpu.memory_space<vmem>>, %arg4: memref<1x32x16xbf16, #tpu.memory_space<vmem>>) attributes {dimension_semantics = [#tpu.dimension_semantics<parallel>], iteration_bounds = array<i64: 2>, scalar_prefetch = 0 : i64, scratch_operands = 0 : i64, tpu.core_type = #tpu.core_type<tc>, window_params = [{transform_indices = @transform_0, window_bounds = array<i64: 1, 32, 16>}, {pipeline_mode = #tpu.pipeline_mode<synchronous>, transform_indices = @transform_1, window_bounds = array<i64: 32, 32>}, {pipeline_mode = #tpu.pipeline_mode<synchronous>, transform_indices = @transform_2, window_bounds = array<i64: 32, 1>}, {transform_indices = @transform_3, window_bounds = array<i64: 1, 32, 16>}]} {
    %c0 = arith.constant 0 : index
    %c0_0 = arith.constant 0 : index
    %0 = vector.load %arg2[%c0, %c0_0] : memref<32x32xbf16, #tpu.memory_space<vmem>>, vector<32x32xbf16>
    %c0_1 = arith.constant 0 : index
    %c0_2 = arith.constant 0 : index
    %c0_3 = arith.constant 0 : index
    %1 = vector.load %arg1[%c0_1, %c0_2, %c0_3] : memref<1x32x16xbf16, #tpu.memory_space<vmem>>, vector<1x32x16xbf16>
    %2 = vector.shape_cast %1 : vector<1x32x16xbf16> to vector<32x16xbf16>
    %cst = arith.constant dense<0.000000e+00> : vector<32x16xf32>
    %3 = tpu.matmul %0, %2, %cst {dimension_numbers = #tpu.dot_dimension_numbers<[1], [0], [0], [1], [0, 0, 1, 1], [], []>} : vector<32x32xbf16>, vector<32x16xbf16>, vector<32x16xf32> -> vector<32x16xf32>
    %c0_4 = arith.constant 0 : index
    %c0_5 = arith.constant 0 : index
    %4 = vector.load %arg3[%c0_4, %c0_5] : memref<32x1xf32, #tpu.memory_space<vmem>>, vector<32x1xf32>
    %5 = vector.broadcast %4 : vector<32x1xf32> to vector<32x16xf32>
    %6 = arith.addf %3, %5 : vector<32x16xf32>
    %7 = arith.truncf %6 : vector<32x16xf32> to vector<32x16xbf16>
    %c0_6 = arith.constant 0 : index
    %c0_7 = arith.constant 0 : index
    %c0_8 = arith.constant 0 : index
    %8 = vector.load %arg4[%c0_6, %c0_7, %c0_8] : memref<1x32x16xbf16, #tpu.memory_space<vmem>>, vector<1x32x16xbf16>
    %9 = vector.shape_cast %8 : vector<1x32x16xbf16> to vector<32x16xbf16>
    %10 = vector.shape_cast %7 : vector<32x16xbf16> to vector<1x32x16xbf16>
    tpu.vector_store %arg4[%c0_6, %c0_7, %c0_8], %10 {strides = array<i32>} : memref<1x32x16xbf16, #tpu.memory_space<vmem>>, vector<1x32x16xbf16>,
    return
  }
  func.func @transform_0(%arg0: i32) -> (i32, i32, i32) {
    %c0_i32 = arith.constant 0 : i32
    %c0_i32_0 = arith.constant 0 : i32
    %c0_i32_1 = arith.constant 0 : i32
    return %arg0, %c0_i32, %c0_i32_0 : i32, i32, i32
  }
  func.func @transform_1(%arg0: i32) -> (i32, i32) {
    %c0_i32 = arith.constant 0 : i32
    %c0_i32_0 = arith.constant 0 : i32
    %c0_i32_1 = arith.constant 0 : i32
    return %c0_i32, %c0_i32_0 : i32, i32
  }
  func.func @transform_2(%arg0: i32) -> (i32, i32) {
    %c0_i32 = arith.constant 0 : i32
    %c0_i32_0 = arith.constant 0 : i32
    %c0_i32_1 = arith.constant 0 : i32
    return %c0_i32, %c0_i32_0 : i32, i32
  }
  func.func @transform_3(%arg0: i32) -> (i32, i32, i32) {
    %c0_i32 = arith.constant 0 : i32
    %c0_i32_0 = arith.constant 0 : i32
    %c0_i32_1 = arith.constant 0 : i32
    return %arg0, %c0_i32, %c0_i32_0 : i32, i32, i32
  }
}

module attributes {stable_mosaic.version = 11 : i64} {
  func.func @kernel(%arg0: i32, %arg1: memref<1x40x100xbf16, #tpu.memory_space<vmem>>, %arg2: memref<1x100xf32, #tpu.memory_space<vmem>>, %arg3: memref<40x1xf32, #tpu.memory_space<vmem>>, %arg4: memref<40x1xf32, #tpu.memory_space<vmem>>, %arg5: memref<9x4x40xbf16, #tpu.memory_space<vmem>>, %arg6: memref<4x1xf32, #tpu.memory_space<vmem>>, %arg7: memref<44x1xf32, #tpu.memory_space<vmem>>, %arg8: memref<44x1xf32, #tpu.memory_space<vmem>>, %arg9: memref<9x4x44xbf16, #tpu.memory_space<vmem>>, %arg10: memref<4x1xf32, #tpu.memory_space<vmem>>, %arg11: memref<1x8x100xbf16, #tpu.memory_space<vmem>>, %arg12: memref<44x100xbf16, #tpu.memory_space<vmem>>, %arg13: memref<44x122xbf16, #tpu.memory_space<vmem>>) attributes {dimension_semantics = [#tpu.dimension_semantics<parallel>], iteration_bounds = array<i64: 2>, scalar_prefetch = 0 : i64, scratch_operands = 2 : i64, tpu.core_type = #tpu.core_type<tc>, window_params = [{transform_indices = @transform_0, window_bounds = array<i64: 1, 40, 100>}, {pipeline_mode = #tpu.pipeline_mode<synchronous>, transform_indices = @transform_1, window_bounds = array<i64: 1, 100>}, {pipeline_mode = #tpu.pipeline_mode<synchronous>, transform_indices = @transform_2, window_bounds = array<i64: 40, 1>}, {pipeline_mode = #tpu.pipeline_mode<synchronous>, transform_indices = @transform_3, window_bounds = array<i64: 40, 1>}, {pipeline_mode = #tpu.pipeline_mode<synchronous>, transform_indices = @transform_4, window_bounds = array<i64: 9, 4, 40>}, {pipeline_mode = #tpu.pipeline_mode<synchronous>, transform_indices = @transform_5, window_bounds = array<i64: 4, 1>}, {pipeline_mode = #tpu.pipeline_mode<synchronous>, transform_indices = @transform_6, window_bounds = array<i64: 44, 1>}, {pipeline_mode = #tpu.pipeline_mode<synchronous>, transform_indices = @transform_7, window_bounds = array<i64: 44, 1>}, {pipeline_mode = #tpu.pipeline_mode<synchronous>, transform_indices = @transform_8, window_bounds = array<i64: 9, 4, 44>}, {pipeline_mode = #tpu.pipeline_mode<synchronous>, transform_indices = @transform_9, window_bounds = array<i64: 4, 1>}, {transform_indices = @transform_10, window_bounds = array<i64: 1, 8, 100>}]} {
    %c0 = arith.constant 0 : index
    %c0_0 = arith.constant 0 : index
    %c0_1 = arith.constant 0 : index
    %0 = vector.load %arg1[%c0, %c0_0, %c0_1] : memref<1x40x100xbf16, #tpu.memory_space<vmem>>, vector<1x40x100xbf16>
    %1 = vector.shape_cast %0 : vector<1x40x100xbf16> to vector<40x100xbf16>
    %c0_2 = arith.constant 0 : index
    %c0_3 = arith.constant 0 : index
    %2 = vector.load %arg12[%c0_2, %c0_3] : memref<44x100xbf16, #tpu.memory_space<vmem>>, vector<40x100xbf16>
    tpu.vector_store %arg12[%c0_2, %c0_3], %1 {strides = array<i32>} : memref<44x100xbf16, #tpu.memory_space<vmem>>, vector<40x100xbf16>,
    %c0_4 = arith.constant 0 : index
    %c0_5 = arith.constant 0 : index
    %3 = vector.load %arg2[%c0_4, %c0_5] : memref<1x100xf32, #tpu.memory_space<vmem>>, vector<1x100xf32>
    %cst = arith.constant 0.000000e+00 : bf16
    %4 = vector.broadcast %cst : bf16 to vector<44x11xbf16>
    %c0_6 = arith.constant 0 : index
    %c0_7 = arith.constant 0 : index
    %5 = vector.load %arg13[%c0_6, %c0_7] : memref<44x122xbf16, #tpu.memory_space<vmem>>, vector<44x11xbf16>
    tpu.vector_store %arg13[%c0_6, %c0_7], %4 {strides = array<i32>} : memref<44x122xbf16, #tpu.memory_space<vmem>>, vector<44x11xbf16>,
    %cst_8 = arith.constant 0.000000e+00 : bf16
    %6 = vector.broadcast %cst_8 : bf16 to vector<44x11xbf16>
    %c0_9 = arith.constant 0 : index
    %c111 = arith.constant 111 : index
    %7 = vector.load %arg13[%c0_9, %c111] : memref<44x122xbf16, #tpu.memory_space<vmem>>, vector<44x11xbf16>
    tpu.vector_store %arg13[%c0_9, %c111], %6 {strides = array<i32>} : memref<44x122xbf16, #tpu.memory_space<vmem>>, vector<44x11xbf16>,
    %c0_10 = arith.constant 0 : index
    %c0_11 = arith.constant 0 : index
    %8 = vector.load %arg12[%c0_10, %c0_11] : memref<44x100xbf16, #tpu.memory_space<vmem>>, vector<40x100xbf16>
    %9 = arith.extf %8 : vector<40x100xbf16> to vector<40x100xf32>
    %c0_12 = arith.constant 0 : index
    %c0_13 = arith.constant 0 : index
    %10 = vector.load %arg3[%c0_12, %c0_13] : memref<40x1xf32, #tpu.memory_space<vmem>>, vector<40x1xf32>
    %11 = vector.broadcast %10 : vector<40x1xf32> to vector<40x100xf32>
    %12 = arith.mulf %9, %11 : vector<40x100xf32>
    %c0_14 = arith.constant 0 : index
    %c0_15 = arith.constant 0 : index
    %13 = vector.load %arg4[%c0_14, %c0_15] : memref<40x1xf32, #tpu.memory_space<vmem>>, vector<40x1xf32>
    %14 = vector.broadcast %13 : vector<40x1xf32> to vector<40x100xf32>
    %15 = arith.addf %12, %14 : vector<40x100xf32>
    %cst_16 = arith.constant 0.000000e+00 : f32
    %16 = vector.broadcast %cst_16 : f32 to vector<40x100xf32>
    %17 = arith.maximumf %15, %16 : vector<40x100xf32>
    %18 = vector.broadcast %3 : vector<1x100xf32> to vector<40x100xf32>
    %19 = arith.mulf %17, %18 : vector<40x100xf32>
    %20 = arith.truncf %19 : vector<40x100xf32> to vector<40x100xbf16>
    %c0_17 = arith.constant 0 : index
    %c11 = arith.constant 11 : index
    %21 = vector.load %arg13[%c0_17, %c11] : memref<44x122xbf16, #tpu.memory_space<vmem>>, vector<40x100xbf16>
    tpu.vector_store %arg13[%c0_17, %c11], %20 {strides = array<i32>} : memref<44x122xbf16, #tpu.memory_space<vmem>>, vector<40x100xbf16>,
    %cst_18 = arith.constant 0.000000e+00 : f32
    %22 = vector.broadcast %cst_18 : f32 to vector<4x100xf32>
    %c0_19 = arith.constant 0 : index
    %c0_20 = arith.constant 0 : index
    %c0_21 = arith.constant 0 : index
    %23 = vector.load %arg5[%c0_19, %c0_20, %c0_21] : memref<9x4x40xbf16, #tpu.memory_space<vmem>>, vector<1x4x40xbf16>
    %24 = vector.shape_cast %23 : vector<1x4x40xbf16> to vector<4x40xbf16>
    %c0_22 = arith.constant 0 : index
    %c0_23 = arith.constant 0 : index
    %25 = vector.load %arg13[%c0_22, %c0_23] : memref<44x122xbf16, #tpu.memory_space<vmem>>, vector<40x100xbf16>
    %cst_24 = arith.constant dense<0.000000e+00> : vector<4x100xf32>
    %26 = tpu.matmul %24, %25, %cst_24 {dimension_numbers = #tpu.dot_dimension_numbers<[1], [0], [0], [1], [0, 0, 1, 1], [], []>} : vector<4x40xbf16>, vector<40x100xbf16>, vector<4x100xf32> -> vector<4x100xf32>
    %27 = arith.addf %22, %26 : vector<4x100xf32>
    %c1 = arith.constant 1 : index
    %c0_25 = arith.constant 0 : index
    %c0_26 = arith.constant 0 : index
    %28 = vector.load %arg5[%c1, %c0_25, %c0_26] : memref<9x4x40xbf16, #tpu.memory_space<vmem>>, vector<1x4x40xbf16>
    %29 = vector.shape_cast %28 : vector<1x4x40xbf16> to vector<4x40xbf16>
    %c0_27 = arith.constant 0 : index
    %c1_28 = arith.constant 1 : index
    %30 = vector.load %arg13[%c0_27, %c1_28] : memref<44x122xbf16, #tpu.memory_space<vmem>>, vector<40x100xbf16>
    %cst_29 = arith.constant dense<0.000000e+00> : vector<4x100xf32>
    %31 = tpu.matmul %29, %30, %cst_29 {dimension_numbers = #tpu.dot_dimension_numbers<[1], [0], [0], [1], [0, 0, 1, 1], [], []>} : vector<4x40xbf16>, vector<40x100xbf16>, vector<4x100xf32> -> vector<4x100xf32>
    %32 = arith.addf %27, %31 : vector<4x100xf32>
    %c2 = arith.constant 2 : index
    %c0_30 = arith.constant 0 : index
    %c0_31 = arith.constant 0 : index
    %33 = vector.load %arg5[%c2, %c0_30, %c0_31] : memref<9x4x40xbf16, #tpu.memory_space<vmem>>, vector<1x4x40xbf16>
    %34 = vector.shape_cast %33 : vector<1x4x40xbf16> to vector<4x40xbf16>
    %c0_32 = arith.constant 0 : index
    %c2_33 = arith.constant 2 : index
    %35 = vector.load %arg13[%c0_32, %c2_33] : memref<44x122xbf16, #tpu.memory_space<vmem>>, vector<40x100xbf16>
    %cst_34 = arith.constant dense<0.000000e+00> : vector<4x100xf32>
    %36 = tpu.matmul %34, %35, %cst_34 {dimension_numbers = #tpu.dot_dimension_numbers<[1], [0], [0], [1], [0, 0, 1, 1], [], []>} : vector<4x40xbf16>, vector<40x100xbf16>, vector<4x100xf32> -> vector<4x100xf32>
    %37 = arith.addf %32, %36 : vector<4x100xf32>
    %c3 = arith.constant 3 : index
    %c0_35 = arith.constant 0 : index
    %c0_36 = arith.constant 0 : index
    %38 = vector.load %arg5[%c3, %c0_35, %c0_36] : memref<9x4x40xbf16, #tpu.memory_space<vmem>>, vector<1x4x40xbf16>
    %39 = vector.shape_cast %38 : vector<1x4x40xbf16> to vector<4x40xbf16>
    %c0_37 = arith.constant 0 : index
    %c10 = arith.constant 10 : index
    %40 = vector.load %arg13[%c0_37, %c10] : memref<44x122xbf16, #tpu.memory_space<vmem>>, vector<40x100xbf16>
    %cst_38 = arith.constant dense<0.000000e+00> : vector<4x100xf32>
    %41 = tpu.matmul %39, %40, %cst_38 {dimension_numbers = #tpu.dot_dimension_numbers<[1], [0], [0], [1], [0, 0, 1, 1], [], []>} : vector<4x40xbf16>, vector<40x100xbf16>, vector<4x100xf32> -> vector<4x100xf32>
    %42 = arith.addf %37, %41 : vector<4x100xf32>
    %c4 = arith.constant 4 : index
    %c0_39 = arith.constant 0 : index
    %c0_40 = arith.constant 0 : index
    %43 = vector.load %arg5[%c4, %c0_39, %c0_40] : memref<9x4x40xbf16, #tpu.memory_space<vmem>>, vector<1x4x40xbf16>
    %44 = vector.shape_cast %43 : vector<1x4x40xbf16> to vector<4x40xbf16>
    %c0_41 = arith.constant 0 : index
    %c11_42 = arith.constant 11 : index
    %45 = vector.load %arg13[%c0_41, %c11_42] : memref<44x122xbf16, #tpu.memory_space<vmem>>, vector<40x100xbf16>
    %cst_43 = arith.constant dense<0.000000e+00> : vector<4x100xf32>
    %46 = tpu.matmul %44, %45, %cst_43 {dimension_numbers = #tpu.dot_dimension_numbers<[1], [0], [0], [1], [0, 0, 1, 1], [], []>} : vector<4x40xbf16>, vector<40x100xbf16>, vector<4x100xf32> -> vector<4x100xf32>
    %47 = arith.addf %42, %46 : vector<4x100xf32>
    %c5 = arith.constant 5 : index
    %c0_44 = arith.constant 0 : index
    %c0_45 = arith.constant 0 : index
    %48 = vector.load %arg5[%c5, %c0_44, %c0_45] : memref<9x4x40xbf16, #tpu.memory_space<vmem>>, vector<1x4x40xbf16>
    %49 = vector.shape_cast %48 : vector<1x4x40xbf16> to vector<4x40xbf16>
    %c0_46 = arith.constant 0 : index
    %c12 = arith.constant 12 : index
    %50 = vector.load %arg13[%c0_46, %c12] : memref<44x122xbf16, #tpu.memory_space<vmem>>, vector<40x100xbf16>
    %cst_47 = arith.constant dense<0.000000e+00> : vector<4x100xf32>
    %51 = tpu.matmul %49, %50, %cst_47 {dimension_numbers = #tpu.dot_dimension_numbers<[1], [0], [0], [1], [0, 0, 1, 1], [], []>} : vector<4x40xbf16>, vector<40x100xbf16>, vector<4x100xf32> -> vector<4x100xf32>
    %52 = arith.addf %47, %51 : vector<4x100xf32>
    %c6 = arith.constant 6 : index
    %c0_48 = arith.constant 0 : index
    %c0_49 = arith.constant 0 : index
    %53 = vector.load %arg5[%c6, %c0_48, %c0_49] : memref<9x4x40xbf16, #tpu.memory_space<vmem>>, vector<1x4x40xbf16>
    %54 = vector.shape_cast %53 : vector<1x4x40xbf16> to vector<4x40xbf16>
    %c0_50 = arith.constant 0 : index
    %c20 = arith.constant 20 : index
    %55 = vector.load %arg13[%c0_50, %c20] : memref<44x122xbf16, #tpu.memory_space<vmem>>, vector<40x100xbf16>
    %cst_51 = arith.constant dense<0.000000e+00> : vector<4x100xf32>
    %56 = tpu.matmul %54, %55, %cst_51 {dimension_numbers = #tpu.dot_dimension_numbers<[1], [0], [0], [1], [0, 0, 1, 1], [], []>} : vector<4x40xbf16>, vector<40x100xbf16>, vector<4x100xf32> -> vector<4x100xf32>
    %57 = arith.addf %52, %56 : vector<4x100xf32>
    %c7 = arith.constant 7 : index
    %c0_52 = arith.constant 0 : index
    %c0_53 = arith.constant 0 : index
    %58 = vector.load %arg5[%c7, %c0_52, %c0_53] : memref<9x4x40xbf16, #tpu.memory_space<vmem>>, vector<1x4x40xbf16>
    %59 = vector.shape_cast %58 : vector<1x4x40xbf16> to vector<4x40xbf16>
    %c0_54 = arith.constant 0 : index
    %c21 = arith.constant 21 : index
    %60 = vector.load %arg13[%c0_54, %c21] : memref<44x122xbf16, #tpu.memory_space<vmem>>, vector<40x100xbf16>
    %cst_55 = arith.constant dense<0.000000e+00> : vector<4x100xf32>
    %61 = tpu.matmul %59, %60, %cst_55 {dimension_numbers = #tpu.dot_dimension_numbers<[1], [0], [0], [1], [0, 0, 1, 1], [], []>} : vector<4x40xbf16>, vector<40x100xbf16>, vector<4x100xf32> -> vector<4x100xf32>
    %62 = arith.addf %57, %61 : vector<4x100xf32>
    %c8 = arith.constant 8 : index
    %c0_56 = arith.constant 0 : index
    %c0_57 = arith.constant 0 : index
    %63 = vector.load %arg5[%c8, %c0_56, %c0_57] : memref<9x4x40xbf16, #tpu.memory_space<vmem>>, vector<1x4x40xbf16>
    %64 = vector.shape_cast %63 : vector<1x4x40xbf16> to vector<4x40xbf16>
    %c0_58 = arith.constant 0 : index
    %c22 = arith.constant 22 : index
    %65 = vector.load %arg13[%c0_58, %c22] : memref<44x122xbf16, #tpu.memory_space<vmem>>, vector<40x100xbf16>
    %cst_59 = arith.constant dense<0.000000e+00> : vector<4x100xf32>
    %66 = tpu.matmul %64, %65, %cst_59 {dimension_numbers = #tpu.dot_dimension_numbers<[1], [0], [0], [1], [0, 0, 1, 1], [], []>} : vector<4x40xbf16>, vector<40x100xbf16>, vector<4x100xf32> -> vector<4x100xf32>
    %67 = arith.addf %62, %66 : vector<4x100xf32>
    %c0_60 = arith.constant 0 : index
    %c0_61 = arith.constant 0 : index
    %68 = vector.load %arg6[%c0_60, %c0_61] : memref<4x1xf32, #tpu.memory_space<vmem>>, vector<4x1xf32>
    %69 = vector.broadcast %68 : vector<4x1xf32> to vector<4x100xf32>
    %70 = arith.addf %67, %69 : vector<4x100xf32>
    %71 = vector.broadcast %3 : vector<1x100xf32> to vector<4x100xf32>
    %72 = arith.mulf %70, %71 : vector<4x100xf32>
    %73 = arith.truncf %72 : vector<4x100xf32> to vector<4x100xbf16>
    %c0_62 = arith.constant 0 : index
    %c0_63 = arith.constant 0 : index
    %c0_64 = arith.constant 0 : index
    %74 = vector.load %arg11[%c0_62, %c0_63, %c0_64] : memref<1x8x100xbf16, #tpu.memory_space<vmem>>, vector<1x4x100xbf16>
    %75 = vector.shape_cast %74 : vector<1x4x100xbf16> to vector<4x100xbf16>
    %76 = vector.shape_cast %73 : vector<4x100xbf16> to vector<1x4x100xbf16>
    tpu.vector_store %arg11[%c0_62, %c0_63, %c0_64], %76 {strides = array<i32>} : memref<1x8x100xbf16, #tpu.memory_space<vmem>>, vector<1x4x100xbf16>,
    %c40 = arith.constant 40 : index
    %c0_65 = arith.constant 0 : index
    %77 = vector.load %arg12[%c40, %c0_65] : memref<44x100xbf16, #tpu.memory_space<vmem>>, vector<4x100xbf16>
    tpu.vector_store %arg12[%c40, %c0_65], %73 {strides = array<i32>} : memref<44x100xbf16, #tpu.memory_space<vmem>>, vector<4x100xbf16>,
    %c0_66 = arith.constant 0 : index
    %c0_67 = arith.constant 0 : index
    %78 = vector.load %arg12[%c0_66, %c0_67] : memref<44x100xbf16, #tpu.memory_space<vmem>>, vector<44x100xbf16>
    %79 = arith.extf %78 : vector<44x100xbf16> to vector<44x100xf32>
    %c0_68 = arith.constant 0 : index
    %c0_69 = arith.constant 0 : index
    %80 = vector.load %arg7[%c0_68, %c0_69] : memref<44x1xf32, #tpu.memory_space<vmem>>, vector<44x1xf32>
    %81 = vector.broadcast %80 : vector<44x1xf32> to vector<44x100xf32>
    %82 = arith.mulf %79, %81 : vector<44x100xf32>
    %c0_70 = arith.constant 0 : index
    %c0_71 = arith.constant 0 : index
    %83 = vector.load %arg8[%c0_70, %c0_71] : memref<44x1xf32, #tpu.memory_space<vmem>>, vector<44x1xf32>
    %84 = vector.broadcast %83 : vector<44x1xf32> to vector<44x100xf32>
    %85 = arith.addf %82, %84 : vector<44x100xf32>
    %cst_72 = arith.constant 0.000000e+00 : f32
    %86 = vector.broadcast %cst_72 : f32 to vector<44x100xf32>
    %87 = arith.maximumf %85, %86 : vector<44x100xf32>
    %88 = vector.broadcast %3 : vector<1x100xf32> to vector<44x100xf32>
    %89 = arith.mulf %87, %88 : vector<44x100xf32>
    %90 = arith.truncf %89 : vector<44x100xf32> to vector<44x100xbf16>
    %c0_73 = arith.constant 0 : index
    %c11_74 = arith.constant 11 : index
    %91 = vector.load %arg13[%c0_73, %c11_74] : memref<44x122xbf16, #tpu.memory_space<vmem>>, vector<44x100xbf16>
    tpu.vector_store %arg13[%c0_73, %c11_74], %90 {strides = array<i32>} : memref<44x122xbf16, #tpu.memory_space<vmem>>, vector<44x100xbf16>,
    %cst_75 = arith.constant 0.000000e+00 : f32
    %92 = vector.broadcast %cst_75 : f32 to vector<4x100xf32>
    %c0_76 = arith.constant 0 : index
    %c0_77 = arith.constant 0 : index
    %c0_78 = arith.constant 0 : index
    %93 = vector.load %arg9[%c0_76, %c0_77, %c0_78] : memref<9x4x44xbf16, #tpu.memory_space<vmem>>, vector<1x4x44xbf16>
    %94 = vector.shape_cast %93 : vector<1x4x44xbf16> to vector<4x44xbf16>
    %c0_79 = arith.constant 0 : index
    %c0_80 = arith.constant 0 : index
    %95 = vector.load %arg13[%c0_79, %c0_80] : memref<44x122xbf16, #tpu.memory_space<vmem>>, vector<44x100xbf16>
    %cst_81 = arith.constant dense<0.000000e+00> : vector<4x100xf32>
    %96 = tpu.matmul %94, %95, %cst_81 {dimension_numbers = #tpu.dot_dimension_numbers<[1], [0], [0], [1], [0, 0, 1, 1], [], []>} : vector<4x44xbf16>, vector<44x100xbf16>, vector<4x100xf32> -> vector<4x100xf32>
    %97 = arith.addf %92, %96 : vector<4x100xf32>
    %c1_82 = arith.constant 1 : index
    %c0_83 = arith.constant 0 : index
    %c0_84 = arith.constant 0 : index
    %98 = vector.load %arg9[%c1_82, %c0_83, %c0_84] : memref<9x4x44xbf16, #tpu.memory_space<vmem>>, vector<1x4x44xbf16>
    %99 = vector.shape_cast %98 : vector<1x4x44xbf16> to vector<4x44xbf16>
    %c0_85 = arith.constant 0 : index
    %c1_86 = arith.constant 1 : index
    %100 = vector.load %arg13[%c0_85, %c1_86] : memref<44x122xbf16, #tpu.memory_space<vmem>>, vector<44x100xbf16>
    %cst_87 = arith.constant dense<0.000000e+00> : vector<4x100xf32>
    %101 = tpu.matmul %99, %100, %cst_87 {dimension_numbers = #tpu.dot_dimension_numbers<[1], [0], [0], [1], [0, 0, 1, 1], [], []>} : vector<4x44xbf16>, vector<44x100xbf16>, vector<4x100xf32> -> vector<4x100xf32>
    %102 = arith.addf %97, %101 : vector<4x100xf32>
    %c2_88 = arith.constant 2 : index
    %c0_89 = arith.constant 0 : index
    %c0_90 = arith.constant 0 : index
    %103 = vector.load %arg9[%c2_88, %c0_89, %c0_90] : memref<9x4x44xbf16, #tpu.memory_space<vmem>>, vector<1x4x44xbf16>
    %104 = vector.shape_cast %103 : vector<1x4x44xbf16> to vector<4x44xbf16>
    %c0_91 = arith.constant 0 : index
    %c2_92 = arith.constant 2 : index
    %105 = vector.load %arg13[%c0_91, %c2_92] : memref<44x122xbf16, #tpu.memory_space<vmem>>, vector<44x100xbf16>
    %cst_93 = arith.constant dense<0.000000e+00> : vector<4x100xf32>
    %106 = tpu.matmul %104, %105, %cst_93 {dimension_numbers = #tpu.dot_dimension_numbers<[1], [0], [0], [1], [0, 0, 1, 1], [], []>} : vector<4x44xbf16>, vector<44x100xbf16>, vector<4x100xf32> -> vector<4x100xf32>
    %107 = arith.addf %102, %106 : vector<4x100xf32>
    %c3_94 = arith.constant 3 : index
    %c0_95 = arith.constant 0 : index
    %c0_96 = arith.constant 0 : index
    %108 = vector.load %arg9[%c3_94, %c0_95, %c0_96] : memref<9x4x44xbf16, #tpu.memory_space<vmem>>, vector<1x4x44xbf16>
    %109 = vector.shape_cast %108 : vector<1x4x44xbf16> to vector<4x44xbf16>
    %c0_97 = arith.constant 0 : index
    %c10_98 = arith.constant 10 : index
    %110 = vector.load %arg13[%c0_97, %c10_98] : memref<44x122xbf16, #tpu.memory_space<vmem>>, vector<44x100xbf16>
    %cst_99 = arith.constant dense<0.000000e+00> : vector<4x100xf32>
    %111 = tpu.matmul %109, %110, %cst_99 {dimension_numbers = #tpu.dot_dimension_numbers<[1], [0], [0], [1], [0, 0, 1, 1], [], []>} : vector<4x44xbf16>, vector<44x100xbf16>, vector<4x100xf32> -> vector<4x100xf32>
    %112 = arith.addf %107, %111 : vector<4x100xf32>
    %c4_100 = arith.constant 4 : index
    %c0_101 = arith.constant 0 : index
    %c0_102 = arith.constant 0 : index
    %113 = vector.load %arg9[%c4_100, %c0_101, %c0_102] : memref<9x4x44xbf16, #tpu.memory_space<vmem>>, vector<1x4x44xbf16>
    %114 = vector.shape_cast %113 : vector<1x4x44xbf16> to vector<4x44xbf16>
    %c0_103 = arith.constant 0 : index
    %c11_104 = arith.constant 11 : index
    %115 = vector.load %arg13[%c0_103, %c11_104] : memref<44x122xbf16, #tpu.memory_space<vmem>>, vector<44x100xbf16>
    %cst_105 = arith.constant dense<0.000000e+00> : vector<4x100xf32>
    %116 = tpu.matmul %114, %115, %cst_105 {dimension_numbers = #tpu.dot_dimension_numbers<[1], [0], [0], [1], [0, 0, 1, 1], [], []>} : vector<4x44xbf16>, vector<44x100xbf16>, vector<4x100xf32> -> vector<4x100xf32>
    %117 = arith.addf %112, %116 : vector<4x100xf32>
    %c5_106 = arith.constant 5 : index
    %c0_107 = arith.constant 0 : index
    %c0_108 = arith.constant 0 : index
    %118 = vector.load %arg9[%c5_106, %c0_107, %c0_108] : memref<9x4x44xbf16, #tpu.memory_space<vmem>>, vector<1x4x44xbf16>
    %119 = vector.shape_cast %118 : vector<1x4x44xbf16> to vector<4x44xbf16>
    %c0_109 = arith.constant 0 : index
    %c12_110 = arith.constant 12 : index
    %120 = vector.load %arg13[%c0_109, %c12_110] : memref<44x122xbf16, #tpu.memory_space<vmem>>, vector<44x100xbf16>
    %cst_111 = arith.constant dense<0.000000e+00> : vector<4x100xf32>
    %121 = tpu.matmul %119, %120, %cst_111 {dimension_numbers = #tpu.dot_dimension_numbers<[1], [0], [0], [1], [0, 0, 1, 1], [], []>} : vector<4x44xbf16>, vector<44x100xbf16>, vector<4x100xf32> -> vector<4x100xf32>
    %122 = arith.addf %117, %121 : vector<4x100xf32>
    %c6_112 = arith.constant 6 : index
    %c0_113 = arith.constant 0 : index
    %c0_114 = arith.constant 0 : index
    %123 = vector.load %arg9[%c6_112, %c0_113, %c0_114] : memref<9x4x44xbf16, #tpu.memory_space<vmem>>, vector<1x4x44xbf16>
    %124 = vector.shape_cast %123 : vector<1x4x44xbf16> to vector<4x44xbf16>
    %c0_115 = arith.constant 0 : index
    %c20_116 = arith.constant 20 : index
    %125 = vector.load %arg13[%c0_115, %c20_116] : memref<44x122xbf16, #tpu.memory_space<vmem>>, vector<44x100xbf16>
    %cst_117 = arith.constant dense<0.000000e+00> : vector<4x100xf32>
    %126 = tpu.matmul %124, %125, %cst_117 {dimension_numbers = #tpu.dot_dimension_numbers<[1], [0], [0], [1], [0, 0, 1, 1], [], []>} : vector<4x44xbf16>, vector<44x100xbf16>, vector<4x100xf32> -> vector<4x100xf32>
    %127 = arith.addf %122, %126 : vector<4x100xf32>
    %c7_118 = arith.constant 7 : index
    %c0_119 = arith.constant 0 : index
    %c0_120 = arith.constant 0 : index
    %128 = vector.load %arg9[%c7_118, %c0_119, %c0_120] : memref<9x4x44xbf16, #tpu.memory_space<vmem>>, vector<1x4x44xbf16>
    %129 = vector.shape_cast %128 : vector<1x4x44xbf16> to vector<4x44xbf16>
    %c0_121 = arith.constant 0 : index
    %c21_122 = arith.constant 21 : index
    %130 = vector.load %arg13[%c0_121, %c21_122] : memref<44x122xbf16, #tpu.memory_space<vmem>>, vector<44x100xbf16>
    %cst_123 = arith.constant dense<0.000000e+00> : vector<4x100xf32>
    %131 = tpu.matmul %129, %130, %cst_123 {dimension_numbers = #tpu.dot_dimension_numbers<[1], [0], [0], [1], [0, 0, 1, 1], [], []>} : vector<4x44xbf16>, vector<44x100xbf16>, vector<4x100xf32> -> vector<4x100xf32>
    %132 = arith.addf %127, %131 : vector<4x100xf32>
    %c8_124 = arith.constant 8 : index
    %c0_125 = arith.constant 0 : index
    %c0_126 = arith.constant 0 : index
    %133 = vector.load %arg9[%c8_124, %c0_125, %c0_126] : memref<9x4x44xbf16, #tpu.memory_space<vmem>>, vector<1x4x44xbf16>
    %134 = vector.shape_cast %133 : vector<1x4x44xbf16> to vector<4x44xbf16>
    %c0_127 = arith.constant 0 : index
    %c22_128 = arith.constant 22 : index
    %135 = vector.load %arg13[%c0_127, %c22_128] : memref<44x122xbf16, #tpu.memory_space<vmem>>, vector<44x100xbf16>
    %cst_129 = arith.constant dense<0.000000e+00> : vector<4x100xf32>
    %136 = tpu.matmul %134, %135, %cst_129 {dimension_numbers = #tpu.dot_dimension_numbers<[1], [0], [0], [1], [0, 0, 1, 1], [], []>} : vector<4x44xbf16>, vector<44x100xbf16>, vector<4x100xf32> -> vector<4x100xf32>
    %137 = arith.addf %132, %136 : vector<4x100xf32>
    %c0_130 = arith.constant 0 : index
    %c0_131 = arith.constant 0 : index
    %138 = vector.load %arg10[%c0_130, %c0_131] : memref<4x1xf32, #tpu.memory_space<vmem>>, vector<4x1xf32>
    %139 = vector.broadcast %138 : vector<4x1xf32> to vector<4x100xf32>
    %140 = arith.addf %137, %139 : vector<4x100xf32>
    %141 = vector.broadcast %3 : vector<1x100xf32> to vector<4x100xf32>
    %142 = arith.mulf %140, %141 : vector<4x100xf32>
    %143 = arith.truncf %142 : vector<4x100xf32> to vector<4x100xbf16>
    %c0_132 = arith.constant 0 : index
    %c4_133 = arith.constant 4 : index
    %c0_134 = arith.constant 0 : index
    %144 = vector.load %arg11[%c0_132, %c4_133, %c0_134] : memref<1x8x100xbf16, #tpu.memory_space<vmem>>, vector<1x4x100xbf16>
    %145 = vector.shape_cast %144 : vector<1x4x100xbf16> to vector<4x100xbf16>
    %146 = vector.shape_cast %143 : vector<4x100xbf16> to vector<1x4x100xbf16>
    tpu.vector_store %arg11[%c0_132, %c4_133, %c0_134], %146 {strides = array<i32>} : memref<1x8x100xbf16, #tpu.memory_space<vmem>>, vector<1x4x100xbf16>,
    return
  }
  func.func @transform_0(%arg0: i32) -> (i32, i32, i32) {
    %c0_i32 = arith.constant 0 : i32
    %c0_i32_0 = arith.constant 0 : i32
    %c0_i32_1 = arith.constant 0 : i32
    return %arg0, %c0_i32, %c0_i32_0 : i32, i32, i32
  }
  func.func @transform_1(%arg0: i32) -> (i32, i32) {
    %c0_i32 = arith.constant 0 : i32
    %c0_i32_0 = arith.constant 0 : i32
    %c0_i32_1 = arith.constant 0 : i32
    return %c0_i32, %c0_i32_0 : i32, i32
  }
  func.func @transform_2(%arg0: i32) -> (i32, i32) {
    %c0_i32 = arith.constant 0 : i32
    %c0_i32_0 = arith.constant 0 : i32
    %c0_i32_1 = arith.constant 0 : i32
    return %c0_i32, %c0_i32_0 : i32, i32
  }
  func.func @transform_3(%arg0: i32) -> (i32, i32) {
    %c0_i32 = arith.constant 0 : i32
    %c0_i32_0 = arith.constant 0 : i32
    %c0_i32_1 = arith.constant 0 : i32
    return %c0_i32, %c0_i32_0 : i32, i32
  }
  func.func @transform_4(%arg0: i32) -> (i32, i32, i32) {
    %c0_i32 = arith.constant 0 : i32
    %c0_i32_0 = arith.constant 0 : i32
    %c0_i32_1 = arith.constant 0 : i32
    %c0_i32_2 = arith.constant 0 : i32
    return %c0_i32, %c0_i32_0, %c0_i32_1 : i32, i32, i32
  }
  func.func @transform_5(%arg0: i32) -> (i32, i32) {
    %c0_i32 = arith.constant 0 : i32
    %c0_i32_0 = arith.constant 0 : i32
    %c0_i32_1 = arith.constant 0 : i32
    return %c0_i32, %c0_i32_0 : i32, i32
  }
  func.func @transform_6(%arg0: i32) -> (i32, i32) {
    %c0_i32 = arith.constant 0 : i32
    %c0_i32_0 = arith.constant 0 : i32
    %c0_i32_1 = arith.constant 0 : i32
    return %c0_i32, %c0_i32_0 : i32, i32
  }
  func.func @transform_7(%arg0: i32) -> (i32, i32) {
    %c0_i32 = arith.constant 0 : i32
    %c0_i32_0 = arith.constant 0 : i32
    %c0_i32_1 = arith.constant 0 : i32
    return %c0_i32, %c0_i32_0 : i32, i32
  }
  func.func @transform_8(%arg0: i32) -> (i32, i32, i32) {
    %c0_i32 = arith.constant 0 : i32
    %c0_i32_0 = arith.constant 0 : i32
    %c0_i32_1 = arith.constant 0 : i32
    %c0_i32_2 = arith.constant 0 : i32
    return %c0_i32, %c0_i32_0, %c0_i32_1 : i32, i32, i32
  }
  func.func @transform_9(%arg0: i32) -> (i32, i32) {
    %c0_i32 = arith.constant 0 : i32
    %c0_i32_0 = arith.constant 0 : i32
    %c0_i32_1 = arith.constant 0 : i32
    return %c0_i32, %c0_i32_0 : i32, i32
  }
  func.func @transform_10(%arg0: i32) -> (i32, i32, i32) {
    %c0_i32 = arith.constant 0 : i32
    %c0_i32_0 = arith.constant 0 : i32
    %c0_i32_1 = arith.constant 0 : i32
    return %arg0, %c0_i32, %c0_i32_0 : i32, i32, i32
  }
}

module attributes {stable_mosaic.version = 11 : i64} {
  func.func @_mm_kernel(%arg0: i32, %arg1: memref<1x32x64xbf16, #tpu.memory_space<vmem>>, %arg2: memref<32x32xbf16, #tpu.memory_space<vmem>>, %arg3: memref<32x1xf32, #tpu.memory_space<vmem>>, %arg4: memref<1x32x64xbf16, #tpu.memory_space<vmem>>) attributes {dimension_semantics = [#tpu.dimension_semantics<parallel>], iteration_bounds = array<i64: 2>, scalar_prefetch = 0 : i64, scratch_operands = 0 : i64, tpu.core_type = #tpu.core_type<tc>, window_params = [{transform_indices = @transform_0, window_bounds = array<i64: 1, 32, 64>}, {pipeline_mode = #tpu.pipeline_mode<synchronous>, transform_indices = @transform_1, window_bounds = array<i64: 32, 32>}, {pipeline_mode = #tpu.pipeline_mode<synchronous>, transform_indices = @transform_2, window_bounds = array<i64: 32, 1>}, {transform_indices = @transform_3, window_bounds = array<i64: 1, 32, 64>}]} {
    %c0 = arith.constant 0 : index
    %c0_0 = arith.constant 0 : index
    %0 = vector.load %arg2[%c0, %c0_0] : memref<32x32xbf16, #tpu.memory_space<vmem>>, vector<32x32xbf16>
    %c0_1 = arith.constant 0 : index
    %c0_2 = arith.constant 0 : index
    %c0_3 = arith.constant 0 : index
    %1 = vector.load %arg1[%c0_1, %c0_2, %c0_3] : memref<1x32x64xbf16, #tpu.memory_space<vmem>>, vector<1x32x64xbf16>
    %2 = vector.shape_cast %1 : vector<1x32x64xbf16> to vector<32x64xbf16>
    %cst = arith.constant dense<0.000000e+00> : vector<32x64xf32>
    %3 = tpu.matmul %0, %2, %cst {dimension_numbers = #tpu.dot_dimension_numbers<[1], [0], [0], [1], [0, 0, 1, 1], [], []>} : vector<32x32xbf16>, vector<32x64xbf16>, vector<32x64xf32> -> vector<32x64xf32>
    %c0_4 = arith.constant 0 : index
    %c0_5 = arith.constant 0 : index
    %4 = vector.load %arg3[%c0_4, %c0_5] : memref<32x1xf32, #tpu.memory_space<vmem>>, vector<32x1xf32>
    %5 = vector.broadcast %4 : vector<32x1xf32> to vector<32x64xf32>
    %6 = arith.addf %3, %5 : vector<32x64xf32>
    %7 = arith.truncf %6 : vector<32x64xf32> to vector<32x64xbf16>
    %c0_6 = arith.constant 0 : index
    %c0_7 = arith.constant 0 : index
    %c0_8 = arith.constant 0 : index
    %8 = vector.load %arg4[%c0_6, %c0_7, %c0_8] : memref<1x32x64xbf16, #tpu.memory_space<vmem>>, vector<1x32x64xbf16>
    %9 = vector.shape_cast %8 : vector<1x32x64xbf16> to vector<32x64xbf16>
    %10 = vector.shape_cast %7 : vector<32x64xbf16> to vector<1x32x64xbf16>
    tpu.vector_store %arg4[%c0_6, %c0_7, %c0_8], %10 {strides = array<i32>} : memref<1x32x64xbf16, #tpu.memory_space<vmem>>, vector<1x32x64xbf16>,
    return
  }
  func.func @transform_0(%arg0: i32) -> (i32, i32, i32) {
    %c0_i32 = arith.constant 0 : i32
    %c0_i32_0 = arith.constant 0 : i32
    %c0_i32_1 = arith.constant 0 : i32
    return %arg0, %c0_i32, %c0_i32_0 : i32, i32, i32
  }
  func.func @transform_1(%arg0: i32) -> (i32, i32) {
    %c0_i32 = arith.constant 0 : i32
    %c0_i32_0 = arith.constant 0 : i32
    %c0_i32_1 = arith.constant 0 : i32
    return %c0_i32, %c0_i32_0 : i32, i32
  }
  func.func @transform_2(%arg0: i32) -> (i32, i32) {
    %c0_i32 = arith.constant 0 : i32
    %c0_i32_0 = arith.constant 0 : i32
    %c0_i32_1 = arith.constant 0 : i32
    return %c0_i32, %c0_i32_0 : i32, i32
  }
  func.func @transform_3(%arg0: i32) -> (i32, i32, i32) {
    %c0_i32 = arith.constant 0 : i32
    %c0_i32_0 = arith.constant 0 : i32
    %c0_i32_1 = arith.constant 0 : i32
    return %arg0, %c0_i32, %c0_i32_0 : i32, i32, i32
  }
}

module attributes {stable_mosaic.version = 11 : i64} {
  func.func @_mm_kernel(%arg0: i32, %arg1: memref<1x40x324xbf16, #tpu.memory_space<vmem>>, %arg2: memref<1x40xbf16, #tpu.memory_space<vmem>>, %arg3: memref<1x1xf32, #tpu.memory_space<vmem>>, %arg4: memref<1x1x324xf32, #tpu.memory_space<vmem>>) attributes {dimension_semantics = [#tpu.dimension_semantics<parallel>], iteration_bounds = array<i64: 2>, scalar_prefetch = 0 : i64, scratch_operands = 0 : i64, tpu.core_type = #tpu.core_type<tc>, window_params = [{transform_indices = @transform_0, window_bounds = array<i64: 1, 40, 324>}, {pipeline_mode = #tpu.pipeline_mode<synchronous>, transform_indices = @transform_1, window_bounds = array<i64: 1, 40>}, {pipeline_mode = #tpu.pipeline_mode<synchronous>, transform_indices = @transform_2, window_bounds = array<i64: 1, 1>}, {transform_indices = @transform_3, window_bounds = array<i64: 1, 1, 324>}]} {
    %c0 = arith.constant 0 : index
    %c0_0 = arith.constant 0 : index
    %0 = vector.load %arg2[%c0, %c0_0] : memref<1x40xbf16, #tpu.memory_space<vmem>>, vector<1x40xbf16>
    %c0_1 = arith.constant 0 : index
    %c0_2 = arith.constant 0 : index
    %c0_3 = arith.constant 0 : index
    %1 = vector.load %arg1[%c0_1, %c0_2, %c0_3] : memref<1x40x324xbf16, #tpu.memory_space<vmem>>, vector<1x40x324xbf16>
    %2 = vector.shape_cast %1 : vector<1x40x324xbf16> to vector<40x324xbf16>
    %cst = arith.constant dense<0.000000e+00> : vector<1x324xf32>
    %3 = tpu.matmul %0, %2, %cst {dimension_numbers = #tpu.dot_dimension_numbers<[1], [0], [0], [1], [0, 0, 1, 1], [], []>} : vector<1x40xbf16>, vector<40x324xbf16>, vector<1x324xf32> -> vector<1x324xf32>
    %c0_4 = arith.constant 0 : index
    %c0_5 = arith.constant 0 : index
    %4 = vector.load %arg3[%c0_4, %c0_5] : memref<1x1xf32, #tpu.memory_space<vmem>>, vector<1x1xf32>
    %5 = vector.broadcast %4 : vector<1x1xf32> to vector<1x324xf32>
    %6 = arith.addf %3, %5 : vector<1x324xf32>
    %c0_6 = arith.constant 0 : index
    %c0_7 = arith.constant 0 : index
    %c0_8 = arith.constant 0 : index
    %7 = vector.load %arg4[%c0_6, %c0_7, %c0_8] : memref<1x1x324xf32, #tpu.memory_space<vmem>>, vector<1x1x324xf32>
    %8 = vector.shape_cast %7 : vector<1x1x324xf32> to vector<1x324xf32>
    %9 = vector.shape_cast %6 : vector<1x324xf32> to vector<1x1x324xf32>
    tpu.vector_store %arg4[%c0_6, %c0_7, %c0_8], %9 {strides = array<i32>} : memref<1x1x324xf32, #tpu.memory_space<vmem>>, vector<1x1x324xf32>,
    return
  }
  func.func @transform_0(%arg0: i32) -> (i32, i32, i32) {
    %c0_i32 = arith.constant 0 : i32
    %c0_i32_0 = arith.constant 0 : i32
    %c0_i32_1 = arith.constant 0 : i32
    return %arg0, %c0_i32, %c0_i32_0 : i32, i32, i32
  }
  func.func @transform_1(%arg0: i32) -> (i32, i32) {
    %c0_i32 = arith.constant 0 : i32
    %c0_i32_0 = arith.constant 0 : i32
    %c0_i32_1 = arith.constant 0 : i32
    return %c0_i32, %c0_i32_0 : i32, i32
  }
  func.func @transform_2(%arg0: i32) -> (i32, i32) {
    %c0_i32 = arith.constant 0 : i32
    %c0_i32_0 = arith.constant 0 : i32
    %c0_i32_1 = arith.constant 0 : i32
    return %c0_i32, %c0_i32_0 : i32, i32
  }
  func.func @transform_3(%arg0: i32) -> (i32, i32, i32) {
    %c0_i32 = arith.constant 0 : i32
    %c0_i32_0 = arith.constant 0 : i32
    %c0_i32_1 = arith.constant 0 : i32
    return %arg0, %c0_i32, %c0_i32_0 : i32, i32, i32
  }
}

module attributes {stable_mosaic.version = 11 : i64} {
  func.func @kernel(%arg0: i32, %arg1: memref<1x32x324xbf16, #tpu.memory_space<vmem>>, %arg2: memref<1x324xf32, #tpu.memory_space<vmem>>, %arg3: memref<32x1xf32, #tpu.memory_space<vmem>>, %arg4: memref<32x1xf32, #tpu.memory_space<vmem>>, %arg5: memref<9x4x32xbf16, #tpu.memory_space<vmem>>, %arg6: memref<4x1xf32, #tpu.memory_space<vmem>>, %arg7: memref<36x1xf32, #tpu.memory_space<vmem>>, %arg8: memref<36x1xf32, #tpu.memory_space<vmem>>, %arg9: memref<9x4x36xbf16, #tpu.memory_space<vmem>>, %arg10: memref<4x1xf32, #tpu.memory_space<vmem>>, %arg11: memref<1x40x324xbf16, #tpu.memory_space<vmem>>, %arg12: memref<36x324xbf16, #tpu.memory_space<vmem>>, %arg13: memref<36x362xbf16, #tpu.memory_space<vmem>>) attributes {dimension_semantics = [#tpu.dimension_semantics<parallel>], iteration_bounds = array<i64: 2>, scalar_prefetch = 0 : i64, scratch_operands = 2 : i64, tpu.core_type = #tpu.core_type<tc>, window_params = [{transform_indices = @transform_0, window_bounds = array<i64: 1, 32, 324>}, {pipeline_mode = #tpu.pipeline_mode<synchronous>, transform_indices = @transform_1, window_bounds = array<i64: 1, 324>}, {pipeline_mode = #tpu.pipeline_mode<synchronous>, transform_indices = @transform_2, window_bounds = array<i64: 32, 1>}, {pipeline_mode = #tpu.pipeline_mode<synchronous>, transform_indices = @transform_3, window_bounds = array<i64: 32, 1>}, {pipeline_mode = #tpu.pipeline_mode<synchronous>, transform_indices = @transform_4, window_bounds = array<i64: 9, 4, 32>}, {pipeline_mode = #tpu.pipeline_mode<synchronous>, transform_indices = @transform_5, window_bounds = array<i64: 4, 1>}, {pipeline_mode = #tpu.pipeline_mode<synchronous>, transform_indices = @transform_6, window_bounds = array<i64: 36, 1>}, {pipeline_mode = #tpu.pipeline_mode<synchronous>, transform_indices = @transform_7, window_bounds = array<i64: 36, 1>}, {pipeline_mode = #tpu.pipeline_mode<synchronous>, transform_indices = @transform_8, window_bounds = array<i64: 9, 4, 36>}, {pipeline_mode = #tpu.pipeline_mode<synchronous>, transform_indices = @transform_9, window_bounds = array<i64: 4, 1>}, {transform_indices = @transform_10, window_bounds = array<i64: 1, 40, 324>}]} {
    %c0 = arith.constant 0 : index
    %c0_0 = arith.constant 0 : index
    %c0_1 = arith.constant 0 : index
    %0 = vector.load %arg1[%c0, %c0_0, %c0_1] : memref<1x32x324xbf16, #tpu.memory_space<vmem>>, vector<1x32x324xbf16>
    %1 = vector.shape_cast %0 : vector<1x32x324xbf16> to vector<32x324xbf16>
    %c0_2 = arith.constant 0 : index
    %c0_3 = arith.constant 0 : index
    %2 = vector.load %arg12[%c0_2, %c0_3] : memref<36x324xbf16, #tpu.memory_space<vmem>>, vector<32x324xbf16>
    tpu.vector_store %arg12[%c0_2, %c0_3], %1 {strides = array<i32>} : memref<36x324xbf16, #tpu.memory_space<vmem>>, vector<32x324xbf16>,
    %c0_4 = arith.constant 0 : index
    %c0_5 = arith.constant 0 : index
    %c0_6 = arith.constant 0 : index
    %3 = vector.load %arg11[%c0_4, %c0_5, %c0_6] : memref<1x40x324xbf16, #tpu.memory_space<vmem>>, vector<1x32x324xbf16>
    %4 = vector.shape_cast %3 : vector<1x32x324xbf16> to vector<32x324xbf16>
    %5 = vector.shape_cast %1 : vector<32x324xbf16> to vector<1x32x324xbf16>
    tpu.vector_store %arg11[%c0_4, %c0_5, %c0_6], %5 {strides = array<i32>} : memref<1x40x324xbf16, #tpu.memory_space<vmem>>, vector<1x32x324xbf16>,
    %c0_7 = arith.constant 0 : index
    %c0_8 = arith.constant 0 : index
    %6 = vector.load %arg2[%c0_7, %c0_8] : memref<1x324xf32, #tpu.memory_space<vmem>>, vector<1x324xf32>
    %cst = arith.constant 0.000000e+00 : bf16
    %7 = vector.broadcast %cst : bf16 to vector<36x19xbf16>
    %c0_9 = arith.constant 0 : index
    %c0_10 = arith.constant 0 : index
    %8 = vector.load %arg13[%c0_9, %c0_10] : memref<36x362xbf16, #tpu.memory_space<vmem>>, vector<36x19xbf16>
    tpu.vector_store %arg13[%c0_9, %c0_10], %7 {strides = array<i32>} : memref<36x362xbf16, #tpu.memory_space<vmem>>, vector<36x19xbf16>,
    %cst_11 = arith.constant 0.000000e+00 : bf16
    %9 = vector.broadcast %cst_11 : bf16 to vector<36x19xbf16>
    %c0_12 = arith.constant 0 : index
    %c343 = arith.constant 343 : index
    %10 = vector.load %arg13[%c0_12, %c343] : memref<36x362xbf16, #tpu.memory_space<vmem>>, vector<36x19xbf16>
    tpu.vector_store %arg13[%c0_12, %c343], %9 {strides = array<i32>} : memref<36x362xbf16, #tpu.memory_space<vmem>>, vector<36x19xbf16>,
    %c0_13 = arith.constant 0 : index
    %c0_14 = arith.constant 0 : index
    %11 = vector.load %arg12[%c0_13, %c0_14] : memref<36x324xbf16, #tpu.memory_space<vmem>>, vector<32x324xbf16>
    %12 = arith.extf %11 : vector<32x324xbf16> to vector<32x324xf32>
    %c0_15 = arith.constant 0 : index
    %c0_16 = arith.constant 0 : index
    %13 = vector.load %arg3[%c0_15, %c0_16] : memref<32x1xf32, #tpu.memory_space<vmem>>, vector<32x1xf32>
    %14 = vector.broadcast %13 : vector<32x1xf32> to vector<32x324xf32>
    %15 = arith.mulf %12, %14 : vector<32x324xf32>
    %c0_17 = arith.constant 0 : index
    %c0_18 = arith.constant 0 : index
    %16 = vector.load %arg4[%c0_17, %c0_18] : memref<32x1xf32, #tpu.memory_space<vmem>>, vector<32x1xf32>
    %17 = vector.broadcast %16 : vector<32x1xf32> to vector<32x324xf32>
    %18 = arith.addf %15, %17 : vector<32x324xf32>
    %cst_19 = arith.constant 0.000000e+00 : f32
    %19 = vector.broadcast %cst_19 : f32 to vector<32x324xf32>
    %20 = arith.maximumf %18, %19 : vector<32x324xf32>
    %21 = vector.broadcast %6 : vector<1x324xf32> to vector<32x324xf32>
    %22 = arith.mulf %20, %21 : vector<32x324xf32>
    %23 = arith.truncf %22 : vector<32x324xf32> to vector<32x324xbf16>
    %c0_20 = arith.constant 0 : index
    %c19 = arith.constant 19 : index
    %24 = vector.load %arg13[%c0_20, %c19] : memref<36x362xbf16, #tpu.memory_space<vmem>>, vector<32x324xbf16>
    tpu.vector_store %arg13[%c0_20, %c19], %23 {strides = array<i32>} : memref<36x362xbf16, #tpu.memory_space<vmem>>, vector<32x324xbf16>,
    %cst_21 = arith.constant 0.000000e+00 : f32
    %25 = vector.broadcast %cst_21 : f32 to vector<4x324xf32>
    %c0_22 = arith.constant 0 : index
    %c0_23 = arith.constant 0 : index
    %c0_24 = arith.constant 0 : index
    %26 = vector.load %arg5[%c0_22, %c0_23, %c0_24] : memref<9x4x32xbf16, #tpu.memory_space<vmem>>, vector<1x4x32xbf16>
    %27 = vector.shape_cast %26 : vector<1x4x32xbf16> to vector<4x32xbf16>
    %c0_25 = arith.constant 0 : index
    %c0_26 = arith.constant 0 : index
    %28 = vector.load %arg13[%c0_25, %c0_26] : memref<36x362xbf16, #tpu.memory_space<vmem>>, vector<32x324xbf16>
    %cst_27 = arith.constant dense<0.000000e+00> : vector<4x324xf32>
    %29 = tpu.matmul %27, %28, %cst_27 {dimension_numbers = #tpu.dot_dimension_numbers<[1], [0], [0], [1], [0, 0, 1, 1], [], []>} : vector<4x32xbf16>, vector<32x324xbf16>, vector<4x324xf32> -> vector<4x324xf32>
    %30 = arith.addf %25, %29 : vector<4x324xf32>
    %c1 = arith.constant 1 : index
    %c0_28 = arith.constant 0 : index
    %c0_29 = arith.constant 0 : index
    %31 = vector.load %arg5[%c1, %c0_28, %c0_29] : memref<9x4x32xbf16, #tpu.memory_space<vmem>>, vector<1x4x32xbf16>
    %32 = vector.shape_cast %31 : vector<1x4x32xbf16> to vector<4x32xbf16>
    %c0_30 = arith.constant 0 : index
    %c1_31 = arith.constant 1 : index
    %33 = vector.load %arg13[%c0_30, %c1_31] : memref<36x362xbf16, #tpu.memory_space<vmem>>, vector<32x324xbf16>
    %cst_32 = arith.constant dense<0.000000e+00> : vector<4x324xf32>
    %34 = tpu.matmul %32, %33, %cst_32 {dimension_numbers = #tpu.dot_dimension_numbers<[1], [0], [0], [1], [0, 0, 1, 1], [], []>} : vector<4x32xbf16>, vector<32x324xbf16>, vector<4x324xf32> -> vector<4x324xf32>
    %35 = arith.addf %30, %34 : vector<4x324xf32>
    %c2 = arith.constant 2 : index
    %c0_33 = arith.constant 0 : index
    %c0_34 = arith.constant 0 : index
    %36 = vector.load %arg5[%c2, %c0_33, %c0_34] : memref<9x4x32xbf16, #tpu.memory_space<vmem>>, vector<1x4x32xbf16>
    %37 = vector.shape_cast %36 : vector<1x4x32xbf16> to vector<4x32xbf16>
    %c0_35 = arith.constant 0 : index
    %c2_36 = arith.constant 2 : index
    %38 = vector.load %arg13[%c0_35, %c2_36] : memref<36x362xbf16, #tpu.memory_space<vmem>>, vector<32x324xbf16>
    %cst_37 = arith.constant dense<0.000000e+00> : vector<4x324xf32>
    %39 = tpu.matmul %37, %38, %cst_37 {dimension_numbers = #tpu.dot_dimension_numbers<[1], [0], [0], [1], [0, 0, 1, 1], [], []>} : vector<4x32xbf16>, vector<32x324xbf16>, vector<4x324xf32> -> vector<4x324xf32>
    %40 = arith.addf %35, %39 : vector<4x324xf32>
    %c3 = arith.constant 3 : index
    %c0_38 = arith.constant 0 : index
    %c0_39 = arith.constant 0 : index
    %41 = vector.load %arg5[%c3, %c0_38, %c0_39] : memref<9x4x32xbf16, #tpu.memory_space<vmem>>, vector<1x4x32xbf16>
    %42 = vector.shape_cast %41 : vector<1x4x32xbf16> to vector<4x32xbf16>
    %c0_40 = arith.constant 0 : index
    %c18 = arith.constant 18 : index
    %43 = vector.load %arg13[%c0_40, %c18] : memref<36x362xbf16, #tpu.memory_space<vmem>>, vector<32x324xbf16>
    %cst_41 = arith.constant dense<0.000000e+00> : vector<4x324xf32>
    %44 = tpu.matmul %42, %43, %cst_41 {dimension_numbers = #tpu.dot_dimension_numbers<[1], [0], [0], [1], [0, 0, 1, 1], [], []>} : vector<4x32xbf16>, vector<32x324xbf16>, vector<4x324xf32> -> vector<4x324xf32>
    %45 = arith.addf %40, %44 : vector<4x324xf32>
    %c4 = arith.constant 4 : index
    %c0_42 = arith.constant 0 : index
    %c0_43 = arith.constant 0 : index
    %46 = vector.load %arg5[%c4, %c0_42, %c0_43] : memref<9x4x32xbf16, #tpu.memory_space<vmem>>, vector<1x4x32xbf16>
    %47 = vector.shape_cast %46 : vector<1x4x32xbf16> to vector<4x32xbf16>
    %c0_44 = arith.constant 0 : index
    %c19_45 = arith.constant 19 : index
    %48 = vector.load %arg13[%c0_44, %c19_45] : memref<36x362xbf16, #tpu.memory_space<vmem>>, vector<32x324xbf16>
    %cst_46 = arith.constant dense<0.000000e+00> : vector<4x324xf32>
    %49 = tpu.matmul %47, %48, %cst_46 {dimension_numbers = #tpu.dot_dimension_numbers<[1], [0], [0], [1], [0, 0, 1, 1], [], []>} : vector<4x32xbf16>, vector<32x324xbf16>, vector<4x324xf32> -> vector<4x324xf32>
    %50 = arith.addf %45, %49 : vector<4x324xf32>
    %c5 = arith.constant 5 : index
    %c0_47 = arith.constant 0 : index
    %c0_48 = arith.constant 0 : index
    %51 = vector.load %arg5[%c5, %c0_47, %c0_48] : memref<9x4x32xbf16, #tpu.memory_space<vmem>>, vector<1x4x32xbf16>
    %52 = vector.shape_cast %51 : vector<1x4x32xbf16> to vector<4x32xbf16>
    %c0_49 = arith.constant 0 : index
    %c20 = arith.constant 20 : index
    %53 = vector.load %arg13[%c0_49, %c20] : memref<36x362xbf16, #tpu.memory_space<vmem>>, vector<32x324xbf16>
    %cst_50 = arith.constant dense<0.000000e+00> : vector<4x324xf32>
    %54 = tpu.matmul %52, %53, %cst_50 {dimension_numbers = #tpu.dot_dimension_numbers<[1], [0], [0], [1], [0, 0, 1, 1], [], []>} : vector<4x32xbf16>, vector<32x324xbf16>, vector<4x324xf32> -> vector<4x324xf32>
    %55 = arith.addf %50, %54 : vector<4x324xf32>
    %c6 = arith.constant 6 : index
    %c0_51 = arith.constant 0 : index
    %c0_52 = arith.constant 0 : index
    %56 = vector.load %arg5[%c6, %c0_51, %c0_52] : memref<9x4x32xbf16, #tpu.memory_space<vmem>>, vector<1x4x32xbf16>
    %57 = vector.shape_cast %56 : vector<1x4x32xbf16> to vector<4x32xbf16>
    %c0_53 = arith.constant 0 : index
    %c36 = arith.constant 36 : index
    %58 = vector.load %arg13[%c0_53, %c36] : memref<36x362xbf16, #tpu.memory_space<vmem>>, vector<32x324xbf16>
    %cst_54 = arith.constant dense<0.000000e+00> : vector<4x324xf32>
    %59 = tpu.matmul %57, %58, %cst_54 {dimension_numbers = #tpu.dot_dimension_numbers<[1], [0], [0], [1], [0, 0, 1, 1], [], []>} : vector<4x32xbf16>, vector<32x324xbf16>, vector<4x324xf32> -> vector<4x324xf32>
    %60 = arith.addf %55, %59 : vector<4x324xf32>
    %c7 = arith.constant 7 : index
    %c0_55 = arith.constant 0 : index
    %c0_56 = arith.constant 0 : index
    %61 = vector.load %arg5[%c7, %c0_55, %c0_56] : memref<9x4x32xbf16, #tpu.memory_space<vmem>>, vector<1x4x32xbf16>
    %62 = vector.shape_cast %61 : vector<1x4x32xbf16> to vector<4x32xbf16>
    %c0_57 = arith.constant 0 : index
    %c37 = arith.constant 37 : index
    %63 = vector.load %arg13[%c0_57, %c37] : memref<36x362xbf16, #tpu.memory_space<vmem>>, vector<32x324xbf16>
    %cst_58 = arith.constant dense<0.000000e+00> : vector<4x324xf32>
    %64 = tpu.matmul %62, %63, %cst_58 {dimension_numbers = #tpu.dot_dimension_numbers<[1], [0], [0], [1], [0, 0, 1, 1], [], []>} : vector<4x32xbf16>, vector<32x324xbf16>, vector<4x324xf32> -> vector<4x324xf32>
    %65 = arith.addf %60, %64 : vector<4x324xf32>
    %c8 = arith.constant 8 : index
    %c0_59 = arith.constant 0 : index
    %c0_60 = arith.constant 0 : index
    %66 = vector.load %arg5[%c8, %c0_59, %c0_60] : memref<9x4x32xbf16, #tpu.memory_space<vmem>>, vector<1x4x32xbf16>
    %67 = vector.shape_cast %66 : vector<1x4x32xbf16> to vector<4x32xbf16>
    %c0_61 = arith.constant 0 : index
    %c38 = arith.constant 38 : index
    %68 = vector.load %arg13[%c0_61, %c38] : memref<36x362xbf16, #tpu.memory_space<vmem>>, vector<32x324xbf16>
    %cst_62 = arith.constant dense<0.000000e+00> : vector<4x324xf32>
    %69 = tpu.matmul %67, %68, %cst_62 {dimension_numbers = #tpu.dot_dimension_numbers<[1], [0], [0], [1], [0, 0, 1, 1], [], []>} : vector<4x32xbf16>, vector<32x324xbf16>, vector<4x324xf32> -> vector<4x324xf32>
    %70 = arith.addf %65, %69 : vector<4x324xf32>
    %c0_63 = arith.constant 0 : index
    %c0_64 = arith.constant 0 : index
    %71 = vector.load %arg6[%c0_63, %c0_64] : memref<4x1xf32, #tpu.memory_space<vmem>>, vector<4x1xf32>
    %72 = vector.broadcast %71 : vector<4x1xf32> to vector<4x324xf32>
    %73 = arith.addf %70, %72 : vector<4x324xf32>
    %74 = vector.broadcast %6 : vector<1x324xf32> to vector<4x324xf32>
    %75 = arith.mulf %73, %74 : vector<4x324xf32>
    %76 = arith.truncf %75 : vector<4x324xf32> to vector<4x324xbf16>
    %c0_65 = arith.constant 0 : index
    %c32 = arith.constant 32 : index
    %c0_66 = arith.constant 0 : index
    %77 = vector.load %arg11[%c0_65, %c32, %c0_66] : memref<1x40x324xbf16, #tpu.memory_space<vmem>>, vector<1x4x324xbf16>
    %78 = vector.shape_cast %77 : vector<1x4x324xbf16> to vector<4x324xbf16>
    %79 = vector.shape_cast %76 : vector<4x324xbf16> to vector<1x4x324xbf16>
    tpu.vector_store %arg11[%c0_65, %c32, %c0_66], %79 {strides = array<i32>} : memref<1x40x324xbf16, #tpu.memory_space<vmem>>, vector<1x4x324xbf16>,
    %c32_67 = arith.constant 32 : index
    %c0_68 = arith.constant 0 : index
    %80 = vector.load %arg12[%c32_67, %c0_68] : memref<36x324xbf16, #tpu.memory_space<vmem>>, vector<4x324xbf16>
    tpu.vector_store %arg12[%c32_67, %c0_68], %76 {strides = array<i32>} : memref<36x324xbf16, #tpu.memory_space<vmem>>, vector<4x324xbf16>,
    %c0_69 = arith.constant 0 : index
    %c0_70 = arith.constant 0 : index
    %81 = vector.load %arg12[%c0_69, %c0_70] : memref<36x324xbf16, #tpu.memory_space<vmem>>, vector<36x324xbf16>
    %82 = arith.extf %81 : vector<36x324xbf16> to vector<36x324xf32>
    %c0_71 = arith.constant 0 : index
    %c0_72 = arith.constant 0 : index
    %83 = vector.load %arg7[%c0_71, %c0_72] : memref<36x1xf32, #tpu.memory_space<vmem>>, vector<36x1xf32>
    %84 = vector.broadcast %83 : vector<36x1xf32> to vector<36x324xf32>
    %85 = arith.mulf %82, %84 : vector<36x324xf32>
    %c0_73 = arith.constant 0 : index
    %c0_74 = arith.constant 0 : index
    %86 = vector.load %arg8[%c0_73, %c0_74] : memref<36x1xf32, #tpu.memory_space<vmem>>, vector<36x1xf32>
    %87 = vector.broadcast %86 : vector<36x1xf32> to vector<36x324xf32>
    %88 = arith.addf %85, %87 : vector<36x324xf32>
    %cst_75 = arith.constant 0.000000e+00 : f32
    %89 = vector.broadcast %cst_75 : f32 to vector<36x324xf32>
    %90 = arith.maximumf %88, %89 : vector<36x324xf32>
    %91 = vector.broadcast %6 : vector<1x324xf32> to vector<36x324xf32>
    %92 = arith.mulf %90, %91 : vector<36x324xf32>
    %93 = arith.truncf %92 : vector<36x324xf32> to vector<36x324xbf16>
    %c0_76 = arith.constant 0 : index
    %c19_77 = arith.constant 19 : index
    %94 = vector.load %arg13[%c0_76, %c19_77] : memref<36x362xbf16, #tpu.memory_space<vmem>>, vector<36x324xbf16>
    tpu.vector_store %arg13[%c0_76, %c19_77], %93 {strides = array<i32>} : memref<36x362xbf16, #tpu.memory_space<vmem>>, vector<36x324xbf16>,
    %cst_78 = arith.constant 0.000000e+00 : f32
    %95 = vector.broadcast %cst_78 : f32 to vector<4x324xf32>
    %c0_79 = arith.constant 0 : index
    %c0_80 = arith.constant 0 : index
    %c0_81 = arith.constant 0 : index
    %96 = vector.load %arg9[%c0_79, %c0_80, %c0_81] : memref<9x4x36xbf16, #tpu.memory_space<vmem>>, vector<1x4x36xbf16>
    %97 = vector.shape_cast %96 : vector<1x4x36xbf16> to vector<4x36xbf16>
    %c0_82 = arith.constant 0 : index
    %c0_83 = arith.constant 0 : index
    %98 = vector.load %arg13[%c0_82, %c0_83] : memref<36x362xbf16, #tpu.memory_space<vmem>>, vector<36x324xbf16>
    %cst_84 = arith.constant dense<0.000000e+00> : vector<4x324xf32>
    %99 = tpu.matmul %97, %98, %cst_84 {dimension_numbers = #tpu.dot_dimension_numbers<[1], [0], [0], [1], [0, 0, 1, 1], [], []>} : vector<4x36xbf16>, vector<36x324xbf16>, vector<4x324xf32> -> vector<4x324xf32>
    %100 = arith.addf %95, %99 : vector<4x324xf32>
    %c1_85 = arith.constant 1 : index
    %c0_86 = arith.constant 0 : index
    %c0_87 = arith.constant 0 : index
    %101 = vector.load %arg9[%c1_85, %c0_86, %c0_87] : memref<9x4x36xbf16, #tpu.memory_space<vmem>>, vector<1x4x36xbf16>
    %102 = vector.shape_cast %101 : vector<1x4x36xbf16> to vector<4x36xbf16>
    %c0_88 = arith.constant 0 : index
    %c1_89 = arith.constant 1 : index
    %103 = vector.load %arg13[%c0_88, %c1_89] : memref<36x362xbf16, #tpu.memory_space<vmem>>, vector<36x324xbf16>
    %cst_90 = arith.constant dense<0.000000e+00> : vector<4x324xf32>
    %104 = tpu.matmul %102, %103, %cst_90 {dimension_numbers = #tpu.dot_dimension_numbers<[1], [0], [0], [1], [0, 0, 1, 1], [], []>} : vector<4x36xbf16>, vector<36x324xbf16>, vector<4x324xf32> -> vector<4x324xf32>
    %105 = arith.addf %100, %104 : vector<4x324xf32>
    %c2_91 = arith.constant 2 : index
    %c0_92 = arith.constant 0 : index
    %c0_93 = arith.constant 0 : index
    %106 = vector.load %arg9[%c2_91, %c0_92, %c0_93] : memref<9x4x36xbf16, #tpu.memory_space<vmem>>, vector<1x4x36xbf16>
    %107 = vector.shape_cast %106 : vector<1x4x36xbf16> to vector<4x36xbf16>
    %c0_94 = arith.constant 0 : index
    %c2_95 = arith.constant 2 : index
    %108 = vector.load %arg13[%c0_94, %c2_95] : memref<36x362xbf16, #tpu.memory_space<vmem>>, vector<36x324xbf16>
    %cst_96 = arith.constant dense<0.000000e+00> : vector<4x324xf32>
    %109 = tpu.matmul %107, %108, %cst_96 {dimension_numbers = #tpu.dot_dimension_numbers<[1], [0], [0], [1], [0, 0, 1, 1], [], []>} : vector<4x36xbf16>, vector<36x324xbf16>, vector<4x324xf32> -> vector<4x324xf32>
    %110 = arith.addf %105, %109 : vector<4x324xf32>
    %c3_97 = arith.constant 3 : index
    %c0_98 = arith.constant 0 : index
    %c0_99 = arith.constant 0 : index
    %111 = vector.load %arg9[%c3_97, %c0_98, %c0_99] : memref<9x4x36xbf16, #tpu.memory_space<vmem>>, vector<1x4x36xbf16>
    %112 = vector.shape_cast %111 : vector<1x4x36xbf16> to vector<4x36xbf16>
    %c0_100 = arith.constant 0 : index
    %c18_101 = arith.constant 18 : index
    %113 = vector.load %arg13[%c0_100, %c18_101] : memref<36x362xbf16, #tpu.memory_space<vmem>>, vector<36x324xbf16>
    %cst_102 = arith.constant dense<0.000000e+00> : vector<4x324xf32>
    %114 = tpu.matmul %112, %113, %cst_102 {dimension_numbers = #tpu.dot_dimension_numbers<[1], [0], [0], [1], [0, 0, 1, 1], [], []>} : vector<4x36xbf16>, vector<36x324xbf16>, vector<4x324xf32> -> vector<4x324xf32>
    %115 = arith.addf %110, %114 : vector<4x324xf32>
    %c4_103 = arith.constant 4 : index
    %c0_104 = arith.constant 0 : index
    %c0_105 = arith.constant 0 : index
    %116 = vector.load %arg9[%c4_103, %c0_104, %c0_105] : memref<9x4x36xbf16, #tpu.memory_space<vmem>>, vector<1x4x36xbf16>
    %117 = vector.shape_cast %116 : vector<1x4x36xbf16> to vector<4x36xbf16>
    %c0_106 = arith.constant 0 : index
    %c19_107 = arith.constant 19 : index
    %118 = vector.load %arg13[%c0_106, %c19_107] : memref<36x362xbf16, #tpu.memory_space<vmem>>, vector<36x324xbf16>
    %cst_108 = arith.constant dense<0.000000e+00> : vector<4x324xf32>
    %119 = tpu.matmul %117, %118, %cst_108 {dimension_numbers = #tpu.dot_dimension_numbers<[1], [0], [0], [1], [0, 0, 1, 1], [], []>} : vector<4x36xbf16>, vector<36x324xbf16>, vector<4x324xf32> -> vector<4x324xf32>
    %120 = arith.addf %115, %119 : vector<4x324xf32>
    %c5_109 = arith.constant 5 : index
    %c0_110 = arith.constant 0 : index
    %c0_111 = arith.constant 0 : index
    %121 = vector.load %arg9[%c5_109, %c0_110, %c0_111] : memref<9x4x36xbf16, #tpu.memory_space<vmem>>, vector<1x4x36xbf16>
    %122 = vector.shape_cast %121 : vector<1x4x36xbf16> to vector<4x36xbf16>
    %c0_112 = arith.constant 0 : index
    %c20_113 = arith.constant 20 : index
    %123 = vector.load %arg13[%c0_112, %c20_113] : memref<36x362xbf16, #tpu.memory_space<vmem>>, vector<36x324xbf16>
    %cst_114 = arith.constant dense<0.000000e+00> : vector<4x324xf32>
    %124 = tpu.matmul %122, %123, %cst_114 {dimension_numbers = #tpu.dot_dimension_numbers<[1], [0], [0], [1], [0, 0, 1, 1], [], []>} : vector<4x36xbf16>, vector<36x324xbf16>, vector<4x324xf32> -> vector<4x324xf32>
    %125 = arith.addf %120, %124 : vector<4x324xf32>
    %c6_115 = arith.constant 6 : index
    %c0_116 = arith.constant 0 : index
    %c0_117 = arith.constant 0 : index
    %126 = vector.load %arg9[%c6_115, %c0_116, %c0_117] : memref<9x4x36xbf16, #tpu.memory_space<vmem>>, vector<1x4x36xbf16>
    %127 = vector.shape_cast %126 : vector<1x4x36xbf16> to vector<4x36xbf16>
    %c0_118 = arith.constant 0 : index
    %c36_119 = arith.constant 36 : index
    %128 = vector.load %arg13[%c0_118, %c36_119] : memref<36x362xbf16, #tpu.memory_space<vmem>>, vector<36x324xbf16>
    %cst_120 = arith.constant dense<0.000000e+00> : vector<4x324xf32>
    %129 = tpu.matmul %127, %128, %cst_120 {dimension_numbers = #tpu.dot_dimension_numbers<[1], [0], [0], [1], [0, 0, 1, 1], [], []>} : vector<4x36xbf16>, vector<36x324xbf16>, vector<4x324xf32> -> vector<4x324xf32>
    %130 = arith.addf %125, %129 : vector<4x324xf32>
    %c7_121 = arith.constant 7 : index
    %c0_122 = arith.constant 0 : index
    %c0_123 = arith.constant 0 : index
    %131 = vector.load %arg9[%c7_121, %c0_122, %c0_123] : memref<9x4x36xbf16, #tpu.memory_space<vmem>>, vector<1x4x36xbf16>
    %132 = vector.shape_cast %131 : vector<1x4x36xbf16> to vector<4x36xbf16>
    %c0_124 = arith.constant 0 : index
    %c37_125 = arith.constant 37 : index
    %133 = vector.load %arg13[%c0_124, %c37_125] : memref<36x362xbf16, #tpu.memory_space<vmem>>, vector<36x324xbf16>
    %cst_126 = arith.constant dense<0.000000e+00> : vector<4x324xf32>
    %134 = tpu.matmul %132, %133, %cst_126 {dimension_numbers = #tpu.dot_dimension_numbers<[1], [0], [0], [1], [0, 0, 1, 1], [], []>} : vector<4x36xbf16>, vector<36x324xbf16>, vector<4x324xf32> -> vector<4x324xf32>
    %135 = arith.addf %130, %134 : vector<4x324xf32>
    %c8_127 = arith.constant 8 : index
    %c0_128 = arith.constant 0 : index
    %c0_129 = arith.constant 0 : index
    %136 = vector.load %arg9[%c8_127, %c0_128, %c0_129] : memref<9x4x36xbf16, #tpu.memory_space<vmem>>, vector<1x4x36xbf16>
    %137 = vector.shape_cast %136 : vector<1x4x36xbf16> to vector<4x36xbf16>
    %c0_130 = arith.constant 0 : index
    %c38_131 = arith.constant 38 : index
    %138 = vector.load %arg13[%c0_130, %c38_131] : memref<36x362xbf16, #tpu.memory_space<vmem>>, vector<36x324xbf16>
    %cst_132 = arith.constant dense<0.000000e+00> : vector<4x324xf32>
    %139 = tpu.matmul %137, %138, %cst_132 {dimension_numbers = #tpu.dot_dimension_numbers<[1], [0], [0], [1], [0, 0, 1, 1], [], []>} : vector<4x36xbf16>, vector<36x324xbf16>, vector<4x324xf32> -> vector<4x324xf32>
    %140 = arith.addf %135, %139 : vector<4x324xf32>
    %c0_133 = arith.constant 0 : index
    %c0_134 = arith.constant 0 : index
    %141 = vector.load %arg10[%c0_133, %c0_134] : memref<4x1xf32, #tpu.memory_space<vmem>>, vector<4x1xf32>
    %142 = vector.broadcast %141 : vector<4x1xf32> to vector<4x324xf32>
    %143 = arith.addf %140, %142 : vector<4x324xf32>
    %144 = vector.broadcast %6 : vector<1x324xf32> to vector<4x324xf32>
    %145 = arith.mulf %143, %144 : vector<4x324xf32>
    %146 = arith.truncf %145 : vector<4x324xf32> to vector<4x324xbf16>
    %c0_135 = arith.constant 0 : index
    %c36_136 = arith.constant 36 : index
    %c0_137 = arith.constant 0 : index
    %147 = vector.load %arg11[%c0_135, %c36_136, %c0_137] : memref<1x40x324xbf16, #tpu.memory_space<vmem>>, vector<1x4x324xbf16>
    %148 = vector.shape_cast %147 : vector<1x4x324xbf16> to vector<4x324xbf16>
    %149 = vector.shape_cast %146 : vector<4x324xbf16> to vector<1x4x324xbf16>
    tpu.vector_store %arg11[%c0_135, %c36_136, %c0_137], %149 {strides = array<i32>} : memref<1x40x324xbf16, #tpu.memory_space<vmem>>, vector<1x4x324xbf16>,
    return
  }
  func.func @transform_0(%arg0: i32) -> (i32, i32, i32) {
    %c0_i32 = arith.constant 0 : i32
    %c0_i32_0 = arith.constant 0 : i32
    %c0_i32_1 = arith.constant 0 : i32
    return %arg0, %c0_i32, %c0_i32_0 : i32, i32, i32
  }
  func.func @transform_1(%arg0: i32) -> (i32, i32) {
    %c0_i32 = arith.constant 0 : i32
    %c0_i32_0 = arith.constant 0 : i32
    %c0_i32_1 = arith.constant 0 : i32
    return %c0_i32, %c0_i32_0 : i32, i32
  }
  func.func @transform_2(%arg0: i32) -> (i32, i32) {
    %c0_i32 = arith.constant 0 : i32
    %c0_i32_0 = arith.constant 0 : i32
    %c0_i32_1 = arith.constant 0 : i32
    return %c0_i32, %c0_i32_0 : i32, i32
  }
  func.func @transform_3(%arg0: i32) -> (i32, i32) {
    %c0_i32 = arith.constant 0 : i32
    %c0_i32_0 = arith.constant 0 : i32
    %c0_i32_1 = arith.constant 0 : i32
    return %c0_i32, %c0_i32_0 : i32, i32
  }
  func.func @transform_4(%arg0: i32) -> (i32, i32, i32) {
    %c0_i32 = arith.constant 0 : i32
    %c0_i32_0 = arith.constant 0 : i32
    %c0_i32_1 = arith.constant 0 : i32
    %c0_i32_2 = arith.constant 0 : i32
    return %c0_i32, %c0_i32_0, %c0_i32_1 : i32, i32, i32
  }
  func.func @transform_5(%arg0: i32) -> (i32, i32) {
    %c0_i32 = arith.constant 0 : i32
    %c0_i32_0 = arith.constant 0 : i32
    %c0_i32_1 = arith.constant 0 : i32
    return %c0_i32, %c0_i32_0 : i32, i32
  }
  func.func @transform_6(%arg0: i32) -> (i32, i32) {
    %c0_i32 = arith.constant 0 : i32
    %c0_i32_0 = arith.constant 0 : i32
    %c0_i32_1 = arith.constant 0 : i32
    return %c0_i32, %c0_i32_0 : i32, i32
  }
  func.func @transform_7(%arg0: i32) -> (i32, i32) {
    %c0_i32 = arith.constant 0 : i32
    %c0_i32_0 = arith.constant 0 : i32
    %c0_i32_1 = arith.constant 0 : i32
    return %c0_i32, %c0_i32_0 : i32, i32
  }
  func.func @transform_8(%arg0: i32) -> (i32, i32, i32) {
    %c0_i32 = arith.constant 0 : i32
    %c0_i32_0 = arith.constant 0 : i32
    %c0_i32_1 = arith.constant 0 : i32
    %c0_i32_2 = arith.constant 0 : i32
    return %c0_i32, %c0_i32_0, %c0_i32_1 : i32, i32, i32
  }
  func.func @transform_9(%arg0: i32) -> (i32, i32) {
    %c0_i32 = arith.constant 0 : i32
    %c0_i32_0 = arith.constant 0 : i32
    %c0_i32_1 = arith.constant 0 : i32
    return %c0_i32, %c0_i32_0 : i32, i32
  }
  func.func @transform_10(%arg0: i32) -> (i32, i32, i32) {
    %c0_i32 = arith.constant 0 : i32
    %c0_i32_0 = arith.constant 0 : i32
    %c0_i32_1 = arith.constant 0 : i32
    return %arg0, %c0_i32, %c0_i32_0 : i32, i32, i32
  }
}

</mosaic_0001>

<bundles_post_ra>
// kernel: fcdensenet_apply.11
= control target key start
LH: loop header
LB: loop body
LE: loop exit
PB: predicated region body
PF: predicated region fallthrough
CT: control target
= control target key end

     0   :  { %s1251_s15 = smov 0   ;;  %s1392_s0 = inlined_call_operand.vmem [shape: bf16[2,3,324], index: 0, kind: input, shape index: {}]   ;;  %s1393_s1 = inlined_call_operand.vmem [shape: f32[1,324], index: 1, kind: input, shape index: {}]   ;;  %s1394_s2 = inlined_call_operand.vmem [shape: bf16[9,16,3], index: 2, kind: input, shape index: {}]   ;;  %s1395_s3 = inlined_call_operand.vmem [shape: f32[16,1], index: 3, kind: input, shape index: {}]   ;;  %s1396_s4 = inlined_call_operand.vmem [shape: bf16[2,16,324], index: 4, kind: output, shape index: {}]  }
   0x1 LB: > { %s1086_s16 = sadd.s32 4294967295, %s1213_s15   ;;  %p1090_p0 = scmp.ge.s32.totalorder %s1213_s15, 1  ;;  %s1213_s15 = sphi %s1251_s15, %s14_s15  }
   0x2   : > { %p162_p1 = scmp.lt.s32.totalorder %s1213_s15, 3 }
   0x4   : > { %p163_p2 = pnand %p1090_p0, %p162_p1 }
   0x5   : > { %p188_p3 = scmp.lt.s32.totalorder (!%p163_p2), %s1086_s16, 1  ;;  %s1215_s21 = smov (!%p163_p2), 19  }
   0x6   : > { %166 = sbr.rel (%p163_p2) target bundleno = 530 (0x212), region = 36  ;;  %s1216_s22 = smov (!%p163_p2), 127  }
   0x7   : > { %s1218_s23 = smov (!%p163_p2), 126   ;;  %s1219_s24 = smov (!%p163_p2), 110  }
   0x8   : > { %s1220_s25 = smov (!%p163_p2), 109   ;;  %s1221_s26 = smov (!%p163_p2), 108  }
   0x9   : > { %s1222_s27 = smov (!%p163_p2), 92   ;;  %s1223_s28 = smov (!%p163_p2), 91  }
   0xa   : > { %s1224_s29 = smov (!%p163_p2), 90  }
   0xb   : > { %vm200_vm0 = vcmask 1041408   ;;  %vm201_vm1 = vsmask.f32 1280  ;;  %vm203_vm2 = vcmask 1043458   ;;  %vm204_vm4 = vsmask.f32 3328 }
   0xc   : > { %vm202_vm3 = vmand %vm200_vm0, %vm201_vm1  ;;  %vm207_vm5 = vcmask 553988   ;;  %vm208_vm6 = vsmask.f32 5376  ;;  %s1400_s16 = smov (!%p188_p3, %s1086_s16), 1  ;;  %vm215_vm9 = vcmask 148480   ;;  %vm220_vm11 = vcmask 861880  }
   0xd   : > { %vm1263_vm7 = vmand %vm203_vm2, %vm204_vm4  ;;  %s1183_s17 = smul.u32 6, %s1400_s16  ;;  %v217_v1 = vld [vmem:[#allocation3] sm:$0x3]  ;;  %v211_v2 = vld [vmem:[#allocation2] sm:$0x3f]  ;;  %vm233_vm13 = vcmask 1041560  }
   0xe   : > { %vm206_vm8 = vmor %vm1263_vm7, %vm202_vm3  ;;  %v222_v3 = vld [vmem:[#allocation3 + $0x4] sm:$0x3]  ;;  %vm236_vm2 = vcmask 709636   ;;  %v1217_v18 = vmov 65535   ;;  %v1174_v53 = vld [vmem:[%s1394_s2] sm:$0xff]  ;;  %s1184_s30 = smul.u32 24, %s1400_s16 }
   0xf   : > { %vm209_vm10 = vmand %vm207_vm5, %vm208_vm6  ;;  %s192_s20 = scalar_lea.vmem %s1392_s0, %s1183_s17  ;;  %v1175_v60 = vld [vmem:[%s1394_s2 + $0x8] sm:$0xff] }
  0x10   : > { %vm210_vm12 = vmor %vm209_vm10, %vm206_vm8  ;;  %v199_v4 = vld [vmem:[%s192_s20] sm:$0x3f]  ;;  %vm498_vm10 = vcmask 900096   ;;  %s197_s7 = scalar_lea.vmem %s1396_s4, %s1184_s30 }
  0x11   : > { %vm216_vm14 = vmand %vm215_vm9, %vm201_vm1  ;;  %v212_v6 = vsel %vm210_vm12, %v199_v4, %v211_v2  ;;  %vm230_vm9 = vcmask 154624   ;;  %vm670_vm12 = vcmask 883712  }
  0x12   : > { %v218_v5 = vsel %vm216_vm14, 0, %v217_v1  ;;  %vm221_vm15 = vmand %vm220_vm11, %vm201_vm1  ;;  %213 = vst [vmem:[#allocation2] sm:$0x3f] %v212_v6  ;;  %vm584_vm11 = vcmask 891904   ;;  %vm842_vm14 = vcmask 744448  }
  0x13   : > { %219 = vst [vmem:[#allocation3] sm:$0x3] %v218_v5  ;;  %v223_v7 = vsel %vm221_vm15, 0, %v222_v3  ;;  %vm234_vm3 = vmand %vm233_vm13, %vm201_vm1  ;;  %vm274_vm1 = vcmask 1040384   ;;  %vm756_vm13 = vcmask 752640   ;;  %vm928_vm15 = vcmask 736256  }
  0x14   : > { %vm235_vm4 = vmor %vm1263_vm7, %vm234_vm3  ;;  %224 = vst [vmem:[#allocation3 + $0x4] sm:$0x3] %v223_v7  ;;  %v276_v19 = vsel %vm274_vm1, 4294967295, %v1217_v18  ;;  %vm267_vm7 = vcmask 1039360  }
  0x15   : > { %vm237_vm5 = vmand %vm236_vm2, %vm208_vm6  ;;  %v1281_v20 = vsel %vm200_vm0, %v276_v19, 0  ;;  %vm270_vm0 = vcmask 23552   ;;  %vm412_vm6 = vcmask 1031168   ;;  %vm1027_vm2 = vcmask 551936  }
  0x16   : > { %vm238_vm8 = vmor %vm237_vm5, %vm235_vm4 }
  0x19   : > { %v225_v8 = vld [vmem:[#allocation2] sm:$0x3f] }
  0x1a   : > { %227 = vrot.lane.b32.xlu0 %v225_v8, %s1215_s21 }
  0x1b   : > { %v239_v10 = vld [vmem:[#allocation3] sm:$0x3f] }
  0x8c   : > { %v228_v9 = vpop.permute.xlu0 %227 }
  0x8d   : > { %v229_v11 = vrot.slane %v228_v9, 6 }
  0x8f   : > { %v231_v12 = vsel %vm230_vm9, %v229_v11, %v228_v9  ;;  %v1176_v9 = vld [vmem:[%s1394_s2 + $0x10] sm:$0xff] }
  0x90   : > { %v240_v13 = vsel %vm238_vm8, %v231_v12, %v239_v10 }
  0x91   : > { %241 = vst [vmem:[#allocation3] sm:$0x3f] %v240_v13 }
  0x98   : > { %v244_v14 = vld [vmem:[#allocation3] sm:$0x3f] }
  0x99   : > { %254 = vst [vmem:[#allocation1] ss:$4 sm:$0xff] %v244_v14  ;;  %v392_v23 = vld [vmem:[#allocation3] sm:$0x3f] }
  0x9a   : > { %v478_v28 = vld [vmem:[#allocation3] sm:$0x3f] }
  0x9b   : > { %v564_v32 = vld [vmem:[#allocation3] sm:$0x3f] }
  0x9c   : > { %v650_v36 = vld [vmem:[#allocation3] sm:$0x3f] }
  0x9d   : > { %v736_v40 = vld [vmem:[#allocation3] sm:$0x3f] }
  0x9e   : > { %v822_v44 = vld [vmem:[#allocation3] sm:$0x3f] }
  0x9f   : > { %v908_v48 = vld [vmem:[#allocation3] sm:$0x3f] }
  0xa0   : > { %v259_v15 = vld.sshfl [vmem:[#allocation1 + $0x10] sm:$0xff pattern:$0x73625140]  ;;  %v255_v16 = vld.sshfl [vmem:[#allocation1] sm:$0xff pattern:$0x73625140] }
  0xa1   : > { %265 = vrot.lane.b32.xlu0 %v259_v15, %s1216_s22  ;;  %261 = vrot.lane.b32.xlu1 %v255_v16, %s1216_s22  ;;  %v257_v17 = vld.sshfl [vmem:[#allocation1 + $0x8] sm:$0xff pattern:$0x73625140] }
  0xa2   : > { %334 = vst [vmem:[#allocation1] ss:$4 sm:$0xff] %v244_v14 }
  0xa9   : > { %263 = vrot.lane.b32.xlu1 %v257_v17, %s1216_s22  ;;  %v335_v21 = vld.sshfl [vmem:[#allocation1] sm:$0xff pattern:$0x73625140]  ;;  %v1283_v22 = vld.sshfl [vmem:[#allocation1 + $0x8] sm:$0xff pattern:$0x73625140] }
  0xaa   : > { %v1285_v24 = vld.sshfl [vmem:[#allocation1 + $0x10] sm:$0xff pattern:$0x73625140]  ;;  %v341_v25 = vand.u32 %v335_v21, %v1281_v20  ;;  %v343_v4 = vand.u32 %v1283_v22, %v1281_v20 }
  0xab   : > { %399 = vst [vmem:[#allocation1] ss:$4 sm:$0xff] %v392_v23  ;;  %v345_v5 = vand.u32 %v1285_v24, %v1281_v20 }
  0xac   : > { %354 = vmatpush.bf16.msra.mxu3 %v341_v25 }
  0xaf   : > { %1106 = vmatmul.msk.bf16.vlgmr.msra.gmra.mxu3 %vm270_vm0, %v1174_v53 }
  0xb2   : > { %v404_v26 = vld.sshfl [vmem:[#allocation1 + $0x10] sm:$0xff pattern:$0x73625140]  ;;  %v400_v27 = vld.sshfl [vmem:[#allocation1] sm:$0xff pattern:$0x73625140] }
  0xb3   : > { %410 = vrot.lane.b32.xlu0 %v404_v26, %s1218_s23  ;;  %406 = vrot.lane.b32.xlu2 %v400_v27, %s1218_s23  ;;  %v402_v29 = vld.sshfl [vmem:[#allocation1 + $0x8] sm:$0xff pattern:$0x73625140]  ;;  %v1177_v26 = vld [vmem:[%s1394_s2 + $0x18] sm:$0xff] }
  0xb4   : > { %485 = vst [vmem:[#allocation1] ss:$4 sm:$0xff] %v478_v28 }
  0xbb   : > { %408 = vrot.lane.b32.xlu2 %v402_v29, %s1218_s23  ;;  %v488_v30 = vld.sshfl [vmem:[#allocation1 + $0x8] sm:$0xff pattern:$0x73625140]  ;;  %v486_v31 = vld.sshfl [vmem:[#allocation1] sm:$0xff pattern:$0x73625140] }
  0xbc   : > { %494 = vrot.lane.b32.xlu1 %v488_v30, %s1219_s24  ;;  %492 = vrot.lane.b32.xlu0 %v486_v31, %s1219_s24  ;;  %v490_v33 = vld.sshfl [vmem:[#allocation1 + $0x10] sm:$0xff pattern:$0x73625140] }
  0xbd   : > { %571 = vst [vmem:[#allocation1] ss:$4 sm:$0xff] %v564_v32 }
  0xc3   : > { %496 = vrot.lane.b32.xlu2 %v490_v33, %s1219_s24 }
  0xc4   : > { %v576_v34 = vld.sshfl [vmem:[#allocation1 + $0x10] sm:$0xff pattern:$0x73625140]  ;;  %v574_v35 = vld.sshfl [vmem:[#allocation1 + $0x8] sm:$0xff pattern:$0x73625140] }
  0xc5   : > { %582 = vrot.lane.b32.xlu1 %v576_v34, %s1220_s25  ;;  %580 = vrot.lane.b32.xlu0 %v574_v35, %s1220_s25  ;;  %v572_v37 = vld.sshfl [vmem:[#allocation1] sm:$0xff pattern:$0x73625140] }
  0xc6   : > { %657 = vst [vmem:[#allocation1] ss:$4 sm:$0xff] %v650_v36  ;;  %v1178_v36 = vld [vmem:[%s1394_s2 + $0x20] sm:$0xff] }
  0xcb   : > { %578 = vrot.lane.b32.xlu2 %v572_v37, %s1220_s25  ;;  %v1179_v37 = vld [vmem:[%s1394_s2 + $0x28] sm:$0xff] }
  0xcd   : > { %v662_v38 = vld.sshfl [vmem:[#allocation1 + $0x10] sm:$0xff pattern:$0x73625140]  ;;  %v658_v39 = vld.sshfl [vmem:[#allocation1] sm:$0xff pattern:$0x73625140] }
  0xce   : > { %664 = vrot.lane.b32.xlu1 %v658_v39, %s1221_s26  ;;  %v660_v41 = vld.sshfl [vmem:[#allocation1 + $0x8] sm:$0xff pattern:$0x73625140] }
  0xcf   : > { %743 = vst [vmem:[#allocation1] ss:$4 sm:$0xff] %v736_v40 }
  0xd3   : > { %666 = vrot.lane.b32.xlu2 %v660_v41, %s1221_s26 }
  0xd6   : > { %v746_v42 = vld.sshfl [vmem:[#allocation1 + $0x8] sm:$0xff pattern:$0x73625140]  ;;  %v744_v43 = vld.sshfl [vmem:[#allocation1] sm:$0xff pattern:$0x73625140] }
  0xd7   : > { %752 = vrot.lane.b32.xlu1 %v746_v42, %s1222_s27  ;;  %750 = vrot.lane.b32.xlu0 %v744_v43, %s1222_s27  ;;  %v748_v45 = vld.sshfl [vmem:[#allocation1 + $0x10] sm:$0xff pattern:$0x73625140] }
  0xd8   : > { %829 = vst [vmem:[#allocation1] ss:$4 sm:$0xff] %v822_v44 }
  0xdb   : > { %668 = vrot.lane.b32.xlu2 %v662_v38, %s1221_s26 }
  0xdf   : > { %754 = vrot.lane.b32.xlu0 %v748_v45, %s1222_s27  ;;  %v832_v46 = vld.sshfl [vmem:[#allocation1 + $0x8] sm:$0xff pattern:$0x73625140]  ;;  %v834_v47 = vld.sshfl [vmem:[#allocation1 + $0x10] sm:$0xff pattern:$0x73625140] }
  0xe0   : > { %838 = vrot.lane.b32.xlu1 %v832_v46, %s1223_s28  ;;  %v830_v49 = vld.sshfl [vmem:[#allocation1] sm:$0xff pattern:$0x73625140] }
  0xe1   : > { %915 = vst [vmem:[#allocation1] ss:$4 sm:$0xff] %v908_v48 }
  0xe3   : > { %840 = vrot.lane.b32.xlu2 %v834_v47, %s1223_s28 }
  0xe7   : > { %836 = vrot.lane.b32.xlu0 %v830_v49, %s1223_s28 }
  0xe8   : > { %v920_v50 = vld.sshfl [vmem:[#allocation1 + $0x10] sm:$0xff pattern:$0x73625140]  ;;  %v916_v51 = vld.sshfl [vmem:[#allocation1] sm:$0xff pattern:$0x73625140] }
  0xe9   : > { %926 = vrot.lane.b32.xlu1 %v920_v50, %s1224_s29  ;;  %v918_v52 = vld.sshfl [vmem:[#allocation1 + $0x8] sm:$0xff pattern:$0x73625140] }
  0xeb   : > { %922 = vrot.lane.b32.xlu2 %v916_v51, %s1224_s29  ;;  %v1180_v51 = vld [vmem:[%s1394_s2 + $0x30] sm:$0xff] }
  0xef   : > { %924 = vrot.lane.b32.xlu0 %v918_v52, %s1224_s29 }
 0x10d   : > { %v407_v54 = vpop.permute.xlu2 %406 }
 0x113   : > { %v266_v55 = vpop.permute.xlu0 %265  ;;  %v262_v56 = vpop.permute.xlu1 %261 }
 0x114   : > { %v285_v57 = vand.u32 %v1281_v20, %v266_v55 }
 0x115   : > { %v409_v58 = vpop.permute.xlu2 %408 }
 0x116   : > { %v413_v59 = vsel %vm412_vm6, %v407_v54, %v409_v58  ;;  %322 = vmatpush.bf16.msra.mxu2 %v285_v57 }
 0x117   : > { %v419_v61 = vand.u32 %v413_v59, %v1281_v20 }
 0x119   : > { %1101 = vmatmul.msk.bf16.vlgmr.msra.gmra.mxu2 %vm270_vm0, %v1175_v60 }
 0x11a   : > { %434 = vmatpush.bf16.msrb.mxu2 %v419_v61 }
 0x11b   : > { %v264_v62 = vpop.permute.xlu1 %263 }
 0x11c   : > { %v268_v63 = vsel %vm267_vm7, %v262_v56, %v264_v62  ;;  %v269_v0 = vsel %vm267_vm7, %v264_v62, %v266_v55 }
 0x11d   : > { %v279_v1 = vand.u32 %v1281_v20, %v268_v63  ;;  %v282_v2 = vand.u32 %v1281_v20, %v269_v0  ;;  %v497_v3 = vpop.permute.xlu2 %496  ;;  %v991_v63 = vld [vmem:[%s1395_s3] sm:$0xff]  ;;  %v1225_v0 = vmov 0  }
 0x11e   : > { %v511_v11 = vand.u32 %v497_v3, %v1281_v20  ;;  %1204 = vset.pattern.permute.xlu1 %v1225_v0  ;;  %1205 = vset.pattern.permute.xlu2 %v1225_v0 }
 0x11f   : > { %294 = vmatpush.bf16.msra.mxu0 %v279_v1  ;;  %308 = vmatpush.bf16.msra.mxu1 %v282_v2  ;;  %v1181_v1 = vld [vmem:[%s1394_s2 + $0x38] sm:$0xff]  ;;  %v992_v2 = vld [vmem:[%s1395_s3 + $0x8] sm:$0xff] }
 0x120   : > { %995 = vperm.xlu1 %1204, %v991_v63   ;;  %1206 = vset.pattern.permute.xlu0 %v1225_v0 }
 0x121   : > { %1000 = vperm.xlu2 %1205, %v992_v2  }
 0x122   : > { %1099 = vmatmul.msk.bf16.vlgmr.msra.gmra.mxu0 %vm270_vm0, %v1175_v60  ;;  %1100 = vmatmul.msk.bf16.vlgmr.msra.gmra.mxu1 %vm270_vm0, %v1175_v60 }
 0x123   : > { %368 = vmatpush.bf16.msrb.mxu0 %v343_v4  ;;  %382 = vmatpush.bf16.msrb.mxu1 %v345_v5 }
 0x125   : > { %v411_v6 = vpop.permute.xlu0 %410  ;;  %v579_v12 = vpop.permute.xlu2 %578 }
 0x126   : > { %v414_v7 = vsel %vm412_vm6, %v409_v58, %v411_v6  ;;  %v425_v8 = vand.u32 %v411_v6, %v1281_v20 }
 0x127   : > { %v422_v10 = vand.u32 %v414_v7, %v1281_v20 }
 0x128   : > { %462 = vmatpush.bf16.msra.mxu0 %v425_v8 }
 0x129   : > { %448 = vmatpush.bf16.msrb.mxu3 %v422_v10  ;;  %1115 = vmatmul.msk.bf16.vlgmr.msrb.gmra.mxu2 %vm270_vm0, %v1176_v9 }
 0x12c   : > { %1116 = vmatmul.msk.bf16.vlgmr.msrb.gmra.mxu3 %vm270_vm0, %v1176_v9 }
 0x12d   : > { %548 = vmatpush.bf16.msra.mxu3 %v511_v11  ;;  %v667_v19 = vpop.permute.xlu2 %666 }
 0x12e   : > { %v495_v13 = vpop.permute.xlu1 %494  ;;  %v493_v14 = vpop.permute.xlu0 %492 }
 0x12f   : > { %v500_v15 = vsel %vm498_vm10, %v495_v13, %v497_v3  ;;  %v499_v16 = vsel %vm498_vm10, %v493_v14, %v495_v13 }
 0x130   : > { %v508_v17 = vand.u32 %v500_v15, %v1281_v20  ;;  %v505_v18 = vand.u32 %v499_v16, %v1281_v20 }
 0x132   : > { %520 = vmatpush.bf16.msra.mxu1 %v505_v18  ;;  %534 = vmatpush.bf16.msra.mxu2 %v508_v17  ;;  %v356_v3 = vpop.f32.mrf.mxu3 }
 0x133   : > { %1107 = vmatmul.msk.bf16.vlgmr.msrb.gmra.mxu0 %vm270_vm0, %v1174_v53  ;;  %1108 = vmatmul.msk.bf16.vlgmr.msrb.gmra.mxu1 %vm270_vm0, %v1174_v53 }
 0x135   : > { %v669_v29 = vpop.permute.xlu2 %668 }
 0x136   : > { %v672_v30 = vsel %vm670_vm12, %v667_v19, %v669_v29  ;;  %v683_v35 = vand.u32 %v669_v29, %v1281_v20 }
 0x137   : > { %v583_v21 = vpop.permute.xlu1 %582  ;;  %v581_v22 = vpop.permute.xlu0 %580  ;;  %v680_v33 = vand.u32 %v672_v30, %v1281_v20 }
 0x138   : > { %v597_v23 = vand.u32 %v583_v21, %v1281_v20  ;;  %v585_v24 = vsel %vm584_vm11, %v579_v12, %v581_v22  ;;  %v586_v25 = vsel %vm584_vm11, %v581_v22, %v583_v21 }
 0x139   : > { %v591_v27 = vand.u32 %v585_v24, %v1281_v20  ;;  %v594_v28 = vand.u32 %v586_v25, %v1281_v20  ;;  %1125 = vmatmul.msk.bf16.vlgmr.msra.gmra.mxu2 %vm270_vm0, %v1177_v26 }
 0x13a   : > { %634 = vmatpush.bf16.msrb.mxu2 %v597_v23 }
 0x13b   : > { %606 = vmatpush.bf16.msrb.mxu0 %v591_v27  ;;  %620 = vmatpush.bf16.msrb.mxu1 %v594_v28 }
 0x13c   : > { %1126 = vmatmul.msk.bf16.vlgmr.msra.gmra.mxu3 %vm270_vm0, %v1177_v26 }
 0x13d   : > { %v841_v42 = vpop.permute.xlu2 %840 }
 0x13e   : > { %v855_v49 = vand.u32 %v841_v42, %v1281_v20 }
 0x140   : > { %v665_v31 = vpop.permute.xlu1 %664 }
 0x141   : > { %v671_v32 = vsel %vm670_vm12, %v665_v31, %v667_v19 }
 0x142   : > { %v677_v34 = vand.u32 %v671_v32, %v1281_v20 }
 0x143   : > { %1117 = vmatmul.msk.bf16.vlgmr.msra.gmra.mxu0 %vm270_vm0, %v1176_v9  ;;  %1124 = vmatmul.msk.bf16.vlgmr.msra.gmra.mxu1 %vm270_vm0, %v1177_v26  ;;  %v358_v9 = vpop.f32.mrf.mxu3 }
 0x144   : > { %692 = vmatpush.bf16.msrb.mxu3 %v677_v34  ;;  %706 = vmatpush.bf16.msra.mxu0 %v680_v33 }
 0x145   : > { %720 = vmatpush.bf16.msra.mxu1 %v683_v35  ;;  %v923_v57 = vpop.permute.xlu2 %922 }
 0x149   : > { %v753_v38 = vpop.permute.xlu1 %752  ;;  %v751_v39 = vpop.permute.xlu0 %750  ;;  %1135 = vmatmul.msk.bf16.vlgmr.msrb.gmra.mxu2 %vm270_vm0, %v1178_v36 }
 0x14a   : > { %v757_v40 = vsel %vm756_vm13, %v751_v39, %v753_v38 }
 0x14b   : > { %v763_v41 = vand.u32 %v757_v40, %v1281_v20 }
 0x14c   : > { %1142 = vmatmul.msk.bf16.vlgmr.msrb.gmra.mxu3 %vm270_vm0, %v1179_v37 }
 0x14d   : > { %778 = vmatpush.bf16.msra.mxu2 %v763_v41 }
 0x151   : > { %v755_v43 = vpop.permute.xlu0 %754 }
 0x152   : > { %v758_v44 = vsel %vm756_vm13, %v753_v38, %v755_v43  ;;  %v769_v45 = vand.u32 %v755_v43, %v1281_v20  ;;  %v839_v46 = vpop.permute.xlu1 %838 }
 0x153   : > { %v766_v47 = vand.u32 %v758_v44, %v1281_v20  ;;  %v844_v48 = vsel %vm842_vm14, %v839_v46, %v841_v42  ;;  %1133 = vmatmul.msk.bf16.vlgmr.msrb.gmra.mxu0 %vm270_vm0, %v1178_v36  ;;  %1134 = vmatmul.msk.bf16.vlgmr.msrb.gmra.mxu1 %vm270_vm0, %v1178_v36 }
 0x154   : > { %v852_v50 = vand.u32 %v844_v48, %v1281_v20  ;;  %806 = vmatpush.bf16.msrb.mxu0 %v769_v45 }
 0x155   : > { %792 = vmatpush.bf16.msra.mxu3 %v766_v47 }
 0x156   : > { %878 = vmatpush.bf16.msrb.mxu2 %v852_v50 }
 0x159   : > { %892 = vmatpush.bf16.msrb.mxu3 %v855_v49  ;;  %v837_v52 = vpop.permute.xlu0 %836  ;;  %1151 = vmatmul.msk.bf16.vlgmr.msra.gmra.mxu2 %vm270_vm0, %v1180_v51 }
 0x15a   : > { %v843_v53 = vsel %vm842_vm14, %v837_v52, %v839_v46 }
 0x15b   : > { %v849_v54 = vand.u32 %v843_v53, %v1281_v20  ;;  %v927_v55 = vpop.permute.xlu1 %926 }
 0x15c   : > { %v941_v56 = vand.u32 %v927_v55, %v1281_v20  ;;  %1152 = vmatmul.msk.bf16.vlgmr.msra.gmra.mxu3 %vm270_vm0, %v1180_v51 }
 0x15d   : > { %864 = vmatpush.bf16.msrb.mxu1 %v849_v54 }
 0x15e   : > { %978 = vmatpush.bf16.msra.mxu2 %v941_v56 }
 0x161   : > { %v925_v58 = vpop.permute.xlu0 %924 }
 0x162   : > { %v929_v59 = vsel %vm928_vm15, %v923_v57, %v925_v58  ;;  %v930_v60 = vsel %vm928_vm15, %v925_v58, %v927_v55 }
 0x163   : > { %v935_v61 = vand.u32 %v929_v59, %v1281_v20  ;;  %v938_v62 = vand.u32 %v930_v60, %v1281_v20  ;;  %1143 = vmatmul.msk.bf16.vlgmr.msra.gmra.mxu0 %vm270_vm0, %v1179_v37  ;;  %1144 = vmatmul.msk.bf16.vlgmr.msra.gmra.mxu1 %vm270_vm0, %v1179_v37  ;;  %v1182_v20 = vld [vmem:[%s1394_s2 + $0x40] sm:$0xff] }
 0x165   : > { %950 = vmatpush.bf16.msra.mxu0 %v935_v61  ;;  %964 = vmatpush.bf16.msra.mxu1 %v938_v62 }
 0x169   : > { %1161 = vmatmul.msk.bf16.vlgmr.msrb.gmra.mxu2 %vm270_vm0, %v1181_v1 }
 0x16c   : > { %1162 = vmatmul.msk.bf16.vlgmr.msrb.gmra.mxu3 %vm270_vm0, %v1181_v1 }
 0x173   : > { %1153 = vmatmul.msk.bf16.vlgmr.msrb.gmra.mxu0 %vm270_vm0, %v1180_v51  ;;  %1160 = vmatmul.msk.bf16.vlgmr.msrb.gmra.mxu1 %vm270_vm0, %v1181_v1 }
 0x179   : > { %1171 = vmatmul.msk.bf16.vlgmr.msra.gmra.mxu2 %vm270_vm0, %v1182_v20 }
 0x183   : > { %1169 = vmatmul.msk.bf16.vlgmr.msra.gmra.mxu0 %vm270_vm0, %v1182_v20  ;;  %1170 = vmatmul.msk.bf16.vlgmr.msra.gmra.mxu1 %vm270_vm0, %v1182_v20 }
 0x19c   : > { %v324_v4 = vpop.f32.mrf.mxu2 }
 0x19f   : > { %v296_v5 = vpop.f32.mrf.mxu0  ;;  %v310_v6 = vpop.f32.mrf.mxu1 }
 0x1a0   : > { %v357_v7 = vadd.f32 %v356_v3, %v296_v5 }
 0x1a4   : > { %v326_v8 = vpop.f32.mrf.mxu2 }
 0x1a7   : > { %v298_v10 = vpop.f32.mrf.mxu0  ;;  %v312_v11 = vpop.f32.mrf.mxu1 }
 0x1a8   : > { %v359_v12 = vadd.f32 %v358_v9, %v298_v10 }
 0x1ac   : > { %v436_v13 = vpop.f32.mrf.mxu2 }
 0x1ad   : > { %v469_v14 = vadd.f32 %v436_v13, %v357_v7  ;;  %v214_v13 = vld [vmem:[%s1393_s1] sm:$0x7] }
 0x1af   : > { %v450_v15 = vpop.f32.mrf.mxu3 }
 0x1b0   : > { %v370_v16 = vpop.f32.mrf.mxu0  ;;  %v384_v17 = vpop.f32.mrf.mxu1 }
 0x1b1   : > { %v371_v18 = vadd.f32 %v370_v16, %v310_v6  ;;  %v385_v19 = vadd.f32 %v384_v17, %v324_v4 }
 0x1b3   : > { %v470_v56 = vadd.f32 %v450_v15, %v371_v18 }
 0x1b4   : > { %v438_v21 = vpop.f32.mrf.mxu2 }
 0x1b5   : > { %v472_v22 = vadd.f32 %v438_v21, %v359_v12 }
 0x1b7   : > { %v452_v23 = vpop.f32.mrf.mxu3 }
 0x1b8   : > { %v372_v24 = vpop.f32.mrf.mxu0  ;;  %v386_v25 = vpop.f32.mrf.mxu1 }
 0x1b9   : > { %v373_v26 = vadd.f32 %v372_v24, %v312_v11  ;;  %v387_v27 = vadd.f32 %v386_v25, %v326_v8  ;;  %v996_v24 = vpop.permute.xlu1 %995 }
 0x1bb   : > { %v473_v6 = vadd.f32 %v452_v23, %v373_v26  ;;  %v1012_v26 = vperm.slane %v214_v13, 2 }
 0x1bc   : > { %v536_v28 = vpop.f32.mrf.mxu2 }
 0x1bd   : > { %v556_v58 = vadd.f32 %v536_v28, %v470_v56 }
 0x1bf   : > { %v550_v29 = vpop.f32.mrf.mxu3 }
 0x1c0   : > { %v464_v30 = vpop.f32.mrf.mxu0  ;;  %v522_v31 = vpop.f32.mrf.mxu1 }
 0x1c1   : > { %v471_v53 = vadd.f32 %v464_v30, %v385_v19  ;;  %v555_v59 = vadd.f32 %v522_v31, %v469_v14 }
 0x1c3   : > { %v557_v57 = vadd.f32 %v550_v29, %v471_v53 }
 0x1c4   : > { %v538_v32 = vpop.f32.mrf.mxu2 }
 0x1c5   : > { %v559_v9 = vadd.f32 %v538_v32, %v473_v6  ;;  %v1011_v32 = vperm.slane %v214_v13, 1 }
 0x1c7   : > { %v552_v33 = vpop.f32.mrf.mxu3 }
 0x1c8   : > { %v466_v34 = vpop.f32.mrf.mxu0  ;;  %v524_v35 = vpop.f32.mrf.mxu1 }
 0x1c9   : > { %v474_v0 = vadd.f32 %v466_v34, %v387_v27  ;;  %v558_v10 = vadd.f32 %v524_v35, %v472_v22  ;;  %v1010_v22 = vperm.slane %v214_v13, 0 }
 0x1cb   : > { %v560_v8 = vadd.f32 %v552_v33, %v474_v0 }
 0x1cc   : > { %v636_v36 = vpop.f32.mrf.mxu2 }
 0x1cd   : > { %v643_v60 = vadd.f32 %v636_v36, %v557_v57 }
 0x1cf   : > { %v694_v39 = vpop.f32.mrf.mxu3 }
 0x1d0   : > { %v608_v37 = vpop.f32.mrf.mxu0  ;;  %v622_v38 = vpop.f32.mrf.mxu1 }
 0x1d1   : > { %v641_v61 = vadd.f32 %v608_v37, %v555_v59  ;;  %v642_v62 = vadd.f32 %v622_v38, %v556_v58 }
 0x1d3   : > { %v727_v7 = vadd.f32 %v694_v39, %v641_v61 }
 0x1d4   : > { %v638_v40 = vpop.f32.mrf.mxu2 }
 0x1d5   : > { %v646_v14 = vadd.f32 %v638_v40, %v560_v8 }
 0x1d7   : > { %v696_v43 = vpop.f32.mrf.mxu3 }
 0x1d8   : > { %v610_v41 = vpop.f32.mrf.mxu0  ;;  %v624_v42 = vpop.f32.mrf.mxu1 }
 0x1d9   : > { %v644_v16 = vadd.f32 %v610_v41, %v558_v10  ;;  %v645_v17 = vadd.f32 %v624_v42, %v559_v9 }
 0x1db   : > { %v730_v35 = vadd.f32 %v696_v43, %v644_v16  ;;  %v1001_v43 = vpop.permute.xlu2 %1000 }
 0x1dc   : > { %v780_v44 = vpop.f32.mrf.mxu2 }
 0x1dd   : > { %v813_v11 = vadd.f32 %v780_v44, %v727_v7 }
 0x1df   : > { %v794_v47 = vpop.f32.mrf.mxu3 }
 0x1e0   : > { %v708_v45 = vpop.f32.mrf.mxu0  ;;  %v722_v46 = vpop.f32.mrf.mxu1 }
 0x1e1   : > { %v729_v1 = vadd.f32 %v722_v46, %v643_v60  ;;  %v728_v3 = vadd.f32 %v708_v45, %v642_v62 }
 0x1e3   : > { %v814_v12 = vadd.f32 %v794_v47, %v728_v3 }
 0x1e4   : > { %v782_v48 = vpop.f32.mrf.mxu2 }
 0x1e5   : > { %v816_v40 = vadd.f32 %v782_v48, %v730_v35 }
 0x1e7   : > { %v796_v51 = vpop.f32.mrf.mxu3 }
 0x1e8   : > { %v710_v49 = vpop.f32.mrf.mxu0  ;;  %v724_v50 = vpop.f32.mrf.mxu1 }
 0x1e9   : > { %v732_v23 = vadd.f32 %v724_v50, %v646_v14  ;;  %v731_v29 = vadd.f32 %v710_v49, %v645_v17 }
 0x1eb   : > { %v817_v41 = vadd.f32 %v796_v51, %v731_v29 }
 0x1ec   : > { %v880_v52 = vpop.f32.mrf.mxu2 }
 0x1ed   : > { %v900_v18 = vadd.f32 %v880_v52, %v814_v12 }
 0x1ef   : > { %v894_v4 = vpop.f32.mrf.mxu3 }
 0x1f0   : > { %v808_v54 = vpop.f32.mrf.mxu0  ;;  %v866_v55 = vpop.f32.mrf.mxu1 }
 0x1f1   : > { %v815_v5 = vadd.f32 %v808_v54, %v729_v1  ;;  %v899_v19 = vadd.f32 %v866_v55, %v813_v11 }
 0x1f3   : > { %v901_v15 = vadd.f32 %v894_v4, %v815_v5 }
 0x1f4   : > { %v882_v63 = vpop.f32.mrf.mxu2 }
 0x1f5   : > { %v903_v47 = vadd.f32 %v882_v63, %v817_v41 }
 0x1f7   : > { %v896_v36 = vpop.f32.mrf.mxu3 }
 0x1f8   : > { %v810_v20 = vpop.f32.mrf.mxu0  ;;  %v868_v2 = vpop.f32.mrf.mxu1 }
 0x1f9   : > { %v818_v33 = vadd.f32 %v810_v20, %v732_v23  ;;  %v902_v49 = vadd.f32 %v868_v2, %v816_v40 }
 0x1fb   : > { %v904_v45 = vadd.f32 %v896_v36, %v818_v33 }
 0x1fc   : > { %v980_v21 = vpop.f32.mrf.mxu2 }
 0x1fd   : > { %v987_v25 = vadd.f32 %v980_v21, %v901_v15 }
 0x1ff   : > { %v1005_v34 = vadd.f32 %v996_v24, %v987_v25 }
 0x200   : > { %v952_v27 = vpop.f32.mrf.mxu0  ;;  %v966_v28 = vpop.f32.mrf.mxu1 }
 0x201   : > { %v985_v30 = vadd.f32 %v952_v27, %v899_v19  ;;  %v986_v31 = vadd.f32 %v966_v28, %v900_v18  ;;  %v1018_v39 = vmul.f32 %v1012_v26, %v1005_v34 }
 0x203   : > { %v1003_v37 = vadd.f32 %v996_v24, %v985_v30  ;;  %v1004_v38 = vadd.f32 %v996_v24, %v986_v31  ;;  %v1023_v46 = vpack.c.bf16 %v1018_v39, %v1018_v39 }
 0x204   : > { %v982_v52 = vpop.f32.mrf.mxu2 }
 0x205   : > { %v1016_v42 = vmul.f32 %v1010_v22, %v1003_v37  ;;  %v1017_v44 = vmul.f32 %v1011_v32, %v1004_v38  ;;  %1028 = vst.msk [vmem:[%s197_s7 + $0x8] sm:$0xf] %vm1027_vm2, %v1023_v46  ;;  %v990_v53 = vadd.f32 %v982_v52, %v904_v45 }
 0x207   : > { %v1022_v50 = vpack.c.bf16 %v1017_v44, %v1016_v42  ;;  %v1008_v56 = vadd.f32 %v1001_v43, %v990_v53 }
 0x208   : > { %v954_v54 = vpop.f32.mrf.mxu0  ;;  %v968_v55 = vpop.f32.mrf.mxu1 }
 0x209   : > { %1026 = vst [vmem:[%s197_s7] sm:$0xff] %v1022_v50  ;;  %v988_v48 = vadd.f32 %v954_v54, %v902_v49  ;;  %v989_v51 = vadd.f32 %v968_v55, %v903_v47  ;;  %v1021_v59 = vmul.f32 %v1012_v26, %v1008_v56 }
 0x20b   : > { %v1006_v57 = vadd.f32 %v1001_v43, %v988_v48  ;;  %v1007_v58 = vadd.f32 %v1001_v43, %v989_v51  ;;  %v1025_v62 = vpack.c.bf16 %v1021_v59, %v1021_v59 }
 0x20d   : > { %v1019_v60 = vmul.f32 %v1010_v22, %v1006_v57  ;;  %v1020_v61 = vmul.f32 %v1011_v32, %v1007_v58  ;;  %1030 = vst.msk [vmem:[%s197_s7 + $0x14] sm:$0xf] %vm1027_vm2, %v1025_v62 }
 0x20f   : > { %v1024_v63 = vpack.c.bf16 %v1020_v61, %v1019_v60 }
 0x211   : > { %1029 = vst [vmem:[%s197_s7 + $0xc] sm:$0xff] %v1024_v63 }
 0x212 PF: > { %s14_s15 = sadd.s32 1, %s1213_s15  }
 0x213   : > { %p11_p4 = scmp.ge.s32.totalorder %s14_s15, 4  }
 0x215   :  { %13 = sbr.rel (!%p11_p4) target bundleno = 1 (0x1), region = 74 }

// kernel: fcdensenet_apply.12
= control target key start
LH: loop header
LB: loop body
LE: loop exit
PB: predicated region body
PF: predicated region fallthrough
CT: control target
= control target key end

     0   :  { %s2137_s13 = smov 0   ;;  %s2695_s0 = inlined_call_operand.vmem [shape: bf16[2,16,324], index: 0, kind: input, shape index: {}]   ;;  %s2696_s1 = inlined_call_operand.vmem [shape: f32[1,324], index: 1, kind: input, shape index: {}]   ;;  %s2697_s2 = inlined_call_operand.vmem [shape: f32[16,1], index: 2, kind: input, shape index: {}]   ;;  %s2698_s3 = inlined_call_operand.vmem [shape: f32[16,1], index: 3, kind: input, shape index: {}]   ;;  %s2699_s4 = inlined_call_operand.vmem [shape: bf16[9,4,16], index: 4, kind: input, shape index: {}]   ;;  %s2700_s5 = inlined_call_operand.vmem [shape: f32[4,1], index: 5, kind: input, shape index: {}]   ;;  %s2701_s6 = inlined_call_operand.vmem [shape: f32[20,1], index: 6, kind: input, shape index: {}]   ;;  %s2702_s7 = inlined_call_operand.vmem [shape: f32[20,1], index: 7, kind: input, shape index: {}]   ;;  %s2703_s8 = inlined_call_operand.vmem [shape: bf16[9,4,20], index: 8, kind: input, shape index: {}]   ;;  %s2704_s9 = inlined_call_operand.vmem [shape: f32[4,1], index: 9, kind: input, shape index: {}]   ;;  %s2705_s10 = inlined_call_operand.vmem [shape: bf16[2,24,324], index: 10, kind: output, shape index: {}]  }
   0x1 LB: > { %s1932_s14 = sadd.s32 4294967295, %s2070_s13   ;;  %p1936_p0 = scmp.ge.s32.totalorder %s2070_s13, 1  ;;  %s2070_s13 = sphi %s2137_s13, %s20_s13  }
   0x2   : > { %p312_p1 = scmp.lt.s32.totalorder %s2070_s13, 3 }
   0x4   : > { %p313_p2 = pnand %p1936_p0, %p312_p1 }
   0x5   : > { %p350_p3 = scmp.lt.s32.totalorder (!%p313_p2), %s1932_s14, 1  ;;  %s2073_s29 = smov (!%p313_p2), 19  }
   0x6   : > { %316 = sbr.rel (%p313_p2) target bundleno = 1154 (0x482), region = 60  ;;  %s2074_s30 = smov (!%p313_p2), 127  }
   0x7   : > { %s2075_s11 = smov (!%p313_p2), 126   ;;  %s2076_s12 = smov (!%p313_p2), 110  }
   0x8   : > { %s2077_s15 = smov (!%p313_p2), 109   ;;  %s2078_s16 = smov (!%p313_p2), 108  }
   0x9   : > { %s2079_s17 = smov (!%p313_p2), 92   ;;  %s2080_s18 = smov (!%p313_p2), 91  }
   0xa   : > { %s2081_s19 = smov (!%p313_p2), 90  }
   0xb   : > { %v413_v0 = vld [vmem:[%s2698_s3] sm:$0xff]  ;;  %v2072_v2 = vmov 0   ;;  %v414_v3 = vld [vmem:[%s2698_s3 + $0x8] sm:$0xff]  ;;  %s2709_s14 = smov (!%p350_p3, %s1932_s14), 1  ;;  %vm366_vm0 = vcmask 551936   ;;  %vm375_vm1 = vcmask 150528  }
   0xc   : > { %v395_v1 = vld [vmem:[%s2697_s2] sm:$0xff]  ;;  %2062 = vset.pattern.permute.xlu1 %v2072_v2  ;;  %2061 = vset.pattern.permute.xlu0 %v2072_v2  ;;  %v396_v4 = vld [vmem:[%s2697_s2 + $0x8] sm:$0xff]  ;;  %s2041_s23 = smul.u32 24, %s2709_s14  ;;  %376 = vst.msk [vmem:[#allocation3] sm:$0xf] %vm375_vm1, %v2072_v2  ;;  %vm380_vm2 = vcmask 863928  }
   0xd   : > { %417 = vperm.xlu1 %2062, %v413_v0   ;;  %399 = vperm.xlu0 %2061, %v395_v1   ;;  %377 = vst.msk [vmem:[#allocation3 + $0xc] sm:$0xf] %vm375_vm1, %v2072_v2  ;;  %v374_v13 = vld [vmem:[%s2696_s1] sm:$0x7]  ;;  %vm477_vm3 = vcmask 1043608   ;;  %vm478_vm4 = vcmask 1047556  }
   0xe   : > { %2063 = vset.pattern.permute.xlu2 %v2072_v2  ;;  %s354_s26 = scalar_lea.vmem %s2695_s0, %s2041_s23  ;;  %v2189_v20 = vperm.slane %v374_v13, 2  ;;  %v2191_v21 = vperm.slane %v374_v13, 0  ;;  %v2193_v25 = vperm.slane %v374_v13, 1  ;;  %381 = vst.msk [vmem:[#allocation3 + $0x8] sm:$0xf] %vm380_vm2, %v2072_v2  ;;  %vm468_vm5 = vcmask 154624   ;;  %vm2213_vm6 = vmor %vm478_vm4, %vm477_vm3 }
   0xf   : > { %v2166_v5 = vld [vmem:[%s354_s26 + $0x8] sm:$0xf]  ;;  %v2170_v6 = vld [vmem:[%s354_s26] sm:$0xff]  ;;  %v2172_v7 = vld [vmem:[%s354_s26 + $0x14] sm:$0xf]  ;;  %vm481_vm7 = vcmask 707584  }
  0x10   : > { %367 = vst.msk [vmem:[#allocation2 + $0x8] sm:$0xf] %vm366_vm0, %v2166_v5  ;;  %v2176_v8 = vld [vmem:[%s354_s26 + $0xc] sm:$0xff]  ;;  %v389_v10 = vunpack.c.l.bf16 %v2170_v6  ;;  %v390_v11 = vunpack.c.h.bf16 %v2170_v6  ;;  %vm517_vm8 = vcmask 130048   ;;  %vm511_vm9 = vcmask 1039360   ;;  %s2042_s25 = smul.u32 36, %s2709_s14 }
  0x11   : > { %369 = vst.msk [vmem:[#allocation2 + $0x14] sm:$0xf] %vm366_vm0, %v2172_v7  ;;  %v392_v26 = vunpack.c.l.bf16 %v2176_v8  ;;  %v393_v27 = vunpack.c.h.bf16 %v2176_v8  ;;  %vm613_vm10 = vcmask 1031168   ;;  %vm672_vm11 = vcmask 900096  }
  0x12   : > { %382 = vst.msk [vmem:[#allocation3 + $0x14] sm:$0xf] %vm380_vm2, %v2072_v2  ;;  %vm731_vm12 = vcmask 891904   ;;  %vm790_vm13 = vcmask 883712   ;;  %vm849_vm14 = vcmask 752640   ;;  %vm967_vm15 = vcmask 736256   ;;  %s2390_s28 = scalar_lea.vmem %s2705_s10, %s2042_s25 }
  0x13   : > { %vm908_vm1 = vcmask 744448   ;;  %370 = vst [vmem:[%s2390_s28] sm:$0xff] %v2170_v6  ;;  %vm378_vm2 = vcmask 148480   ;;  %vm383_vm3 = vcmask 861880   ;;  %vm1167_vm4 = vcmask 1041560  }
  0x14   : > { %371 = vst.msk [vmem:[%s2390_s28 + $0x8] sm:$0xf] %vm366_vm0, %v2166_v5 }
  0x15   : > { %422 = vperm.xlu1 %2062, %v414_v3   ;;  %404 = vperm.xlu0 %2061, %v396_v4   ;;  %372 = vst [vmem:[%s2390_s28 + $0xc] sm:$0xff] %v2176_v8 }
  0x16   : > { %373 = vst.msk [vmem:[%s2390_s28 + $0x14] sm:$0xf] %vm366_vm0, %v2172_v7  ;;  %vm1033_vm0 = vcmask 549888  }
  0x17   : > { %v386_v9 = vld [vmem:[#allocation2 + $0x8] sm:$0xf]  ;;  %379 = vst.msk [vmem:[#allocation3 + $0x18] sm:$0x3] %vm378_vm2, %v2072_v2 }
  0x18   : > { %v391_v12 = vunpack.c.l.bf16 %v386_v9  ;;  %v388_v19 = vld [vmem:[#allocation2 + $0x14] sm:$0xf]  ;;  %384 = vst.msk [vmem:[#allocation3 + $0x20] sm:$0x3] %vm383_vm3, %v2072_v2 }
  0x19   : > { %v394_v29 = vunpack.c.l.bf16 %v388_v19  ;;  %v1053_v19 = vld [vmem:[%s2701_s6 + $0x8] sm:$0xff] }
  0x7f   : > { %v418_v14 = vpop.permute.xlu1 %417  ;;  %v400_v15 = vpop.permute.xlu0 %399 }
  0x80   : > { %v407_v16 = vmul.f32 %v400_v15, %v389_v10  ;;  %v408_v17 = vmul.f32 %v400_v15, %v390_v11  ;;  %v409_v18 = vmul.f32 %v400_v15, %v391_v12 }
  0x82   : > { %v425_v22 = vadd.f32 %v418_v14, %v407_v16  ;;  %v426_v23 = vadd.f32 %v418_v14, %v408_v17  ;;  %v427_v24 = vadd.f32 %v418_v14, %v409_v18  ;;  %v1018_v16 = vld [vmem:[%s2700_s5] sm:$0xf]  ;;  %v1054_v17 = vld [vmem:[%s2701_s6 + $0x10] sm:$0xf] }
  0x83   : > { %v1052_v18 = vld [vmem:[%s2701_s6] sm:$0xff] }
  0x84   : > { %v433_v28 = vmax.f32 %v427_v24, 0.0  ;;  %v431_v30 = vmax.f32 %v425_v22, 0.0  ;;  %v432_v31 = vmax.f32 %v426_v23, 0.0  ;;  %v1080_v22 = vld [vmem:[%s2702_s7 + $0x8] sm:$0xff]  ;;  %v1081_v23 = vld [vmem:[%s2702_s7 + $0x10] sm:$0xf] }
  0x86   : > { %v446_v32 = vmul.f32 %v2189_v20, %v433_v28  ;;  %v444_v33 = vmul.f32 %v2191_v21, %v431_v30  ;;  %v445_v34 = vmul.f32 %v2193_v25, %v432_v31  ;;  %v1079_v28 = vld [vmem:[%s2702_s7] sm:$0xff] }
  0x87   : > { %v405_v35 = vpop.permute.xlu0 %404  ;;  %v423_v40 = vpop.permute.xlu1 %422  ;;  %v485_v30 = vld [vmem:[%s2699_s4] sm:$0x3] }
  0x88   : > { %v410_v36 = vmul.f32 %v405_v35, %v392_v26  ;;  %v411_v37 = vmul.f32 %v405_v35, %v393_v27  ;;  %v412_v38 = vmul.f32 %v405_v35, %v394_v29  ;;  %v451_v39 = vpack.c.bf16 %v446_v32, %v446_v32 }
  0x89   : > { %v450_v41 = vpack.c.bf16 %v445_v34, %v444_v33  ;;  %v1939_v34 = vld [vmem:[%s2699_s4 + $0x2] sm:$0x3] }
  0x8a   : > { %v428_v42 = vadd.f32 %v423_v40, %v410_v36  ;;  %v429_v43 = vadd.f32 %v423_v40, %v411_v37  ;;  %v430_v44 = vadd.f32 %v423_v40, %v412_v38  ;;  %460 = vrot.lane.b32.xlu0 %v451_v39, %s2073_s29 }
  0x8b   : > { %458 = vrot.lane.b32.xlu2 %v450_v41, %s2073_s29 }
  0x8c   : > { %v434_v45 = vmax.f32 %v428_v42, 0.0  ;;  %v435_v46 = vmax.f32 %v429_v43, 0.0  ;;  %v436_v47 = vmax.f32 %v430_v44, 0.0 }
  0x8e   : > { %v449_v48 = vmul.f32 %v2189_v20, %v436_v47  ;;  %v447_v49 = vmul.f32 %v2191_v21, %v434_v45  ;;  %v448_v50 = vmul.f32 %v2193_v25, %v435_v46 }
  0x90   : > { %v453_v51 = vpack.c.bf16 %v449_v48, %v449_v48  ;;  %v452_v52 = vpack.c.bf16 %v448_v50, %v447_v49  ;;  %v1958_v48 = vld [vmem:[%s2699_s4 + $0x4] sm:$0x3] }
  0x92   : > { %464 = vrot.lane.b32.xlu1 %v453_v51, %s2073_s29 }
  0x93   : > { %462 = vrot.lane.b32.xlu2 %v452_v52, %s2073_s29 }
  0xe5   : > { %v459_v53 = vpop.permute.xlu2 %458 }
  0xe6   : > { %v466_v55 = vrot.slane %v459_v53, 4 }
  0xe8   : > { %v469_v56 = vsel %vm468_vm5, %v466_v55, %v459_v53 }
  0xe9   : > { %480 = vst.msk [vmem:[#allocation3] sm:$0xff] %vm2213_vm6, %v469_v56 }
  0xed   : > { %v463_v57 = vpop.permute.xlu2 %462 }
  0xee   : > { %v467_v58 = vrot.slane %v463_v57, 4 }
  0xf0   : > { %v471_v59 = vsel %vm468_vm5, %v467_v58, %v463_v57  ;;  %v2035_v60 = vld [vmem:[#allocation3 + $0x4] sm:$0xf]  ;;  %v1942_v61 = vld [vmem:[#allocation3] sm:$0xf] }
  0xf1   : > { %483 = vst.msk [vmem:[#allocation3 + $0xc] sm:$0xff] %vm2213_vm6, %v471_v59  ;;  %v1962_v59 = vld [vmem:[%s2699_s4 + $0x6] sm:$0x3] }
  0xf8   : > { %v1944_v62 = vld [vmem:[#allocation3 + $0xc] sm:$0xf0]  ;;  %v2036_v63 = vld [vmem:[#allocation3 + $0x8] sm:$0xf0] }
  0xf9   : > { %v1943_v0 = vor.u32 %v2036_v63, %v1942_v61  ;;  %v2223_v1 = vor.u32 %v2035_v60, %v1944_v62  ;;  %v1966_v61 = vld [vmem:[%s2699_s4 + $0x8] sm:$0x3] }
  0xfb   : > { %505 = vrot.lane.b32.xlu2 %v1943_v0, %s2074_s30  ;;  %573 = vmatpush.bf16.msra.mxu3 %v1943_v0 }
  0xfc   : > { %507 = vrot.lane.b32.xlu0 %v2223_v1, %s2074_s30  ;;  %v461_v3 = vpop.permute.xlu0 %460 }
  0xfd   : > { %v470_v4 = vsel %vm468_vm5, %v466_v55, %v461_v3 }
  0xfe   : > { %482 = vst.msk [vmem:[#allocation3 + $0x8] sm:$0xf] %vm481_vm7, %v470_v4  ;;  %1955 = vmatmul.msk.bf16.vlgmr.msra.gmra.mxu3 %vm517_vm8, %v485_v30 }
 0x103   : > { %607 = vrot.lane.b32.xlu2 %v1943_v0, %s2075_s11 }
 0x104   : > { %609 = vrot.lane.b32.xlu0 %v2223_v1, %s2075_s11  ;;  %v465_v9 = vpop.permute.xlu1 %464 }
 0x105   : > { %v472_v12 = vsel %vm468_vm5, %v467_v58, %v465_v9  ;;  %v1950_v13 = vld [vmem:[#allocation3 + $0x8] sm:$0xf] }
 0x106   : > { %484 = vst.msk [vmem:[#allocation3 + $0x14] sm:$0xf] %vm481_vm7, %v472_v12 }
 0x10b   : > { %666 = vrot.lane.b32.xlu2 %v1943_v0, %s2076_s12 }
 0x10c   : > { %668 = vrot.lane.b32.xlu0 %v2223_v1, %s2076_s12 }
 0x10d   : > { %v2037_v14 = vld [vmem:[#allocation3 + $0x10] sm:$0xf0] }
 0x10e   : > { %v2238_v15 = vor.u32 %v2037_v14, %v1950_v13  ;;  %v1970_v13 = vld [vmem:[%s2699_s4 + $0xa] sm:$0x3] }
 0x110   : > { %509 = vrot.lane.b32.xlu1 %v2238_v15, %s2074_s30 }
 0x113   : > { %725 = vrot.lane.b32.xlu2 %v1943_v0, %s2077_s15 }
 0x114   : > { %727 = vrot.lane.b32.xlu0 %v2223_v1, %s2077_s15 }
 0x118   : > { %611 = vrot.lane.b32.xlu1 %v2238_v15, %s2075_s11 }
 0x11b   : > { %784 = vrot.lane.b32.xlu2 %v1943_v0, %s2078_s16 }
 0x11c   : > { %786 = vrot.lane.b32.xlu0 %v2223_v1, %s2078_s16 }
 0x120   : > { %670 = vrot.lane.b32.xlu1 %v2238_v15, %s2076_s12 }
 0x123   : > { %843 = vrot.lane.b32.xlu2 %v1943_v0, %s2079_s17 }
 0x124   : > { %845 = vrot.lane.b32.xlu0 %v2223_v1, %s2079_s17 }
 0x128   : > { %729 = vrot.lane.b32.xlu1 %v2238_v15, %s2077_s15 }
 0x12b   : > { %902 = vrot.lane.b32.xlu2 %v1943_v0, %s2080_s18 }
 0x12c   : > { %904 = vrot.lane.b32.xlu0 %v2223_v1, %s2080_s18 }
 0x130   : > { %788 = vrot.lane.b32.xlu1 %v2238_v15, %s2078_s16 }
 0x133   : > { %961 = vrot.lane.b32.xlu2 %v1943_v0, %s2081_s19 }
 0x134   : > { %963 = vrot.lane.b32.xlu0 %v2223_v1, %s2081_s19 }
 0x138   : > { %847 = vrot.lane.b32.xlu1 %v2238_v15, %s2079_s17 }
 0x13b   : > { %1021 = vperm.xlu2 %2063, %v1018_v16  }
 0x13c   : > { %1067 = vperm.xlu0 %2061, %v1054_v17  }
 0x140   : > { %906 = vrot.lane.b32.xlu1 %v2238_v15, %s2080_s18 }
 0x143   : > { %1057 = vperm.xlu2 %2063, %v1052_v18  }
 0x144   : > { %1062 = vperm.xlu0 %2061, %v1053_v19  }
 0x148   : > { %965 = vrot.lane.b32.xlu1 %v2238_v15, %s2081_s19 }
 0x14b   : > { %1089 = vperm.xlu2 %2063, %v1080_v22  }
 0x150   : > { %1094 = vperm.xlu1 %2062, %v1081_v23  }
 0x155   : > { %v506_v24 = vpop.permute.xlu2 %505 }
 0x158   : > { %1084 = vperm.xlu1 %2062, %v1079_v28  }
 0x15d   : > { %v608_v29 = vpop.permute.xlu2 %607 }
 0x165   : > { %v667_v31 = vpop.permute.xlu2 %666 }
 0x16d   : > { %v726_v35 = vpop.permute.xlu2 %725 }
 0x16e   : > { %v508_v32 = vpop.permute.xlu0 %507 }
 0x16f   : > { %v512_v33 = vsel %vm511_vm9, %v506_v24, %v508_v32 }
 0x170   : > { %528 = vmatpush.bf16.msra.mxu0 %v512_v33 }
 0x173   : > { %1952 = vmatmul.msk.bf16.vlgmr.msra.gmra.mxu0 %vm517_vm8, %v1939_v34 }
 0x174   : > { %586 = vmatpush.bf16.msrb.mxu0 %v2223_v1 }
 0x175   : > { %v785_v37 = vpop.permute.xlu2 %784 }
 0x176   : > { %v610_v36 = vpop.permute.xlu0 %609 }
 0x177   : > { %v614_v41 = vsel %vm613_vm10, %v608_v29, %v610_v36 }
 0x17d   : > { %v844_v42 = vpop.permute.xlu2 %843 }
 0x17e   : > { %v669_v38 = vpop.permute.xlu0 %668 }
 0x17f   : > { %v673_v44 = vsel %vm672_vm11, %v667_v31, %v669_v38 }
 0x182   : > { %v510_v39 = vpop.permute.xlu1 %509 }
 0x183   : > { %1956 = vmatmul.msk.bf16.vlgmr.msrb.gmra.mxu0 %vm517_vm8, %v485_v30  ;;  %554 = vmatpush.bf16.msra.mxu2 %v510_v39  ;;  %v513_v40 = vsel %vm511_vm9, %v508_v32, %v510_v39 }
 0x184   : > { %541 = vmatpush.bf16.msra.mxu1 %v513_v40  ;;  %v1038_v40 = vld [vmem:[#allocation2 + $0x8] sm:$0xf] }
 0x185   : > { %v903_v50 = vpop.permute.xlu2 %902 }
 0x186   : > { %v728_v43 = vpop.permute.xlu0 %727  ;;  %1954 = vmatmul.msk.bf16.vlgmr.msra.gmra.mxu2 %vm517_vm8, %v1939_v34 }
 0x187   : > { %629 = vmatpush.bf16.msrb.mxu2 %v614_v41  ;;  %1953 = vmatmul.msk.bf16.vlgmr.msra.gmra.mxu1 %vm517_vm8, %v1939_v34  ;;  %v732_v46 = vsel %vm731_vm12, %v726_v35, %v728_v43 }
 0x188   : > { %599 = vmatpush.bf16.msrb.mxu1 %v2238_v15  ;;  %v1040_v15 = vld [vmem:[#allocation2 + $0x14] sm:$0xf] }
 0x189   : > { %v1048_v18 = vunpack.c.l.bf16 %v1040_v15 }
 0x18a   : > { %v612_v45 = vpop.permute.xlu1 %611 }
 0x18b   : > { %655 = vmatpush.bf16.msra.mxu0 %v612_v45  ;;  %v615_v47 = vsel %vm613_vm10, %v610_v36, %v612_v45 }
 0x18c   : > { %688 = vmatpush.bf16.msra.mxu1 %v673_v44  ;;  %642 = vmatpush.bf16.msrb.mxu3 %v615_v47 }
 0x18d   : > { %v962_v56 = vpop.permute.xlu2 %961 }
 0x18e   : > { %v787_v49 = vpop.permute.xlu0 %786 }
 0x18f   : > { %747 = vmatpush.bf16.msrb.mxu0 %v732_v46  ;;  %1960 = vmatmul.msk.bf16.vlgmr.msrb.gmra.mxu3 %vm517_vm8, %v1958_v48  ;;  %v791_v52 = vsel %vm790_vm13, %v785_v37, %v787_v49  ;;  %v1974_v37 = vld [vmem:[%s2699_s4 + $0xc] sm:$0x3] }
 0x192   : > { %v671_v51 = vpop.permute.xlu1 %670 }
 0x193   : > { %1961 = vmatmul.msk.bf16.vlgmr.msra.gmra.mxu0 %vm517_vm8, %v1958_v48  ;;  %v674_v53 = vsel %vm672_vm11, %v669_v38, %v671_v51  ;;  %714 = vmatpush.bf16.msra.mxu3 %v671_v51 }
 0x194   : > { %701 = vmatpush.bf16.msra.mxu2 %v674_v53 }
 0x195   : > { %v2328_v63 = vpop.permute.xlu2 %1021 }
 0x196   : > { %v846_v55 = vpop.permute.xlu0 %845  ;;  %1959 = vmatmul.msk.bf16.vlgmr.msrb.gmra.mxu2 %vm517_vm8, %v1958_v48 }
 0x197   : > { %806 = vmatpush.bf16.msrb.mxu3 %v791_v52  ;;  %1957 = vmatmul.msk.bf16.vlgmr.msrb.gmra.mxu1 %vm517_vm8, %v485_v30  ;;  %v850_v1 = vsel %vm849_vm14, %v844_v42, %v846_v55 }
 0x19a   : > { %v730_v57 = vpop.permute.xlu1 %729 }
 0x19b   : > { %v733_v58 = vsel %vm731_vm12, %v728_v43, %v730_v57  ;;  %773 = vmatpush.bf16.msrb.mxu2 %v730_v57  ;;  %v1045_v43 = vunpack.c.l.bf16 %v1038_v40  ;;  %v1982_v57 = vld [vmem:[%s2699_s4 + $0x10] sm:$0x3] }
 0x19c   : > { %760 = vmatpush.bf16.msrb.mxu1 %v733_v58 }
 0x19d   : > { %v1058_v12 = vpop.permute.xlu2 %1057 }
 0x19e   : > { %v905_v60 = vpop.permute.xlu0 %904  ;;  %v1070_v44 = vmul.f32 %v1058_v12, %v389_v10  ;;  %v1071_v45 = vmul.f32 %v1058_v12, %v390_v11  ;;  %v1072_v48 = vmul.f32 %v1058_v12, %v1045_v43  ;;  %v1978_v10 = vld [vmem:[%s2699_s4 + $0xe] sm:$0x3] }
 0x19f   : > { %1965 = vmatmul.msk.bf16.vlgmr.msra.gmra.mxu3 %vm517_vm8, %v1962_v59  ;;  %v909_v19 = vsel %vm908_vm1, %v903_v50, %v905_v60 }
 0x1a2   : > { %v789_v62 = vpop.permute.xlu1 %788 }
 0x1a3   : > { %1967 = vmatmul.msk.bf16.vlgmr.msrb.gmra.mxu0 %vm517_vm8, %v1966_v61  ;;  %v792_v0 = vsel %vm790_vm13, %v787_v49, %v789_v62 }
 0x1a4   : > { %819 = vmatpush.bf16.msra.mxu0 %v792_v0 }
 0x1a5   : > { %v1090_v24 = vpop.permute.xlu2 %1089 }
 0x1a6   : > { %v964_v3 = vpop.permute.xlu0 %963  ;;  %1964 = vmatmul.msk.bf16.vlgmr.msra.gmra.mxu2 %vm517_vm8, %v1962_v59 }
 0x1a7   : > { %865 = vmatpush.bf16.msra.mxu2 %v850_v1  ;;  %1963 = vmatmul.msk.bf16.vlgmr.msra.gmra.mxu1 %vm517_vm8, %v1962_v59  ;;  %v968_v17 = vsel %vm967_vm15, %v962_v56, %v964_v3 }
 0x1a8   : > { %832 = vmatpush.bf16.msra.mxu1 %v789_v62  ;;  %v575_v62 = vpop.f32.mrf.mxu3 }
 0x1aa   : > { %v848_v4 = vpop.permute.xlu1 %847 }
 0x1ab   : > { %v851_v9 = vsel %vm849_vm14, %v846_v55, %v848_v4  ;;  %891 = vmatpush.bf16.msrb.mxu0 %v848_v4 }
 0x1ac   : > { %878 = vmatpush.bf16.msra.mxu3 %v851_v9 }
 0x1ae   : > { %v2339_v14 = vpop.permute.xlu0 %1067 }
 0x1af   : > { %1971 = vmatmul.msk.bf16.vlgmr.msrb.gmra.mxu3 %vm517_vm8, %v1970_v13 }
 0x1b0   : > { %v577_v0 = vpop.f32.mrf.mxu3 }
 0x1b2   : > { %v907_v16 = vpop.permute.xlu1 %906 }
 0x1b3   : > { %1972 = vmatmul.msk.bf16.vlgmr.msra.gmra.mxu0 %vm517_vm8, %v1970_v13  ;;  %950 = vmatpush.bf16.msrb.mxu3 %v907_v16  ;;  %v910_v22 = vsel %vm908_vm1, %v905_v60, %v907_v16 }
 0x1b4   : > { %983 = vmatpush.bf16.msra.mxu0 %v968_v17 }
 0x1b6   : > { %v1063_v23 = vpop.permute.xlu0 %1062  ;;  %1969 = vmatmul.msk.bf16.vlgmr.msrb.gmra.mxu2 %vm517_vm8, %v1966_v61 }
 0x1b7   : > { %v1073_v28 = vmul.f32 %v1063_v23, %v392_v26  ;;  %v1074_v29 = vmul.f32 %v1063_v23, %v393_v27  ;;  %v1075_v30 = vmul.f32 %v1063_v23, %v1048_v18  ;;  %937 = vmatpush.bf16.msrb.mxu2 %v910_v22  ;;  %1968 = vmatmul.msk.bf16.vlgmr.msrb.gmra.mxu1 %vm517_vm8, %v1966_v61 }
 0x1b8   : > { %924 = vmatpush.bf16.msrb.mxu1 %v909_v19 }
 0x1b9   : > { %v1100_v31 = vadd.f32 %v1090_v24, %v1073_v28  ;;  %v1101_v32 = vadd.f32 %v1090_v24, %v1074_v29  ;;  %v1102_v34 = vadd.f32 %v1090_v24, %v1075_v30 }
 0x1ba   : > { %v966_v33 = vpop.permute.xlu1 %965 }
 0x1bb   : > { %v1109_v35 = vmax.f32 %v1100_v31, 0.0  ;;  %v1110_v36 = vmax.f32 %v1101_v32, 0.0  ;;  %v1111_v27 = vmax.f32 %v1102_v34, 0.0  ;;  %v969_v46 = vsel %vm967_vm15, %v964_v3, %v966_v33 }
 0x1bd   : > { %v1118_v26 = vmul.f32 %v1109_v35, %v2191_v21  ;;  %v1119_v38 = vmul.f32 %v1110_v36, %v2193_v25  ;;  %v1120_v42 = vmul.f32 %v1111_v27, %v2189_v20 }
 0x1bf   : > { %1976 = vmatmul.msk.bf16.vlgmr.msra.gmra.mxu3 %vm517_vm8, %v1974_v37  ;;  %v1126_v39 = vpack.c.bf16 %v1119_v38, %v1118_v26  ;;  %v1127_v47 = vpack.c.bf16 %v1120_v42, %v1120_v42 }
 0x1c1   : > { %1140 = vrot.lane.b32.xlu2 %v1126_v39, %s2073_s29 }
 0x1c2   : > { %v2359_v41 = vpop.permute.xlu1 %1094 }
 0x1c3   : > { %1977 = vmatmul.msk.bf16.vlgmr.msrb.gmra.mxu0 %vm517_vm8, %v1974_v37 }
 0x1c6   : > { %1975 = vmatmul.msk.bf16.vlgmr.msra.gmra.mxu2 %vm517_vm8, %v1974_v37 }
 0x1c7   : > { %1009 = vmatpush.bf16.msra.mxu2 %v966_v33  ;;  %1973 = vmatmul.msk.bf16.vlgmr.msra.gmra.mxu1 %vm517_vm8, %v1970_v13 }
 0x1c8   : > { %996 = vmatpush.bf16.msra.mxu1 %v969_v46 }
 0x1c9   : > { %1142 = vrot.lane.b32.xlu2 %v1127_v47, %s2073_s29 }
 0x1ca   : > { %v1085_v49 = vpop.permute.xlu1 %1084 }
 0x1cb   : > { %v1097_v50 = vadd.f32 %v1085_v49, %v1070_v44  ;;  %v1098_v51 = vadd.f32 %v1085_v49, %v1071_v45  ;;  %v1099_v52 = vadd.f32 %v1085_v49, %v1072_v48 }
 0x1cd   : > { %v1106_v53 = vmax.f32 %v1097_v50, 0.0  ;;  %v1107_v11 = vmax.f32 %v1098_v51, 0.0  ;;  %v1108_v58 = vmax.f32 %v1099_v52, 0.0 }
 0x1cf   : > { %1981 = vmatmul.msk.bf16.vlgmr.msrb.gmra.mxu3 %vm517_vm8, %v1978_v10  ;;  %v1115_v55 = vmul.f32 %v1106_v53, %v2191_v21  ;;  %v1116_v56 = vmul.f32 %v1107_v11, %v2193_v25  ;;  %v1117_v60 = vmul.f32 %v1108_v58, %v2189_v20 }
 0x1d1   : > { %v1124_v59 = vpack.c.bf16 %v1116_v56, %v1115_v55  ;;  %v1125_v61 = vpack.c.bf16 %v1117_v60, %v1117_v60 }
 0x1d3   : > { %1136 = vrot.lane.b32.xlu1 %v1124_v59, %s2073_s29  ;;  %1983 = vmatmul.msk.bf16.vlgmr.msra.gmra.mxu0 %vm517_vm8, %v1982_v57 }
 0x1d6   : > { %1980 = vmatmul.msk.bf16.vlgmr.msrb.gmra.mxu2 %vm517_vm8, %v1978_v10 }
 0x1d7   : > { %1979 = vmatmul.msk.bf16.vlgmr.msrb.gmra.mxu1 %vm517_vm8, %v1978_v10 }
 0x1db   : > { %1138 = vrot.lane.b32.xlu1 %v1125_v61, %s2073_s29 }
 0x1e6   : > { %1985 = vmatmul.msk.bf16.vlgmr.msra.gmra.mxu2 %vm517_vm8, %v1982_v57 }
 0x1e7   : > { %1984 = vmatmul.msk.bf16.vlgmr.msra.gmra.mxu1 %vm517_vm8, %v1982_v57  ;;  %vm1171_vm8 = vcmask 705536  }
 0x1f0   : > { %v530_v1 = vpop.f32.mrf.mxu0 }
 0x1f1   : > { %v576_v3 = vadd.f32 %v575_v62, %v530_v1 }
 0x1f8   : > { %v532_v4 = vpop.f32.mrf.mxu0 }
 0x200   : > { %v588_v9 = vpop.f32.mrf.mxu0 }
 0x204   : > { %v543_v12 = vpop.f32.mrf.mxu1 }
 0x205   : > { %v589_v13 = vadd.f32 %v588_v9, %v543_v12 }
 0x208   : > { %v590_v15 = vpop.f32.mrf.mxu0 }
 0x209   : > { %v556_v16 = vpop.f32.mrf.mxu2 }
 0x20c   : > { %v545_v6 = vpop.f32.mrf.mxu1 }
 0x210   : > { %v657_v17 = vpop.f32.mrf.mxu0 }
 0x211   : > { %v558_v18 = vpop.f32.mrf.mxu2 }
 0x212   : > { %v644_v19 = vpop.f32.mrf.mxu3 }
 0x213   : > { %v662_v22 = vadd.f32 %v644_v19, %v589_v13 }
 0x214   : > { %v601_v5 = vpop.f32.mrf.mxu1 }
 0x215   : > { %v602_v23 = vadd.f32 %v601_v5, %v556_v16 }
 0x217   : > { %v2404_v8 = vadd.f32 %v657_v17, %v602_v23 }
 0x218   : > { %v659_v24 = vpop.f32.mrf.mxu0 }
 0x219   : > { %v631_v7 = vpop.f32.mrf.mxu2 }
 0x21a   : > { %v646_v28 = vpop.f32.mrf.mxu3  ;;  %v661_v4 = vadd.f32 %v631_v7, %v576_v3 }
 0x21b   : > { %v1141_v29 = vpop.permute.xlu2 %1140 }
 0x21c   : > { %v1149_v30 = vrot.slane %v1141_v29, 4  ;;  %v603_v31 = vpop.f32.mrf.mxu1 }
 0x21e   : > { %v1153_v32 = vsel %vm468_vm5, %v1149_v30, %v1141_v29 }
 0x21f   : > { %1165 = vst.msk [vmem:[#allocation3 + $0xc] sm:$0xff] %vm2213_vm6, %v1153_v32 }
 0x220   : > { %v749_v33 = vpop.f32.mrf.mxu0 }
 0x221   : > { %v633_v34 = vpop.f32.mrf.mxu2 }
 0x222   : > { %v716_v35 = vpop.f32.mrf.mxu3 }
 0x223   : > { %v1143_v36 = vpop.permute.xlu2 %1142  ;;  %v722_v31 = vadd.f32 %v716_v35, %v2404_v8 }
 0x224   : > { %v1154_v37 = vsel %vm468_vm5, %v1149_v30, %v1143_v36  ;;  %v690_v26 = vpop.f32.mrf.mxu1 }
 0x225   : > { %1166 = vst.msk [vmem:[#allocation3 + $0x14] sm:$0xf] %vm481_vm7, %v1154_v37  ;;  %v720_v15 = vadd.f32 %v690_v26, %v661_v4 }
 0x226   : > { %v2039_v62 = vld [vmem:[#allocation3 + $0x8] sm:$0xf0] }
 0x227   : > { %v779_v6 = vadd.f32 %v749_v33, %v720_v15 }
 0x228   : > { %v751_v38 = vpop.f32.mrf.mxu0 }
 0x229   : > { %v703_v27 = vpop.f32.mrf.mxu2 }
 0x22a   : > { %v718_v39 = vpop.f32.mrf.mxu3  ;;  %v721_v19 = vadd.f32 %v703_v27, %v662_v22 }
 0x22c   : > { %v692_v40 = vpop.f32.mrf.mxu1  ;;  %v2040_v17 = vld [vmem:[#allocation3 + $0x10] sm:$0xf0] }
 0x230   : > { %v821_v42 = vpop.f32.mrf.mxu0 }
 0x231   : > { %v705_v43 = vpop.f32.mrf.mxu2 }
 0x232   : > { %v808_v44 = vpop.f32.mrf.mxu3 }
 0x233   : > { %v838_v5 = vadd.f32 %v808_v44, %v779_v6 }
 0x234   : > { %v762_v45 = vpop.f32.mrf.mxu1 }
 0x235   : > { %v780_v3 = vadd.f32 %v762_v45, %v721_v19 }
 0x237   : > { %v839_v32 = vadd.f32 %v821_v42, %v780_v3 }
 0x238   : > { %v823_v46 = vpop.f32.mrf.mxu0 }
 0x239   : > { %v775_v47 = vpop.f32.mrf.mxu2 }
 0x23a   : > { %v810_v48 = vpop.f32.mrf.mxu3  ;;  %v781_v34 = vadd.f32 %v775_v47, %v722_v31 }
 0x23c   : > { %v764_v49 = vpop.f32.mrf.mxu1 }
 0x240   : > { %v893_v50 = vpop.f32.mrf.mxu0 }
 0x241   : > { %v777_v51 = vpop.f32.mrf.mxu2 }
 0x242   : > { %v880_v10 = vpop.f32.mrf.mxu3 }
 0x243   : > { %v898_v33 = vadd.f32 %v880_v10, %v839_v32 }
 0x244   : > { %v834_v52 = vpop.f32.mrf.mxu1 }
 0x245   : > { %v1137_v53 = vpop.permute.xlu1 %1136  ;;  %v840_v22 = vadd.f32 %v834_v52, %v781_v34 }
 0x246   : > { %v1148_v11 = vrot.slane %v1137_v53, 4 }
 0x247   : > { %v899_v40 = vadd.f32 %v893_v50, %v840_v22 }
 0x248   : > { %v1151_v55 = vsel %vm468_vm5, %v1148_v11, %v1137_v53  ;;  %v895_v56 = vpop.f32.mrf.mxu0 }
 0x249   : > { %1163 = vst.msk [vmem:[#allocation3] sm:$0xff] %vm2213_vm6, %v1151_v55  ;;  %v867_v57 = vpop.f32.mrf.mxu2  ;;  %vm1168_vm6 = vcmask 1045508  }
 0x24a   : > { %v882_v58 = vpop.f32.mrf.mxu3  ;;  %v897_v7 = vadd.f32 %v867_v57, %v838_v5 }
 0x24c   : > { %v836_v59 = vpop.f32.mrf.mxu1 }
 0x24d   : > { %v1139_v60 = vpop.permute.xlu1 %1138 }
 0x24e   : > { %v1152_v61 = vsel %vm468_vm5, %v1148_v11, %v1139_v60 }
 0x24f   : > { %1164 = vst.msk [vmem:[#allocation3 + $0x8] sm:$0xf] %vm481_vm7, %v1152_v61  ;;  %vm1169_vm7 = vmor %vm1168_vm6, %vm1167_vm4 }
 0x250   : > { %v1989_v0 = vld [vmem:[#allocation3] sm:$0xf]  ;;  %v985_v1 = vpop.f32.mrf.mxu0 }
 0x251   : > { %v869_v9 = vpop.f32.mrf.mxu2  ;;  %v2416_v12 = vor.u32 %v2039_v62, %v1989_v0 }
 0x252   : > { %v952_v13 = vpop.f32.mrf.mxu3 }
 0x253   : > { %1203 = vrot.lane.b32.xlu2 %v2416_v12, %s2074_s30  ;;  %v958_v8 = vadd.f32 %v952_v13, %v899_v40 }
 0x254   : > { %v926_v54 = vpop.f32.mrf.mxu1 }
 0x255   : > { %v956_v30 = vadd.f32 %v926_v54, %v897_v7  ;;  %v2038_v54 = vld [vmem:[#allocation3 + $0x4] sm:$0xf] }
 0x256   : > { %v1997_v16 = vld [vmem:[#allocation3 + $0x8] sm:$0xf] }
 0x257   : > { %v2420_v23 = vor.u32 %v2040_v17, %v1997_v16  ;;  %v1015_v36 = vadd.f32 %v985_v1, %v956_v30  ;;  %v1991_v16 = vld [vmem:[#allocation3 + $0xc] sm:$0xf0] }
 0x258   : > { %v987_v18 = vpop.f32.mrf.mxu0  ;;  %v2452_v6 = vor.u32 %v2038_v54, %v1991_v16  ;;  %v2005_v16 = vld [vmem:[%s2703_s8 + $0x4] sm:$0x3] }
 0x259   : > { %v939_v24 = vpop.f32.mrf.mxu2  ;;  %v1024_v27 = vadd.f32 %v2328_v63, %v1015_v36 }
 0x25a   : > { %v954_v28 = vpop.f32.mrf.mxu3  ;;  %v957_v26 = vadd.f32 %v939_v24, %v898_v33 }
 0x25b   : > { %1207 = vrot.lane.b32.xlu2 %v2420_v23, %s2074_s30  ;;  %v1027_v35 = vmul.f32 %v1024_v27, %v2191_v21 }
 0x25c   : > { %v928_v29 = vpop.f32.mrf.mxu1 }
 0x261   : > { %v941_v37 = vpop.f32.mrf.mxu2 }
 0x263   : > { %1331 = vrot.lane.b32.xlu2 %v2416_v12, %s2075_s11 }
 0x264   : > { %v998_v38 = vpop.f32.mrf.mxu1 }
 0x265   : > { %v1016_v39 = vadd.f32 %v998_v38, %v957_v26  ;;  %v2546_v26 = vld [vmem:[%s2703_s8] sm:$0x3] }
 0x267   : > { %v1025_v43 = vadd.f32 %v2328_v63, %v1016_v39 }
 0x269   : > { %v1028_v42 = vmul.f32 %v1025_v43, %v2193_v25  ;;  %v1011_v44 = vpop.f32.mrf.mxu2 }
 0x26a   : > { %v1017_v45 = vadd.f32 %v1011_v44, %v958_v8 }
 0x26b   : > { %v1030_v46 = vpack.c.bf16 %v1028_v42, %v1027_v35  ;;  %1335 = vrot.lane.b32.xlu2 %v2420_v23, %s2075_s11  ;;  %v1986_v42 = vld [vmem:[%s2703_s8 + $0x2] sm:$0x3] }
 0x26c   : > { %v1026_v47 = vadd.f32 %v2328_v63, %v1017_v45  ;;  %v1000_v48 = vpop.f32.mrf.mxu1 }
 0x26d   : > { %1032 = vst [vmem:[%s2390_s28 + $0x18] sm:$0x33] %v1030_v46 }
 0x26e   : > { %1035 = vst [vmem:[#allocation2 + $0x18] sm:$0x33] %v1030_v46  ;;  %v1029_v49 = vmul.f32 %v1026_v47, %v2189_v20 }
 0x270   : > { %v1031_v50 = vpack.c.bf16 %v1029_v49, %v1029_v49 }
 0x271   : > { %v1013_v51 = vpop.f32.mrf.mxu2 }
 0x272   : > { %1034 = vst.msk [vmem:[%s2390_s28 + $0x20] sm:$0x3] %vm1033_vm0, %v1031_v50 }
 0x273   : > { %1036 = vst.msk [vmem:[#allocation2 + $0x20] sm:$0x3] %vm1033_vm0, %v1031_v50  ;;  %1410 = vrot.lane.b32.xlu2 %v2420_v23, %s2076_s12  ;;  %vm1226_vm0 = vcmask 1041408  }
 0x275   : > { %v1041_v10 = vld [vmem:[#allocation2 + $0x18] sm:$0x33] }
 0x276   : > { %v1049_v52 = vunpack.c.l.bf16 %v1041_v10  ;;  %v1050_v53 = vunpack.c.h.bf16 %v1041_v10 }
 0x278   : > { %v1076_v11 = vmul.f32 %v2339_v14, %v1049_v52  ;;  %v1077_v63 = vmul.f32 %v2339_v14, %v1050_v53 }
 0x27a   : > { %v1103_v55 = vadd.f32 %v2359_v41, %v1076_v11  ;;  %v1104_v56 = vadd.f32 %v2359_v41, %v1077_v63  ;;  %v1042_v57 = vld [vmem:[#allocation2 + $0x20] sm:$0x3] }
 0x27b   : > { %1481 = vrot.lane.b32.xlu2 %v2416_v12, %s2077_s15  ;;  %v1051_v58 = vunpack.c.l.bf16 %v1042_v57 }
 0x27c   : > { %v1112_v59 = vmax.f32 %v1103_v55, 0.0  ;;  %v1113_v60 = vmax.f32 %v1104_v56, 0.0 }
 0x27d   : > { %v1078_v61 = vmul.f32 %v2339_v14, %v1051_v58 }
 0x27e   : > { %v1121_v62 = vmul.f32 %v1112_v59, %v2191_v21  ;;  %v1122_v0 = vmul.f32 %v1113_v60, %v2193_v25 }
 0x27f   : > { %v1105_v1 = vadd.f32 %v2359_v41, %v1078_v61 }
 0x280   : > { %v1128_v4 = vpack.c.bf16 %v1122_v0, %v1121_v62 }
 0x281   : > { %v1114_v9 = vmax.f32 %v1105_v1, 0.0 }
 0x282   : > { %1144 = vrot.lane.b32.xlu0 %v1128_v4, %s2073_s29 }
 0x283   : > { %v1123_v13 = vmul.f32 %v1114_v9, %v2189_v20 }
 0x285   : > { %v1129_v15 = vpack.c.bf16 %v1123_v13, %v1123_v13 }
 0x28a   : > { %1146 = vrot.lane.b32.xlu0 %v1129_v15, %s2073_s29 }
 0x292   : > { %1205 = vrot.lane.b32.xlu0 %v2452_v6, %s2074_s30 }
 0x29a   : > { %1333 = vrot.lane.b32.xlu0 %v2452_v6, %s2075_s11 }
 0x2ad   : > { %v1204_v32 = vpop.permute.xlu2 %1203 }
 0x2b5   : > { %v1208_v34 = vpop.permute.xlu2 %1207 }
 0x2bd   : > { %v1332_v36 = vpop.permute.xlu2 %1331 }
 0x2c5   : > { %v2541_v22 = vpop.permute.xlu2 %1335 }
 0x2cd   : > { %v2557_v8 = vpop.permute.xlu2 %1410 }
 0x2d5   : > { %v2566_v48 = vpop.permute.xlu2 %1481 }
 0x2f4   : > { %v1145_v14 = vpop.permute.xlu0 %1144 }
 0x2f5   : > { %v1150_v41 = vrot.slane %v1145_v14, 4 }
 0x2f7   : > { %v1155_v17 = vsel %vm468_vm5, %v1150_v41, %v1145_v14 }
 0x2f8   : > { %1170 = vst.msk [vmem:[#allocation3 + $0x18] sm:$0x33] %vm1169_vm7, %v1155_v17 }
 0x2fc   : > { %v1147_v18 = vpop.permute.xlu0 %1146 }
 0x2fd   : > { %v1156_v19 = vsel %vm468_vm5, %v1150_v41, %v1147_v18  ;;  %vm1222_vm5 = vcmask 162816  }
 0x2fe   : > { %1172 = vst.msk [vmem:[#allocation3 + $0x20] sm:$0x3] %vm1171_vm8, %v1156_v19 }
 0x2ff   : > { %v1178_v5 = vld [vmem:[#allocation3 + $0x18] sm:$0x33] }
 0x300   : > { %v1194_v24 = vunpack.c.l.b16 %v1178_v5  ;;  %v1195_v28 = vunpack.c.h.b16 %v1178_v5 }
 0x302   : > { %v1200_v3 = vpack.c.b16 %v1194_v24, %v1194_v24  ;;  %v2462_v7 = vpack.c.b16 %v1195_v28, %v1195_v28 }
 0x304   : > { %1211 = vrot.lane.b32.xlu1 %v2462_v7, %s2074_s30  ;;  %1209 = vrot.lane.b32.xlu0 %v1200_v3, %s2074_s30  ;;  %v1282_v2 = vsel %vm1226_vm0, %v1200_v3, 0  ;;  %v1206_v33 = vpop.permute.xlu0 %1205  ;;  %v1285_v35 = vsel %vm1226_vm0, %v2462_v7, 0 }
 0x305   : > { %v1179_v29 = vld [vmem:[#allocation3 + $0x20] sm:$0x3]  ;;  %1296 = vmatpush.bf16.msrb.mxu2 %v1282_v2  ;;  %v1215_v43 = vsel %vm511_vm9, %v1204_v32, %v1206_v33  ;;  %v1216_v55 = vsel %vm511_vm9, %v1206_v33, %v1208_v34 }
 0x306   : > { %v1196_v30 = vunpack.c.l.b16 %v1179_v29 }
 0x308   : > { %v2468_v31 = vpack.c.b16 %v1196_v30, %v1196_v30 }
 0x309   : > { %1297 = vmatpush.bf16.msrb.mxu2 %v2416_v12 }
 0x30a   : > { %1416 = vrot.lane.b32.xlu2 %v2468_v31, %s2076_s12  ;;  %v1288_v56 = vsel %vm1226_vm0, %v2468_v31, 0 }
 0x30c   : > { %1339 = vrot.lane.b32.xlu1 %v2462_v7, %s2075_s11  ;;  %1406 = vrot.lane.b32.xlu0 %v2416_v12, %s2076_s12  ;;  %v2536_v37 = vpop.permute.xlu0 %1333 }
 0x30d   : > { %2002 = vmatmul.msk.bf16.vlgmr.msrb.gmra.mxu2 %vm1222_vm5, %v2546_v26  ;;  %v1343_v61 = vsel %vm613_vm10, %v1332_v36, %v2536_v37  ;;  %v1344_v5 = vsel %vm613_vm10, %v2536_v37, %v2541_v22 }
 0x312   : > { %1485 = vrot.lane.b32.xlu2 %v2420_v23, %s2077_s15 }
 0x314   : > { %1414 = vrot.lane.b32.xlu1 %v2462_v7, %s2076_s12  ;;  %1337 = vrot.lane.b32.xlu0 %v1200_v3, %s2075_s11 }
 0x31a   : > { %1560 = vrot.lane.b32.xlu2 %v2420_v23, %s2078_s16 }
 0x31c   : > { %1412 = vrot.lane.b32.xlu0 %v1200_v3, %s2076_s12  ;;  %1213 = vrot.lane.b32.xlu1 %v2468_v31, %s2074_s30 }
 0x322   : > { %1566 = vrot.lane.b32.xlu2 %v2468_v31, %s2078_s16 }
 0x324   : > { %1487 = vrot.lane.b32.xlu0 %v1200_v3, %s2077_s15  ;;  %1408 = vrot.lane.b32.xlu1 %v2452_v6, %s2076_s12 }
 0x32a   : > { %1631 = vrot.lane.b32.xlu2 %v2416_v12, %s2079_s17 }
 0x32c   : > { %1483 = vrot.lane.b32.xlu0 %v2452_v6, %s2077_s15  ;;  %1489 = vrot.lane.b32.xlu1 %v2462_v7, %s2077_s15 }
 0x332   : > { %1635 = vrot.lane.b32.xlu2 %v2420_v23, %s2079_s17 }
 0x334   : > { %1562 = vrot.lane.b32.xlu0 %v1200_v3, %s2078_s16  ;;  %1341 = vrot.lane.b32.xlu1 %v2468_v31, %s2075_s11 }
 0x33a   : > { %1716 = vrot.lane.b32.xlu2 %v2468_v31, %s2080_s18 }
 0x33c   : > { %1556 = vrot.lane.b32.xlu0 %v2416_v12, %s2078_s16  ;;  %1564 = vrot.lane.b32.xlu1 %v2462_v7, %s2078_s16 }
 0x342   : > { %1710 = vrot.lane.b32.xlu2 %v2420_v23, %s2080_s18 }
 0x344   : > { %1637 = vrot.lane.b32.xlu0 %v1200_v3, %s2079_s17  ;;  %1558 = vrot.lane.b32.xlu1 %v2452_v6, %s2078_s16 }
 0x34a   : > { %1781 = vrot.lane.b32.xlu2 %v2416_v12, %s2081_s19 }
 0x34c   : > { %1633 = vrot.lane.b32.xlu0 %v2452_v6, %s2079_s17  ;;  %1491 = vrot.lane.b32.xlu1 %v2468_v31, %s2077_s15 }
 0x352   : > { %1785 = vrot.lane.b32.xlu2 %v2420_v23, %s2081_s19 }
 0x354   : > { %1712 = vrot.lane.b32.xlu0 %v1200_v3, %s2080_s18  ;;  %1639 = vrot.lane.b32.xlu1 %v2462_v7, %s2079_s17 }
 0x35c   : > { %1706 = vrot.lane.b32.xlu0 %v2416_v12, %s2080_s18  ;;  %1714 = vrot.lane.b32.xlu1 %v2462_v7, %s2080_s18  ;;  %v1854_v12 = vld [vmem:[%s2704_s9] sm:$0xf] }
 0x364   : > { %1787 = vrot.lane.b32.xlu0 %v1200_v3, %s2081_s19  ;;  %1641 = vrot.lane.b32.xlu1 %v2468_v31, %s2079_s17  ;;  %v1417_v51 = vpop.permute.xlu2 %1416 }
 0x365   : > { %v1435_v24 = vsel %vm1226_vm0, %v1417_v51, 0 }
 0x36c   : > { %1783 = vrot.lane.b32.xlu0 %v2452_v6, %s2081_s19  ;;  %1708 = vrot.lane.b32.xlu1 %v2452_v6, %s2080_s18  ;;  %v2584_v62 = vpop.permute.xlu2 %1485 }
 0x374   : > { %1857 = vperm.xlu0 %2061, %v1854_v12   ;;  %1789 = vrot.lane.b32.xlu1 %v2462_v7, %s2081_s19  ;;  %v2592_v54 = vpop.permute.xlu2 %1560 }
 0x376   : > { %v1212_v38 = vpop.permute.xlu1 %1211  ;;  %v1210_v27 = vpop.permute.xlu0 %1209 }
 0x377   : > { %v1217_v39 = vsel %vm511_vm9, %v1210_v27, %v1212_v38 }
 0x378   : > { %v1228_v40 = vsel %vm1226_vm0, %v1217_v39, 0 }
 0x379   : > { %1242 = vmatpush.bf16.msra.mxu3 %v1228_v40 }
 0x37c   : > { %1791 = vrot.lane.b32.xlu1 %v2468_v31, %s2081_s19  ;;  %v1567_v28 = vpop.permute.xlu2 %1566 }
 0x37d   : > { %1243 = vmatpush.bf16.msra.mxu3 %v1215_v43 }
 0x37e   : > { %v1340_v44 = vpop.permute.xlu1 %1339  ;;  %v1407_v45 = vpop.permute.xlu0 %1406 }
 0x380   : > { %1999 = vmatmul.msk.bf16.vlgmr.msra.gmra.mxu3 %vm1222_vm5, %v1986_v42 }
 0x381   : > { %1309 = vmatpush.bf16.msrb.mxu3 %v1285_v35 }
 0x385   : > { %1310 = vmatpush.bf16.msrb.mxu3 %v2452_v6 }
 0x386   : > { %v1415_v46 = vpop.permute.xlu1 %1414  ;;  %v1338_v47 = vpop.permute.xlu0 %1337 }
 0x387   : > { %v1345_v11 = vsel %vm613_vm10, %v1338_v47, %v1340_v44  ;;  %v1421_v57 = vsel %vm672_vm11, %v1415_v46, %v1417_v51 }
 0x388   : > { %v1354_v63 = vsel %vm1226_vm0, %v1345_v11, 0  ;;  %v1432_v0 = vsel %vm1226_vm0, %v1421_v57, 0 }
 0x38e   : > { %v1214_v49 = vpop.permute.xlu1 %1213  ;;  %v1413_v50 = vpop.permute.xlu0 %1412 }
 0x38f   : > { %v1218_v10 = vsel %vm511_vm9, %v1212_v38, %v1214_v49  ;;  %v1234_v52 = vsel %vm1226_vm0, %v1214_v49, 0  ;;  %v1420_v60 = vsel %vm672_vm11, %v1413_v50, %v1415_v46  ;;  %v2017_v49 = vld [vmem:[%s2703_s8 + $0xa] sm:$0x3]  ;;  %vm1875_vm9 = vcmask 551938  }
 0x390   : > { %v1231_v53 = vsel %vm1226_vm0, %v1218_v10, 0  ;;  %1268 = vmatpush.bf16.msrb.mxu1 %v1234_v52  ;;  %2003 = vmatmul.msk.bf16.vlgmr.msrb.gmra.mxu3 %vm1222_vm5, %v2546_v26  ;;  %v1429_v1 = vsel %vm1226_vm0, %v1420_v60, 0 }
 0x391   : > { %1255 = vmatpush.bf16.msrb.mxu0 %v1231_v53 }
 0x394   : > { %1269 = vmatpush.bf16.msrb.mxu1 %v1208_v34  ;;  %v2009_v34 = vld [vmem:[%s2703_s8 + $0x6] sm:$0x3] }
 0x395   : > { %1256 = vmatpush.bf16.msrb.mxu0 %v1216_v55 }
 0x396   : > { %v1409_v58 = vpop.permute.xlu1 %1408  ;;  %v1488_v59 = vpop.permute.xlu0 %1487 }
 0x397   : > { %2001 = vmatmul.msk.bf16.vlgmr.msrb.gmra.mxu1 %vm1222_vm5, %v1986_v42  ;;  %v1419_v4 = vsel %vm672_vm11, %v1409_v58, %v2557_v8  ;;  %v1418_v15 = vsel %vm672_vm11, %v1407_v45, %v1409_v58 }
 0x398   : > { %1368 = vmatpush.bf16.msra.mxu1 %v1354_v63  ;;  %2000 = vmatmul.msk.bf16.vlgmr.msrb.gmra.mxu0 %vm1222_vm5, %v1986_v42  ;;  %v1585_v42 = vsel %vm1226_vm0, %v1567_v28, 0  ;;  %v2021_v63 = vld [vmem:[%s2703_s8 + $0xc] sm:$0x3] }
 0x399   : > { %1322 = vmatpush.bf16.msra.mxu0 %v1288_v56 }
 0x39c   : > { %1369 = vmatpush.bf16.msra.mxu1 %v1343_v61 }
 0x39d   : > { %1323 = vmatpush.bf16.msra.mxu0 %v2420_v23 }
 0x39e   : > { %v1490_v9 = vpop.permute.xlu1 %1489  ;;  %v1484_v13 = vpop.permute.xlu0 %1483 }
 0x39f   : > { %v1495_v18 = vsel %vm731_vm12, %v1488_v59, %v1490_v9  ;;  %v1493_v31 = vsel %vm731_vm12, %v2566_v48, %v1484_v13  ;;  %v1494_v35 = vsel %vm731_vm12, %v1484_v13, %v2584_v62  ;;  %v2025_v13 = vld [vmem:[%s2703_s8 + $0xe] sm:$0x3] }
 0x3a0   : > { %1456 = vmatpush.bf16.msrb.mxu1 %v1432_v0  ;;  %v1504_v19 = vsel %vm1226_vm0, %v1495_v18, 0 }
 0x3a1   : > { %1443 = vmatpush.bf16.msrb.mxu0 %v1429_v1 }
 0x3a4   : > { %1457 = vmatpush.bf16.msrb.mxu1 %v1419_v4 }
 0x3a5   : > { %1444 = vmatpush.bf16.msrb.mxu0 %v1418_v15 }
 0x3a6   : > { %v1342_v6 = vpop.permute.xlu1 %1341  ;;  %v1563_v14 = vpop.permute.xlu0 %1562 }
 0x3a7   : > { %v1346_v23 = vsel %vm613_vm10, %v1340_v44, %v1342_v6  ;;  %v1360_v41 = vsel %vm1226_vm0, %v1342_v6, 0  ;;  %2006 = vmatmul.msk.bf16.vlgmr.msra.gmra.mxu1 %vm1222_vm5, %v2005_v16 }
 0x3a8   : > { %v1357_v17 = vsel %vm1226_vm0, %v1346_v23, 0  ;;  %2004 = vmatmul.msk.bf16.vlgmr.msra.gmra.mxu0 %vm1222_vm5, %v2546_v26  ;;  %1394 = vmatpush.bf16.msra.mxu3 %v1360_v41  ;;  %v2013_v26 = vld [vmem:[%s2703_s8 + $0x8] sm:$0x3]  ;;  %v2029_v41 = vld [vmem:[%s2703_s8 + $0x10] sm:$0x3] }
 0x3a9   : > { %1381 = vmatpush.bf16.msra.mxu2 %v1357_v17 }
 0x3ac   : > { %1395 = vmatpush.bf16.msra.mxu3 %v2541_v22  ;;  %v1632_v22 = vpop.permute.xlu2 %1631 }
 0x3ad   : > { %1382 = vmatpush.bf16.msra.mxu2 %v1344_v5 }
 0x3ae   : > { %v1565_v3 = vpop.permute.xlu1 %1564  ;;  %v1557_v7 = vpop.permute.xlu0 %1556 }
 0x3af   : > { %v1570_v2 = vsel %vm790_vm13, %v1563_v14, %v1565_v3  ;;  %v1571_v29 = vsel %vm790_vm13, %v1565_v3, %v1567_v28  ;;  %2008 = vmatmul.msk.bf16.vlgmr.msra.gmra.mxu3 %vm1222_vm5, %v2005_v16  ;;  %v1299_v3 = vpop.f32.mrf.mxu2 }
 0x3b0   : > { %1518 = vmatpush.bf16.msrb.mxu3 %v1504_v19  ;;  %v1582_v30 = vsel %vm1226_vm0, %v1571_v29, 0  ;;  %2007 = vmatmul.msk.bf16.vlgmr.msra.gmra.mxu2 %vm1222_vm5, %v2005_v16  ;;  %v1579_v32 = vsel %vm1226_vm0, %v1570_v2, 0 }
 0x3b1   : > { %1469 = vmatpush.bf16.msrb.mxu2 %v1435_v24 }
 0x3b4   : > { %1519 = vmatpush.bf16.msrb.mxu3 %v1493_v31 }
 0x3b5   : > { %1470 = vmatpush.bf16.msrb.mxu2 %v2557_v8  ;;  %v1636_v8 = vpop.permute.xlu2 %1635 }
 0x3b6   : > { %v1559_v33 = vpop.permute.xlu1 %1558  ;;  %v1638_v36 = vpop.permute.xlu0 %1637 }
 0x3b7   : > { %2011 = vmatmul.msk.bf16.vlgmr.msrb.gmra.mxu1 %vm1222_vm5, %v2009_v34  ;;  %v1568_v37 = vsel %vm790_vm13, %v1557_v7, %v1559_v33  ;;  %v1569_v12 = vsel %vm790_vm13, %v1559_v33, %v2592_v54  ;;  %v1301_v7 = vpop.f32.mrf.mxu2 }
 0x3b8   : > { %1606 = vmatpush.bf16.msra.mxu3 %v1582_v30  ;;  %2010 = vmatmul.msk.bf16.vlgmr.msrb.gmra.mxu0 %vm1222_vm5, %v2009_v34 }
 0x3b9   : > { %1593 = vmatpush.bf16.msra.mxu2 %v1579_v32 }
 0x3bc   : > { %1607 = vmatpush.bf16.msra.mxu3 %v1569_v12 }
 0x3bd   : > { %1594 = vmatpush.bf16.msra.mxu2 %v1568_v37  ;;  %v1717_v50 = vpop.permute.xlu2 %1716 }
 0x3be   : > { %v1492_v38 = vpop.permute.xlu1 %1491  ;;  %v1634_v43 = vpop.permute.xlu0 %1633  ;;  %v1735_v61 = vsel %vm1226_vm0, %v1717_v50, 0 }
 0x3bf   : > { %v1496_v27 = vsel %vm731_vm12, %v1490_v9, %v1492_v38  ;;  %v1510_v39 = vsel %vm1226_vm0, %v1492_v38, 0  ;;  %2014 = vmatmul.msk.bf16.vlgmr.msrb.gmra.mxu3 %vm1222_vm5, %v2013_v26  ;;  %v1643_v48 = vsel %vm849_vm14, %v1632_v22, %v1634_v43  ;;  %v1644_v60 = vsel %vm849_vm14, %v1634_v43, %v1636_v8 }
 0x3c0   : > { %v1507_v40 = vsel %vm1226_vm0, %v1496_v27, 0  ;;  %2012 = vmatmul.msk.bf16.vlgmr.msrb.gmra.mxu2 %vm1222_vm5, %v2009_v34  ;;  %1544 = vmatpush.bf16.msra.mxu1 %v1510_v39 }
 0x3c1   : > { %1531 = vmatpush.bf16.msra.mxu0 %v1507_v40 }
 0x3c4   : > { %1545 = vmatpush.bf16.msra.mxu1 %v2584_v62 }
 0x3c5   : > { %1532 = vmatpush.bf16.msra.mxu0 %v1494_v35  ;;  %v1711_v62 = vpop.permute.xlu2 %1710 }
 0x3c6   : > { %v1640_v44 = vpop.permute.xlu1 %1639  ;;  %v1713_v47 = vpop.permute.xlu0 %1712 }
 0x3c7   : > { %v1645_v45 = vsel %vm849_vm14, %v1638_v36, %v1640_v44  ;;  %2016 = vmatmul.msk.bf16.vlgmr.msra.gmra.mxu1 %vm1222_vm5, %v2013_v26 }
 0x3c8   : > { %v1654_v46 = vsel %vm1226_vm0, %v1645_v45, 0  ;;  %2015 = vmatmul.msk.bf16.vlgmr.msra.gmra.mxu0 %vm1222_vm5, %v2013_v26 }
 0x3c9   : > { %1619 = vmatpush.bf16.msrb.mxu0 %v1585_v42  ;;  %1668 = vmatpush.bf16.msrb.mxu1 %v1654_v46 }
 0x3cd   : > { %1620 = vmatpush.bf16.msrb.mxu0 %v2592_v54  ;;  %1669 = vmatpush.bf16.msrb.mxu1 %v1643_v48  ;;  %v1782_v6 = vpop.permute.xlu2 %1781 }
 0x3ce   : > { %v1715_v51 = vpop.permute.xlu1 %1714  ;;  %v1707_v55 = vpop.permute.xlu0 %1706 }
 0x3cf   : > { %v1720_v10 = vsel %vm908_vm1, %v1713_v47, %v1715_v51  ;;  %v1721_v52 = vsel %vm908_vm1, %v1715_v51, %v1717_v50  ;;  %2019 = vmatmul.msk.bf16.vlgmr.msra.gmra.mxu3 %vm1222_vm5, %v2017_v49 }
 0x3d0   : > { %v1729_v53 = vsel %vm1226_vm0, %v1720_v10, 0  ;;  %v1732_v11 = vsel %vm1226_vm0, %v1721_v52, 0  ;;  %2018 = vmatmul.msk.bf16.vlgmr.msra.gmra.mxu2 %vm1222_vm5, %v2017_v49 }
 0x3d1   : > { %1743 = vmatpush.bf16.msra.mxu0 %v1729_v53  ;;  %1756 = vmatpush.bf16.msra.mxu1 %v1732_v11 }
 0x3d5   : > { %v1786_v24 = vpop.permute.xlu2 %1785 }
 0x3d6   : > { %v1642_v56 = vpop.permute.xlu1 %1641  ;;  %v1788_v1 = vpop.permute.xlu0 %1787 }
 0x3d7   : > { %v1646_v57 = vsel %vm849_vm14, %v1640_v44, %v1642_v56  ;;  %v1660_v58 = vsel %vm1226_vm0, %v1642_v56, 0  ;;  %2022 = vmatmul.msk.bf16.vlgmr.msrb.gmra.mxu1 %vm1222_vm5, %v2021_v63 }
 0x3d8   : > { %v1657_v59 = vsel %vm1226_vm0, %v1646_v57, 0  ;;  %2020 = vmatmul.msk.bf16.vlgmr.msrb.gmra.mxu0 %vm1222_vm5, %v2017_v49  ;;  %1694 = vmatpush.bf16.msrb.mxu3 %v1660_v58 }
 0x3d9   : > { %1681 = vmatpush.bf16.msrb.mxu2 %v1657_v59 }
 0x3dc   : > { %1695 = vmatpush.bf16.msrb.mxu3 %v1636_v8 }
 0x3dd   : > { %1682 = vmatpush.bf16.msrb.mxu2 %v1644_v60 }
 0x3de   : > { %v1709_v0 = vpop.permute.xlu1 %1708  ;;  %v1784_v14 = vpop.permute.xlu0 %1783 }
 0x3df   : > { %2024 = vmatmul.msk.bf16.vlgmr.msrb.gmra.mxu3 %vm1222_vm5, %v2021_v63  ;;  %v1718_v4 = vsel %vm908_vm1, %v1707_v55, %v1709_v0  ;;  %v1719_v9 = vsel %vm908_vm1, %v1709_v0, %v1711_v62  ;;  %v1793_v23 = vsel %vm967_vm15, %v1782_v6, %v1784_v14  ;;  %v1794_v28 = vsel %vm967_vm15, %v1784_v14, %v1786_v24 }
 0x3e0   : > { %2023 = vmatmul.msk.bf16.vlgmr.msrb.gmra.mxu2 %vm1222_vm5, %v2021_v63  ;;  %1744 = vmatpush.bf16.msra.mxu0 %v1718_v4 }
 0x3e1   : > { %1769 = vmatpush.bf16.msra.mxu2 %v1735_v61  ;;  %1757 = vmatpush.bf16.msra.mxu1 %v1719_v9 }
 0x3e5   : > { %1770 = vmatpush.bf16.msra.mxu2 %v1711_v62 }
 0x3e6   : > { %v1790_v15 = vpop.permute.xlu1 %1789 }
 0x3e7   : > { %v1795_v54 = vsel %vm967_vm15, %v1788_v1, %v1790_v15  ;;  %2027 = vmatmul.msk.bf16.vlgmr.msra.gmra.mxu1 %vm1222_vm5, %v2025_v13 }
 0x3e8   : > { %v1804_v16 = vsel %vm1226_vm0, %v1795_v54, 0  ;;  %2026 = vmatmul.msk.bf16.vlgmr.msra.gmra.mxu0 %vm1222_vm5, %v2025_v13 }
 0x3e9   : > { %1818 = vmatpush.bf16.msra.mxu3 %v1804_v16 }
 0x3ed   : > { %1819 = vmatpush.bf16.msra.mxu3 %v1793_v23 }
 0x3ee   : > { %v1792_v17 = vpop.permute.xlu1 %1791 }
 0x3ef   : > { %v1796_v18 = vsel %vm967_vm15, %v1790_v15, %v1792_v17  ;;  %v1810_v19 = vsel %vm1226_vm0, %v1792_v17, 0 }
 0x3f0   : > { %v1807_v5 = vsel %vm1226_vm0, %v1796_v18, 0  ;;  %2028 = vmatmul.msk.bf16.vlgmr.msra.gmra.mxu2 %vm1222_vm5, %v2025_v13  ;;  %2030 = vmatmul.msk.bf16.vlgmr.msra.gmra.mxu3 %vm1222_vm5, %v2029_v41 }
 0x3f1   : > { %1844 = vmatpush.bf16.msrb.mxu1 %v1810_v19  ;;  %1831 = vmatpush.bf16.msrb.mxu0 %v1807_v5 }
 0x3f5   : > { %1845 = vmatpush.bf16.msrb.mxu1 %v1786_v24  ;;  %1832 = vmatpush.bf16.msrb.mxu0 %v1794_v28 }
 0x3f8   : > { %2031 = vmatmul.msk.bf16.vlgmr.msrb.gmra.mxu0 %vm1222_vm5, %v2029_v41  ;;  %2032 = vmatmul.msk.bf16.vlgmr.msrb.gmra.mxu1 %vm1222_vm5, %v2029_v41 }
 0x403   : > { %v1245_v2 = vpop.f32.mrf.mxu3 }
 0x404   : > { %v1300_v29 = vadd.f32 %v1299_v3, %v1245_v2 }
 0x40b   : > { %v1247_v30 = vpop.f32.mrf.mxu3 }
 0x413   : > { %v1312_v31 = vpop.f32.mrf.mxu3 }
 0x414   : > { %v1271_v32 = vpop.f32.mrf.mxu1 }
 0x415   : > { %v1258_v34 = vpop.f32.mrf.mxu0 }
 0x416   : > { %v1313_v33 = vadd.f32 %v1312_v31, %v1258_v34 }
 0x41b   : > { %v1314_v36 = vpop.f32.mrf.mxu3 }
 0x41c   : > { %v1273_v37 = vpop.f32.mrf.mxu1 }
 0x41d   : > { %v1260_v12 = vpop.f32.mrf.mxu0 }
 0x424   : > { %v1371_v22 = vpop.f32.mrf.mxu1 }
 0x425   : > { %v1401_v26 = vadd.f32 %v1371_v22, %v1300_v29  ;;  %v1325_v38 = vpop.f32.mrf.mxu0 }
 0x426   : > { %v1326_v27 = vadd.f32 %v1325_v38, %v1271_v32  ;;  %v1858_v32 = vpop.permute.xlu0 %1857 }
 0x42c   : > { %v1373_v39 = vpop.f32.mrf.mxu1 }
 0x42d   : > { %v1327_v40 = vpop.f32.mrf.mxu0 }
 0x432   : > { %v1397_v43 = vpop.f32.mrf.mxu3 }
 0x433   : > { %v1384_v8 = vpop.f32.mrf.mxu2  ;;  %v1403_v13 = vadd.f32 %v1397_v43, %v1326_v27 }
 0x434   : > { %v1459_v35 = vpop.f32.mrf.mxu1  ;;  %v1402_v9 = vadd.f32 %v1384_v8, %v1313_v33 }
 0x435   : > { %v1446_v42 = vpop.f32.mrf.mxu0 }
 0x436   : > { %v1476_v15 = vadd.f32 %v1446_v42, %v1401_v26  ;;  %v1477_v54 = vadd.f32 %v1459_v35, %v1402_v9 }
 0x43a   : > { %v1399_v44 = vpop.f32.mrf.mxu3 }
 0x43b   : > { %v1386_v45 = vpop.f32.mrf.mxu2 }
 0x43c   : > { %v1461_v46 = vpop.f32.mrf.mxu1 }
 0x43d   : > { %v1448_v47 = vpop.f32.mrf.mxu0 }
 0x442   : > { %v1521_v48 = vpop.f32.mrf.mxu3 }
 0x443   : > { %v1472_v49 = vpop.f32.mrf.mxu2  ;;  %v1551_v16 = vadd.f32 %v1521_v48, %v1476_v15 }
 0x444   : > { %v1547_v50 = vpop.f32.mrf.mxu1  ;;  %v1478_v6 = vadd.f32 %v1472_v49, %v1403_v13 }
 0x445   : > { %v1534_v51 = vpop.f32.mrf.mxu0 }
 0x446   : > { %v1552_v41 = vadd.f32 %v1534_v51, %v1477_v54  ;;  %v1553_v5 = vadd.f32 %v1547_v50, %v1478_v6 }
 0x44a   : > { %v1523_v10 = vpop.f32.mrf.mxu3 }
 0x44b   : > { %v1474_v52 = vpop.f32.mrf.mxu2 }
 0x44c   : > { %v1549_v53 = vpop.f32.mrf.mxu1 }
 0x44d   : > { %v1536_v11 = vpop.f32.mrf.mxu0 }
 0x452   : > { %v1609_v63 = vpop.f32.mrf.mxu3 }
 0x453   : > { %v1596_v55 = vpop.f32.mrf.mxu2  ;;  %v1627_v24 = vadd.f32 %v1609_v63, %v1552_v41 }
 0x454   : > { %v1671_v56 = vpop.f32.mrf.mxu1  ;;  %v1626_v17 = vadd.f32 %v1596_v55, %v1551_v16 }
 0x455   : > { %v1622_v57 = vpop.f32.mrf.mxu0 }
 0x456   : > { %v1628_v28 = vadd.f32 %v1622_v57, %v1553_v5  ;;  %v1701_v3 = vadd.f32 %v1671_v56, %v1626_v17 }
 0x45a   : > { %v1611_v58 = vpop.f32.mrf.mxu3 }
 0x45b   : > { %v1598_v59 = vpop.f32.mrf.mxu2 }
 0x45c   : > { %v1673_v60 = vpop.f32.mrf.mxu1 }
 0x45d   : > { %v1624_v61 = vpop.f32.mrf.mxu0 }
 0x462   : > { %v1697_v62 = vpop.f32.mrf.mxu3 }
 0x463   : > { %v1684_v0 = vpop.f32.mrf.mxu2  ;;  %v1703_v2 = vadd.f32 %v1697_v62, %v1628_v28 }
 0x464   : > { %v1759_v1 = vpop.f32.mrf.mxu1  ;;  %v1702_v7 = vadd.f32 %v1684_v0, %v1627_v24 }
 0x465   : > { %v1746_v4 = vpop.f32.mrf.mxu0 }
 0x466   : > { %v1776_v29 = vadd.f32 %v1746_v4, %v1701_v3  ;;  %v1777_v34 = vadd.f32 %v1759_v1, %v1702_v7 }
 0x46a   : > { %v1699_v14 = vpop.f32.mrf.mxu3 }
 0x46b   : > { %v1686_v23 = vpop.f32.mrf.mxu2 }
 0x46c   : > { %v1761_v18 = vpop.f32.mrf.mxu1 }
 0x46d   : > { %v1748_v19 = vpop.f32.mrf.mxu0 }
 0x473   : > { %v1772_v30 = vpop.f32.mrf.mxu2  ;;  %v1821_v31 = vpop.f32.mrf.mxu3 }
 0x474   : > { %v1778_v33 = vadd.f32 %v1772_v30, %v1703_v2  ;;  %v1851_v36 = vadd.f32 %v1821_v31, %v1776_v29 }
 0x475   : > { %v1834_v37 = vpop.f32.mrf.mxu0  ;;  %v1847_v12 = vpop.f32.mrf.mxu1 }
 0x476   : > { %v1860_v22 = vadd.f32 %v1858_v32, %v1851_v36  ;;  %v1852_v26 = vadd.f32 %v1834_v37, %v1777_v34  ;;  %v1853_v38 = vadd.f32 %v1847_v12, %v1778_v33 }
 0x478   : > { %v1861_v27 = vadd.f32 %v1858_v32, %v1852_v26  ;;  %v1862_v39 = vadd.f32 %v1858_v32, %v1853_v38  ;;  %v1863_v40 = vmul.f32 %v1860_v22, %v2191_v21 }
 0x47a   : > { %v1864_v43 = vmul.f32 %v1861_v27, %v2193_v25  ;;  %v1865_v8 = vmul.f32 %v1862_v39, %v2189_v20 }
 0x47b   : > { %v1774_v35 = vpop.f32.mrf.mxu2  ;;  %v1823_v42 = vpop.f32.mrf.mxu3 }
 0x47c   : > { %v1866_v44 = vpack.c.bf16 %v1864_v43, %v1863_v40  ;;  %v1867_v45 = vpack.c.bf16 %v1865_v8, %v1865_v8 }
 0x47d   : > { %v1836_v46 = vpop.f32.mrf.mxu0  ;;  %v1849_v47 = vpop.f32.mrf.mxu1 }
 0x47e   : > { %v1870_v48 = vrot.slane %v1866_v44, 6  ;;  %v1871_v49 = vrot.slane %v1867_v45, 6 }
 0x480   : > { %1874 = vst [vmem:[%s2390_s28 + $0x18] sm:$0xcc] %v1870_v48 }
 0x481   : > { %1876 = vst.msk [vmem:[%s2390_s28 + $0x20] sm:$0xc] %vm1875_vm9, %v1871_v49 }
 0x482 PF: > { %s20_s13 = sadd.s32 1, %s2070_s13  }
 0x483   : > { %p17_p4 = scmp.ge.s32.totalorder %s20_s13, 4  }
 0x485   :  { %19 = sbr.rel (!%p17_p4) target bundleno = 1 (0x1), region = 106 }

// kernel: fcdensenet_apply.13
= control target key start
LH: loop header
LB: loop body
LE: loop exit
PB: predicated region body
PF: predicated region fallthrough
CT: control target
= control target key end

     0   :  { %s631_s18 = smov 0   ;;  %s692_s0 = inlined_call_operand.vmem [shape: bf16[2,4,24,64], index: 0, kind: input, shape index: {}]   ;;  %s693_s1 = inlined_call_operand.vmem [shape: f32[24,1], index: 1, kind: input, shape index: {}]   ;;  %s694_s2 = inlined_call_operand.vmem [shape: f32[24,1], index: 2, kind: input, shape index: {}]   ;;  %s695_s3 = inlined_call_operand.vmem [shape: bf16[24,24], index: 3, kind: input, shape index: {}]   ;;  %s696_s4 = inlined_call_operand.vmem [shape: f32[24,1], index: 4, kind: input, shape index: {}]   ;;  %s697_s5 = inlined_call_operand.vmem [shape: bf16[2,24,64], index: 5, kind: output, shape index: {}]  }
   0x1 LB: > { %s528_s19 = sadd.s32 4294967295, %s598_s18   ;;  %p532_p0 = scmp.ge.s32.totalorder %s598_s18, 1  ;;  %s598_s18 = sphi %s631_s18, %s15_s18  }
   0x2   : > { %p187_p1 = scmp.lt.s32.totalorder %s598_s18, 3 }
   0x4   : > { %p188_p2 = pnand %p532_p0, %p187_p1 }
   0x5   : > { %p215_p3 = scmp.lt.s32.totalorder (!%p188_p2), %s528_s19, 1 }
   0x6   : > { %191 = sbr.rel (%p188_p2) target bundleno = 309 (0x135), region = 40 }
   0xb   : > { %v234_v0 = vld [vmem:[%s693_s1 + $0x10] sm:$0xff]  ;;  %v232_v1 = vld [vmem:[%s693_s1] sm:$0xff]  ;;  %v600_v2 = vmov 0   ;;  %v233_v5 = vld [vmem:[%s693_s1 + $0x8] sm:$0xff]  ;;  %s699_s19 = smov (!%p215_p3, %s528_s19), 1  ;;  %vm297_vm0 = vcmask 1043456  }
   0xc   : > { %590 = vset.pattern.permute.xlu1 %v600_v2  ;;  %589 = vset.pattern.permute.xlu0 %v600_v2  ;;  %v253_v3 = vld [vmem:[%s694_s2] sm:$0xff]  ;;  %v255_v4 = vld [vmem:[%s694_s2 + $0x10] sm:$0xff]  ;;  %v254_v6 = vld [vmem:[%s694_s2 + $0x8] sm:$0xff]  ;;  %s578_s13 = smul.u32 48, %s699_s19  ;;  %vm290_vm1 = vcmask 195584   ;;  %vm469_vm2 = vcmask 519168  }
   0xd   : > { %247 = vperm.xlu0 %589, %v234_v0   ;;  %237 = vperm.xlu1 %590, %v232_v1   ;;  %v445_v7 = vld [vmem:[%s696_s4] sm:$0xff]  ;;  %v446_v8 = vld [vmem:[%s696_s4 + $0x8] sm:$0xff]  ;;  %v447_v9 = vld [vmem:[%s696_s4 + $0x10] sm:$0xff]  ;;  %s579_s23 = smul.u32 12, %s699_s19 }
   0xe   : > { %591 = vset.pattern.permute.xlu2 %v600_v2  ;;  %s219_s16 = scalar_lea.vmem %s692_s0, %s578_s13 }
   0xf   : > { %258 = vperm.xlu2 %591, %v253_v3   ;;  %v560_v13 = vld [vmem:[%s219_s16] sm:$0xff]   ;;  %v541_v14 = vld [vmem:[%s219_s16 + $0x8] sm:$0xff]   ;;  %v576_v15 = vld [vmem:[%s219_s16 + $0x18] sm:$0xff]   ;;  %s224_s26 = scalar_lea.vmem %s697_s5, %s579_s23 }
  0x10   : > { %v551_v16 = vld [vmem:[%s219_s16 + $0x20] sm:$0xff]   ;;  %v575_v17 = vld [vmem:[%s219_s16 + $0x10] sm:$0xff]   ;;  %v577_v18 = vld [vmem:[%s219_s16 + $0x28] sm:$0xff]   ;;  %v561_v19 = vunpack.c.l.bf16 %v560_v13  ;;  %v323_v20 = vunpack.c.h.bf16 %v541_v14  ;;  %v569_v21 = vunpack.c.l.bf16 %v576_v15  ;;  %v231_v23 = vunpack.c.l.bf16 %v541_v14 }
  0x11   : > { %v407_v22 = vunpack.c.h.bf16 %v551_v16  ;;  %v566_v24 = vunpack.c.h.bf16 %v575_v17  ;;  %v367_v25 = vunpack.c.l.bf16 %v551_v16  ;;  %v574_v26 = vunpack.c.h.bf16 %v577_v18 }
  0x12   : > { %v562_v27 = vunpack.c.h.bf16 %v560_v13  ;;  %v565_v28 = vunpack.c.l.bf16 %v575_v17  ;;  %v570_v29 = vunpack.c.h.bf16 %v576_v15  ;;  %v573_v30 = vunpack.c.l.bf16 %v577_v18  ;;  %v558_v18 = vld [vmem:[%s695_s3] sm:$0xff] }
  0x15   : > { %268 = vperm.xlu0 %589, %v255_v4   ;;  %242 = vperm.xlu1 %590, %v233_v5  }
  0x17   : > { %263 = vperm.xlu2 %591, %v254_v6  }
  0x1d   : > { %450 = vperm.xlu0 %589, %v445_v7   ;;  %455 = vperm.xlu1 %590, %v446_v8  }
  0x1f   : > { %460 = vperm.xlu2 %591, %v447_v9  }
  0x69   : > { %v259_v10 = vpop.permute.xlu2 %258 }
  0x71   : > { %v264_v45 = vpop.permute.xlu2 %263 }
  0x7f   : > { %v248_v11 = vpop.permute.xlu0 %247  ;;  %v238_v12 = vpop.permute.xlu1 %237 }
  0x80   : > { %v250_v31 = vmul.f32 %v561_v19, %v238_v12  ;;  %v326_v32 = vmul.f32 %v323_v20, %v238_v12  ;;  %v368_v33 = vmul.f32 %v569_v21, %v238_v12  ;;  %v410_v34 = vmul.f32 %v407_v22, %v238_v12  ;;  %v279_v19 = vld [vmem:[%s695_s3 + $0x8] sm:$0xf] }
  0x81   : > { %v252_v37 = vmul.f32 %v248_v11, %v231_v23  ;;  %v328_v38 = vmul.f32 %v566_v24, %v248_v11  ;;  %v370_v39 = vmul.f32 %v367_v25, %v248_v11  ;;  %v412_v40 = vmul.f32 %v574_v26, %v248_v11 }
  0x82   : > { %v271_v58 = vadd.f32 %v259_v10, %v250_v31  ;;  %v329_v59 = vadd.f32 %v326_v32, %v259_v10  ;;  %v371_v60 = vadd.f32 %v368_v33, %v259_v10  ;;  %v413_v61 = vadd.f32 %v410_v34, %v259_v10 }
  0x83   : > { %v287_v20 = vunpack.c.l.b16 %v279_v19 }
  0x84   : > { %v274_v11 = vmax.f32 %v271_v58, 0.0  ;;  %v332_v10 = vmax.f32 %v329_v59, 0.0  ;;  %v374_v12 = vmax.f32 %v371_v60, 0.0  ;;  %v416_v13 = vmax.f32 %v413_v61, 0.0 }
  0x85   : > { %v289_v21 = vpack.c.b16 %v287_v20, %v287_v20 }
  0x87   : > { %v269_v35 = vpop.permute.xlu0 %268  ;;  %v243_v36 = vpop.permute.xlu1 %242 }
  0x88   : > { %v251_v41 = vmul.f32 %v562_v27, %v243_v36  ;;  %v327_v42 = vmul.f32 %v565_v28, %v243_v36  ;;  %v369_v43 = vmul.f32 %v570_v29, %v243_v36  ;;  %v411_v44 = vmul.f32 %v573_v30, %v243_v36 }
  0x89   : > { %v273_v46 = vadd.f32 %v269_v35, %v252_v37  ;;  %v331_v47 = vadd.f32 %v328_v38, %v269_v35  ;;  %v373_v48 = vadd.f32 %v370_v39, %v269_v35  ;;  %v415_v49 = vadd.f32 %v412_v40, %v269_v35 }
  0x8a   : > { %v272_v50 = vadd.f32 %v264_v45, %v251_v41  ;;  %v330_v51 = vadd.f32 %v327_v42, %v264_v45  ;;  %v372_v52 = vadd.f32 %v369_v43, %v264_v45  ;;  %v414_v53 = vadd.f32 %v411_v44, %v264_v45 }
  0x8b   : > { %v276_v54 = vmax.f32 %v273_v46, 0.0  ;;  %v334_v55 = vmax.f32 %v331_v47, 0.0  ;;  %v376_v56 = vmax.f32 %v373_v48, 0.0  ;;  %v418_v57 = vmax.f32 %v415_v49, 0.0 }
  0x8c   : > { %v275_v2 = vmax.f32 %v272_v50, 0.0  ;;  %v333_v3 = vmax.f32 %v330_v51, 0.0  ;;  %v375_v4 = vmax.f32 %v372_v52, 0.0  ;;  %v417_v5 = vmax.f32 %v414_v53, 0.0  ;;  %v461_v51 = vpop.permute.xlu2 %460 }
  0x8d   : > { %v281_v62 = vpack.c.bf16 %v276_v54, %v276_v54  ;;  %v336_v63 = vpack.c.bf16 %v334_v55, %v334_v55  ;;  %v378_v0 = vpack.c.bf16 %v376_v56, %v376_v56  ;;  %v420_v1 = vpack.c.bf16 %v418_v57, %v418_v57 }
  0x8e   : > { %v280_v14 = vpack.c.bf16 %v275_v2, %v274_v11  ;;  %v335_v15 = vpack.c.bf16 %v333_v3, %v332_v10  ;;  %v377_v16 = vpack.c.bf16 %v375_v4, %v374_v12  ;;  %v419_v17 = vpack.c.bf16 %v417_v5, %v416_v13 }
  0x8f   : > { %v299_v6 = vsel %vm297_vm0, %v281_v62, 0  ;;  %v338_v7 = vsel %vm297_vm0, %v336_v63, 0  ;;  %v380_v8 = vsel %vm297_vm0, %v378_v0, 0  ;;  %v422_v9 = vsel %vm297_vm0, %v420_v1, 0  ;;  %v451_v31 = vpop.permute.xlu0 %450  ;;  %v456_v41 = vpop.permute.xlu1 %455 }
  0x90   : > { %307 = vmatpush.bf16.msra.mxu0 %v299_v6  ;;  %346 = vmatpush.bf16.msra.mxu1 %v338_v7 }
  0x91   : > { %388 = vmatpush.bf16.msra.mxu2 %v380_v8  ;;  %430 = vmatpush.bf16.msra.mxu3 %v422_v9 }
  0x94   : > { %308 = vmatpush.bf16.msra.mxu0 %v280_v14  ;;  %347 = vmatpush.bf16.msra.mxu1 %v335_v15 }
  0x95   : > { %389 = vmatpush.bf16.msra.mxu2 %v377_v16  ;;  %431 = vmatpush.bf16.msra.mxu3 %v419_v17 }
  0x97   : > { %539 = vmatmul.msk.bf16.vlgmr.msra.gmra.mxu0 %vm290_vm1, %v558_v18  ;;  %544 = vmatmul.msk.bf16.vlgmr.msra.gmra.mxu1 %vm290_vm1, %v558_v18 }
  0x98   : > { %549 = vmatmul.msk.bf16.vlgmr.msra.gmra.mxu2 %vm290_vm1, %v558_v18  ;;  %554 = vmatmul.msk.bf16.vlgmr.msra.gmra.mxu3 %vm290_vm1, %v558_v18 }
  0xa7   : > { %540 = vmatmul.msk.bf16.gmra.mxu0 %vm290_vm1, %v289_v21  ;;  %545 = vmatmul.msk.bf16.gmra.mxu1 %vm290_vm1, %v289_v21 }
  0xa8   : > { %550 = vmatmul.msk.bf16.gmra.mxu2 %vm290_vm1, %v289_v21  ;;  %555 = vmatmul.msk.bf16.gmra.mxu3 %vm290_vm1, %v289_v21 }
 0x114   : > { %v310_v22 = vpop.f32.mrf.mxu0  ;;  %v349_v23 = vpop.f32.mrf.mxu1 }
 0x115   : > { %v358_v24 = vmax.f32 %v310_v22, %v349_v23 }
 0x11b   : > { %v391_v25 = vpop.f32.mrf.mxu2  ;;  %v433_v26 = vpop.f32.mrf.mxu3 }
 0x11c   : > { %v400_v27 = vmax.f32 %v358_v24, %v391_v25  ;;  %v312_v28 = vpop.f32.mrf.mxu0  ;;  %v351_v29 = vpop.f32.mrf.mxu1 }
 0x11d   : > { %v359_v34 = vmax.f32 %v312_v28, %v351_v29 }
 0x11e   : > { %v442_v30 = vmax.f32 %v400_v27, %v433_v26 }
 0x120   : > { %v463_v32 = vadd.f32 %v451_v31, %v442_v30 }
 0x122   : > { %v466_v33 = vpack.c.bf16 %v463_v32, %v463_v32 }
 0x123   : > { %v393_v35 = vpop.f32.mrf.mxu2  ;;  %v435_v36 = vpop.f32.mrf.mxu3 }
 0x124   : > { %470 = vst.msk [vmem:[%s224_s26] sm:$0xf] %vm469_vm2, %v466_v33  ;;  %v401_v37 = vmax.f32 %v359_v34, %v393_v35  ;;  %v315_v38 = vpop.f32.mrf.mxu0  ;;  %v354_v39 = vpop.f32.mrf.mxu1 }
 0x125   : > { %v360_v43 = vmax.f32 %v315_v38, %v354_v39 }
 0x126   : > { %v443_v40 = vmax.f32 %v401_v37, %v435_v36 }
 0x128   : > { %v464_v42 = vadd.f32 %v456_v41, %v443_v40 }
 0x12a   : > { %v467_v44 = vpack.c.bf16 %v464_v42, %v464_v42 }
 0x12b   : > { %v396_v45 = vpop.f32.mrf.mxu2  ;;  %v438_v46 = vpop.f32.mrf.mxu3 }
 0x12c   : > { %471 = vst.msk [vmem:[%s224_s26 + $0x4] sm:$0xf] %vm469_vm2, %v467_v44  ;;  %v402_v47 = vmax.f32 %v360_v43, %v396_v45  ;;  %v317_v48 = vpop.f32.mrf.mxu0  ;;  %v356_v49 = vpop.f32.mrf.mxu1 }
 0x12e   : > { %v444_v50 = vmax.f32 %v402_v47, %v438_v46 }
 0x130   : > { %v465_v52 = vadd.f32 %v461_v51, %v444_v50 }
 0x132   : > { %v468_v53 = vpack.c.bf16 %v465_v52, %v465_v52 }
 0x133   : > { %v398_v54 = vpop.f32.mrf.mxu2  ;;  %v440_v55 = vpop.f32.mrf.mxu3 }
 0x134   : > { %472 = vst.msk [vmem:[%s224_s26 + $0x8] sm:$0xf] %vm469_vm2, %v468_v53 }
 0x135 PF: > { %s15_s18 = sadd.s32 1, %s598_s18  }
 0x136   : > { %p12_p4 = scmp.ge.s32.totalorder %s15_s18, 4  }
 0x138   :  { %14 = sbr.rel (!%p12_p4) target bundleno = 1 (0x1), region = 73 }

// kernel: fcdensenet_apply.15
= control target key start
LH: loop header
LB: loop body
LE: loop exit
PB: predicated region body
PF: predicated region fallthrough
CT: control target
= control target key end

     0   :  { %s699_s18 = smov 0   ;;  %s776_s0 = inlined_call_operand.vmem [shape: bf16[2,4,32,16], index: 0, kind: input, shape index: {}]   ;;  %s777_s1 = inlined_call_operand.vmem [shape: f32[32,1], index: 1, kind: input, shape index: {}]   ;;  %s778_s2 = inlined_call_operand.vmem [shape: f32[32,1], index: 2, kind: input, shape index: {}]   ;;  %s779_s3 = inlined_call_operand.vmem [shape: bf16[32,32], index: 3, kind: input, shape index: {}]   ;;  %s780_s4 = inlined_call_operand.vmem [shape: f32[32,1], index: 4, kind: input, shape index: {}]   ;;  %s781_s5 = inlined_call_operand.vmem [shape: bf16[2,32,16], index: 5, kind: output, shape index: {}]  }
   0x1 LB: > { %s566_s19 = sadd.s32 4294967295, %s666_s18   ;;  %p570_p0 = scmp.ge.s32.totalorder %s666_s18, 1  ;;  %s666_s18 = sphi %s699_s18, %s15_s18  }
   0x2   : > { %p187_p1 = scmp.lt.s32.totalorder %s666_s18, 3 }
   0x4   : > { %p188_p2 = pnand %p570_p0, %p187_p1 }
   0x5   : > { %p215_p3 = scmp.lt.s32.totalorder (!%p188_p2), %s566_s19, 1 }
   0x6   : > { %191 = sbr.rel (%p188_p2) target bundleno = 319 (0x13f), region = 40 }
   0xb   : > { %v264_v0 = vld [vmem:[%s778_s2 + $0x10] sm:$0xff]  ;;  %v668_v2 = vmov 0   ;;  %v234_v3 = vld [vmem:[%s777_s1] sm:$0xff]  ;;  %v265_v4 = vld [vmem:[%s778_s2 + $0x18] sm:$0xff]  ;;  %s783_s19 = smov (!%p215_p3, %s566_s19), 1  ;;  %vm310_vm0 = vcmask 261120  }
   0xc   : > { %v236_v1 = vld [vmem:[%s777_s1 + $0x10] sm:$0xff]  ;;  %658 = vset.pattern.permute.xlu1 %v668_v2  ;;  %657 = vset.pattern.permute.xlu0 %v668_v2  ;;  %v237_v5 = vld [vmem:[%s777_s1 + $0x18] sm:$0xff]  ;;  %v235_v6 = vld [vmem:[%s777_s1 + $0x8] sm:$0xff]  ;;  %s605_s21 = sshll.u32 %s783_s19, 6  ;;  %s606_s29 = sshll.u32 %s783_s19, 4  ;;  %vm506_vm1 = vcmask 125952  }
   0xd   : > { %278 = vperm.xlu1 %658, %v264_v0   ;;  %250 = vperm.xlu0 %657, %v236_v1   ;;  %v263_v7 = vld [vmem:[%s778_s2 + $0x8] sm:$0xff]  ;;  %v262_v8 = vld [vmem:[%s778_s2] sm:$0xff]  ;;  %v476_v10 = vld [vmem:[%s780_s4 + $0x10] sm:$0xff]  ;;  %s219_s24 = scalar_lea.vmem %s776_s0, %s605_s21  ;;  %s763_s7 = scalar_lea.vmem %s781_s5, %s606_s29 }
   0xe   : > { %659 = vset.pattern.permute.xlu2 %v668_v2  ;;  %v474_v9 = vld [vmem:[%s780_s4] sm:$0xff]  ;;  %v475_v11 = vld [vmem:[%s780_s4 + $0x8] sm:$0xff]  ;;  %v477_v12 = vld [vmem:[%s780_s4 + $0x18] sm:$0xff] }
   0xf   : > { %240 = vperm.xlu2 %659, %v234_v3   ;;  %v641_v13 = vld [vmem:[%s219_s24 + $0x8] sm:$0xff]   ;;  %v643_v14 = vld [vmem:[%s219_s24 + $0x18] sm:$0xff]   ;;  %v610_v24 = vld [vmem:[%s219_s24] sm:$0xff]  }
  0x10   : > { %v645_v15 = vld [vmem:[%s219_s24 + $0x28] sm:$0xff]   ;;  %v647_v16 = vld [vmem:[%s219_s24 + $0x38] sm:$0xff]   ;;  %v615_v19 = vunpack.c.l.bf16 %v641_v13  ;;  %v623_v20 = vunpack.c.l.bf16 %v643_v14  ;;  %v642_v25 = vld [vmem:[%s219_s24 + $0x10] sm:$0xff]   ;;  %v616_v32 = vunpack.c.h.bf16 %v641_v13  ;;  %v624_v33 = vunpack.c.h.bf16 %v643_v14 }
  0x11   : > { %v631_v21 = vunpack.c.l.bf16 %v645_v15  ;;  %v639_v22 = vunpack.c.l.bf16 %v647_v16  ;;  %v644_v26 = vld [vmem:[%s219_s24 + $0x20] sm:$0xff]   ;;  %v646_v27 = vld [vmem:[%s219_s24 + $0x30] sm:$0xff]   ;;  %v632_v34 = vunpack.c.h.bf16 %v645_v15  ;;  %v640_v35 = vunpack.c.h.bf16 %v647_v16 }
  0x12   : > { %v611_v36 = vunpack.c.l.bf16 %v610_v24  ;;  %v619_v37 = vunpack.c.l.bf16 %v642_v25  ;;  %v627_v38 = vunpack.c.l.bf16 %v644_v26  ;;  %v635_v39 = vunpack.c.l.bf16 %v646_v27 }
  0x13   : > { %v612_v50 = vunpack.c.h.bf16 %v610_v24  ;;  %v620_v51 = vunpack.c.h.bf16 %v642_v25  ;;  %v628_v52 = vunpack.c.h.bf16 %v644_v26  ;;  %v636_v53 = vunpack.c.h.bf16 %v646_v27 }
  0x15   : > { %283 = vperm.xlu1 %658, %v265_v4   ;;  %255 = vperm.xlu0 %657, %v237_v5  }
  0x17   : > { %245 = vperm.xlu2 %659, %v235_v6  }
  0x1d   : > { %273 = vperm.xlu1 %658, %v263_v7   ;;  %268 = vperm.xlu0 %657, %v262_v8  }
  0x1f   : > { %480 = vperm.xlu2 %659, %v474_v9  }
  0x25   : > { %490 = vperm.xlu1 %658, %v476_v10   ;;  %485 = vperm.xlu0 %657, %v475_v11  }
  0x27   : > { %495 = vperm.xlu2 %659, %v477_v12  }
  0x69   : > { %v241_v23 = vpop.permute.xlu2 %240 }
  0x6a   : > { %v258_v3 = vmul.f32 %v611_v36, %v241_v23  ;;  %v345_v4 = vmul.f32 %v619_v37, %v241_v23  ;;  %v391_v5 = vmul.f32 %v627_v38, %v241_v23  ;;  %v437_v11 = vmul.f32 %v635_v39, %v241_v23  ;;  %v607_v36 = vld [vmem:[%s779_s3] sm:$0xff]  ;;  %v608_v38 = vld [vmem:[%s779_s3 + $0x8] sm:$0xff] }
  0x71   : > { %v246_v62 = vpop.permute.xlu2 %245 }
  0x72   : > { %v259_v6 = vmul.f32 %v612_v50, %v246_v62  ;;  %v346_v12 = vmul.f32 %v620_v51, %v246_v62  ;;  %v392_v13 = vmul.f32 %v628_v52, %v246_v62  ;;  %v438_v14 = vmul.f32 %v636_v53, %v246_v62 }
  0x7f   : > { %v279_v17 = vpop.permute.xlu1 %278  ;;  %v251_v18 = vpop.permute.xlu0 %250 }
  0x80   : > { %v260_v28 = vmul.f32 %v615_v19, %v251_v18  ;;  %v347_v29 = vmul.f32 %v623_v20, %v251_v18  ;;  %v393_v30 = vmul.f32 %v631_v21, %v251_v18  ;;  %v439_v31 = vmul.f32 %v639_v22, %v251_v18 }
  0x82   : > { %v288_v42 = vadd.f32 %v279_v17, %v260_v28  ;;  %v351_v43 = vadd.f32 %v347_v29, %v279_v17  ;;  %v397_v44 = vadd.f32 %v393_v30, %v279_v17  ;;  %v443_v45 = vadd.f32 %v439_v31, %v279_v17 }
  0x84   : > { %v292_v58 = vmax.f32 %v288_v42, 0.0  ;;  %v355_v59 = vmax.f32 %v351_v43, 0.0  ;;  %v401_v60 = vmax.f32 %v397_v44, 0.0  ;;  %v447_v61 = vmax.f32 %v443_v45, 0.0 }
  0x87   : > { %v284_v40 = vpop.permute.xlu1 %283  ;;  %v256_v41 = vpop.permute.xlu0 %255 }
  0x88   : > { %v261_v46 = vmul.f32 %v616_v32, %v256_v41  ;;  %v348_v47 = vmul.f32 %v624_v33, %v256_v41  ;;  %v394_v48 = vmul.f32 %v632_v34, %v256_v41  ;;  %v440_v49 = vmul.f32 %v640_v35, %v256_v41 }
  0x8a   : > { %v289_v54 = vadd.f32 %v284_v40, %v261_v46  ;;  %v352_v55 = vadd.f32 %v348_v47, %v284_v40  ;;  %v398_v56 = vadd.f32 %v394_v48, %v284_v40  ;;  %v444_v57 = vadd.f32 %v440_v49, %v284_v40  ;;  %v481_v48 = vpop.permute.xlu2 %480 }
  0x8c   : > { %v293_v63 = vmax.f32 %v289_v54, 0.0  ;;  %v356_v0 = vmax.f32 %v352_v55, 0.0  ;;  %v402_v1 = vmax.f32 %v398_v56, 0.0  ;;  %v448_v2 = vmax.f32 %v444_v57, 0.0 }
  0x8e   : > { %v299_v7 = vpack.c.bf16 %v293_v63, %v292_v58  ;;  %v358_v8 = vpack.c.bf16 %v356_v0, %v355_v59  ;;  %v404_v9 = vpack.c.bf16 %v402_v1, %v401_v60  ;;  %v450_v10 = vpack.c.bf16 %v448_v2, %v447_v61 }
  0x8f   : > { %v274_v15 = vpop.permute.xlu1 %273  ;;  %v269_v16 = vpop.permute.xlu0 %268 }
  0x90   : > { %323 = vmatpush.bf16.msra.mxu0 %v299_v7  ;;  %365 = vmatpush.bf16.msra.mxu1 %v358_v8  ;;  %v286_v17 = vadd.f32 %v269_v16, %v258_v3  ;;  %v287_v18 = vadd.f32 %v274_v15, %v259_v6  ;;  %v349_v19 = vadd.f32 %v345_v4, %v269_v16 }
  0x91   : > { %411 = vmatpush.bf16.msra.mxu2 %v404_v9  ;;  %457 = vmatpush.bf16.msra.mxu3 %v450_v10  ;;  %v350_v20 = vadd.f32 %v346_v12, %v274_v15  ;;  %v395_v21 = vadd.f32 %v391_v5, %v269_v16  ;;  %v396_v22 = vadd.f32 %v392_v13, %v274_v15 }
  0x92   : > { %v290_v24 = vmax.f32 %v286_v17, 0.0  ;;  %v291_v25 = vmax.f32 %v287_v18, 0.0  ;;  %v353_v26 = vmax.f32 %v349_v19, 0.0  ;;  %v441_v27 = vadd.f32 %v437_v11, %v269_v16  ;;  %v496_v12 = vpop.permute.xlu2 %495 }
  0x93   : > { %v354_v23 = vmax.f32 %v350_v20, 0.0  ;;  %v399_v28 = vmax.f32 %v395_v21, 0.0  ;;  %v400_v29 = vmax.f32 %v396_v22, 0.0  ;;  %v442_v30 = vadd.f32 %v438_v14, %v274_v15 }
  0x94   : > { %v298_v31 = vpack.c.bf16 %v291_v25, %v290_v24  ;;  %v445_v32 = vmax.f32 %v441_v27, 0.0 }
  0x95   : > { %v357_v33 = vpack.c.bf16 %v354_v23, %v353_v26  ;;  %v403_v34 = vpack.c.bf16 %v400_v29, %v399_v28  ;;  %v446_v35 = vmax.f32 %v442_v30, 0.0 }
  0x96   : > { %324 = vmatpush.bf16.msra.mxu0 %v298_v31 }
  0x97   : > { %366 = vmatpush.bf16.msra.mxu1 %v357_v33  ;;  %412 = vmatpush.bf16.msra.mxu2 %v403_v34  ;;  %v449_v37 = vpack.c.bf16 %v446_v35, %v445_v32  ;;  %v486_v58 = vpop.permute.xlu0 %485  ;;  %v491_v1 = vpop.permute.xlu1 %490 }
  0x99   : > { %458 = vmatpush.bf16.msra.mxu3 %v449_v37  ;;  %583 = vmatmul.msk.bf16.vlgmr.msra.gmra.mxu0 %vm310_vm0, %v607_v36 }
  0x9a   : > { %589 = vmatmul.msk.bf16.vlgmr.msra.gmra.mxu1 %vm310_vm0, %v607_v36  ;;  %595 = vmatmul.msk.bf16.vlgmr.msra.gmra.mxu2 %vm310_vm0, %v607_v36 }
  0x9c   : > { %601 = vmatmul.msk.bf16.vlgmr.msra.gmra.mxu3 %vm310_vm0, %v607_v36 }
  0xa9   : > { %584 = vmatmul.msk.bf16.gmra.mxu0 %vm310_vm0, %v608_v38 }
  0xaa   : > { %590 = vmatmul.msk.bf16.gmra.mxu1 %vm310_vm0, %v608_v38  ;;  %596 = vmatmul.msk.bf16.gmra.mxu2 %vm310_vm0, %v608_v38 }
  0xac   : > { %602 = vmatmul.msk.bf16.gmra.mxu3 %vm310_vm0, %v608_v38 }
 0x116   : > { %v326_v39 = vpop.f32.mrf.mxu0 }
 0x117   : > { %v368_v40 = vpop.f32.mrf.mxu1 }
 0x118   : > { %v378_v41 = vmax.f32 %v326_v39, %v368_v40 }
 0x11d   : > { %v414_v42 = vpop.f32.mrf.mxu2 }
 0x11e   : > { %v424_v43 = vmax.f32 %v378_v41, %v414_v42  ;;  %v328_v44 = vpop.f32.mrf.mxu0 }
 0x11f   : > { %v460_v45 = vpop.f32.mrf.mxu3  ;;  %v370_v46 = vpop.f32.mrf.mxu1 }
 0x120   : > { %v470_v47 = vmax.f32 %v424_v43, %v460_v45  ;;  %v379_v51 = vmax.f32 %v328_v44, %v370_v46 }
 0x122   : > { %v498_v49 = vadd.f32 %v481_v48, %v470_v47 }
 0x124   : > { %v502_v50 = vpack.c.bf16 %v498_v49, %v498_v49 }
 0x125   : > { %v416_v52 = vpop.f32.mrf.mxu2 }
 0x126   : > { %507 = vst.msk [vmem:[%s763_s7] sm:$0xf] %vm506_vm1, %v502_v50  ;;  %v425_v53 = vmax.f32 %v379_v51, %v416_v52  ;;  %v331_v54 = vpop.f32.mrf.mxu0 }
 0x127   : > { %v462_v55 = vpop.f32.mrf.mxu3  ;;  %v373_v56 = vpop.f32.mrf.mxu1 }
 0x128   : > { %v471_v57 = vmax.f32 %v425_v53, %v462_v55  ;;  %v380_v60 = vmax.f32 %v331_v54, %v373_v56 }
 0x12a   : > { %v499_v59 = vadd.f32 %v486_v58, %v471_v57 }
 0x12c   : > { %v503_v61 = vpack.c.bf16 %v499_v59, %v499_v59 }
 0x12d   : > { %v419_v62 = vpop.f32.mrf.mxu2 }
 0x12e   : > { %508 = vst.msk [vmem:[%s763_s7 + $0x4] sm:$0xf] %vm506_vm1, %v503_v61  ;;  %v426_v63 = vmax.f32 %v380_v60, %v419_v62  ;;  %v333_v3 = vpop.f32.mrf.mxu0 }
 0x12f   : > { %v465_v0 = vpop.f32.mrf.mxu3  ;;  %v375_v4 = vpop.f32.mrf.mxu1 }
 0x130   : > { %v472_v2 = vmax.f32 %v426_v63, %v465_v0  ;;  %v381_v7 = vmax.f32 %v333_v3, %v375_v4 }
 0x132   : > { %v500_v5 = vadd.f32 %v491_v1, %v472_v2 }
 0x134   : > { %v504_v6 = vpack.c.bf16 %v500_v5, %v500_v5 }
 0x135   : > { %v421_v8 = vpop.f32.mrf.mxu2 }
 0x136   : > { %509 = vst.msk [vmem:[%s763_s7 + $0x8] sm:$0xf] %vm506_vm1, %v504_v6  ;;  %v427_v9 = vmax.f32 %v381_v7, %v421_v8 }
 0x137   : > { %v467_v10 = vpop.f32.mrf.mxu3 }
 0x138   : > { %v473_v11 = vmax.f32 %v427_v9, %v467_v10 }
 0x13a   : > { %v501_v13 = vadd.f32 %v496_v12, %v473_v11 }
 0x13c   : > { %v505_v14 = vpack.c.bf16 %v501_v13, %v501_v13 }
 0x13e   : > { %510 = vst.msk [vmem:[%s763_s7 + $0xc] sm:$0xf] %vm506_vm1, %v505_v14 }
 0x13f PF: > { %s15_s18 = sadd.s32 1, %s666_s18  }
 0x140   : > { %p12_p4 = scmp.ge.s32.totalorder %s15_s18, 4  }
 0x142   :  { %14 = sbr.rel (!%p12_p4) target bundleno = 1 (0x1), region = 73 }

// kernel: fcdensenet_apply.14
= control target key start
LH: loop header
LB: loop body
LE: loop exit
PB: predicated region body
PF: predicated region fallthrough
CT: control target
= control target key end

     0   :  { %s1303_s13 = smov 0   ;;  %s1578_s0 = inlined_call_operand.vmem [shape: bf16[2,24,100], index: 0, kind: input, shape index: {}]   ;;  %s1579_s1 = inlined_call_operand.vmem [shape: f32[1,100], index: 1, kind: input, shape index: {}]   ;;  %s1580_s2 = inlined_call_operand.vmem [shape: f32[24,1], index: 2, kind: input, shape index: {}]   ;;  %s1581_s3 = inlined_call_operand.vmem [shape: f32[24,1], index: 3, kind: input, shape index: {}]   ;;  %s1582_s4 = inlined_call_operand.vmem [shape: bf16[9,4,24], index: 4, kind: input, shape index: {}]   ;;  %s1583_s5 = inlined_call_operand.vmem [shape: f32[4,1], index: 5, kind: input, shape index: {}]   ;;  %s1584_s6 = inlined_call_operand.vmem [shape: f32[28,1], index: 6, kind: input, shape index: {}]   ;;  %s1585_s7 = inlined_call_operand.vmem [shape: f32[28,1], index: 7, kind: input, shape index: {}]   ;;  %s1586_s8 = inlined_call_operand.vmem [shape: bf16[9,4,28], index: 8, kind: input, shape index: {}]   ;;  %s1587_s9 = inlined_call_operand.vmem [shape: f32[4,1], index: 9, kind: input, shape index: {}]   ;;  %s1588_s10 = inlined_call_operand.vmem [shape: bf16[2,32,100], index: 10, kind: output, shape index: {}]  }
   0x1 LB: > { %s1139_s14 = sadd.s32 4294967295, %s1236_s13   ;;  %p1143_p0 = scmp.ge.s32.totalorder %s1236_s13, 1  ;;  %s1236_s13 = sphi %s1303_s13, %s20_s13  }
   0x2   : > { %p312_p1 = scmp.lt.s32.totalorder %s1236_s13, 3 }
   0x4   : > { %p313_p2 = pnand %p1143_p0, %p312_p1 }
   0x5   : > { %p350_p3 = scmp.lt.s32.totalorder (!%p313_p2), %s1139_s14, 1  ;;  %s1239_s15 = smov (!%p313_p2), 11  }
   0x6   : > { %316 = sbr.rel (%p313_p2) target bundleno = 974 (0x3ce), region = 60  ;;  %s1240_s16 = smov (!%p313_p2), 127  }
   0x7   : > { %s1241_s17 = smov (!%p313_p2), 126   ;;  %s1242_s18 = smov (!%p313_p2), 118  }
   0x8   : > { %s1243_s19 = smov (!%p313_p2), 117   ;;  %s1244_s20 = smov (!%p313_p2), 108  }
   0x9   : > { %s1245_s21 = smov (!%p313_p2), 116   ;;  %s1589_s22 = smov (!%p313_p2), 107  }
   0xa   : > { %s1247_s25 = smov (!%p313_p2), 106  }
   0xb   : > { %v390_v0 = vld [vmem:[%s1580_s2] sm:$0xff]  ;;  %v392_v1 = vld [vmem:[%s1580_s2 + $0x10] sm:$0xff]  ;;  %v1238_v2 = vmov 0   ;;  %v391_v5 = vld [vmem:[%s1580_s2 + $0x8] sm:$0xff]  ;;  %s1593_s14 = smov (!%p350_p3, %s1139_s14), 1  ;;  %vm364_vm0 = vcmask 814080  }
   0xc   : > { %1227 = vset.pattern.permute.xlu1 %v1238_v2  ;;  %1226 = vset.pattern.permute.xlu0 %v1238_v2  ;;  %v411_v3 = vld [vmem:[%s1581_s3] sm:$0xff]  ;;  %v413_v4 = vld [vmem:[%s1581_s3 + $0x10] sm:$0xff]  ;;  %v412_v6 = vld [vmem:[%s1581_s3 + $0x8] sm:$0xff]  ;;  %s1207_s27 = smul.u32 12, %s1593_s14  ;;  %vm372_vm1 = vcmask 84992   ;;  %vm378_vm2 = vcmask 995192  }
   0xd   : > { %395 = vperm.xlu1 %1227, %v390_v0   ;;  %405 = vperm.xlu0 %1226, %v392_v1   ;;  %374 = vst.msk [vmem:[#allocation3 + $0x4] sm:$0xf] %vm372_vm1, %v1238_v2  ;;  %v1364_v19 = vld [vmem:[%s1579_s1] ss:$0 sm:$0xff]  ;;  %vm456_vm3 = vcmask 904280   ;;  %vm483_vm4 = vcmask 1043456  }
   0xe   : > { %1228 = vset.pattern.permute.xlu2 %v1238_v2  ;;  %s354_s30 = scalar_lea.vmem %s1578_s0, %s1207_s27  ;;  %380 = vst.msk [vmem:[#allocation3 + $0x4] sm:$0xf] %vm378_vm2, %v1238_v2  ;;  %v709_v47 = vld [vmem:[%s1583_s5] sm:$0xf]  ;;  %v731_v48 = vld [vmem:[%s1584_s6 + $0x10] sm:$0xff]  ;;  %v730_v52 = vld [vmem:[%s1584_s6 + $0x8] sm:$0xff] }
   0xf   : > { %416 = vperm.xlu2 %1228, %v411_v3   ;;  %v1338_v7 = vld [vmem:[%s354_s30] sm:$0xf]  ;;  %v1340_v8 = vld [vmem:[%s354_s30 + $0x4] sm:$0xf]  ;;  %v1344_v9 = vld [vmem:[%s354_s30 + $0x8] sm:$0xf] }
  0x10   : > { %365 = vst.msk [vmem:[#allocation2] sm:$0xf] %vm364_vm0, %v1338_v7  ;;  %v759_v49 = vld [vmem:[%s1585_s7 + $0x10] sm:$0xff]  ;;  %v732_v50 = vld [vmem:[%s1584_s6 + $0x18] sm:$0xf]  ;;  %v729_v53 = vld [vmem:[%s1584_s6] sm:$0xff] }
  0x11   : > { %366 = vst.msk [vmem:[#allocation2 + $0x4] sm:$0xf] %vm364_vm0, %v1340_v8  ;;  %v760_v51 = vld [vmem:[%s1585_s7 + $0x18] sm:$0xf]  ;;  %v757_v54 = vld [vmem:[%s1585_s7] sm:$0xff]  ;;  %v758_v55 = vld [vmem:[%s1585_s7 + $0x8] sm:$0xff] }
  0x12   : > { %367 = vst.msk [vmem:[#allocation2 + $0x8] sm:$0xf] %vm364_vm0, %v1344_v9  ;;  %vm479_vm5 = vcmask 195584   ;;  %v460_v58 = vld [vmem:[%s1582_s4] sm:$0x3]  ;;  %s1195_s30 = sshll.u32 %s1593_s14, 4 }
  0x13   : > { %373 = vst.msk [vmem:[#allocation3] sm:$0xf] %vm372_vm1, %v1238_v2  ;;  %v1154_v3 = vld [vmem:[%s1582_s4 + $0x4] sm:$0x3]  ;;  %s1472_s12 = scalar_lea.vmem %s1588_s10, %s1195_s30  ;;  %vm376_vm6 = vcmask 82944   ;;  %vm382_vm7 = vcmask 993144  }
  0x14   : > { %375 = vst.msk [vmem:[#allocation3 + $0x8] sm:$0xf] %vm372_vm1, %v1238_v2  ;;  %vm718_vm8 = vcmask 812032   ;;  %vm816_vm9 = vcmask 902232   ;;  %vm844_vm10 = vcmask 1045504   ;;  %vm840_vm11 = vcmask 228352  }
  0x15   : > { %426 = vperm.xlu0 %1226, %v413_v4   ;;  %400 = vperm.xlu1 %1227, %v391_v5   ;;  %379 = vst.msk [vmem:[#allocation3] sm:$0xf] %vm378_vm2, %v1238_v2  ;;  %v1147_v5 = vld [vmem:[%s1582_s4 + $0x2] sm:$0x3]  ;;  %vm1082_vm12 = vcmask 814082  }
  0x16   : > { %381 = vst.msk [vmem:[#allocation3 + $0x8] sm:$0xf] %vm378_vm2, %v1238_v2 }
  0x17   : > { %421 = vperm.xlu2 %1228, %v412_v6   ;;  %368 = vst.msk [vmem:[%s1472_s12] sm:$0xf] %vm364_vm0, %v1338_v7 }
  0x18   : > { %v1356_v10 = vld [vmem:[#allocation2] sm:$0xff]   ;;  %369 = vst.msk [vmem:[%s1472_s12 + $0x4] sm:$0xf] %vm364_vm0, %v1340_v8 }
  0x19   : > { %v1201_v11 = vunpack.c.l.bf16 %v1356_v10  ;;  %v386_v15 = vld [vmem:[#allocation2 + $0x8] sm:$0xf]  ;;  %v1202_v21 = vunpack.c.h.bf16 %v1356_v10  ;;  %370 = vst.msk [vmem:[%s1472_s12 + $0x8] sm:$0xf] %vm364_vm0, %v1344_v9 }
  0x1a   : > { %v389_v17 = vunpack.c.l.bf16 %v386_v15  ;;  %377 = vst.msk [vmem:[#allocation3 + $0xc] sm:$0x3] %vm376_vm6, %v1238_v2 }
  0x1b   : > { %383 = vst.msk [vmem:[#allocation3 + $0xc] sm:$0x3] %vm382_vm7, %v1238_v2 }
  0x69   : > { %v417_v12 = vpop.permute.xlu2 %416 }
  0x71   : > { %v422_v24 = vpop.permute.xlu2 %421 }
  0x7f   : > { %v396_v13 = vpop.permute.xlu1 %395  ;;  %v406_v14 = vpop.permute.xlu0 %405 }
  0x80   : > { %v408_v16 = vmul.f32 %v1201_v11, %v396_v13  ;;  %v410_v22 = vmul.f32 %v406_v14, %v389_v17  ;;  %v1156_v14 = vld [vmem:[%s1582_s4 + $0x6] sm:$0x3] }
  0x82   : > { %v429_v18 = vadd.f32 %v417_v12, %v408_v16 }
  0x84   : > { %v432_v20 = vmax.f32 %v429_v18, 0.0 }
  0x86   : > { %v438_v23 = vmul.f32 %v1364_v19, %v432_v20  ;;  %v1162_v20 = vld [vmem:[%s1582_s4 + $0xc] sm:$0x3] }
  0x87   : > { %v427_v25 = vpop.permute.xlu0 %426  ;;  %v401_v26 = vpop.permute.xlu1 %400 }
  0x88   : > { %v441_v27 = vpack.c.bf16 %v438_v23, %v438_v23  ;;  %v431_v28 = vadd.f32 %v427_v25, %v410_v22  ;;  %v409_v29 = vmul.f32 %v1202_v21, %v401_v26 }
  0x8a   : > { %v434_v30 = vmax.f32 %v431_v28, 0.0  ;;  %447 = vrot.lane.b32.xlu1 %v441_v27, %s1239_s15  ;;  %v430_v31 = vadd.f32 %v422_v24, %v409_v29  ;;  %v1158_v24 = vld [vmem:[%s1582_s4 + $0x8] sm:$0x3]  ;;  %v1160_v28 = vld [vmem:[%s1582_s4 + $0xa] sm:$0x3] }
  0x8c   : > { %v440_v32 = vmul.f32 %v1364_v19, %v434_v30  ;;  %v433_v33 = vmax.f32 %v430_v31, 0.0  ;;  %v723_v30 = vld [vmem:[#allocation2 + $0x8] sm:$0xf] }
  0x8e   : > { %v443_v34 = vpack.c.bf16 %v440_v32, %v440_v32  ;;  %v439_v35 = vmul.f32 %v1364_v19, %v433_v33  ;;  %v1164_v32 = vld [vmem:[%s1582_s4 + $0xe] sm:$0x3]  ;;  %v727_v33 = vunpack.c.l.bf16 %v723_v30 }
  0x90   : > { %v442_v36 = vpack.c.bf16 %v439_v35, %v439_v35  ;;  %451 = vrot.lane.b32.xlu0 %v443_v34, %s1239_s15 }
  0x92   : > { %449 = vrot.lane.b32.xlu2 %v442_v36, %s1239_s15 }
  0xec   : > { %v450_v37 = vpop.permute.xlu2 %449 }
  0xed   : > { %458 = vst.msk [vmem:[#allocation3 + $0x4] sm:$0xf] %vm456_vm3, %v450_v37 }
  0xf4   : > { %v1196_v40 = vld [vmem:[#allocation3] sm:$0xf0] }
  0xfc   : > { %v448_v38 = vpop.permute.xlu1 %447 }
  0xfd   : > { %457 = vst.msk [vmem:[#allocation3] sm:$0xf] %vm456_vm3, %v448_v38  ;;  %v1166_v38 = vld [vmem:[%s1582_s4 + $0x10] sm:$0x3] }
 0x102   : > { %v452_v39 = vpop.permute.xlu0 %451 }
 0x103   : > { %459 = vst.msk [vmem:[#allocation3 + $0x8] sm:$0xf] %vm456_vm3, %v452_v39 }
 0x104   : > { %v1150_v41 = vld [vmem:[#allocation3] sm:$0xf] }
 0x105   : > { %v1151_v42 = vor.u32 %v1196_v40, %v1150_v41 }
 0x107   : > { %474 = vrot.lane.b32.xlu1 %v1151_v42, %s1240_s16 }
 0x10a   : > { %v463_v43 = vld [vmem:[#allocation3 + $0x8] sm:$0xf] }
 0x10b   : > { %v471_v44 = vunpack.c.l.b16 %v463_v43 }
 0x10d   : > { %v473_v45 = vpack.c.b16 %v471_v44, %v471_v44 }
 0x10f   : > { %476 = vrot.lane.b32.xlu0 %v473_v45, %s1240_s16  ;;  %524 = vrot.lane.b32.xlu2 %v473_v45, %s1241_s17  ;;  %v505_v46 = vsel %vm483_vm4, %v473_v45, 0 }
 0x110   : > { %522 = vrot.lane.b32.xlu1 %v1151_v42, %s1241_s17  ;;  %513 = vmatpush.bf16.msra.mxu1 %v505_v46 }
 0x114   : > { %514 = vmatpush.bf16.msra.mxu1 %v1151_v42 }
 0x117   : > { %551 = vrot.lane.b32.xlu0 %v473_v45, %s1242_s18  ;;  %549 = vrot.lane.b32.xlu2 %v1151_v42, %s1242_s18 }
 0x118   : > { %576 = vrot.lane.b32.xlu1 %v1151_v42, %s1243_s19  ;;  %1153 = vmatmul.msk.bf16.vlgmr.msra.gmra.mxu1 %vm479_vm5, %v460_v58 }
 0x11f   : > { %578 = vrot.lane.b32.xlu0 %v473_v45, %s1243_s19  ;;  %632 = vrot.lane.b32.xlu2 %v473_v45, %s1244_s20 }
 0x120   : > { %605 = vrot.lane.b32.xlu1 %v473_v45, %s1245_s21 }
 0x127   : > { %659 = vrot.lane.b32.xlu0 %v473_v45, %s1589_s22  ;;  %630 = vrot.lane.b32.xlu2 %v1151_v42, %s1244_s20 }
 0x128   : > { %603 = vrot.lane.b32.xlu1 %v1151_v42, %s1245_s21 }
 0x12f   : > { %657 = vrot.lane.b32.xlu0 %v1151_v42, %s1589_s22  ;;  %686 = vrot.lane.b32.xlu2 %v473_v45, %s1247_s25 }
 0x130   : > { %712 = vperm.xlu1 %1227, %v709_v47  }
 0x137   : > { %684 = vrot.lane.b32.xlu0 %v1151_v42, %s1247_s25  ;;  %745 = vperm.xlu2 %1228, %v731_v48  }
 0x138   : > { %773 = vperm.xlu1 %1227, %v759_v49  }
 0x13f   : > { %750 = vperm.xlu0 %1226, %v732_v50   ;;  %778 = vperm.xlu2 %1228, %v760_v51  }
 0x140   : > { %740 = vperm.xlu1 %1227, %v730_v52  }
 0x147   : > { %735 = vperm.xlu0 %1226, %v729_v53   ;;  %763 = vperm.xlu2 %1228, %v757_v54  }
 0x14f   : > { %768 = vperm.xlu0 %1226, %v758_v55  }
 0x169   : > { %v525_v56 = vpop.permute.xlu2 %524 }
 0x16a   : > { %v531_v57 = vsel %vm483_vm4, %v525_v56, 0 }
 0x16b   : > { %539 = vmatpush.bf16.msra.mxu2 %v531_v57 }
 0x171   : > { %v550_v59 = vpop.permute.xlu2 %549 }
 0x179   : > { %v475_v60 = vpop.permute.xlu1 %474  ;;  %v633_v61 = vpop.permute.xlu2 %632 }
 0x17a   : > { %v639_v1 = vsel %vm483_vm4, %v633_v61, 0 }
 0x181   : > { %v477_v62 = vpop.permute.xlu0 %476  ;;  %v631_v4 = vpop.permute.xlu2 %630 }
 0x182   : > { %v523_v63 = vpop.permute.xlu1 %522  ;;  %v485_v0 = vsel %vm483_vm4, %v477_v62, 0 }
 0x183   : > { %540 = vmatpush.bf16.msra.mxu2 %v523_v63  ;;  %493 = vmatpush.bf16.msra.mxu0 %v485_v0 }
 0x186   : > { %1155 = vmatmul.msk.bf16.vlgmr.msra.gmra.mxu2 %vm479_vm5, %v1154_v3 }
 0x187   : > { %647 = vmatpush.bf16.msrb.mxu2 %v639_v1  ;;  %494 = vmatpush.bf16.msra.mxu0 %v475_v60 }
 0x189   : > { %v552_v6 = vpop.permute.xlu0 %551  ;;  %v687_v22 = vpop.permute.xlu2 %686 }
 0x18a   : > { %v577_v12 = vpop.permute.xlu1 %576  ;;  %1152 = vmatmul.msk.bf16.vlgmr.msra.gmra.mxu0 %vm479_vm5, %v1147_v5  ;;  %v558_v13 = vsel %vm483_vm4, %v552_v6, 0  ;;  %v693_v23 = vsel %vm483_vm4, %v687_v22, 0 }
 0x18b   : > { %648 = vmatpush.bf16.msrb.mxu2 %v631_v4  ;;  %566 = vmatpush.bf16.msra.mxu3 %v558_v13 }
 0x18f   : > { %567 = vmatpush.bf16.msra.mxu3 %v550_v59 }
 0x191   : > { %v579_v15 = vpop.permute.xlu0 %578  ;;  %v746_v34 = vpop.permute.xlu2 %745 }
 0x192   : > { %v606_v16 = vpop.permute.xlu1 %605  ;;  %1157 = vmatmul.msk.bf16.vlgmr.msra.gmra.mxu3 %vm479_vm5, %v1156_v14  ;;  %v585_v17 = vsel %vm483_vm4, %v579_v15, 0  ;;  %v755_v35 = vmul.f32 %v746_v34, %v727_v33 }
 0x193   : > { %593 = vmatpush.bf16.msrb.mxu0 %v585_v17  ;;  %v612_v18 = vsel %vm483_vm4, %v606_v16, 0 }
 0x194   : > { %620 = vmatpush.bf16.msrb.mxu1 %v612_v18 }
 0x196   : > { %1163 = vmatmul.msk.bf16.vlgmr.msrb.gmra.mxu2 %vm479_vm5, %v1162_v20 }
 0x197   : > { %594 = vmatpush.bf16.msrb.mxu0 %v577_v12 }
 0x199   : > { %v660_v25 = vpop.permute.xlu0 %659  ;;  %v1481_v42 = vpop.permute.xlu2 %778 }
 0x19a   : > { %v604_v26 = vpop.permute.xlu1 %603  ;;  %1159 = vmatmul.msk.bf16.vlgmr.msrb.gmra.mxu0 %vm479_vm5, %v1158_v24  ;;  %v666_v27 = vsel %vm483_vm4, %v660_v25, 0 }
 0x19b   : > { %701 = vmatpush.bf16.msra.mxu0 %v693_v23  ;;  %621 = vmatpush.bf16.msrb.mxu1 %v604_v26 }
 0x19c   : > { %674 = vmatpush.bf16.msrb.mxu3 %v666_v27 }
 0x19e   : > { %1161 = vmatmul.msk.bf16.vlgmr.msrb.gmra.mxu1 %vm479_vm5, %v1160_v28 }
 0x1a1   : > { %v658_v29 = vpop.permute.xlu0 %657  ;;  %v764_v47 = vpop.permute.xlu2 %763 }
 0x1a2   : > { %v1458_v31 = vpop.permute.xlu1 %712  ;;  %675 = vmatpush.bf16.msrb.mxu3 %v658_v29 }
 0x1a5   : > { %1165 = vmatmul.msk.bf16.vlgmr.msrb.gmra.mxu3 %vm479_vm5, %v1164_v32 }
 0x1a9   : > { %v685_v36 = vpop.permute.xlu0 %684 }
 0x1aa   : > { %v774_v37 = vpop.permute.xlu1 %773  ;;  %702 = vmatpush.bf16.msra.mxu0 %v685_v36 }
 0x1ab   : > { %v783_v39 = vadd.f32 %v774_v37, %v755_v35 }
 0x1ad   : > { %v787_v40 = vmax.f32 %v783_v39, 0.0  ;;  %1167 = vmatmul.msk.bf16.vlgmr.msra.gmra.mxu0 %vm479_vm5, %v1166_v38 }
 0x1af   : > { %v791_v41 = vmul.f32 %v1364_v19, %v787_v40 }
 0x1b1   : > { %v795_v43 = vpack.c.bf16 %v791_v41, %v791_v41  ;;  %v1483_v44 = vpop.permute.xlu0 %750 }
 0x1b2   : > { %v741_v7 = vpop.permute.xlu1 %740 }
 0x1b3   : > { %805 = vrot.lane.b32.xlu1 %v795_v43, %s1239_s15  ;;  %v754_v8 = vmul.f32 %v1202_v21, %v741_v7  ;;  %v1070_v43 = vld [vmem:[%s1587_s9] sm:$0xf] }
 0x1b9   : > { %v736_v45 = vpop.permute.xlu0 %735 }
 0x1ba   : > { %v753_v46 = vmul.f32 %v1201_v11, %v736_v45  ;;  %v516_v11 = vpop.f32.mrf.mxu1 }
 0x1bc   : > { %v781_v48 = vadd.f32 %v764_v47, %v753_v46 }
 0x1be   : > { %v785_v49 = vmax.f32 %v781_v48, 0.0  ;;  %v1168_v48 = vld [vmem:[%s1586_s8 + $0x2] sm:$0x3] }
 0x1c0   : > { %v789_v50 = vmul.f32 %v1364_v19, %v785_v49 }
 0x1c1   : > { %v769_v51 = vpop.permute.xlu0 %768 }
 0x1c2   : > { %v782_v52 = vadd.f32 %v769_v51, %v754_v8  ;;  %v793_v53 = vpack.c.bf16 %v789_v50, %v789_v50  ;;  %v518_v56 = vpop.f32.mrf.mxu1 }
 0x1c4   : > { %v786_v54 = vmax.f32 %v782_v52, 0.0  ;;  %801 = vrot.lane.b32.xlu0 %v793_v53, %s1239_s15 }
 0x1c6   : > { %v790_v9 = vmul.f32 %v1364_v19, %v786_v54 }
 0x1c8   : > { %v794_v55 = vpack.c.bf16 %v790_v9, %v790_v9  ;;  %v1179_v9 = vld [vmem:[%s1586_s8 + $0x4] sm:$0x3] }
 0x1ca   : > { %803 = vrot.lane.b32.xlu1 %v794_v55, %s1239_s15  ;;  %v1181_v55 = vld [vmem:[%s1586_s8 + $0x6] sm:$0x3] }
 0x207   : > { %v496_v57 = vpop.f32.mrf.mxu0 }
 0x208   : > { %v517_v21 = vadd.f32 %v516_v11, %v496_v57 }
 0x209   : > { %v542_v58 = vpop.f32.mrf.mxu2 }
 0x20a   : > { %v546_v62 = vadd.f32 %v542_v58, %v517_v21 }
 0x20f   : > { %v498_v59 = vpop.f32.mrf.mxu0 }
 0x211   : > { %v544_v10 = vpop.f32.mrf.mxu2 }
 0x215   : > { %v569_v60 = vpop.f32.mrf.mxu3 }
 0x216   : > { %v573_v0 = vadd.f32 %v569_v60, %v546_v62  ;;  %v1185_v62 = vld [vmem:[%s1586_s8 + $0xa] sm:$0x3] }
 0x217   : > { %v596_v61 = vpop.f32.mrf.mxu0 }
 0x218   : > { %v600_v4 = vadd.f32 %v596_v61, %v573_v0  ;;  %v1183_v61 = vld [vmem:[%s1586_s8 + $0x8] sm:$0x3] }
 0x219   : > { %v650_v63 = vpop.f32.mrf.mxu2 }
 0x21b   : > { %v623_v1 = vpop.f32.mrf.mxu1 }
 0x21c   : > { %v627_v12 = vadd.f32 %v623_v1, %v600_v4 }
 0x21d   : > { %v571_v3 = vpop.f32.mrf.mxu3 }
 0x21e   : > { %v654_v15 = vadd.f32 %v650_v63, %v627_v12  ;;  %v1187_v3 = vld [vmem:[%s1586_s8 + $0xc] sm:$0x3]  ;;  %v1191_v12 = vld [vmem:[%s1586_s8 + $0x10] sm:$0x3] }
 0x21f   : > { %v598_v5 = vpop.f32.mrf.mxu0 }
 0x221   : > { %v652_v6 = vpop.f32.mrf.mxu2 }
 0x222   : > { %v1189_v6 = vld [vmem:[%s1586_s8 + $0xe] sm:$0x3] }
 0x223   : > { %v625_v13 = vpop.f32.mrf.mxu1 }
 0x225   : > { %v806_v14 = vpop.permute.xlu1 %805 }
 0x226   : > { %815 = vst.msk [vmem:[#allocation3 + $0x8] sm:$0xf] %vm456_vm3, %v806_v14 }
 0x228   : > { %v677_v16 = vpop.f32.mrf.mxu3 }
 0x229   : > { %v681_v17 = vadd.f32 %v677_v16, %v654_v15 }
 0x22a   : > { %v704_v18 = vpop.f32.mrf.mxu0 }
 0x22b   : > { %v708_v20 = vadd.f32 %v704_v18, %v681_v17 }
 0x22d   : > { %v715_v22 = vadd.f32 %v1458_v31, %v708_v20  ;;  %v1175_v39 = vld [vmem:[#allocation3 + $0x8] sm:$0xf] }
 0x22f   : > { %v716_v23 = vmul.f32 %v1364_v19, %v715_v22 }
 0x230   : > { %v679_v24 = vpop.f32.mrf.mxu3 }
 0x231   : > { %v717_v25 = vpack.c.bf16 %v716_v23, %v716_v23 }
 0x232   : > { %v706_v26 = vpop.f32.mrf.mxu0 }
 0x233   : > { %719 = vst.msk [vmem:[%s1472_s12 + $0xc] sm:$0x3] %vm718_vm8, %v717_v25 }
 0x234   : > { %720 = vst.msk [vmem:[#allocation2 + $0xc] sm:$0x3] %vm718_vm8, %v717_v25 }
 0x236   : > { %v802_v27 = vpop.permute.xlu0 %801 }
 0x237   : > { %813 = vst.msk [vmem:[#allocation3] sm:$0xf] %vm456_vm3, %v802_v27 }
 0x23b   : > { %v724_v28 = vld [vmem:[#allocation2 + $0xc] sm:$0x3] }
 0x23c   : > { %v804_v29 = vpop.permute.xlu1 %803  ;;  %v728_v30 = vunpack.c.l.bf16 %v724_v28 }
 0x23d   : > { %814 = vst.msk [vmem:[#allocation3 + $0x4] sm:$0xf] %vm456_vm3, %v804_v29 }
 0x23e   : > { %v756_v2 = vmul.f32 %v1483_v44, %v728_v30  ;;  %v1171_v33 = vld [vmem:[#allocation3] sm:$0xf]  ;;  %v818_v44 = vld [vmem:[%s1586_s8] sm:$0x3] }
 0x240   : > { %v784_v31 = vadd.f32 %v1481_v42, %v756_v2 }
 0x242   : > { %v788_v32 = vmax.f32 %v784_v31, 0.0 }
 0x244   : > { %v1197_v34 = vld [vmem:[#allocation3] sm:$0xf0]  ;;  %v792_v35 = vmul.f32 %v1364_v19, %v788_v32 }
 0x245   : > { %v1172_v36 = vor.u32 %v1197_v34, %v1171_v33 }
 0x246   : > { %v796_v37 = vpack.c.bf16 %v792_v35, %v792_v35 }
 0x247   : > { %835 = vrot.lane.b32.xlu0 %v1172_v36, %s1240_s16 }
 0x248   : > { %807 = vrot.lane.b32.xlu2 %v796_v37, %s1239_s15 }
 0x2a2   : > { %v808_v38 = vpop.permute.xlu2 %807 }
 0x2a3   : > { %817 = vst.msk [vmem:[#allocation3 + $0xc] sm:$0x3] %vm816_vm9, %v808_v38 }
 0x2aa   : > { %v1198_v40 = vld [vmem:[#allocation3 + $0x8] sm:$0x30] }
 0x2ab   : > { %v1176_v41 = vor.u32 %v1198_v40, %v1175_v39 }
 0x2ad   : > { %912 = vrot.lane.b32.xlu0 %v1176_v41, %s1242_s18  ;;  %885 = vrot.lane.b32.xlu1 %v1176_v41, %s1241_s17  ;;  %v866_v42 = vsel %vm844_vm10, %v1176_v41, 0 }
 0x2ae   : > { %837 = vrot.lane.b32.xlu2 %v1176_v41, %s1240_s16  ;;  %874 = vmatpush.bf16.msra.mxu2 %v866_v42  ;;  %s1591_s16 = smov 107  }
 0x2b2   : > { %875 = vmatpush.bf16.msra.mxu2 %v1172_v36 }
 0x2b5   : > { %966 = vrot.lane.b32.xlu0 %v1176_v41, %s1245_s21  ;;  %939 = vrot.lane.b32.xlu1 %v1176_v41, %s1243_s19 }
 0x2b6   : > { %883 = vrot.lane.b32.xlu2 %v1172_v36, %s1241_s17  ;;  %1178 = vmatmul.msk.bf16.vlgmr.msra.gmra.mxu2 %vm840_vm11, %v818_v44 }
 0x2b9   : > { %v836_v47 = vpop.permute.xlu0 %835 }
 0x2bd   : > { %964 = vrot.lane.b32.xlu0 %v1172_v36, %s1245_s21  ;;  %937 = vrot.lane.b32.xlu1 %v1172_v36, %s1243_s19 }
 0x2be   : > { %910 = vrot.lane.b32.xlu2 %v1172_v36, %s1242_s18 }
 0x2c5   : > { %1047 = vrot.lane.b32.xlu0 %v1176_v41, %s1247_s25  ;;  %991 = vrot.lane.b32.xlu1 %v1172_v36, %s1244_s20 }
 0x2c6   : > { %993 = vrot.lane.b32.xlu2 %v1176_v41, %s1244_s20 }
 0x2cd   : > { %1073 = vperm.xlu0 %1226, %v1070_v43   ;;  %1018 = vrot.lane.b32.xlu1 %v1172_v36, %s1591_s16 }
 0x2ce   : > { %1020 = vrot.lane.b32.xlu2 %v1176_v41, %s1591_s16 }
 0x2d6   : > { %1045 = vrot.lane.b32.xlu2 %v1172_v36, %s1247_s25 }
 0x308   : > { %v838_v45 = vpop.permute.xlu2 %837 }
 0x309   : > { %v846_v46 = vsel %vm844_vm10, %v838_v45, 0 }
 0x30a   : > { %854 = vmatpush.bf16.msra.mxu1 %v846_v46 }
 0x30e   : > { %855 = vmatpush.bf16.msra.mxu1 %v836_v47 }
 0x310   : > { %v884_v7 = vpop.permute.xlu2 %883 }
 0x311   : > { %1177 = vmatmul.msk.bf16.vlgmr.msra.gmra.mxu1 %vm840_vm11, %v1168_v48 }
 0x318   : > { %v911_v49 = vpop.permute.xlu2 %910 }
 0x31f   : > { %v913_v8 = vpop.permute.xlu0 %912  ;;  %v886_v50 = vpop.permute.xlu1 %885 }
 0x320   : > { %v919_v51 = vsel %vm844_vm10, %v913_v8, 0  ;;  %v892_v52 = vsel %vm844_vm10, %v886_v50, 0  ;;  %v994_v53 = vpop.permute.xlu2 %993 }
 0x321   : > { %900 = vmatpush.bf16.msra.mxu3 %v892_v52  ;;  %927 = vmatpush.bf16.msrb.mxu0 %v919_v51  ;;  %v1000_v54 = vsel %vm844_vm10, %v994_v53, 0 }
 0x325   : > { %901 = vmatpush.bf16.msra.mxu3 %v884_v7  ;;  %928 = vmatpush.bf16.msrb.mxu0 %v911_v49 }
 0x327   : > { %v967_v11 = vpop.permute.xlu0 %966  ;;  %v940_v56 = vpop.permute.xlu1 %939 }
 0x328   : > { %v973_v57 = vsel %vm844_vm10, %v967_v11, 0  ;;  %v946_v58 = vsel %vm844_vm10, %v940_v56, 0  ;;  %v1021_v59 = vpop.permute.xlu2 %1020  ;;  %1180 = vmatmul.msk.bf16.vlgmr.msra.gmra.mxu3 %vm840_vm11, %v1179_v9  ;;  %1182 = vmatmul.msk.bf16.vlgmr.msrb.gmra.mxu0 %vm840_vm11, %v1181_v55 }
 0x329   : > { %1008 = vmatpush.bf16.msrb.mxu3 %v1000_v54  ;;  %v1027_v10 = vsel %vm844_vm10, %v1021_v59, 0  ;;  %954 = vmatpush.bf16.msrb.mxu1 %v946_v58 }
 0x32a   : > { %981 = vmatpush.bf16.msrb.mxu2 %v973_v57  ;;  %1035 = vmatpush.bf16.msra.mxu0 %v1027_v10 }
 0x32f   : > { %v965_v21 = vpop.permute.xlu0 %964  ;;  %v938_v60 = vpop.permute.xlu1 %937 }
 0x330   : > { %955 = vmatpush.bf16.msrb.mxu1 %v938_v60  ;;  %982 = vmatpush.bf16.msrb.mxu2 %v965_v21  ;;  %v1046_v4 = vpop.permute.xlu2 %1045 }
 0x333   : > { %1184 = vmatmul.msk.bf16.vlgmr.msrb.gmra.mxu1 %vm840_vm11, %v1183_v61  ;;  %1186 = vmatmul.msk.bf16.vlgmr.msrb.gmra.mxu2 %vm840_vm11, %v1185_v62 }
 0x337   : > { %v1048_v63 = vpop.permute.xlu0 %1047  ;;  %v992_v0 = vpop.permute.xlu1 %991 }
 0x338   : > { %v1054_v1 = vsel %vm844_vm10, %v1048_v63, 0  ;;  %1009 = vmatpush.bf16.msrb.mxu3 %v992_v0 }
 0x339   : > { %1062 = vmatpush.bf16.msra.mxu1 %v1054_v1  ;;  %v877_v13 = vpop.f32.mrf.mxu2 }
 0x33b   : > { %1188 = vmatmul.msk.bf16.vlgmr.msrb.gmra.mxu3 %vm840_vm11, %v1187_v3 }
 0x33d   : > { %1063 = vmatpush.bf16.msra.mxu1 %v1046_v4 }
 0x33f   : > { %v1019_v5 = vpop.permute.xlu1 %1018  ;;  %v1074_v37 = vpop.permute.xlu0 %1073 }
 0x340   : > { %1036 = vmatpush.bf16.msra.mxu0 %v1019_v5 }
 0x341   : > { %v879_v14 = vpop.f32.mrf.mxu2 }
 0x343   : > { %1190 = vmatmul.msk.bf16.vlgmr.msra.gmra.mxu0 %vm840_vm11, %v1189_v6  ;;  %1192 = vmatmul.msk.bf16.vlgmr.msra.gmra.mxu1 %vm840_vm11, %v1191_v12 }
 0x38e   : > { %v857_v15 = vpop.f32.mrf.mxu1 }
 0x38f   : > { %v878_v23 = vadd.f32 %v877_v13, %v857_v15 }
 0x396   : > { %v859_v16 = vpop.f32.mrf.mxu1 }
 0x3a5   : > { %v930_v17 = vpop.f32.mrf.mxu0 }
 0x3ab   : > { %v903_v18 = vpop.f32.mrf.mxu3 }
 0x3ac   : > { %v907_v24 = vadd.f32 %v903_v18, %v878_v23 }
 0x3ad   : > { %v932_v20 = vpop.f32.mrf.mxu0 }
 0x3ae   : > { %v934_v27 = vadd.f32 %v930_v17, %v907_v24 }
 0x3b0   : > { %v957_v22 = vpop.f32.mrf.mxu1 }
 0x3b1   : > { %v961_v29 = vadd.f32 %v957_v22, %v934_v27 }
 0x3b3   : > { %v905_v25 = vpop.f32.mrf.mxu3 }
 0x3b6   : > { %v984_v26 = vpop.f32.mrf.mxu2 }
 0x3b7   : > { %v988_v30 = vadd.f32 %v984_v26, %v961_v29 }
 0x3b8   : > { %v959_v28 = vpop.f32.mrf.mxu1 }
 0x3be   : > { %v1011_v2 = vpop.f32.mrf.mxu3  ;;  %v986_v31 = vpop.f32.mrf.mxu2 }
 0x3bf   : > { %v1015_v32 = vadd.f32 %v1011_v2, %v988_v30 }
 0x3c0   : > { %v1038_v33 = vpop.f32.mrf.mxu0  ;;  %v1065_v34 = vpop.f32.mrf.mxu1 }
 0x3c1   : > { %v1042_v35 = vadd.f32 %v1038_v33, %v1015_v32 }
 0x3c3   : > { %v1069_v36 = vadd.f32 %v1065_v34, %v1042_v35 }
 0x3c5   : > { %v1076_v38 = vadd.f32 %v1074_v37, %v1069_v36 }
 0x3c6   : > { %v1013_v39 = vpop.f32.mrf.mxu3 }
 0x3c7   : > { %v1077_v40 = vmul.f32 %v1364_v19, %v1076_v38 }
 0x3c8   : > { %v1040_v41 = vpop.f32.mrf.mxu0  ;;  %v1067_v42 = vpop.f32.mrf.mxu1 }
 0x3c9   : > { %v1078_v43 = vpack.c.bf16 %v1077_v40, %v1077_v40 }
 0x3cb   : > { %v1080_v44 = vrot.slane %v1078_v43, 6 }
 0x3cd   : > { %1083 = vst.msk [vmem:[%s1472_s12 + $0xc] sm:$0xc] %vm1082_vm12, %v1080_v44 }
 0x3ce PF: > { %s20_s13 = sadd.s32 1, %s1236_s13  }
 0x3cf   : > { %p17_p4 = scmp.ge.s32.totalorder %s20_s13, 4  }
 0x3d1   :  { %19 = sbr.rel (!%p17_p4) target bundleno = 1 (0x1), region = 106 }

// kernel: fcdensenet_apply.17
= control target key start
LH: loop header
LB: loop body
LE: loop exit
PB: predicated region body
PF: predicated region fallthrough
CT: control target
= control target key end

     0   :  { %s393_s12 = smov 0   ;;  %s428_s0 = inlined_call_operand.vmem [shape: bf16[2,32,16], index: 0, kind: input, shape index: {}]   ;;  %s429_s1 = inlined_call_operand.vmem [shape: bf16[32,32], index: 1, kind: input, shape index: {}]   ;;  %s430_s2 = inlined_call_operand.vmem [shape: f32[32,1], index: 2, kind: input, shape index: {}]   ;;  %s431_s3 = inlined_call_operand.vmem [shape: bf16[2,32,16], index: 3, kind: output, shape index: {}]  }
   0x1 LB: > { %s316_s13 = sadd.s32 4294967295, %s370_s12   ;;  %p320_p0 = scmp.ge.s32.totalorder %s370_s12, 1  ;;  %s370_s12 = sphi %s393_s12, %s13_s12  }
   0x2   : > { %p137_p1 = scmp.lt.s32.totalorder %s370_s12, 3 }
   0x4   : > { %p138_p2 = pnand %p320_p0, %p137_p1 }
   0x5   : > { %p161_p3 = scmp.lt.s32.totalorder (!%p138_p2), %s316_s13, 1 }
   0x6   : > { %141 = sbr.rel (%p138_p2) target bundleno = 162 (0xa2), region = 32 }
   0xb   : > { %v182_v0 = vld [vmem:[%s430_s2 + $0x10] sm:$0xff]  ;;  %v372_v1 = vmov 0   ;;  %v180_v2 = vld [vmem:[%s430_s2] sm:$0xff]  ;;  %s433_s13 = smov (!%p161_p3, %s316_s13), 1  ;;  %v183_v4 = vld [vmem:[%s430_s2 + $0x18] sm:$0xff]  ;;  %vm226_vm0 = vcmask 261120  }
   0xc   : > { %363 = vset.pattern.permute.xlu1 %v372_v1  ;;  %362 = vset.pattern.permute.xlu0 %v372_v1  ;;  %s345_s18 = sshll.u32 %s433_s13, 4  ;;  %v181_v5 = vld [vmem:[%s430_s2 + $0x8] sm:$0xff]  ;;  %v347_v7 = vld [vmem:[%s429_s1] sm:$0xff]  ;;  %vm256_vm1 = vcmask 125952  }
   0xd   : > { %196 = vperm.xlu1 %363, %v182_v0   ;;  %186 = vperm.xlu0 %362, %v180_v2   ;;  %s165_s21 = scalar_lea.vmem %s428_s0, %s345_s18  ;;  %v348_v8 = vld [vmem:[%s429_s1 + $0x8] sm:$0xff]  ;;  %s170_s5 = scalar_lea.vmem %s431_s3, %s345_s18 }
   0xe   : > { %v350_v3 = vld [vmem:[%s165_s21 + $0x8] sm:$0xff]  ;;  %v349_v6 = vld [vmem:[%s165_s21] sm:$0xff] }
   0xf   : > { %239 = vmatpush.bf16.msra.mxu0 %v350_v3  ;;  %351 = vmatpush.bf16.msra.mxu1 %v350_v3 }
  0x13   : > { %240 = vmatpush.bf16.msra.mxu0 %v349_v6  ;;  %352 = vmatpush.bf16.msra.mxu1 %v349_v6 }
  0x15   : > { %201 = vperm.xlu1 %363, %v183_v4   ;;  %191 = vperm.xlu0 %362, %v181_v5  }
  0x16   : > { %341 = vmatmul.msk.bf16.vlgmr.msra.gmra.mxu0 %vm226_vm0, %v347_v7  ;;  %342 = vmatmul.msk.bf16.vlgmr.msra.gmra.mxu1 %vm226_vm0, %v348_v8 }
  0x7f   : > { %v197_v9 = vpop.permute.xlu1 %196  ;;  %v187_v10 = vpop.permute.xlu0 %186 }
  0x87   : > { %v202_v17 = vpop.permute.xlu1 %201  ;;  %v192_v18 = vpop.permute.xlu0 %191 }
  0x93   : > { %v242_v11 = vpop.f32.mrf.mxu0  ;;  %v247_v12 = vpop.f32.mrf.mxu1 }
  0x94   : > { %v243_v13 = vadd.f32 %v242_v11, %v187_v10  ;;  %v248_v14 = vadd.f32 %v247_v12, %v197_v9 }
  0x96   : > { %v252_v15 = vpack.c.bf16 %v243_v13, %v243_v13  ;;  %v254_v16 = vpack.c.bf16 %v248_v14, %v248_v14 }
  0x98   : > { %257 = vst.msk [vmem:[%s170_s5] sm:$0xf] %vm256_vm1, %v252_v15 }
  0x99   : > { %259 = vst.msk [vmem:[%s170_s5 + $0x8] sm:$0xf] %vm256_vm1, %v254_v16 }
  0x9b   : > { %v244_v19 = vpop.f32.mrf.mxu0  ;;  %v249_v20 = vpop.f32.mrf.mxu1 }
  0x9c   : > { %v245_v21 = vadd.f32 %v244_v19, %v192_v18  ;;  %v250_v22 = vadd.f32 %v249_v20, %v202_v17 }
  0x9e   : > { %v253_v23 = vpack.c.bf16 %v245_v21, %v245_v21  ;;  %v255_v24 = vpack.c.bf16 %v250_v22, %v250_v22 }
  0xa0   : > { %258 = vst.msk [vmem:[%s170_s5 + $0x4] sm:$0xf] %vm256_vm1, %v253_v23 }
  0xa1   : > { %260 = vst.msk [vmem:[%s170_s5 + $0xc] sm:$0xf] %vm256_vm1, %v255_v24 }
  0xa2 PF: > { %s13_s12 = sadd.s32 1, %s370_s12  }
  0xa3   : > { %p10_p4 = scmp.ge.s32.totalorder %s13_s12, 4  }
  0xa5   :  { %12 = sbr.rel (!%p10_p4) target bundleno = 1 (0x1), region = 62 }

// kernel: fcdensenet_apply.16
= control target key start
LH: loop header
LB: loop body
LE: loop exit
PB: predicated region body
PF: predicated region fallthrough
CT: control target
= control target key end

     0   :  { %s1375_s13 = smov 0   ;;  %s1660_s0 = inlined_call_operand.vmem [shape: bf16[2,32,36], index: 0, kind: input, shape index: {}]   ;;  %s1661_s1 = inlined_call_operand.vmem [shape: f32[1,36], index: 1, kind: input, shape index: {}]   ;;  %s1662_s2 = inlined_call_operand.vmem [shape: f32[32,1], index: 2, kind: input, shape index: {}]   ;;  %s1663_s3 = inlined_call_operand.vmem [shape: f32[32,1], index: 3, kind: input, shape index: {}]   ;;  %s1664_s4 = inlined_call_operand.vmem [shape: bf16[9,4,32], index: 4, kind: input, shape index: {}]   ;;  %s1665_s5 = inlined_call_operand.vmem [shape: f32[4,1], index: 5, kind: input, shape index: {}]   ;;  %s1666_s6 = inlined_call_operand.vmem [shape: f32[36,1], index: 6, kind: input, shape index: {}]   ;;  %s1667_s7 = inlined_call_operand.vmem [shape: f32[36,1], index: 7, kind: input, shape index: {}]   ;;  %s1668_s8 = inlined_call_operand.vmem [shape: bf16[9,4,36], index: 8, kind: input, shape index: {}]   ;;  %s1669_s9 = inlined_call_operand.vmem [shape: f32[4,1], index: 9, kind: input, shape index: {}]   ;;  %s1670_s10 = inlined_call_operand.vmem [shape: bf16[2,8,36], index: 10, kind: output, shape index: {}]  }
   0x1 LB: > { %s1197_s14 = sadd.s32 4294967295, %s1308_s13   ;;  %p1201_p0 = scmp.ge.s32.totalorder %s1308_s13, 1  ;;  %s1308_s13 = sphi %s1375_s13, %s20_s13  }
   0x2   : > { %p312_p1 = scmp.lt.s32.totalorder %s1308_s13, 3 }
   0x4   : > { %p313_p2 = pnand %p1201_p0, %p312_p1 }
   0x5   : > { %p349_p3 = scmp.lt.s32.totalorder (!%p313_p2), %s1197_s14, 1  ;;  %s1311_s19 = smov (!%p313_p2), 7  }
   0x6   : > { %316 = sbr.rel (%p313_p2) target bundleno = 1012 (0x3f4), region = 60  ;;  %s1312_s20 = smov (!%p313_p2), 127  }
   0x7   : > { %s1313_s21 = smov (!%p313_p2), 126   ;;  %s1314_s22 = smov (!%p313_p2), 122  }
   0x8   : > { %s1315_s23 = smov (!%p313_p2), 121   ;;  %s1316_s24 = smov (!%p313_p2), 116  }
   0x9   : > { %s1317_s25 = smov (!%p313_p2), 115   ;;  %s1318_s26 = smov (!%p313_p2), 120  }
   0xa   : > { %s1671_s27 = smov (!%p313_p2), 114  }
   0xb   : > { %v421_v0 = vld [vmem:[%s1663_s3 + $0x10] sm:$0xff]  ;;  %v1310_v2 = vmov 0   ;;  %v391_v3 = vld [vmem:[%s1662_s2] sm:$0xff]  ;;  %v422_v4 = vld [vmem:[%s1663_s3 + $0x18] sm:$0xff]  ;;  %s1675_s14 = smov (!%p349_p3, %s1197_s14), 1  ;;  %vm363_vm0 = vcmask 289792  }
   0xc   : > { %v393_v1 = vld [vmem:[%s1662_s2 + $0x10] sm:$0xff]  ;;  %1299 = vset.pattern.permute.xlu1 %v1310_v2  ;;  %1298 = vset.pattern.permute.xlu0 %v1310_v2  ;;  %v394_v5 = vld [vmem:[%s1662_s2 + $0x18] sm:$0xff]  ;;  %v392_v6 = vld [vmem:[%s1662_s2 + $0x8] sm:$0xff]  ;;  %s1257_s11 = sshll.u32 %s1675_s14, 4  ;;  %vm369_vm1 = vcmask 52224   ;;  %vm376_vm2 = vcmask 404824  }
   0xd   : > { %435 = vperm.xlu1 %1299, %v421_v0   ;;  %407 = vperm.xlu0 %1298, %v393_v1   ;;  %v420_v7 = vld [vmem:[%s1663_s3 + $0x8] sm:$0xff]  ;;  %v419_v8 = vld [vmem:[%s1663_s3] sm:$0xff]  ;;  %s353_s16 = scalar_lea.vmem %s1660_s0, %s1257_s11  ;;  %372 = vst.msk [vmem:[#allocation3 + $0x8] sm:$0xf] %vm369_vm1, %v1310_v2  ;;  %vm478_vm3 = vcmask 347192   ;;  %v741_v61 = vld [vmem:[%s1666_s6 + $0x18] sm:$0xff] }
   0xe   : > { %1300 = vset.pattern.permute.xlu2 %v1310_v2  ;;  %v361_v9 = vld [vmem:[%s353_s16 + $0x8] sm:$0xf]  ;;  %v362_v10 = vld [vmem:[%s353_s16 + $0xc] sm:$0xf]  ;;  %v359_v11 = vld [vmem:[%s353_s16] sm:$0xf] }
   0xf   : > { %397 = vperm.xlu2 %1300, %v391_v3   ;;  %366 = vst.msk [vmem:[#allocation2 + $0x8] sm:$0xf] %vm363_vm0, %v361_v9  ;;  %v360_v12 = vld [vmem:[%s353_s16 + $0x4] sm:$0xf]  ;;  %v1432_v20 = vld [vmem:[%s1661_s1] ss:$0 sm:$0xff] }
  0x10   : > { %367 = vst.msk [vmem:[#allocation2 + $0xc] sm:$0xf] %vm363_vm0, %v362_v10  ;;  %v742_v58 = vld [vmem:[%s1666_s6 + $0x20] sm:$0xf]  ;;  %v740_v62 = vld [vmem:[%s1666_s6 + $0x10] sm:$0xff]  ;;  %v776_v1 = vld [vmem:[%s1667_s7 + $0x18] sm:$0xff] }
  0x11   : > { %364 = vst.msk [vmem:[#allocation2] sm:$0xf] %vm363_vm0, %v359_v11  ;;  %v716_v59 = vld [vmem:[%s1665_s5] sm:$0xf]  ;;  %v775_v63 = vld [vmem:[%s1667_s7 + $0x10] sm:$0xff]  ;;  %v739_v3 = vld [vmem:[%s1666_s6 + $0x8] sm:$0xff] }
  0x12   : > { %365 = vst.msk [vmem:[#allocation2 + $0x4] sm:$0xf] %vm363_vm0, %v360_v12  ;;  %v777_v60 = vld [vmem:[%s1667_s7 + $0x20] sm:$0xf]  ;;  %vm506_vm4 = vcmask 261120   ;;  %vm725_vm5 = vcmask 287744  }
  0x13   : > { %379 = vst.msk [vmem:[#allocation3 + $0x8] sm:$0xf] %vm376_vm2, %v1310_v2  ;;  %v738_v0 = vld [vmem:[%s1666_s6] sm:$0xff]  ;;  %vm374_vm6 = vcmask 50176   ;;  %vm381_vm7 = vcmask 402776   ;;  %vm847_vm8 = vcmask 345144  }
  0x14   : > { %370 = vst.msk [vmem:[#allocation3] sm:$0xf] %vm369_vm1, %v1310_v2  ;;  %v1205_v12 = vld [vmem:[%s1664_s4 + $0x2] sm:$0x3]  ;;  %vm882_vm9 = vcmask 1041408   ;;  %vm878_vm10 = vcmask 293888  }
  0x15   : > { %440 = vperm.xlu1 %1299, %v422_v4   ;;  %412 = vperm.xlu0 %1298, %v394_v5   ;;  %371 = vst.msk [vmem:[#allocation3 + $0x4] sm:$0xf] %vm369_vm1, %v1310_v2  ;;  %v774_v4 = vld [vmem:[%s1667_s7 + $0x8] sm:$0xff]  ;;  %v773_v5 = vld [vmem:[%s1667_s7] sm:$0xff]  ;;  %vm1142_vm11 = vcmask 289794  }
  0x16   : > { %373 = vst.msk [vmem:[#allocation3 + $0xc] sm:$0xf] %vm369_vm1, %v1310_v2 }
  0x17   : > { %402 = vperm.xlu2 %1300, %v392_v6   ;;  %v1416_v13 = vld [vmem:[#allocation2 + $0x8] sm:$0xff]   ;;  %378 = vst.msk [vmem:[#allocation3 + $0x4] sm:$0xf] %vm376_vm2, %v1310_v2 }
  0x18   : > { %v1268_v14 = vunpack.c.l.bf16 %v1416_v13  ;;  %377 = vst.msk [vmem:[#allocation3] sm:$0xf] %vm376_vm2, %v1310_v2  ;;  %v1269_v22 = vunpack.c.h.bf16 %v1416_v13 }
  0x19   : > { %380 = vst.msk [vmem:[#allocation3 + $0xc] sm:$0xf] %vm376_vm2, %v1310_v2  ;;  %v1435_v23 = vld [vmem:[#allocation2] sm:$0xff]  }
  0x1a   : > { %v1264_v27 = vunpack.c.l.bf16 %v1435_v23  ;;  %v1265_v30 = vunpack.c.h.bf16 %v1435_v23  ;;  %375 = vst.msk [vmem:[#allocation3 + $0x10] sm:$0x3] %vm374_vm6, %v1310_v2 }
  0x1b   : > { %382 = vst.msk [vmem:[#allocation3 + $0x10] sm:$0x3] %vm381_vm7, %v1310_v2  ;;  %v1130_v2 = vld [vmem:[%s1669_s9] sm:$0xf] }
  0x1d   : > { %430 = vperm.xlu1 %1299, %v420_v7   ;;  %425 = vperm.xlu0 %1298, %v419_v8   ;;  %v483_v7 = vld [vmem:[%s1664_s4] sm:$0x3] }
  0x69   : > { %v398_v15 = vpop.permute.xlu2 %397 }
  0x6a   : > { %v415_v33 = vmul.f32 %v1264_v27, %v398_v15 }
  0x71   : > { %v403_v31 = vpop.permute.xlu2 %402 }
  0x72   : > { %v416_v35 = vmul.f32 %v1265_v30, %v403_v31  ;;  %v1224_v31 = vld [vmem:[%s1664_s4 + $0xc] sm:$0x3] }
  0x7f   : > { %v436_v16 = vpop.permute.xlu1 %435  ;;  %v408_v17 = vpop.permute.xlu0 %407 }
  0x80   : > { %v417_v18 = vmul.f32 %v1268_v14, %v408_v17  ;;  %v1218_v17 = vld [vmem:[%s1664_s4 + $0x6] sm:$0x3] }
  0x82   : > { %v445_v19 = vadd.f32 %v436_v16, %v417_v18 }
  0x84   : > { %v449_v21 = vmax.f32 %v445_v19, 0.0  ;;  %v1216_v19 = vld [vmem:[%s1664_s4 + $0x4] sm:$0x3] }
  0x86   : > { %v456_v24 = vmul.f32 %v1432_v20, %v449_v21 }
  0x87   : > { %v441_v25 = vpop.permute.xlu1 %440  ;;  %v413_v26 = vpop.permute.xlu0 %412 }
  0x88   : > { %v418_v28 = vmul.f32 %v1269_v22, %v413_v26  ;;  %v460_v29 = vpack.c.bf16 %v456_v24, %v456_v24  ;;  %v1220_v26 = vld [vmem:[%s1664_s4 + $0x8] sm:$0x3] }
  0x8a   : > { %v446_v32 = vadd.f32 %v441_v25, %v418_v28  ;;  %470 = vrot.lane.b32.xlu2 %v460_v29, %s1311_s19 }
  0x8c   : > { %v450_v34 = vmax.f32 %v446_v32, 0.0 }
  0x8e   : > { %v457_v36 = vmul.f32 %v1432_v20, %v450_v34 }
  0x8f   : > { %v431_v37 = vpop.permute.xlu1 %430  ;;  %v426_v38 = vpop.permute.xlu0 %425 }
  0x90   : > { %v444_v39 = vadd.f32 %v431_v37, %v416_v35  ;;  %v443_v40 = vadd.f32 %v426_v38, %v415_v33  ;;  %v461_v41 = vpack.c.bf16 %v457_v36, %v457_v36  ;;  %v1226_v33 = vld [vmem:[%s1664_s4 + $0xe] sm:$0x3]  ;;  %v1222_v36 = vld [vmem:[%s1664_s4 + $0xa] sm:$0x3]  ;;  %v1228_v38 = vld [vmem:[%s1664_s4 + $0x10] sm:$0x3] }
  0x92   : > { %v448_v42 = vmax.f32 %v444_v39, 0.0  ;;  %v447_v43 = vmax.f32 %v443_v40, 0.0  ;;  %472 = vrot.lane.b32.xlu0 %v461_v41, %s1311_s19 }
  0x94   : > { %v455_v44 = vmul.f32 %v1432_v20, %v448_v42  ;;  %v454_v45 = vmul.f32 %v1432_v20, %v447_v43 }
  0x96   : > { %v459_v46 = vpack.c.bf16 %v455_v44, %v455_v44  ;;  %v458_v47 = vpack.c.bf16 %v454_v45, %v454_v45 }
  0x98   : > { %468 = vrot.lane.b32.xlu2 %v459_v46, %s1311_s19  ;;  %466 = vrot.lane.b32.xlu1 %v458_v47, %s1311_s19 }
  0xe4   : > { %v471_v48 = vpop.permute.xlu2 %470 }
  0xe5   : > { %481 = vst.msk [vmem:[#allocation3 + $0x8] sm:$0xf] %vm478_vm3, %v471_v48 }
  0xec   : > { %v1212_v52 = vld [vmem:[#allocation3 + $0x8] sm:$0xf] }
  0xf2   : > { %v469_v49 = vpop.permute.xlu2 %468 }
  0xf3   : > { %480 = vst.msk [vmem:[#allocation3 + $0x4] sm:$0xf] %vm478_vm3, %v469_v49 }
  0xfa   : > { %v1258_v55 = vld [vmem:[#allocation3] sm:$0xf0] }
 0x104   : > { %v473_v50 = vpop.permute.xlu0 %472 }
 0x105   : > { %482 = vst.msk [vmem:[#allocation3 + $0xc] sm:$0xf] %vm478_vm3, %v473_v50 }
 0x10a   : > { %v467_v51 = vpop.permute.xlu1 %466 }
 0x10b   : > { %479 = vst.msk [vmem:[#allocation3] sm:$0xf] %vm478_vm3, %v467_v51 }
 0x10c   : > { %v1259_v53 = vld [vmem:[#allocation3 + $0x8] sm:$0xf0] }
 0x10d   : > { %v1213_v54 = vor.u32 %v1259_v53, %v1212_v52 }
 0x10f   : > { %502 = vrot.lane.b32.xlu0 %v1213_v54, %s1312_s20  ;;  %534 = vmatpush.bf16.msra.mxu1 %v1213_v54 }
 0x110   : > { %545 = vrot.lane.b32.xlu2 %v1213_v54, %s1313_s21 }
 0x112   : > { %v1208_v56 = vld [vmem:[#allocation3] sm:$0xf] }
 0x113   : > { %v1209_v57 = vor.u32 %v1258_v55, %v1208_v56 }
 0x115   : > { %500 = vrot.lane.b32.xlu1 %v1209_v57, %s1312_s20  ;;  %535 = vmatpush.bf16.msra.mxu1 %v1209_v57 }
 0x117   : > { %570 = vrot.lane.b32.xlu0 %v1213_v54, %s1314_s22 }
 0x118   : > { %568 = vrot.lane.b32.xlu2 %v1209_v57, %s1314_s22  ;;  %1215 = vmatmul.msk.bf16.vlgmr.msra.gmra.mxu1 %vm506_vm4, %v483_v7 }
 0x11d   : > { %543 = vrot.lane.b32.xlu1 %v1209_v57, %s1313_s21 }
 0x11f   : > { %595 = vrot.lane.b32.xlu0 %v1213_v54, %s1315_s23 }
 0x120   : > { %645 = vrot.lane.b32.xlu2 %v1213_v54, %s1316_s24 }
 0x125   : > { %593 = vrot.lane.b32.xlu1 %v1209_v57, %s1315_s23 }
 0x127   : > { %670 = vrot.lane.b32.xlu0 %v1213_v54, %s1317_s25 }
 0x128   : > { %643 = vrot.lane.b32.xlu2 %v1209_v57, %s1316_s24 }
 0x12d   : > { %620 = vrot.lane.b32.xlu1 %v1213_v54, %s1318_s26 }
 0x12f   : > { %668 = vrot.lane.b32.xlu0 %v1209_v57, %s1317_s25 }
 0x130   : > { %695 = vrot.lane.b32.xlu2 %v1213_v54, %s1671_s27 }
 0x135   : > { %618 = vrot.lane.b32.xlu1 %v1209_v57, %s1318_s26 }
 0x137   : > { %693 = vrot.lane.b32.xlu0 %v1209_v57, %s1671_s27  ;;  %s1204_s27 = sshll.u32 %s1675_s14, 2  ;;  %s1673_s14 = smov 114  }
 0x138   : > { %765 = vperm.xlu2 %1300, %v742_v58   ;;  %s1566_s11 = scalar_lea.vmem %s1670_s10, %s1204_s27 }
 0x13d   : > { %719 = vperm.xlu1 %1299, %v716_v59  }
 0x13f   : > { %800 = vperm.xlu0 %1298, %v777_v60  }
 0x140   : > { %760 = vperm.xlu2 %1300, %v741_v61  }
 0x145   : > { %755 = vperm.xlu1 %1299, %v740_v62  }
 0x147   : > { %790 = vperm.xlu0 %1298, %v775_v63  }
 0x148   : > { %745 = vperm.xlu2 %1300, %v738_v0  }
 0x14d   : > { %795 = vperm.xlu1 %1299, %v776_v1  }
 0x14f   : > { %750 = vperm.xlu0 %1298, %v739_v3  }
 0x150   : > { %785 = vperm.xlu2 %1300, %v774_v4  }
 0x155   : > { %780 = vperm.xlu1 %1299, %v773_v5  }
 0x16a   : > { %v546_v6 = vpop.permute.xlu2 %545 }
 0x16b   : > { %558 = vmatpush.bf16.msra.mxu2 %v546_v6 }
 0x172   : > { %v569_v8 = vpop.permute.xlu2 %568 }
 0x17a   : > { %v646_v10 = vpop.permute.xlu2 %645 }
 0x181   : > { %v503_v9 = vpop.permute.xlu0 %502 }
 0x182   : > { %516 = vmatpush.bf16.msra.mxu0 %v503_v9  ;;  %v644_v16 = vpop.permute.xlu2 %643 }
 0x187   : > { %v501_v11 = vpop.permute.xlu1 %500 }
 0x188   : > { %517 = vmatpush.bf16.msra.mxu0 %v501_v11 }
 0x189   : > { %v571_v15 = vpop.permute.xlu0 %570 }
 0x18a   : > { %583 = vmatpush.bf16.msra.mxu3 %v571_v15  ;;  %v696_v25 = vpop.permute.xlu2 %695 }
 0x18b   : > { %1214 = vmatmul.msk.bf16.vlgmr.msra.gmra.mxu0 %vm506_vm4, %v1205_v12 }
 0x18e   : > { %584 = vmatpush.bf16.msra.mxu3 %v569_v8 }
 0x18f   : > { %v544_v18 = vpop.permute.xlu1 %543 }
 0x190   : > { %559 = vmatpush.bf16.msra.mxu2 %v544_v18 }
 0x191   : > { %v596_v21 = vpop.permute.xlu0 %595  ;;  %1219 = vmatmul.msk.bf16.vlgmr.msra.gmra.mxu3 %vm506_vm4, %v1218_v17 }
 0x192   : > { %608 = vmatpush.bf16.msrb.mxu0 %v596_v21  ;;  %v1533_v34 = vpop.permute.xlu2 %765 }
 0x193   : > { %1217 = vmatmul.msk.bf16.vlgmr.msra.gmra.mxu2 %vm506_vm4, %v1216_v19 }
 0x194   : > { %658 = vmatpush.bf16.msrb.mxu2 %v646_v10 }
 0x195   : > { %v537_v60 = vpop.f32.mrf.mxu1 }
 0x197   : > { %v594_v24 = vpop.permute.xlu1 %593 }
 0x198   : > { %659 = vmatpush.bf16.msrb.mxu2 %v644_v16  ;;  %609 = vmatpush.bf16.msrb.mxu0 %v594_v24 }
 0x199   : > { %v671_v28 = vpop.permute.xlu0 %670 }
 0x19a   : > { %683 = vmatpush.bf16.msrb.mxu3 %v671_v28  ;;  %v761_v39 = vpop.permute.xlu2 %760 }
 0x19b   : > { %1221 = vmatmul.msk.bf16.vlgmr.msrb.gmra.mxu0 %vm506_vm4, %v1220_v26  ;;  %v771_v48 = vmul.f32 %v1269_v22, %v761_v39 }
 0x19c   : > { %708 = vmatpush.bf16.msra.mxu0 %v696_v25 }
 0x19d   : > { %v539_v61 = vpop.f32.mrf.mxu1 }
 0x19f   : > { %v621_v29 = vpop.permute.xlu1 %620 }
 0x1a0   : > { %633 = vmatpush.bf16.msrb.mxu1 %v621_v29 }
 0x1a1   : > { %v669_v32 = vpop.permute.xlu0 %668 }
 0x1a2   : > { %684 = vmatpush.bf16.msrb.mxu3 %v669_v32  ;;  %v1548_v44 = vpop.permute.xlu2 %745 }
 0x1a3   : > { %1225 = vmatmul.msk.bf16.vlgmr.msrb.gmra.mxu2 %vm506_vm4, %v1224_v31 }
 0x1a5   : > { %1227 = vmatmul.msk.bf16.vlgmr.msrb.gmra.mxu3 %vm506_vm4, %v1226_v33 }
 0x1a7   : > { %v619_v35 = vpop.permute.xlu1 %618 }
 0x1a8   : > { %634 = vmatpush.bf16.msrb.mxu1 %v619_v35 }
 0x1a9   : > { %v694_v37 = vpop.permute.xlu0 %693 }
 0x1aa   : > { %709 = vmatpush.bf16.msra.mxu0 %v694_v37 }
 0x1ab   : > { %1223 = vmatmul.msk.bf16.vlgmr.msrb.gmra.mxu1 %vm506_vm4, %v1222_v36 }
 0x1ad   : > { %1229 = vmatmul.msk.bf16.vlgmr.msra.gmra.mxu0 %vm506_vm4, %v1228_v38 }
 0x1af   : > { %v720_v40 = vpop.permute.xlu1 %719 }
 0x1b1   : > { %v1544_v41 = vpop.permute.xlu0 %800 }
 0x1b7   : > { %v756_v42 = vpop.permute.xlu1 %755 }
 0x1b8   : > { %v770_v43 = vmul.f32 %v1268_v14, %v756_v42  ;;  %v786_v14 = vpop.permute.xlu2 %785 }
 0x1b9   : > { %v791_v45 = vpop.permute.xlu0 %790 }
 0x1ba   : > { %v805_v46 = vadd.f32 %v791_v45, %v770_v43  ;;  %v768_v45 = vmul.f32 %v1264_v27, %v1548_v44 }
 0x1bc   : > { %v810_v47 = vmax.f32 %v805_v46, 0.0 }
 0x1be   : > { %v815_v49 = vmul.f32 %v1432_v20, %v810_v47 }
 0x1bf   : > { %v796_v50 = vpop.permute.xlu1 %795 }
 0x1c0   : > { %v820_v51 = vpack.c.bf16 %v815_v49, %v815_v49  ;;  %v806_v52 = vadd.f32 %v796_v50, %v771_v48 }
 0x1c1   : > { %v751_v53 = vpop.permute.xlu0 %750 }
 0x1c2   : > { %v811_v54 = vmax.f32 %v806_v52, 0.0  ;;  %v769_v55 = vmul.f32 %v1265_v30, %v751_v53  ;;  %832 = vrot.lane.b32.xlu1 %v820_v51, %s1311_s19 }
 0x1c4   : > { %v816_v56 = vmul.f32 %v1432_v20, %v811_v54  ;;  %v804_v57 = vadd.f32 %v786_v14, %v769_v55 }
 0x1c6   : > { %v821_v58 = vpack.c.bf16 %v816_v56, %v816_v56  ;;  %v809_v59 = vmax.f32 %v804_v57, 0.0  ;;  %v849_v57 = vld [vmem:[%s1668_s8] sm:$0x3] }
 0x1c7   : > { %v781_v19 = vpop.permute.xlu1 %780 }
 0x1c8   : > { %834 = vrot.lane.b32.xlu2 %v821_v58, %s1311_s19  ;;  %v814_v13 = vmul.f32 %v1432_v20, %v809_v59  ;;  %v803_v47 = vadd.f32 %v781_v19, %v768_v45 }
 0x1ca   : > { %v819_v22 = vpack.c.bf16 %v814_v13, %v814_v13  ;;  %v808_v50 = vmax.f32 %v803_v47, 0.0 }
 0x1cc   : > { %830 = vrot.lane.b32.xlu1 %v819_v22, %s1311_s19  ;;  %v813_v52 = vmul.f32 %v1432_v20, %v808_v50 }
 0x1ce   : > { %v818_v53 = vpack.c.bf16 %v813_v52, %v813_v52 }
 0x208   : > { %v519_v62 = vpop.f32.mrf.mxu0 }
 0x209   : > { %v538_v4 = vadd.f32 %v537_v60, %v519_v62 }
 0x210   : > { %v521_v63 = vpop.f32.mrf.mxu0 }
 0x214   : > { %v586_v30 = vpop.f32.mrf.mxu3 }
 0x216   : > { %v561_v0 = vpop.f32.mrf.mxu2 }
 0x217   : > { %v565_v6 = vadd.f32 %v561_v0, %v538_v4 }
 0x218   : > { %v611_v1 = vpop.f32.mrf.mxu0 }
 0x219   : > { %v590_v9 = vadd.f32 %v586_v30, %v565_v6  ;;  %v1230_v6 = vld [vmem:[%s1668_s8 + $0x2] sm:$0x3] }
 0x21b   : > { %v615_v11 = vadd.f32 %v611_v1, %v590_v9 }
 0x21c   : > { %v588_v3 = vpop.f32.mrf.mxu3 }
 0x21e   : > { %v563_v5 = vpop.f32.mrf.mxu2 }
 0x220   : > { %v613_v7 = vpop.f32.mrf.mxu0 }
 0x222   : > { %v835_v8 = vpop.permute.xlu2 %834 }
 0x223   : > { %846 = vst.msk [vmem:[#allocation3 + $0xc] sm:$0xf] %vm478_vm3, %v835_v8  ;;  %v1241_v8 = vld [vmem:[%s1668_s8 + $0x4] sm:$0x3] }
 0x226   : > { %v661_v10 = vpop.f32.mrf.mxu2 }
 0x228   : > { %v636_v12 = vpop.f32.mrf.mxu1  ;;  %v686_v15 = vpop.f32.mrf.mxu3 }
 0x229   : > { %v640_v16 = vadd.f32 %v636_v12, %v615_v11 }
 0x22a   : > { %v711_v17 = vpop.f32.mrf.mxu0  ;;  %v1261_v36 = vld [vmem:[#allocation3 + $0x8] sm:$0xf0] }
 0x22b   : > { %v665_v18 = vadd.f32 %v661_v10, %v640_v16 }
 0x22d   : > { %v690_v21 = vadd.f32 %v686_v15, %v665_v18 }
 0x22e   : > { %v663_v24 = vpop.f32.mrf.mxu2 }
 0x22f   : > { %v715_v25 = vadd.f32 %v711_v17, %v690_v21  ;;  %v1243_v17 = vld [vmem:[%s1668_s8 + $0x6] sm:$0x3]  ;;  %v1245_v24 = vld [vmem:[%s1668_s8 + $0x8] sm:$0x3] }
 0x230   : > { %v638_v26 = vpop.f32.mrf.mxu1  ;;  %v688_v28 = vpop.f32.mrf.mxu3 }
 0x231   : > { %v722_v29 = vadd.f32 %v720_v40, %v715_v25  ;;  %v1247_v25 = vld [vmem:[%s1668_s8 + $0xa] sm:$0x3] }
 0x232   : > { %v713_v31 = vpop.f32.mrf.mxu0 }
 0x233   : > { %v723_v32 = vmul.f32 %v1432_v20, %v722_v29 }
 0x234   : > { %v833_v33 = vpop.permute.xlu1 %832 }
 0x235   : > { %v724_v35 = vpack.c.bf16 %v723_v32, %v723_v32  ;;  %845 = vst.msk [vmem:[#allocation3 + $0x8] sm:$0xf] %vm478_vm3, %v833_v33  ;;  %v1249_v32 = vld [vmem:[%s1668_s8 + $0xc] sm:$0x3] }
 0x237   : > { %726 = vst.msk [vmem:[%s1566_s11] sm:$0x3] %vm725_vm5, %v724_v35 }
 0x238   : > { %727 = vst.msk [vmem:[#allocation2 + $0x10] sm:$0x3] %vm725_vm5, %v724_v35 }
 0x23c   : > { %v1237_v37 = vld [vmem:[#allocation3 + $0x8] sm:$0xf] }
 0x23d   : > { %v1238_v38 = vor.u32 %v1261_v36, %v1237_v37  ;;  %v1251_v37 = vld [vmem:[%s1668_s8 + $0xe] sm:$0x3] }
 0x23e   : > { %v831_v39 = vpop.permute.xlu1 %830 }
 0x23f   : > { %844 = vst.msk [vmem:[#allocation3 + $0x4] sm:$0xf] %vm478_vm3, %v831_v39  ;;  %954 = vrot.lane.b32.xlu1 %v1238_v38, %s1314_s22  ;;  %v732_v40 = vld [vmem:[#allocation2 + $0x10] sm:$0x3] }
 0x240   : > { %v737_v42 = vunpack.c.l.bf16 %v732_v40  ;;  %v1253_v39 = vld [vmem:[%s1668_s8 + $0x10] sm:$0x3] }
 0x242   : > { %v772_v43 = vmul.f32 %v1533_v34, %v737_v42 }
 0x244   : > { %v807_v46 = vadd.f32 %v1544_v41, %v772_v43 }
 0x246   : > { %v812_v48 = vmax.f32 %v807_v46, 0.0  ;;  %v1260_v55 = vld [vmem:[#allocation3] sm:$0xf0] }
 0x247   : > { %1014 = vrot.lane.b32.xlu1 %v1238_v38, %s1318_s26 }
 0x248   : > { %v817_v49 = vmul.f32 %v1432_v20, %v812_v48 }
 0x24a   : > { %v822_v51 = vpack.c.bf16 %v817_v49, %v817_v49 }
 0x24c   : > { %836 = vrot.lane.b32.xlu0 %v822_v51, %s1311_s19 }
 0x254   : > { %828 = vrot.lane.b32.xlu0 %v818_v53, %s1311_s19 }
 0x25c   : > { %872 = vrot.lane.b32.xlu0 %v1238_v38, %s1312_s20 }
 0x264   : > { %924 = vrot.lane.b32.xlu0 %v1238_v38, %s1313_s21 }
 0x26c   : > { %984 = vrot.lane.b32.xlu0 %v1238_v38, %s1315_s23 }
 0x2b1   : > { %v955_v59 = vpop.permute.xlu1 %954 }
 0x2b9   : > { %v1015_v61 = vpop.permute.xlu1 %1014 }
 0x2be   : > { %v837_v23 = vpop.permute.xlu0 %836 }
 0x2bf   : > { %848 = vst.msk [vmem:[#allocation3 + $0x10] sm:$0x3] %vm847_vm8, %v837_v23 }
 0x2c6   : > { %v854_v27 = vld [vmem:[#allocation3 + $0x10] sm:$0x3]  ;;  %v829_v34 = vpop.permute.xlu0 %828 }
 0x2c7   : > { %v866_v41 = vunpack.c.l.b16 %v854_v27  ;;  %843 = vst.msk [vmem:[#allocation3] sm:$0xf] %vm478_vm3, %v829_v34 }
 0x2c9   : > { %v869_v44 = vpack.c.b16 %v866_v41, %v866_v41 }
 0x2cb   : > { %926 = vrot.lane.b32.xlu1 %v869_v44, %s1313_s21  ;;  %v905_v54 = vsel %vm882_vm9, %v869_v44, 0 }
 0x2cc   : > { %912 = vmatpush.bf16.msra.mxu2 %v905_v54 }
 0x2ce   : > { %v1233_v14 = vld [vmem:[#allocation3] sm:$0xf]  ;;  %v873_v58 = vpop.permute.xlu0 %872 }
 0x2cf   : > { %v1234_v56 = vor.u32 %v1260_v55, %v1233_v14 }
 0x2d0   : > { %913 = vmatpush.bf16.msra.mxu2 %v1238_v38 }
 0x2d1   : > { %982 = vrot.lane.b32.xlu0 %v1234_v56, %s1315_s23  ;;  %870 = vrot.lane.b32.xlu2 %v1234_v56, %s1312_s20 }
 0x2d3   : > { %956 = vrot.lane.b32.xlu1 %v869_v44, %s1314_s22 }
 0x2d4   : > { %914 = vmatpush.bf16.msra.mxu2 %v1234_v56 }
 0x2d6   : > { %v925_v22 = vpop.permute.xlu0 %924 }
 0x2d7   : > { %1240 = vmatmul.msk.bf16.vlgmr.msra.gmra.mxu2 %vm878_vm10, %v849_v57 }
 0x2d9   : > { %986 = vrot.lane.b32.xlu0 %v869_v44, %s1315_s23  ;;  %922 = vrot.lane.b32.xlu2 %v1234_v56, %s1313_s21 }
 0x2db   : > { %1046 = vrot.lane.b32.xlu1 %v869_v44, %s1316_s24 }
 0x2de   : > { %v985_v62 = vpop.permute.xlu0 %984 }
 0x2e1   : > { %1012 = vrot.lane.b32.xlu0 %v1234_v56, %s1318_s26  ;;  %874 = vrot.lane.b32.xlu2 %v869_v44, %s1312_s20 }
 0x2e3   : > { %1076 = vrot.lane.b32.xlu1 %v869_v44, %s1317_s25 }
 0x2e9   : > { %1106 = vrot.lane.b32.xlu0 %v869_v44, %s1673_s14  ;;  %952 = vrot.lane.b32.xlu2 %v1234_v56, %s1314_s22 }
 0x2eb   : > { %1074 = vrot.lane.b32.xlu1 %v1238_v38, %s1317_s25 }
 0x2f1   : > { %1072 = vrot.lane.b32.xlu0 %v1234_v56, %s1317_s25  ;;  %1016 = vrot.lane.b32.xlu2 %v869_v44, %s1318_s26 }
 0x2f3   : > { %1102 = vrot.lane.b32.xlu1 %v1234_v56, %s1673_s14 }
 0x2f9   : > { %1044 = vrot.lane.b32.xlu2 %v1238_v38, %s1316_s24 }
 0x301   : > { %1042 = vrot.lane.b32.xlu2 %v1234_v56, %s1316_s24 }
 0x309   : > { %1104 = vrot.lane.b32.xlu2 %v1238_v38, %s1673_s14 }
 0x311   : > { %1133 = vperm.xlu2 %1300, %v1130_v2  }
 0x32b   : > { %v871_v13 = vpop.permute.xlu2 %870 }
 0x333   : > { %v923_v60 = vpop.permute.xlu2 %922 }
 0x33b   : > { %v875_v63 = vpop.permute.xlu2 %874 }
 0x33c   : > { %v884_v30 = vsel %vm882_vm9, %v875_v63, 0 }
 0x33d   : > { %v927_v0 = vpop.permute.xlu1 %926  ;;  %891 = vmatpush.bf16.msra.mxu1 %v884_v30 }
 0x33e   : > { %v934_v1 = vsel %vm882_vm9, %v927_v0, 0 }
 0x33f   : > { %941 = vmatpush.bf16.msra.mxu3 %v934_v1 }
 0x341   : > { %892 = vmatpush.bf16.msra.mxu1 %v873_v58 }
 0x343   : > { %v953_v3 = vpop.permute.xlu2 %952  ;;  %942 = vmatpush.bf16.msra.mxu3 %v925_v22  ;;  %v983_v4 = vpop.permute.xlu0 %982 }
 0x345   : > { %v957_v5 = vpop.permute.xlu1 %956  ;;  %893 = vmatpush.bf16.msra.mxu1 %v871_v13 }
 0x346   : > { %v964_v7 = vsel %vm882_vm9, %v957_v5, 0 }
 0x347   : > { %943 = vmatpush.bf16.msra.mxu3 %v923_v60  ;;  %971 = vmatpush.bf16.msrb.mxu0 %v964_v7 }
 0x348   : > { %1239 = vmatmul.msk.bf16.vlgmr.msra.gmra.mxu1 %vm878_vm10, %v1230_v6 }
 0x34a   : > { %1242 = vmatmul.msk.bf16.vlgmr.msra.gmra.mxu3 %vm878_vm10, %v1241_v8 }
 0x34b   : > { %972 = vmatpush.bf16.msrb.mxu0 %v955_v59  ;;  %v1017_v9 = vpop.permute.xlu2 %1016  ;;  %v987_v10 = vpop.permute.xlu0 %986 }
 0x34c   : > { %v1024_v11 = vsel %vm882_vm9, %v1017_v9, 0  ;;  %v994_v12 = vsel %vm882_vm9, %v987_v10, 0 }
 0x34d   : > { %v1047_v15 = vpop.permute.xlu1 %1046  ;;  %1001 = vmatpush.bf16.msrb.mxu1 %v994_v12  ;;  %1031 = vmatpush.bf16.msrb.mxu2 %v1024_v11 }
 0x34e   : > { %v1054_v16 = vsel %vm882_vm9, %v1047_v15, 0 }
 0x34f   : > { %973 = vmatpush.bf16.msrb.mxu0 %v953_v3  ;;  %1061 = vmatpush.bf16.msrb.mxu3 %v1054_v16 }
 0x351   : > { %1002 = vmatpush.bf16.msrb.mxu1 %v985_v62  ;;  %1032 = vmatpush.bf16.msrb.mxu2 %v1015_v61 }
 0x352   : > { %1244 = vmatmul.msk.bf16.vlgmr.msrb.gmra.mxu0 %vm878_vm10, %v1243_v17 }
 0x353   : > { %v1045_v18 = vpop.permute.xlu2 %1044  ;;  %v1013_v19 = vpop.permute.xlu0 %1012 }
 0x354   : > { %1062 = vmatpush.bf16.msrb.mxu3 %v1045_v18 }
 0x355   : > { %v1077_v21 = vpop.permute.xlu1 %1076  ;;  %1003 = vmatpush.bf16.msrb.mxu1 %v983_v4  ;;  %1033 = vmatpush.bf16.msrb.mxu2 %v1013_v19 }
 0x356   : > { %v1084_v26 = vsel %vm882_vm9, %v1077_v21, 0 }
 0x357   : > { %1091 = vmatpush.bf16.msra.mxu0 %v1084_v26 }
 0x358   : > { %1246 = vmatmul.msk.bf16.vlgmr.msrb.gmra.mxu1 %vm878_vm10, %v1245_v24  ;;  %1248 = vmatmul.msk.bf16.vlgmr.msrb.gmra.mxu2 %vm878_vm10, %v1247_v25 }
 0x35a   : > { %v916_v40 = vpop.f32.mrf.mxu2 }
 0x35b   : > { %v1043_v28 = vpop.permute.xlu2 %1042  ;;  %v1107_v29 = vpop.permute.xlu0 %1106 }
 0x35c   : > { %v1114_v31 = vsel %vm882_vm9, %v1107_v29, 0  ;;  %1063 = vmatpush.bf16.msrb.mxu3 %v1043_v28 }
 0x35d   : > { %v1075_v33 = vpop.permute.xlu1 %1074  ;;  %1121 = vmatpush.bf16.msra.mxu1 %v1114_v31 }
 0x35e   : > { %1092 = vmatpush.bf16.msra.mxu0 %v1075_v33 }
 0x35f   : > { %1250 = vmatmul.msk.bf16.vlgmr.msrb.gmra.mxu3 %vm878_vm10, %v1249_v32 }
 0x362   : > { %v918_v42 = vpop.f32.mrf.mxu2 }
 0x363   : > { %v1105_v35 = vpop.permute.xlu2 %1104  ;;  %v1073_v36 = vpop.permute.xlu0 %1072 }
 0x364   : > { %1093 = vmatpush.bf16.msra.mxu0 %v1073_v36  ;;  %1122 = vmatpush.bf16.msra.mxu1 %v1105_v35 }
 0x365   : > { %v1103_v38 = vpop.permute.xlu1 %1102 }
 0x367   : > { %1252 = vmatmul.msk.bf16.vlgmr.msra.gmra.mxu0 %vm878_vm10, %v1251_v37 }
 0x368   : > { %1123 = vmatpush.bf16.msra.mxu1 %v1103_v38 }
 0x36b   : > { %1254 = vmatmul.msk.bf16.vlgmr.msra.gmra.mxu1 %vm878_vm10, %v1253_v39  ;;  %v1134_v58 = vpop.permute.xlu2 %1133 }
 0x3c5   : > { %v895_v43 = vpop.f32.mrf.mxu1 }
 0x3c6   : > { %v917_v50 = vadd.f32 %v916_v40, %v895_v43 }
 0x3cd   : > { %v897_v45 = vpop.f32.mrf.mxu1  ;;  %v945_v46 = vpop.f32.mrf.mxu3 }
 0x3ce   : > { %v949_v52 = vadd.f32 %v945_v46, %v917_v50 }
 0x3cf   : > { %v975_v47 = vpop.f32.mrf.mxu0 }
 0x3d0   : > { %v979_v23 = vadd.f32 %v975_v47, %v949_v52 }
 0x3d5   : > { %v1005_v48 = vpop.f32.mrf.mxu1  ;;  %v947_v49 = vpop.f32.mrf.mxu3 }
 0x3d6   : > { %v1009_v34 = vadd.f32 %v1005_v48, %v979_v23 }
 0x3d7   : > { %v977_v51 = vpop.f32.mrf.mxu0 }
 0x3db   : > { %v1035_v53 = vpop.f32.mrf.mxu2 }
 0x3dc   : > { %v1039_v41 = vadd.f32 %v1035_v53, %v1009_v34 }
 0x3dd   : > { %v1007_v27 = vpop.f32.mrf.mxu1 }
 0x3e2   : > { %v1065_v44 = vpop.f32.mrf.mxu3 }
 0x3e3   : > { %v1069_v54 = vadd.f32 %v1065_v44, %v1039_v41  ;;  %v1037_v55 = vpop.f32.mrf.mxu2 }
 0x3e4   : > { %v1095_v14 = vpop.f32.mrf.mxu0 }
 0x3e5   : > { %v1099_v56 = vadd.f32 %v1095_v14, %v1069_v54 }
 0x3e8   : > { %v1125_v2 = vpop.f32.mrf.mxu1 }
 0x3e9   : > { %v1129_v57 = vadd.f32 %v1125_v2, %v1099_v56 }
 0x3ea   : > { %v1067_v59 = vpop.f32.mrf.mxu3 }
 0x3eb   : > { %v1136_v13 = vadd.f32 %v1134_v58, %v1129_v57 }
 0x3ec   : > { %v1097_v22 = vpop.f32.mrf.mxu0 }
 0x3ed   : > { %v1137_v60 = vmul.f32 %v1432_v20, %v1136_v13 }
 0x3ef   : > { %v1138_v61 = vpack.c.bf16 %v1137_v60, %v1137_v60 }
 0x3f0   : > { %v1127_v62 = vpop.f32.mrf.mxu1 }
 0x3f1   : > { %v1140_v63 = vrot.slane %v1138_v61, 6 }
 0x3f3   : > { %1143 = vst.msk [vmem:[%s1566_s11] sm:$0xc] %vm1142_vm11, %v1140_v63 }
 0x3f4 PF: > { %s20_s13 = sadd.s32 1, %s1308_s13  }
 0x3f5   : > { %p17_p4 = scmp.ge.s32.totalorder %s20_s13, 4  }
 0x3f7   :  { %19 = sbr.rel (!%p17_p4) target bundleno = 1 (0x1), region = 106 }

// kernel: fcdensenet_apply.19
= control target key start
LH: loop header
LB: loop body
LE: loop exit
PB: predicated region body
PF: predicated region fallthrough
CT: control target
= control target key end

     0   :  { %s393_s12 = smov 0   ;;  %s428_s0 = inlined_call_operand.vmem [shape: bf16[2,32,64], index: 0, kind: input, shape index: {}]   ;;  %s429_s1 = inlined_call_operand.vmem [shape: bf16[32,32], index: 1, kind: input, shape index: {}]   ;;  %s430_s2 = inlined_call_operand.vmem [shape: f32[32,1], index: 2, kind: input, shape index: {}]   ;;  %s431_s3 = inlined_call_operand.vmem [shape: bf16[2,32,64], index: 3, kind: output, shape index: {}]  }
   0x1 LB: > { %s316_s13 = sadd.s32 4294967295, %s370_s12   ;;  %p320_p0 = scmp.ge.s32.totalorder %s370_s12, 1  ;;  %s370_s12 = sphi %s393_s12, %s13_s12  }
   0x2   : > { %p137_p1 = scmp.lt.s32.totalorder %s370_s12, 3 }
   0x4   : > { %p138_p2 = pnand %p320_p0, %p137_p1 }
   0x5   : > { %p161_p3 = scmp.lt.s32.totalorder (!%p138_p2), %s316_s13, 1 }
   0x6   : > { %141 = sbr.rel (%p138_p2) target bundleno = 162 (0xa2), region = 32 }
   0xb   : > { %v182_v0 = vld [vmem:[%s430_s2 + $0x10] sm:$0xff]  ;;  %v372_v1 = vmov 0   ;;  %v180_v2 = vld [vmem:[%s430_s2] sm:$0xff]  ;;  %s433_s13 = smov (!%p161_p3, %s316_s13), 1  ;;  %v183_v4 = vld [vmem:[%s430_s2 + $0x18] sm:$0xff]  ;;  %vm226_vm0 = vcmask 261120  }
   0xc   : > { %363 = vset.pattern.permute.xlu1 %v372_v1  ;;  %362 = vset.pattern.permute.xlu0 %v372_v1  ;;  %s345_s18 = sshll.u32 %s433_s13, 4  ;;  %v181_v5 = vld [vmem:[%s430_s2 + $0x8] sm:$0xff]  ;;  %v347_v7 = vld [vmem:[%s429_s1] sm:$0xff]  ;;  %vm256_vm1 = vcmask 519168  }
   0xd   : > { %196 = vperm.xlu1 %363, %v182_v0   ;;  %186 = vperm.xlu0 %362, %v180_v2   ;;  %s165_s21 = scalar_lea.vmem %s428_s0, %s345_s18  ;;  %v348_v8 = vld [vmem:[%s429_s1 + $0x8] sm:$0xff]  ;;  %s170_s5 = scalar_lea.vmem %s431_s3, %s345_s18 }
   0xe   : > { %v350_v3 = vld [vmem:[%s165_s21 + $0x8] sm:$0xff]  ;;  %v349_v6 = vld [vmem:[%s165_s21] sm:$0xff] }
   0xf   : > { %239 = vmatpush.bf16.msra.mxu0 %v350_v3  ;;  %351 = vmatpush.bf16.msra.mxu1 %v350_v3 }
  0x13   : > { %240 = vmatpush.bf16.msra.mxu0 %v349_v6  ;;  %352 = vmatpush.bf16.msra.mxu1 %v349_v6 }
  0x15   : > { %201 = vperm.xlu1 %363, %v183_v4   ;;  %191 = vperm.xlu0 %362, %v181_v5  }
  0x16   : > { %341 = vmatmul.msk.bf16.vlgmr.msra.gmra.mxu0 %vm226_vm0, %v347_v7  ;;  %342 = vmatmul.msk.bf16.vlgmr.msra.gmra.mxu1 %vm226_vm0, %v348_v8 }
  0x7f   : > { %v197_v9 = vpop.permute.xlu1 %196  ;;  %v187_v10 = vpop.permute.xlu0 %186 }
  0x87   : > { %v202_v17 = vpop.permute.xlu1 %201  ;;  %v192_v18 = vpop.permute.xlu0 %191 }
  0x93   : > { %v242_v11 = vpop.f32.mrf.mxu0  ;;  %v247_v12 = vpop.f32.mrf.mxu1 }
  0x94   : > { %v243_v13 = vadd.f32 %v242_v11, %v187_v10  ;;  %v248_v14 = vadd.f32 %v247_v12, %v197_v9 }
  0x96   : > { %v252_v15 = vpack.c.bf16 %v243_v13, %v243_v13  ;;  %v254_v16 = vpack.c.bf16 %v248_v14, %v248_v14 }
  0x98   : > { %257 = vst.msk [vmem:[%s170_s5] sm:$0xf] %vm256_vm1, %v252_v15 }
  0x99   : > { %259 = vst.msk [vmem:[%s170_s5 + $0x8] sm:$0xf] %vm256_vm1, %v254_v16 }
  0x9b   : > { %v244_v19 = vpop.f32.mrf.mxu0  ;;  %v249_v20 = vpop.f32.mrf.mxu1 }
  0x9c   : > { %v245_v21 = vadd.f32 %v244_v19, %v192_v18  ;;  %v250_v22 = vadd.f32 %v249_v20, %v202_v17 }
  0x9e   : > { %v253_v23 = vpack.c.bf16 %v245_v21, %v245_v21  ;;  %v255_v24 = vpack.c.bf16 %v250_v22, %v250_v22 }
  0xa0   : > { %258 = vst.msk [vmem:[%s170_s5 + $0x4] sm:$0xf] %vm256_vm1, %v253_v23 }
  0xa1   : > { %260 = vst.msk [vmem:[%s170_s5 + $0xc] sm:$0xf] %vm256_vm1, %v255_v24 }
  0xa2 PF: > { %s13_s12 = sadd.s32 1, %s370_s12  }
  0xa3   : > { %p10_p4 = scmp.ge.s32.totalorder %s13_s12, 4  }
  0xa5   :  { %12 = sbr.rel (!%p10_p4) target bundleno = 1 (0x1), region = 62 }

// kernel: fcdensenet_apply.18
= control target key start
LH: loop header
LB: loop body
LE: loop exit
PB: predicated region body
PF: predicated region fallthrough
CT: control target
= control target key end

     0   :  { %s1482_s13 = smov 0   ;;  %s1813_s0 = inlined_call_operand.vmem [shape: bf16[2,40,100], index: 0, kind: input, shape index: {}]   ;;  %s1814_s1 = inlined_call_operand.vmem [shape: f32[1,100], index: 1, kind: input, shape index: {}]   ;;  %s1815_s2 = inlined_call_operand.vmem [shape: f32[40,1], index: 2, kind: input, shape index: {}]   ;;  %s1816_s3 = inlined_call_operand.vmem [shape: f32[40,1], index: 3, kind: input, shape index: {}]   ;;  %s1817_s4 = inlined_call_operand.vmem [shape: bf16[9,4,40], index: 4, kind: input, shape index: {}]   ;;  %s1818_s5 = inlined_call_operand.vmem [shape: f32[4,1], index: 5, kind: input, shape index: {}]   ;;  %s1819_s6 = inlined_call_operand.vmem [shape: f32[44,1], index: 6, kind: input, shape index: {}]   ;;  %s1820_s7 = inlined_call_operand.vmem [shape: f32[44,1], index: 7, kind: input, shape index: {}]   ;;  %s1821_s8 = inlined_call_operand.vmem [shape: bf16[9,4,44], index: 8, kind: input, shape index: {}]   ;;  %s1822_s9 = inlined_call_operand.vmem [shape: f32[4,1], index: 9, kind: input, shape index: {}]   ;;  %s1823_s10 = inlined_call_operand.vmem [shape: bf16[2,8,100], index: 10, kind: output, shape index: {}]  }
   0x1 LB: > { %s1300_s14 = sadd.s32 4294967295, %s1415_s13   ;;  %p1304_p0 = scmp.ge.s32.totalorder %s1415_s13, 1  ;;  %s1415_s13 = sphi %s1482_s13, %s20_s13  }
   0x2   : > { %p312_p1 = scmp.lt.s32.totalorder %s1415_s13, 3 }
   0x4   : > { %p313_p2 = pnand %p1304_p0, %p312_p1 }
   0x5   : > { %p349_p3 = scmp.lt.s32.totalorder (!%p313_p2), %s1300_s14, 1  ;;  %s1418_s23 = smov (!%p313_p2), 11  }
   0x6   : > { %316 = sbr.rel (%p313_p2) target bundleno = 1030 (0x406), region = 60  ;;  %s1419_s24 = smov (!%p313_p2), 118  }
   0x7   : > { %s1420_s25 = smov (!%p313_p2), 126   ;;  %s1421_s26 = smov (!%p313_p2), 127  }
   0x8   : > { %s1422_s27 = smov (!%p313_p2), 116   ;;  %s1423_s28 = smov (!%p313_p2), 117  }
   0x9   : > { %s1424_s29 = smov (!%p313_p2), 108   ;;  %s1425_s30 = smov (!%p313_p2), 107  }
   0xa   : > { %s1824_s11 = smov (!%p313_p2), 106  }
   0xb   : > { %v399_v0 = vld [vmem:[%s1815_s2 + $0x10] sm:$0xff]  ;;  %v401_v1 = vld [vmem:[%s1815_s2 + $0x20] sm:$0xff]  ;;  %v1417_v2 = vmov 0   ;;  %v400_v4 = vld [vmem:[%s1815_s2 + $0x18] sm:$0xff]  ;;  %s1828_s14 = smov (!%p349_p3, %s1300_s14), 1  ;;  %vm364_vm0 = vcmask 814080  }
   0xc   : > { %1406 = vset.pattern.permute.xlu1 %v1417_v2  ;;  %1405 = vset.pattern.permute.xlu0 %v1417_v2  ;;  %v434_v3 = vld [vmem:[%s1816_s3 + $0x10] sm:$0xff]  ;;  %v436_v5 = vld [vmem:[%s1816_s3 + $0x20] sm:$0xff]  ;;  %v435_v6 = vld [vmem:[%s1816_s3 + $0x18] sm:$0xff]  ;;  %s1386_s17 = smul.u32 20, %s1828_s14  ;;  %vm371_vm1 = vcmask 84992   ;;  %vm379_vm2 = vcmask 995192  }
   0xd   : > { %414 = vperm.xlu1 %1406, %v399_v0   ;;  %424 = vperm.xlu0 %1405, %v401_v1   ;;  %v398_v7 = vld [vmem:[%s1815_s2 + $0x8] sm:$0xff]  ;;  %v397_v8 = vld [vmem:[%s1815_s2] sm:$0xff]  ;;  %374 = vst.msk [vmem:[#allocation3 + $0x8] sm:$0xf] %vm371_vm1, %v1417_v2  ;;  %vm505_vm3 = vcmask 904280   ;;  %vm544_vm4 = vcmask 1043456  }
   0xe   : > { %1407 = vset.pattern.permute.xlu2 %v1417_v2  ;;  %v432_v9 = vld [vmem:[%s1816_s3] sm:$0xff]  ;;  %v433_v10 = vld [vmem:[%s1816_s3 + $0x8] sm:$0xff]  ;;  %s353_s20 = scalar_lea.vmem %s1813_s0, %s1386_s17  ;;  %382 = vst.msk [vmem:[#allocation3 + $0x8] sm:$0xf] %vm379_vm2, %v1417_v2  ;;  %vm540_vm5 = vcmask 326656   ;;  %s1306_s18 = sshll.u32 %s1828_s14, 2 }
   0xf   : > { %449 = vperm.xlu2 %1407, %v434_v3   ;;  %v361_v11 = vld [vmem:[%s353_s20 + $0x8] sm:$0xf]  ;;  %v362_v12 = vld [vmem:[%s353_s20 + $0xc] sm:$0xf]  ;;  %v363_v13 = vld [vmem:[%s353_s20 + $0x10] sm:$0xf]  ;;  %s1719_s21 = scalar_lea.vmem %s1823_s10, %s1306_s18 }
  0x10   : > { %367 = vst.msk [vmem:[#allocation2 + $0x8] sm:$0xf] %vm364_vm0, %v361_v11  ;;  %v359_v14 = vld [vmem:[%s353_s20] sm:$0xf]  ;;  %v360_v15 = vld [vmem:[%s353_s20 + $0x4] sm:$0xf] }
  0x11   : > { %368 = vst.msk [vmem:[#allocation2 + $0xc] sm:$0xf] %vm364_vm0, %v362_v12  ;;  %v1542_v25 = vld [vmem:[%s1814_s1] ss:$0 sm:$0xff]  ;;  %v821_v12 = vld [vmem:[%s1819_s6 + $0x28] sm:$0xf] }
  0x12   : > { %369 = vst.msk [vmem:[#allocation2 + $0x10] sm:$0xf] %vm364_vm0, %v363_v13  ;;  %v792_v13 = vld [vmem:[%s1818_s5] sm:$0xf]  ;;  %vm801_vm6 = vcmask 812032   ;;  %vm377_vm7 = vcmask 82944  }
  0x13   : > { %365 = vst.msk [vmem:[#allocation2] sm:$0xf] %vm364_vm0, %v359_v14  ;;  %v820_v14 = vld [vmem:[%s1819_s6 + $0x20] sm:$0xff]  ;;  %vm385_vm8 = vcmask 993144   ;;  %vm947_vm9 = vcmask 902232   ;;  %vm985_vm10 = vcmask 1045504  }
  0x14   : > { %366 = vst.msk [vmem:[#allocation2 + $0x4] sm:$0xf] %vm364_vm0, %v360_v15  ;;  %v818_v15 = vld [vmem:[%s1819_s6 + $0x10] sm:$0xff]  ;;  %s1826_s14 = smov 106   ;;  %vm981_vm11 = vcmask 359424   ;;  %vm1245_vm12 = vcmask 814082  }
  0x15   : > { %419 = vperm.xlu1 %1406, %v400_v4   ;;  %459 = vperm.xlu0 %1405, %v436_v5   ;;  %372 = vst.msk [vmem:[#allocation3] sm:$0xf] %vm371_vm1, %v1417_v2 }
  0x16   : > { %373 = vst.msk [vmem:[#allocation3 + $0x4] sm:$0xf] %vm371_vm1, %v1417_v2 }
  0x17   : > { %454 = vperm.xlu2 %1407, %v435_v6   ;;  %375 = vst.msk [vmem:[#allocation3 + $0xc] sm:$0xf] %vm371_vm1, %v1417_v2 }
  0x18   : > { %v1533_v16 = vld [vmem:[#allocation2 + $0x8] sm:$0xff]   ;;  %376 = vst.msk [vmem:[#allocation3 + $0x10] sm:$0xf] %vm371_vm1, %v1417_v2 }
  0x19   : > { %v1374_v18 = vunpack.c.l.bf16 %v1533_v16  ;;  %v391_v21 = vld [vmem:[#allocation2 + $0x10] sm:$0xf]  ;;  %v1375_v27 = vunpack.c.h.bf16 %v1533_v16  ;;  %381 = vst.msk [vmem:[#allocation3 + $0x4] sm:$0xf] %vm379_vm2, %v1417_v2 }
  0x1a   : > { %v396_v24 = vunpack.c.l.bf16 %v391_v21  ;;  %380 = vst.msk [vmem:[#allocation3] sm:$0xf] %vm379_vm2, %v1417_v2  ;;  %v819_v21 = vld [vmem:[%s1819_s6 + $0x18] sm:$0xff] }
  0x1b   : > { %v1558_v36 = vld [vmem:[#allocation2] sm:$0xff]   ;;  %383 = vst.msk [vmem:[#allocation3 + $0xc] sm:$0xf] %vm379_vm2, %v1417_v2 }
  0x1c   : > { %384 = vst.msk [vmem:[#allocation3 + $0x10] sm:$0xf] %vm379_vm2, %v1417_v2  ;;  %v1370_v41 = vunpack.c.l.bf16 %v1558_v36  ;;  %v1371_v48 = vunpack.c.h.bf16 %v1558_v36 }
  0x1d   : > { %409 = vperm.xlu1 %1406, %v398_v7   ;;  %404 = vperm.xlu0 %1405, %v397_v8   ;;  %378 = vst.msk [vmem:[#allocation3 + $0x14] sm:$0x3] %vm377_vm7, %v1417_v2 }
  0x1e   : > { %386 = vst.msk [vmem:[#allocation3 + $0x14] sm:$0x3] %vm385_vm8, %v1417_v2 }
  0x1f   : > { %439 = vperm.xlu2 %1407, %v432_v9  }
  0x25   : > { %444 = vperm.xlu0 %1405, %v433_v10  }
  0x69   : > { %v450_v17 = vpop.permute.xlu2 %449 }
  0x71   : > { %v455_v28 = vpop.permute.xlu2 %454 }
  0x79   : > { %v440_v47 = vpop.permute.xlu2 %439 }
  0x7f   : > { %v415_v19 = vpop.permute.xlu1 %414  ;;  %v425_v20 = vpop.permute.xlu0 %424 }
  0x80   : > { %v429_v22 = vmul.f32 %v1374_v18, %v415_v19  ;;  %v431_v29 = vmul.f32 %v425_v20, %v396_v24  ;;  %v863_v19 = vld [vmem:[%s1820_s7 + $0x28] sm:$0xf]  ;;  %v861_v20 = vld [vmem:[%s1820_s7 + $0x18] sm:$0xff]  ;;  %v816_v24 = vld [vmem:[%s1819_s6] sm:$0xff] }
  0x82   : > { %v464_v23 = vadd.f32 %v450_v17, %v429_v22  ;;  %v862_v17 = vld [vmem:[%s1820_s7 + $0x20] sm:$0xff]  ;;  %v860_v22 = vld [vmem:[%s1820_s7 + $0x10] sm:$0xff] }
  0x84   : > { %v469_v26 = vmax.f32 %v464_v23, 0.0  ;;  %v858_v23 = vld [vmem:[%s1820_s7] sm:$0xff] }
  0x86   : > { %v477_v30 = vmul.f32 %v1542_v25, %v469_v26  ;;  %v817_v26 = vld [vmem:[%s1819_s6 + $0x8] sm:$0xff] }
  0x87   : > { %v420_v31 = vpop.permute.xlu1 %419  ;;  %v460_v32 = vpop.permute.xlu0 %459 }
  0x88   : > { %v430_v33 = vmul.f32 %v1375_v27, %v420_v31  ;;  %v466_v34 = vadd.f32 %v460_v32, %v431_v29  ;;  %v482_v35 = vpack.c.bf16 %v477_v30, %v477_v30  ;;  %v859_v29 = vld [vmem:[%s1820_s7 + $0x8] sm:$0xff] }
  0x8a   : > { %v465_v37 = vadd.f32 %v455_v28, %v430_v33  ;;  %v471_v38 = vmax.f32 %v466_v34, 0.0  ;;  %494 = vrot.lane.b32.xlu2 %v482_v35, %s1418_s23 }
  0x8c   : > { %v470_v39 = vmax.f32 %v465_v37, 0.0  ;;  %v479_v40 = vmul.f32 %v1542_v25, %v471_v38  ;;  %v511_v37 = vld [vmem:[%s1817_s4] sm:$0x3] }
  0x8e   : > { %v484_v42 = vpack.c.bf16 %v479_v40, %v479_v40  ;;  %v478_v43 = vmul.f32 %v1542_v25, %v470_v39 }
  0x8f   : > { %v405_v44 = vpop.permute.xlu0 %404  ;;  %v410_v50 = vpop.permute.xlu1 %409 }
  0x90   : > { %v427_v45 = vmul.f32 %v1370_v41, %v405_v44  ;;  %498 = vrot.lane.b32.xlu1 %v484_v42, %s1418_s23  ;;  %v483_v46 = vpack.c.bf16 %v478_v43, %v478_v43  ;;  %v428_v52 = vmul.f32 %v1371_v48, %v410_v50 }
  0x92   : > { %v462_v49 = vadd.f32 %v440_v47, %v427_v45  ;;  %496 = vrot.lane.b32.xlu0 %v483_v46, %s1418_s23 }
  0x94   : > { %v467_v51 = vmax.f32 %v462_v49, 0.0  ;;  %v1318_v49 = vld [vmem:[%s1817_s4 + $0x4] sm:$0x3] }
  0x96   : > { %v475_v53 = vmul.f32 %v1542_v25, %v467_v51 }
  0x97   : > { %v445_v54 = vpop.permute.xlu0 %444 }
  0x98   : > { %v463_v55 = vadd.f32 %v445_v54, %v428_v52  ;;  %v480_v56 = vpack.c.bf16 %v475_v53, %v475_v53  ;;  %v1307_v54 = vld [vmem:[%s1817_s4 + $0x2] sm:$0x3] }
  0x9a   : > { %v468_v57 = vmax.f32 %v463_v55, 0.0  ;;  %490 = vrot.lane.b32.xlu1 %v480_v56, %s1418_s23 }
  0x9c   : > { %v476_v58 = vmul.f32 %v1542_v25, %v468_v57  ;;  %v1320_v57 = vld [vmem:[%s1817_s4 + $0x6] sm:$0x3] }
  0x9e   : > { %v481_v59 = vpack.c.bf16 %v476_v58, %v476_v58 }
  0xa0   : > { %492 = vrot.lane.b32.xlu2 %v481_v59, %s1418_s23 }
  0xe4   : > { %v495_v60 = vpop.permute.xlu2 %494 }
  0xe5   : > { %508 = vst.msk [vmem:[#allocation3 + $0x8] sm:$0xf] %vm505_vm3, %v495_v60 }
  0xec   : > { %v1314_v3 = vld [vmem:[#allocation3 + $0x8] sm:$0xf] }
  0xfa   : > { %v493_v61 = vpop.permute.xlu2 %492 }
  0xfb   : > { %507 = vst.msk [vmem:[#allocation3 + $0x4] sm:$0xf] %vm505_vm3, %v493_v61 }
 0x102   : > { %v499_v62 = vpop.permute.xlu1 %498  ;;  %v1363_v9 = vld [vmem:[#allocation3] sm:$0xf0] }
 0x103   : > { %510 = vst.msk [vmem:[#allocation3 + $0x10] sm:$0xf] %vm505_vm3, %v499_v62  ;;  %v1322_v62 = vld [vmem:[%s1817_s4 + $0x8] sm:$0x3] }
 0x104   : > { %v497_v63 = vpop.permute.xlu0 %496 }
 0x105   : > { %509 = vst.msk [vmem:[#allocation3 + $0xc] sm:$0xf] %vm505_vm3, %v497_v63 }
 0x10a   : > { %v516_v0 = vld [vmem:[#allocation3 + $0x10] sm:$0xf] }
 0x10b   : > { %v528_v1 = vunpack.c.l.b16 %v516_v0 }
 0x10c   : > { %v1364_v4 = vld [vmem:[#allocation3 + $0x8] sm:$0xf0]  ;;  %v491_v5 = vpop.permute.xlu1 %490 }
 0x10d   : > { %v531_v6 = vpack.c.b16 %v528_v1, %v528_v1  ;;  %v1315_v7 = vor.u32 %v1364_v4, %v1314_v3  ;;  %506 = vst.msk [vmem:[#allocation3] sm:$0xf] %vm505_vm3, %v491_v5  ;;  %v1326_v1 = vld [vmem:[%s1817_s4 + $0xc] sm:$0x3]  ;;  %v1328_v4 = vld [vmem:[%s1817_s4 + $0xe] sm:$0x3] }
 0x10f   : > { %616 = vrot.lane.b32.xlu0 %v1315_v7, %s1419_s24  ;;  %586 = vrot.lane.b32.xlu2 %v1315_v7, %s1420_s25  ;;  %v567_v8 = vsel %vm544_vm4, %v531_v6, 0 }
 0x110   : > { %534 = vrot.lane.b32.xlu1 %v1315_v7, %s1421_s26  ;;  %574 = vmatpush.bf16.msra.mxu1 %v567_v8  ;;  %v1324_v8 = vld [vmem:[%s1817_s4 + $0xa] sm:$0x3] }
 0x114   : > { %v1310_v10 = vld [vmem:[#allocation3] sm:$0xf]  ;;  %575 = vmatpush.bf16.msra.mxu1 %v1315_v7 }
 0x115   : > { %v1311_v11 = vor.u32 %v1363_v9, %v1310_v10  ;;  %v1330_v10 = vld [vmem:[%s1817_s4 + $0x10] sm:$0x3] }
 0x117   : > { %588 = vrot.lane.b32.xlu2 %v531_v6, %s1420_s25  ;;  %614 = vrot.lane.b32.xlu0 %v1311_v11, %s1419_s24 }
 0x118   : > { %532 = vrot.lane.b32.xlu1 %v1311_v11, %s1421_s26  ;;  %576 = vmatpush.bf16.msra.mxu1 %v1311_v11 }
 0x11b   : > { %1317 = vmatmul.msk.bf16.vlgmr.msra.gmra.mxu1 %vm540_vm5, %v511_v37 }
 0x11f   : > { %676 = vrot.lane.b32.xlu2 %v1315_v7, %s1422_s27  ;;  %536 = vrot.lane.b32.xlu0 %v531_v6, %s1421_s26 }
 0x120   : > { %584 = vrot.lane.b32.xlu1 %v1311_v11, %s1420_s25 }
 0x127   : > { %648 = vrot.lane.b32.xlu2 %v531_v6, %s1423_s28  ;;  %618 = vrot.lane.b32.xlu0 %v531_v6, %s1419_s24 }
 0x128   : > { %646 = vrot.lane.b32.xlu1 %v1315_v7, %s1423_s28 }
 0x12f   : > { %708 = vrot.lane.b32.xlu2 %v531_v6, %s1424_s29  ;;  %706 = vrot.lane.b32.xlu0 %v1315_v7, %s1424_s29 }
 0x130   : > { %644 = vrot.lane.b32.xlu1 %v1311_v11, %s1423_s28 }
 0x137   : > { %678 = vrot.lane.b32.xlu2 %v531_v6, %s1422_s27  ;;  %738 = vrot.lane.b32.xlu0 %v531_v6, %s1425_s30 }
 0x138   : > { %736 = vrot.lane.b32.xlu1 %v1315_v7, %s1425_s30 }
 0x13f   : > { %734 = vrot.lane.b32.xlu2 %v1311_v11, %s1425_s30  ;;  %704 = vrot.lane.b32.xlu0 %v1311_v11, %s1424_s29 }
 0x140   : > { %768 = vrot.lane.b32.xlu1 %v531_v6, %s1824_s11 }
 0x147   : > { %764 = vrot.lane.b32.xlu2 %v1311_v11, %s1824_s11  ;;  %674 = vrot.lane.b32.xlu0 %v1311_v11, %s1422_s27 }
 0x148   : > { %766 = vrot.lane.b32.xlu1 %v1315_v7, %s1824_s11 }
 0x14f   : > { %849 = vperm.xlu2 %1407, %v821_v12   ;;  %795 = vperm.xlu0 %1405, %v792_v13   ;;  %v808_v12 = vld [vmem:[#allocation2 + $0x10] sm:$0xf] }
 0x150   : > { %844 = vperm.xlu1 %1406, %v820_v14   ;;  %v814_v14 = vunpack.c.l.bf16 %v808_v12 }
 0x157   : > { %834 = vperm.xlu2 %1407, %v818_v15   ;;  %886 = vperm.xlu0 %1405, %v862_v17  }
 0x158   : > { %891 = vperm.xlu1 %1406, %v863_v19  }
 0x15f   : > { %881 = vperm.xlu2 %1407, %v861_v20   ;;  %839 = vperm.xlu0 %1405, %v819_v21  }
 0x160   : > { %876 = vperm.xlu1 %1406, %v860_v22  }
 0x167   : > { %866 = vperm.xlu2 %1407, %v858_v23   ;;  %824 = vperm.xlu0 %1405, %v816_v24  }
 0x168   : > { %829 = vperm.xlu1 %1406, %v817_v26  }
 0x169   : > { %v587_v28 = vpop.permute.xlu2 %586 }
 0x16f   : > { %871 = vperm.xlu0 %1405, %v859_v29  }
 0x171   : > { %v589_v30 = vpop.permute.xlu2 %588 }
 0x172   : > { %v596_v31 = vsel %vm544_vm4, %v589_v30, 0 }
 0x173   : > { %603 = vmatpush.bf16.msra.mxu2 %v596_v31 }
 0x177   : > { %604 = vmatpush.bf16.msra.mxu2 %v587_v28 }
 0x179   : > { %v677_v32 = vpop.permute.xlu2 %676 }
 0x181   : > { %v617_v33 = vpop.permute.xlu0 %616  ;;  %v649_v34 = vpop.permute.xlu2 %648 }
 0x182   : > { %v535_v35 = vpop.permute.xlu1 %534  ;;  %v656_v53 = vsel %vm544_vm4, %v649_v34, 0 }
 0x189   : > { %v709_v38 = vpop.permute.xlu2 %708  ;;  %v615_v39 = vpop.permute.xlu0 %614 }
 0x18a   : > { %v533_v40 = vpop.permute.xlu1 %532  ;;  %v716_v47 = vsel %vm544_vm4, %v709_v38, 0 }
 0x191   : > { %v679_v42 = vpop.permute.xlu2 %678  ;;  %v537_v43 = vpop.permute.xlu0 %536 }
 0x192   : > { %v585_v44 = vpop.permute.xlu1 %584  ;;  %v546_v45 = vsel %vm544_vm4, %v537_v43, 0  ;;  %v686_v46 = vsel %vm544_vm4, %v679_v42, 0 }
 0x193   : > { %605 = vmatpush.bf16.msra.mxu2 %v585_v44  ;;  %553 = vmatpush.bf16.msra.mxu0 %v546_v45 }
 0x194   : > { %693 = vmatpush.bf16.msrb.mxu1 %v686_v46 }
 0x196   : > { %1319 = vmatmul.msk.bf16.vlgmr.msra.gmra.mxu2 %vm540_vm5, %v1318_v49 }
 0x197   : > { %723 = vmatpush.bf16.msrb.mxu2 %v716_v47  ;;  %554 = vmatpush.bf16.msra.mxu0 %v535_v35 }
 0x198   : > { %694 = vmatpush.bf16.msrb.mxu1 %v677_v32  ;;  %v578_v47 = vpop.f32.mrf.mxu1 }
 0x199   : > { %v619_v50 = vpop.permute.xlu0 %618  ;;  %v735_v61 = vpop.permute.xlu2 %734 }
 0x19a   : > { %v647_v51 = vpop.permute.xlu1 %646  ;;  %v626_v52 = vsel %vm544_vm4, %v619_v50, 0 }
 0x19b   : > { %555 = vmatpush.bf16.msra.mxu0 %v533_v40  ;;  %633 = vmatpush.bf16.msra.mxu3 %v626_v52 }
 0x19e   : > { %1316 = vmatmul.msk.bf16.vlgmr.msra.gmra.mxu0 %vm540_vm5, %v1307_v54 }
 0x19f   : > { %663 = vmatpush.bf16.msrb.mxu0 %v656_v53  ;;  %634 = vmatpush.bf16.msra.mxu3 %v617_v33 }
 0x1a0   : > { %v580_v49 = vpop.f32.mrf.mxu1 }
 0x1a1   : > { %v707_v55 = vpop.permute.xlu0 %706  ;;  %v765_v5 = vpop.permute.xlu2 %764 }
 0x1a2   : > { %v645_v56 = vpop.permute.xlu1 %644  ;;  %724 = vmatpush.bf16.msrb.mxu2 %v707_v55 }
 0x1a3   : > { %664 = vmatpush.bf16.msrb.mxu0 %v647_v51  ;;  %635 = vmatpush.bf16.msra.mxu3 %v615_v39 }
 0x1a6   : > { %1321 = vmatmul.msk.bf16.vlgmr.msra.gmra.mxu3 %vm540_vm5, %v1320_v57 }
 0x1a7   : > { %665 = vmatpush.bf16.msrb.mxu0 %v645_v56 }
 0x1a9   : > { %v739_v58 = vpop.permute.xlu0 %738  ;;  %v1688_v9 = vpop.permute.xlu2 %849 }
 0x1aa   : > { %v737_v59 = vpop.permute.xlu1 %736  ;;  %v746_v60 = vsel %vm544_vm4, %v739_v58, 0 }
 0x1ab   : > { %753 = vmatpush.bf16.msrb.mxu3 %v746_v60 }
 0x1ae   : > { %1323 = vmatmul.msk.bf16.vlgmr.msrb.gmra.mxu0 %vm540_vm5, %v1322_v62 }
 0x1af   : > { %754 = vmatpush.bf16.msrb.mxu3 %v737_v59 }
 0x1b1   : > { %v705_v63 = vpop.permute.xlu0 %704  ;;  %v835_v17 = vpop.permute.xlu2 %834 }
 0x1b2   : > { %v769_v0 = vpop.permute.xlu1 %768  ;;  %725 = vmatpush.bf16.msrb.mxu2 %v705_v63  ;;  %v854_v26 = vmul.f32 %v1374_v18, %v835_v17 }
 0x1b3   : > { %v776_v3 = vsel %vm544_vm4, %v769_v0, 0  ;;  %755 = vmatpush.bf16.msrb.mxu3 %v735_v61 }
 0x1b4   : > { %783 = vmatpush.bf16.msra.mxu0 %v776_v3 }
 0x1b5   : > { %1327 = vmatmul.msk.bf16.vlgmr.msrb.gmra.mxu2 %vm540_vm5, %v1326_v1 }
 0x1b6   : > { %1329 = vmatmul.msk.bf16.vlgmr.msrb.gmra.mxu3 %vm540_vm5, %v1328_v4 }
 0x1b9   : > { %v675_v6 = vpop.permute.xlu0 %674  ;;  %v882_v31 = vpop.permute.xlu2 %881 }
 0x1ba   : > { %v767_v7 = vpop.permute.xlu1 %766  ;;  %695 = vmatpush.bf16.msrb.mxu1 %v675_v6 }
 0x1bb   : > { %784 = vmatpush.bf16.msra.mxu0 %v767_v7 }
 0x1bd   : > { %1325 = vmatmul.msk.bf16.vlgmr.msrb.gmra.mxu1 %vm540_vm5, %v1324_v8 }
 0x1bf   : > { %785 = vmatpush.bf16.msra.mxu0 %v765_v5 }
 0x1c1   : > { %v1693_v11 = vpop.permute.xlu0 %795 }
 0x1c2   : > { %1331 = vmatmul.msk.bf16.vlgmr.msra.gmra.mxu0 %vm540_vm5, %v1330_v10  ;;  %v845_v13 = vpop.permute.xlu1 %844 }
 0x1c3   : > { %v856_v15 = vmul.f32 %v845_v13, %v814_v14 }
 0x1c9   : > { %v887_v19 = vpop.permute.xlu0 %886 }
 0x1ca   : > { %v898_v20 = vadd.f32 %v887_v19, %v856_v15  ;;  %v1696_v21 = vpop.permute.xlu1 %891 }
 0x1cc   : > { %v904_v22 = vmax.f32 %v898_v20, 0.0 }
 0x1ce   : > { %v910_v23 = vmul.f32 %v1542_v25, %v904_v22 }
 0x1d0   : > { %v916_v24 = vpack.c.bf16 %v910_v23, %v910_v23 }
 0x1d1   : > { %v840_v28 = vpop.permute.xlu0 %839 }
 0x1d2   : > { %v855_v29 = vmul.f32 %v1375_v27, %v840_v28  ;;  %v877_v30 = vpop.permute.xlu1 %876  ;;  %932 = vrot.lane.b32.xlu1 %v916_v24, %s1418_s23 }
 0x1d3   : > { %v896_v32 = vadd.f32 %v877_v30, %v854_v26 }
 0x1d4   : > { %v897_v33 = vadd.f32 %v882_v31, %v855_v29  ;;  %v867_v29 = vpop.permute.xlu2 %866 }
 0x1d5   : > { %v902_v34 = vmax.f32 %v896_v32, 0.0 }
 0x1d6   : > { %v903_v35 = vmax.f32 %v897_v33, 0.0 }
 0x1d7   : > { %v908_v37 = vmul.f32 %v1542_v25, %v902_v34 }
 0x1d8   : > { %v909_v38 = vmul.f32 %v1542_v25, %v903_v35 }
 0x1d9   : > { %v914_v39 = vpack.c.bf16 %v908_v37, %v908_v37  ;;  %v825_v40 = vpop.permute.xlu0 %824 }
 0x1da   : > { %v915_v42 = vpack.c.bf16 %v909_v38, %v909_v38  ;;  %v830_v16 = vpop.permute.xlu1 %829  ;;  %v852_v22 = vmul.f32 %v1370_v41, %v825_v40 }
 0x1db   : > { %928 = vrot.lane.b32.xlu0 %v914_v39, %s1418_s23  ;;  %v853_v18 = vmul.f32 %v1371_v48, %v830_v16 }
 0x1dc   : > { %930 = vrot.lane.b32.xlu1 %v915_v42, %s1418_s23  ;;  %v894_v31 = vadd.f32 %v867_v29, %v852_v22 }
 0x1de   : > { %v900_v34 = vmax.f32 %v894_v31, 0.0 }
 0x1e0   : > { %v906_v36 = vmul.f32 %v1542_v25, %v900_v34 }
 0x1e1   : > { %v872_v27 = vpop.permute.xlu0 %871 }
 0x1e2   : > { %v895_v43 = vadd.f32 %v872_v27, %v853_v18  ;;  %v912_v41 = vpack.c.bf16 %v906_v36, %v906_v36  ;;  %v1233_v27 = vld [vmem:[%s1822_s9] sm:$0xf] }
 0x1e4   : > { %v901_v44 = vmax.f32 %v895_v43, 0.0 }
 0x1e6   : > { %v907_v45 = vmul.f32 %v1542_v25, %v901_v44 }
 0x1e8   : > { %v913_v46 = vpack.c.bf16 %v907_v45, %v907_v45 }
 0x1ea   : > { %926 = vrot.lane.b32.xlu0 %v913_v46, %s1418_s23 }
 0x219   : > { %v607_v50 = vpop.f32.mrf.mxu2 }
 0x21b   : > { %v557_v51 = vpop.f32.mrf.mxu0 }
 0x21c   : > { %v579_v56 = vadd.f32 %v578_v47, %v557_v51 }
 0x21e   : > { %v611_v48 = vadd.f32 %v607_v50, %v579_v56 }
 0x221   : > { %v609_v52 = vpop.f32.mrf.mxu2 }
 0x222   : > { %v949_v52 = vld [vmem:[%s1821_s8] sm:$0x3] }
 0x223   : > { %v559_v53 = vpop.f32.mrf.mxu0 }
 0x229   : > { %v637_v54 = vpop.f32.mrf.mxu3 }
 0x22a   : > { %v641_v59 = vadd.f32 %v637_v54, %v611_v48 }
 0x22b   : > { %v667_v55 = vpop.f32.mrf.mxu0 }
 0x22c   : > { %v671_v61 = vadd.f32 %v667_v55, %v641_v59  ;;  %v1347_v59 = vld [vmem:[%s1821_s8 + $0x4] sm:$0x3] }
 0x231   : > { %v639_v57 = vpop.f32.mrf.mxu3 }
 0x233   : > { %v669_v58 = vpop.f32.mrf.mxu0 }
 0x238   : > { %v727_v60 = vpop.f32.mrf.mxu2 }
 0x239   : > { %v757_v62 = vpop.f32.mrf.mxu3 }
 0x23a   : > { %v697_v63 = vpop.f32.mrf.mxu1 }
 0x23b   : > { %v701_v0 = vadd.f32 %v697_v63, %v671_v61 }
 0x23d   : > { %v731_v1 = vadd.f32 %v727_v60, %v701_v0 }
 0x23f   : > { %v761_v3 = vadd.f32 %v757_v62, %v731_v1  ;;  %v787_v4 = vpop.f32.mrf.mxu0 }
 0x240   : > { %v729_v5 = vpop.f32.mrf.mxu2 }
 0x241   : > { %v791_v6 = vadd.f32 %v787_v4, %v761_v3  ;;  %v759_v7 = vpop.f32.mrf.mxu3  ;;  %v1349_v4 = vld [vmem:[%s1821_s8 + $0x6] sm:$0x3] }
 0x242   : > { %v699_v8 = vpop.f32.mrf.mxu1 }
 0x243   : > { %v798_v10 = vadd.f32 %v1693_v11, %v791_v6  ;;  %v1332_v6 = vld [vmem:[%s1821_s8 + $0x2] sm:$0x3] }
 0x244   : > { %v933_v12 = vpop.permute.xlu1 %932 }
 0x245   : > { %v799_v13 = vmul.f32 %v1542_v25, %v798_v10  ;;  %946 = vst.msk [vmem:[#allocation3 + $0x10] sm:$0xf] %vm505_vm3, %v933_v12 }
 0x247   : > { %v800_v14 = vpack.c.bf16 %v799_v13, %v799_v13  ;;  %v789_v15 = vpop.f32.mrf.mxu0 }
 0x248   : > { %v1357_v15 = vld [vmem:[%s1821_s8 + $0xe] sm:$0x3] }
 0x249   : > { %802 = vst.msk [vmem:[%s1719_s21] sm:$0x3] %vm801_vm6, %v800_v14 }
 0x24a   : > { %803 = vst.msk [vmem:[#allocation2 + $0x14] sm:$0x3] %vm801_vm6, %v800_v14 }
 0x24d   : > { %v929_v17 = vpop.permute.xlu0 %928 }
 0x24e   : > { %944 = vst.msk [vmem:[#allocation3 + $0x8] sm:$0xf] %vm505_vm3, %v929_v17  ;;  %v931_v11 = vpop.permute.xlu1 %930  ;;  %v1351_v17 = vld [vmem:[%s1821_s8 + $0x8] sm:$0x3] }
 0x24f   : > { %945 = vst.msk [vmem:[#allocation3 + $0xc] sm:$0xf] %vm505_vm3, %v931_v11  ;;  %v1353_v11 = vld [vmem:[%s1821_s8 + $0xa] sm:$0x3] }
 0x251   : > { %v809_v19 = vld [vmem:[#allocation2 + $0x14] sm:$0x3] }
 0x252   : > { %v815_v20 = vunpack.c.l.bf16 %v809_v19 }
 0x254   : > { %v857_v23 = vmul.f32 %v1688_v9, %v815_v20  ;;  %v1355_v20 = vld [vmem:[%s1821_s8 + $0xc] sm:$0x3] }
 0x255   : > { %v1339_v24 = vld [vmem:[#allocation3 + $0x8] sm:$0xf] }
 0x256   : > { %v1366_v26 = vld [vmem:[#allocation3 + $0x8] sm:$0xf0]  ;;  %v899_v28 = vadd.f32 %v1696_v21, %v857_v23  ;;  %v1343_v21 = vld [vmem:[#allocation3 + $0x10] sm:$0xf] }
 0x257   : > { %v1340_v30 = vor.u32 %v1366_v26, %v1339_v24  ;;  %v1359_v24 = vld [vmem:[%s1821_s8 + $0x10] sm:$0x3] }
 0x258   : > { %v905_v32 = vmax.f32 %v899_v28, 0.0 }
 0x259   : > { %1057 = vrot.lane.b32.xlu0 %v1340_v30, %s1419_s24 }
 0x25a   : > { %v911_v33 = vmul.f32 %v1542_v25, %v905_v32 }
 0x25c   : > { %v927_v35 = vpop.permute.xlu0 %926  ;;  %v917_v37 = vpack.c.bf16 %v911_v33, %v911_v33 }
 0x25d   : > { %943 = vst.msk [vmem:[#allocation3 + $0x4] sm:$0xf] %vm505_vm3, %v927_v35 }
 0x25e   : > { %934 = vrot.lane.b32.xlu2 %v917_v37, %s1418_s23 }
 0x261   : > { %1117 = vrot.lane.b32.xlu0 %v1340_v30, %s1422_s27 }
 0x264   : > { %v1365_v42 = vld [vmem:[#allocation3] sm:$0xf0] }
 0x266   : > { %924 = vrot.lane.b32.xlu2 %v912_v41, %s1418_s23 }
 0x26e   : > { %975 = vrot.lane.b32.xlu2 %v1340_v30, %s1421_s26 }
 0x276   : > { %1027 = vrot.lane.b32.xlu2 %v1340_v30, %s1420_s25 }
 0x27e   : > { %1087 = vrot.lane.b32.xlu2 %v1340_v30, %s1423_s28 }
 0x2b8   : > { %v935_v9 = vpop.permute.xlu2 %934 }
 0x2b9   : > { %948 = vst.msk [vmem:[#allocation3 + $0x14] sm:$0x3] %vm947_vm9, %v935_v9 }
 0x2c0   : > { %v1367_v38 = vld [vmem:[#allocation3 + $0x10] sm:$0x30]  ;;  %v925_v39 = vpop.permute.xlu2 %924 }
 0x2c1   : > { %v1344_v40 = vor.u32 %v1367_v38, %v1343_v21  ;;  %942 = vst.msk [vmem:[#allocation3] sm:$0xf] %vm505_vm3, %v925_v39 }
 0x2c3   : > { %1029 = vrot.lane.b32.xlu0 %v1344_v40, %s1420_s25  ;;  %v1008_v2 = vsel %vm985_vm10, %v1344_v40, 0 }
 0x2c4   : > { %1015 = vmatpush.bf16.msra.mxu2 %v1008_v2 }
 0x2c8   : > { %v1335_v16 = vld [vmem:[#allocation3] sm:$0xf]  ;;  %1016 = vmatpush.bf16.msra.mxu2 %v1340_v30  ;;  %v976_v43 = vpop.permute.xlu2 %975 }
 0x2c9   : > { %v1336_v18 = vor.u32 %v1365_v42, %v1335_v16 }
 0x2cb   : > { %973 = vrot.lane.b32.xlu1 %v1336_v18, %s1421_s26  ;;  %1059 = vrot.lane.b32.xlu0 %v1344_v40, %s1419_s24  ;;  %v1058_v44 = vpop.permute.xlu0 %1057 }
 0x2cc   : > { %1085 = vrot.lane.b32.xlu2 %v1336_v18, %s1423_s28  ;;  %1017 = vmatpush.bf16.msra.mxu2 %v1336_v18 }
 0x2cf   : > { %1346 = vmatmul.msk.bf16.vlgmr.msra.gmra.mxu2 %vm981_vm11, %v949_v52 }
 0x2d0   : > { %v1028_v45 = vpop.permute.xlu2 %1027 }
 0x2d3   : > { %1025 = vrot.lane.b32.xlu1 %v1336_v18, %s1420_s25  ;;  %1149 = vrot.lane.b32.xlu0 %v1344_v40, %s1424_s29  ;;  %v1118_v46 = vpop.permute.xlu0 %1117 }
 0x2d4   : > { %1089 = vrot.lane.b32.xlu2 %v1344_v40, %s1423_s28 }
 0x2d8   : > { %v1088_v47 = vpop.permute.xlu2 %1087 }
 0x2db   : > { %977 = vrot.lane.b32.xlu1 %v1344_v40, %s1421_s26  ;;  %1179 = vrot.lane.b32.xlu0 %v1344_v40, %s1425_s30 }
 0x2dc   : > { %1115 = vrot.lane.b32.xlu2 %v1336_v18, %s1422_s27 }
 0x2e3   : > { %1055 = vrot.lane.b32.xlu1 %v1336_v18, %s1419_s24  ;;  %1177 = vrot.lane.b32.xlu0 %v1340_v30, %s1425_s30 }
 0x2e4   : > { %1209 = vrot.lane.b32.xlu2 %v1344_v40, %s1826_s14 }
 0x2eb   : > { %1119 = vrot.lane.b32.xlu1 %v1344_v40, %s1422_s27  ;;  %1205 = vrot.lane.b32.xlu0 %v1336_v18, %s1826_s14 }
 0x2ec   : > { %1175 = vrot.lane.b32.xlu2 %v1336_v18, %s1425_s30 }
 0x2f3   : > { %1147 = vrot.lane.b32.xlu1 %v1340_v30, %s1424_s29 }
 0x2fb   : > { %1145 = vrot.lane.b32.xlu1 %v1336_v18, %s1424_s29 }
 0x303   : > { %1207 = vrot.lane.b32.xlu1 %v1340_v30, %s1826_s14 }
 0x30b   : > { %1236 = vperm.xlu1 %1406, %v1233_v27  }
 0x326   : > { %v1086_v50 = vpop.permute.xlu2 %1085 }
 0x32e   : > { %v1090_v56 = vpop.permute.xlu2 %1089 }
 0x32f   : > { %v1097_v5 = vsel %vm985_vm10, %v1090_v56, 0 }
 0x335   : > { %v1030_v49 = vpop.permute.xlu0 %1029 }
 0x336   : > { %v1037_v51 = vsel %vm985_vm10, %v1030_v49, 0  ;;  %v1116_v60 = vpop.permute.xlu2 %1115 }
 0x337   : > { %1044 = vmatpush.bf16.msra.mxu3 %v1037_v51 }
 0x33b   : > { %1045 = vmatpush.bf16.msra.mxu3 %v1028_v45 }
 0x33d   : > { %v1060_v53 = vpop.permute.xlu0 %1059  ;;  %v974_v54 = vpop.permute.xlu1 %973 }
 0x33e   : > { %v1067_v55 = vsel %vm985_vm10, %v1060_v53, 0  ;;  %v1210_v0 = vpop.permute.xlu2 %1209 }
 0x33f   : > { %1074 = vmatpush.bf16.msrb.mxu0 %v1067_v55  ;;  %v1217_v13 = vsel %vm985_vm10, %v1210_v0, 0 }
 0x343   : > { %1075 = vmatpush.bf16.msrb.mxu0 %v1058_v44 }
 0x345   : > { %v1150_v57 = vpop.permute.xlu0 %1149  ;;  %v1026_v48 = vpop.permute.xlu1 %1025 }
 0x346   : > { %v1157_v58 = vsel %vm985_vm10, %v1150_v57, 0  ;;  %1046 = vmatpush.bf16.msra.mxu3 %v1026_v48  ;;  %v1176_v10 = vpop.permute.xlu2 %1175 }
 0x349   : > { %1348 = vmatmul.msk.bf16.vlgmr.msra.gmra.mxu3 %vm981_vm11, %v1347_v59 }
 0x34a   : > { %1164 = vmatpush.bf16.msrb.mxu3 %v1157_v58 }
 0x34d   : > { %v978_v61 = vpop.permute.xlu1 %977  ;;  %v1180_v63 = vpop.permute.xlu0 %1179 }
 0x34e   : > { %v987_v62 = vsel %vm985_vm10, %v978_v61, 0  ;;  %v1187_v3 = vsel %vm985_vm10, %v1180_v63, 0 }
 0x34f   : > { %994 = vmatpush.bf16.msra.mxu1 %v987_v62 }
 0x352   : > { %v1019_v26 = vpop.f32.mrf.mxu2 }
 0x353   : > { %995 = vmatpush.bf16.msra.mxu1 %v976_v43 }
 0x355   : > { %v1056_v1 = vpop.permute.xlu1 %1055  ;;  %v1178_v7 = vpop.permute.xlu0 %1177 }
 0x356   : > { %1076 = vmatpush.bf16.msrb.mxu0 %v1056_v1 }
 0x357   : > { %996 = vmatpush.bf16.msra.mxu1 %v974_v54 }
 0x359   : > { %1350 = vmatmul.msk.bf16.vlgmr.msrb.gmra.mxu0 %vm981_vm11, %v1349_v4 }
 0x35a   : > { %1194 = vmatpush.bf16.msra.mxu0 %v1187_v3  ;;  %1345 = vmatmul.msk.bf16.vlgmr.msra.gmra.mxu1 %vm981_vm11, %v1332_v6  ;;  %v1021_v28 = vpop.f32.mrf.mxu2 }
 0x35b   : > { %1104 = vmatpush.bf16.msrb.mxu1 %v1097_v5 }
 0x35d   : > { %v1120_v8 = vpop.permute.xlu1 %1119  ;;  %v1206_v23 = vpop.permute.xlu0 %1205 }
 0x35e   : > { %1195 = vmatpush.bf16.msra.mxu0 %v1178_v7  ;;  %v1127_v12 = vsel %vm985_vm10, %v1120_v8, 0 }
 0x35f   : > { %1105 = vmatpush.bf16.msrb.mxu1 %v1088_v47  ;;  %1134 = vmatpush.bf16.msrb.mxu2 %v1127_v12 }
 0x362   : > { %1196 = vmatpush.bf16.msra.mxu0 %v1176_v10 }
 0x363   : > { %1106 = vmatpush.bf16.msrb.mxu1 %v1086_v50  ;;  %1135 = vmatpush.bf16.msrb.mxu2 %v1118_v46 }
 0x365   : > { %v1148_v14 = vpop.permute.xlu1 %1147 }
 0x366   : > { %1165 = vmatpush.bf16.msrb.mxu3 %v1148_v14 }
 0x367   : > { %1224 = vmatpush.bf16.msra.mxu1 %v1217_v13  ;;  %1136 = vmatpush.bf16.msrb.mxu2 %v1116_v60 }
 0x369   : > { %1358 = vmatmul.msk.bf16.vlgmr.msra.gmra.mxu0 %vm981_vm11, %v1357_v15 }
 0x36a   : > { %1352 = vmatmul.msk.bf16.vlgmr.msrb.gmra.mxu1 %vm981_vm11, %v1351_v17  ;;  %1354 = vmatmul.msk.bf16.vlgmr.msrb.gmra.mxu2 %vm981_vm11, %v1353_v11 }
 0x36d   : > { %v1146_v19 = vpop.permute.xlu1 %1145 }
 0x36e   : > { %1166 = vmatpush.bf16.msrb.mxu3 %v1146_v19 }
 0x371   : > { %1356 = vmatmul.msk.bf16.vlgmr.msrb.gmra.mxu3 %vm981_vm11, %v1355_v20 }
 0x375   : > { %v1208_v22 = vpop.permute.xlu1 %1207 }
 0x376   : > { %1225 = vmatpush.bf16.msra.mxu1 %v1208_v22 }
 0x37a   : > { %1226 = vmatpush.bf16.msra.mxu1 %v1206_v23 }
 0x37d   : > { %1360 = vmatmul.msk.bf16.vlgmr.msra.gmra.mxu1 %vm981_vm11, %v1359_v24  ;;  %v1237_v45 = vpop.permute.xlu1 %1236 }
 0x3cc   : > { %v1048_v29 = vpop.f32.mrf.mxu3 }
 0x3d4   : > { %v1050_v30 = vpop.f32.mrf.mxu3 }
 0x3d6   : > { %v1078_v31 = vpop.f32.mrf.mxu0 }
 0x3d7   : > { %v998_v32 = vpop.f32.mrf.mxu1 }
 0x3d8   : > { %v1020_v37 = vadd.f32 %v1019_v26, %v998_v32 }
 0x3da   : > { %v1052_v41 = vadd.f32 %v1048_v29, %v1020_v37 }
 0x3dc   : > { %v1082_v38 = vadd.f32 %v1078_v31, %v1052_v41 }
 0x3de   : > { %v1080_v33 = vpop.f32.mrf.mxu0 }
 0x3df   : > { %v1000_v34 = vpop.f32.mrf.mxu1 }
 0x3e6   : > { %v1198_v35 = vpop.f32.mrf.mxu0 }
 0x3e7   : > { %v1108_v36 = vpop.f32.mrf.mxu1 }
 0x3e8   : > { %v1112_v40 = vadd.f32 %v1108_v36, %v1082_v38 }
 0x3ed   : > { %v1138_v9 = vpop.f32.mrf.mxu2 }
 0x3ee   : > { %v1200_v21 = vpop.f32.mrf.mxu0  ;;  %v1142_v2 = vadd.f32 %v1138_v9, %v1112_v40 }
 0x3ef   : > { %v1110_v39 = vpop.f32.mrf.mxu1 }
 0x3f4   : > { %v1168_v42 = vpop.f32.mrf.mxu3 }
 0x3f5   : > { %v1172_v16 = vadd.f32 %v1168_v42, %v1142_v2  ;;  %v1140_v18 = vpop.f32.mrf.mxu2 }
 0x3f7   : > { %v1202_v27 = vadd.f32 %v1198_v35, %v1172_v16 }
 0x3fa   : > { %v1228_v43 = vpop.f32.mrf.mxu1 }
 0x3fb   : > { %v1232_v44 = vadd.f32 %v1228_v43, %v1202_v27 }
 0x3fc   : > { %v1170_v46 = vpop.f32.mrf.mxu3 }
 0x3fd   : > { %v1239_v47 = vadd.f32 %v1237_v45, %v1232_v44 }
 0x3ff   : > { %v1240_v49 = vmul.f32 %v1542_v25, %v1239_v47 }
 0x401   : > { %v1241_v50 = vpack.c.bf16 %v1240_v49, %v1240_v49 }
 0x402   : > { %v1230_v51 = vpop.f32.mrf.mxu1 }
 0x403   : > { %v1243_v52 = vrot.slane %v1241_v50, 6 }
 0x405   : > { %1246 = vst.msk [vmem:[%s1719_s21] sm:$0xc] %vm1245_vm12, %v1243_v52 }
 0x406 PF: > { %s20_s13 = sadd.s32 1, %s1415_s13  }
 0x407   : > { %p17_p4 = scmp.ge.s32.totalorder %s20_s13, 4  }
 0x409   :  { %19 = sbr.rel (!%p17_p4) target bundleno = 1 (0x1), region = 106 }

// kernel: fcdensenet_apply.21
= control target key start
LH: loop header
LB: loop body
LE: loop exit
PB: predicated region body
PF: predicated region fallthrough
CT: control target
= control target key end

     0   :  { %s436_s14 = smov 0   ;;  %s460_s0 = inlined_call_operand.vmem [shape: bf16[2,40,324], index: 0, kind: input, shape index: {}]   ;;  %s461_s1 = inlined_call_operand.vmem [shape: bf16[1,40], index: 1, kind: input, shape index: {}]   ;;  %s462_s2 = inlined_call_operand.<no memory space> [shape: f32[1,1], index: 2, kind: input, shape index: {}]   ;;  %s463_s3 = inlined_call_operand.vmem [shape: f32[2,1,324], index: 3, kind: output, shape index: {}]  }
   0x1   :  { %v8_v0 = vstv %s462_s2 }
   0x2   :  { %9 = vst [vmem:[#allocation2] sm:$0x1] %v8_v0 }
   0x3 LB: > { %s351_s15 = sadd.s32 4294967295, %s410_s14   ;;  %p355_p0 = scmp.ge.s32.totalorder %s410_s14, 1  ;;  %s410_s14 = sphi %s436_s14, %s15_s14  }
   0x4   : > { %p139_p1 = scmp.lt.s32.totalorder %s410_s14, 3 }
   0x6   : > { %p140_p2 = pnand %p355_p0, %p139_p1 }
   0x7   : > { %p162_p3 = scmp.lt.s32.totalorder (!%p140_p2), %s351_s15, 1 }
   0x8   : > { %143 = sbr.rel (%p140_p2) target bundleno = 175 (0xaf), region = 32 }
   0xd   : > { %v412_v1 = vmov 0   ;;  %v183_v2 = vld [vmem:[#allocation2] sm:$0x1]  ;;  %s465_s15 = smov (!%p162_p3, %s351_s15), 1  ;;  %vm234_vm0 = vcmask 1043456   ;;  %vm230_vm1 = vcmask 326656   ;;  %v293_v40 = vlaneseq }
   0xe   : > { %403 = vset.pattern.permute.xlu0 %v412_v1  ;;  %s392_s2 = smul.u32 60, %s465_s15  ;;  %v172_v32 = vld [vmem:[%s461_s1] sm:$0x1]  ;;  %vm288_vm2 = vcmask 1040384   ;;  %vm290_vm3 = vcmask 1041408  }
   0xf   : > { %186 = vperm.xlu0 %403, %v183_v2   ;;  %s393_s21 = smul.u32 3, %s465_s15  ;;  %vm295_vm4 = vcmp.lt.s32.totalorder %v293_v40, 324 }
  0x10   : > { %s166_s18 = scalar_lea.vmem %s460_s0, %s392_s2 }
  0x11   : > { %v181_v3 = vld [vmem:[%s166_s18 + $0x30] sm:$0xff]  ;;  %v182_v4 = vld [vmem:[%s166_s18 + $0x38] sm:$0xf]  ;;  %v390_v12 = vld [vmem:[%s166_s18 + $0x20] sm:$0xf0]  ;;  %s170_s24 = scalar_lea.vmem %s463_s3, %s393_s21 }
  0x12   : > { %v212_v5 = vunpack.c.l.b16 %v181_v3  ;;  %v213_v6 = vunpack.c.h.b16 %v181_v3  ;;  %v214_v7 = vunpack.c.l.b16 %v182_v4  ;;  %v371_v8 = vld [vmem:[%s166_s18 + $0x18] sm:$0xf]  ;;  %v389_v13 = vld [vmem:[%s166_s18 + $0x1c] sm:$0xf]  ;;  %v373_v14 = vld [vmem:[%s166_s18 + $0x24] sm:$0xf0] }
  0x13   : > { %v379_v15 = vld [vmem:[%s166_s18 + $0x20] sm:$0xf]  ;;  %v391_v16 = vld [vmem:[%s166_s18 + $0x28] sm:$0xf0]  ;;  %v372_v20 = vor.u32 %v390_v12, %v371_v8  ;;  %v376_v21 = vor.u32 %v389_v13, %v373_v14  ;;  %v386_v25 = vld [vmem:[%s166_s18 + $0x4] sm:$0xf] }
  0x14   : > { %v221_v9 = vpack.c.b16 %v212_v5, %v212_v5  ;;  %v222_v10 = vpack.c.b16 %v213_v6, %v213_v6  ;;  %v223_v11 = vpack.c.b16 %v214_v7, %v214_v7  ;;  %v359_v22 = vld [vmem:[%s166_s18] sm:$0xf]  ;;  %v380_v23 = vor.u32 %v391_v16, %v379_v15  ;;  %v387_v24 = vld [vmem:[%s166_s18 + $0x8] sm:$0xf0]  ;;  %v361_v26 = vld [vmem:[%s166_s18 + $0xc] sm:$0xf0] }
  0x15   : > { %v367_v27 = vld [vmem:[%s166_s18 + $0x8] sm:$0xf]  ;;  %v388_v28 = vld [vmem:[%s166_s18 + $0x10] sm:$0xf0]  ;;  %v360_v29 = vor.u32 %v387_v24, %v359_v22  ;;  %v364_v30 = vor.u32 %v386_v25, %v361_v26 }
  0x16   : > { %v236_v17 = vsel %vm234_vm0, %v221_v9, 0  ;;  %v239_v18 = vsel %vm234_vm0, %v222_v10, 0  ;;  %v242_v19 = vsel %vm234_vm0, %v223_v11, 0  ;;  %v368_v31 = vor.u32 %v388_v28, %v367_v27 }
  0x17   : > { %249 = vmatpush.bf16.msra.mxu0 %v236_v17  ;;  %262 = vmatpush.bf16.msra.mxu1 %v239_v18 }
  0x18   : > { %275 = vmatpush.bf16.msra.mxu2 %v242_v19 }
  0x1b   : > { %250 = vmatpush.bf16.msra.mxu0 %v372_v20  ;;  %263 = vmatpush.bf16.msra.mxu1 %v376_v21 }
  0x1c   : > { %276 = vmatpush.bf16.msra.mxu2 %v380_v23 }
  0x1f   : > { %251 = vmatpush.bf16.msra.mxu0 %v360_v29  ;;  %264 = vmatpush.bf16.msra.mxu1 %v364_v30 }
  0x20   : > { %277 = vmatpush.bf16.msra.mxu2 %v368_v31 }
  0x22   : > { %381 = vmatmul.msk.bf16.vlgmr.msra.gmra.mxu0 %vm230_vm1, %v172_v32  ;;  %382 = vmatmul.msk.bf16.vlgmr.msra.gmra.mxu1 %vm230_vm1, %v172_v32 }
  0x23   : > { %383 = vmatmul.msk.bf16.vlgmr.msra.gmra.mxu2 %vm230_vm1, %v172_v32 }
  0x81   : > { %v187_v33 = vpop.permute.xlu0 %186 }
  0x82   : > { %v189_v34 = vperm.slane %v187_v33, 0 }
  0x9f   : > { %v253_v35 = vpop.f32.mrf.mxu0  ;;  %v266_v36 = vpop.f32.mrf.mxu1 }
  0xa0   : > { %v267_v37 = vadd.f32 %v266_v36, %v189_v34  ;;  %v254_v38 = vadd.f32 %v253_v35, %v189_v34 }
  0xa2   : > { %v286_v39 = vrot.slane %v267_v37, 7 }
  0xa4   : > { %v289_v45 = vsel %vm288_vm2, %v254_v38, %v286_v39 }
  0xa6   : > { %v279_v41 = vpop.f32.mrf.mxu2 }
  0xa7   : > { %v280_v42 = vadd.f32 %v279_v41, %v189_v34  ;;  %v255_v43 = vpop.f32.mrf.mxu0  ;;  %v268_v44 = vpop.f32.mrf.mxu1 }
  0xa9   : > { %v287_v46 = vrot.slane %v280_v42, 6 }
  0xab   : > { %v291_v47 = vsel %vm290_vm3, %v289_v45, %v287_v46 }
  0xac   : > { %297 = vst.msk [vmem:[%s170_s24] sm:$0x7] %vm295_vm4, %v291_v47 }
  0xae   : > { %v281_v48 = vpop.f32.mrf.mxu2 }
  0xaf PF: > { %s15_s14 = sadd.s32 1, %s410_s14  }
  0xb0   : > { %p12_p4 = scmp.ge.s32.totalorder %s15_s14, 4  }
  0xb2   :  { %14 = sbr.rel (!%p12_p4) target bundleno = 3 (0x3), region = 62 }

// kernel: fcdensenet_apply.20
= control target key start
LH: loop header
LB: loop body
LE: loop exit
PB: predicated region body
PF: predicated region fallthrough
CT: control target
= control target key end

     0   :  { %s2575_s13 = smov 0   ;;  %s3514_s0 = inlined_call_operand.vmem [shape: bf16[2,32,324], index: 0, kind: input, shape index: {}]   ;;  %s3515_s1 = inlined_call_operand.vmem [shape: f32[1,324], index: 1, kind: input, shape index: {}]   ;;  %s3516_s2 = inlined_call_operand.vmem [shape: f32[32,1], index: 2, kind: input, shape index: {}]   ;;  %s3517_s3 = inlined_call_operand.vmem [shape: f32[32,1], index: 3, kind: input, shape index: {}]   ;;  %s3518_s4 = inlined_call_operand.vmem [shape: bf16[9,4,32], index: 4, kind: input, shape index: {}]   ;;  %s3519_s5 = inlined_call_operand.vmem [shape: f32[4,1], index: 5, kind: input, shape index: {}]   ;;  %s3520_s6 = inlined_call_operand.vmem [shape: f32[36,1], index: 6, kind: input, shape index: {}]   ;;  %s3521_s7 = inlined_call_operand.vmem [shape: f32[36,1], index: 7, kind: input, shape index: {}]   ;;  %s3522_s8 = inlined_call_operand.vmem [shape: bf16[9,4,36], index: 8, kind: input, shape index: {}]   ;;  %s3523_s9 = inlined_call_operand.vmem [shape: f32[4,1], index: 9, kind: input, shape index: {}]   ;;  %s3524_s10 = inlined_call_operand.vmem [shape: bf16[2,40,324], index: 10, kind: output, shape index: {}]  }
   0x1 LB: > { %s2340_s14 = sadd.s32 4294967295, %s2508_s13   ;;  %p2344_p0 = scmp.ge.s32.totalorder %s2508_s13, 1  ;;  %s2508_s13 = sphi %s2575_s13, %s20_s13  }
   0x2   : > { %p312_p1 = scmp.lt.s32.totalorder %s2508_s13, 3 }
   0x4   : > { %p313_p2 = pnand %p2344_p0, %p312_p1 }
   0x5   : > { %p350_p3 = scmp.lt.s32.totalorder (!%p313_p2), %s2340_s14, 1  ;;  %s2511_s22 = smov (!%p313_p2), 19  }
   0x6   : > { %316 = sbr.rel (%p313_p2) target bundleno = 1208 (0x4b8), region = 60  ;;  %s2512_s23 = smov (!%p313_p2), 127  }
   0x7   : > { %s2513_s24 = smov (!%p313_p2), 126   ;;  %s2514_s25 = smov (!%p313_p2), 110  }
   0x8   : > { %s2515_s26 = smov (!%p313_p2), 109   ;;  %s2516_s27 = smov (!%p313_p2), 108  }
   0x9   : > { %s2517_s28 = smov (!%p313_p2), 92   ;;  %s2518_s29 = smov (!%p313_p2), 91  }
   0xa   : > { %s2519_s30 = smov (!%p313_p2), 90  }
   0xb   : > { %v459_v0 = vld [vmem:[%s3517_s3 + $0x10] sm:$0xff]  ;;  %v2510_v2 = vmov 0   ;;  %v421_v3 = vld [vmem:[%s3516_s2] sm:$0xff]  ;;  %v460_v4 = vld [vmem:[%s3517_s3 + $0x18] sm:$0xff]  ;;  %s3528_s14 = smov (!%p350_p3, %s2340_s14), 1  ;;  %vm370_vm0 = vcmask 551936  }
   0xc   : > { %v423_v1 = vld [vmem:[%s3516_s2 + $0x10] sm:$0xff]  ;;  %2500 = vset.pattern.permute.xlu1 %v2510_v2  ;;  %2499 = vset.pattern.permute.xlu0 %v2510_v2  ;;  %v424_v5 = vld [vmem:[%s3516_s2 + $0x18] sm:$0xff]  ;;  %v422_v6 = vld [vmem:[%s3516_s2 + $0x8] sm:$0xff]  ;;  %s2479_s11 = smul.u32 48, %s3528_s14  ;;  %vm387_vm1 = vcmask 150528   ;;  %vm394_vm2 = vcmask 863928  }
   0xd   : > { %473 = vperm.xlu1 %2500, %v459_v0   ;;  %437 = vperm.xlu0 %2499, %v423_v1   ;;  %v458_v7 = vld [vmem:[%s3517_s3 + $0x8] sm:$0xff]  ;;  %v457_v8 = vld [vmem:[%s3517_s3] sm:$0xff]  ;;  %s2480_s12 = smul.u32 60, %s3528_s14  ;;  %390 = vst.msk [vmem:[#allocation3 + $0x18] sm:$0xf] %vm387_vm1, %v2510_v2  ;;  %vm577_vm3 = vcmask 1043608  }
   0xe   : > { %2501 = vset.pattern.permute.xlu2 %v2510_v2  ;;  %s354_s17 = scalar_lea.vmem %s3514_s0, %s2479_s11  ;;  %v386_v21 = vld [vmem:[%s3515_s1] sm:$0x7]  ;;  %388 = vst.msk [vmem:[#allocation3] sm:$0xf] %vm387_vm1, %v2510_v2  ;;  %vm578_vm4 = vcmask 1047556   ;;  %vm560_vm5 = vcmask 154624  }
   0xf   : > { %427 = vperm.xlu2 %2501, %v421_v3   ;;  %v2613_v9 = vld [vmem:[%s354_s17] sm:$0xff]  ;;  %v362_v10 = vld [vmem:[%s354_s17 + $0x8] sm:$0xf]  ;;  %s2618_s20 = scalar_lea.vmem %s3524_s10, %s2480_s12  ;;  %v2628_v12 = vld [vmem:[%s354_s17 + $0x18] sm:$0xff]  ;;  %v2655_v29 = vperm.slane %v386_v21, 2  ;;  %v2657_v30 = vperm.slane %v386_v21, 0 }
  0x10   : > { %371 = vst.msk [vmem:[#allocation2 + $0x8] sm:$0xf] %vm370_vm0, %v362_v10  ;;  %v366_v11 = vld [vmem:[%s354_s17 + $0x20] sm:$0xf]  ;;  %v364_v13 = vld [vmem:[%s354_s17 + $0x14] sm:$0xf]  ;;  %v415_v18 = vunpack.c.l.bf16 %v2628_v12  ;;  %v416_v19 = vunpack.c.h.bf16 %v2628_v12  ;;  %v409_v51 = vunpack.c.l.bf16 %v2613_v9  ;;  %v410_v59 = vunpack.c.h.bf16 %v2613_v9  ;;  %vm2707_vm6 = vmor %vm578_vm4, %vm577_vm3 }
  0x11   : > { %378 = vst [vmem:[%s2618_s20] sm:$0xff] %v2613_v9  ;;  %v368_v14 = vld [vmem:[%s354_s17 + $0x2c] sm:$0xf]  ;;  %v2640_v16 = vld [vmem:[%s354_s17 + $0x24] sm:$0xff]  ;;  %v2659_v34 = vperm.slane %v386_v21, 1  ;;  %vm581_vm7 = vcmask 707584   ;;  %vm638_vm8 = vcmask 1039360  }
  0x12   : > { %379 = vst.msk [vmem:[%s2618_s20 + $0x8] sm:$0xf] %vm370_vm0, %v362_v10  ;;  %v2635_v15 = vld [vmem:[%s354_s17 + $0xc] sm:$0xff]  ;;  %v418_v35 = vunpack.c.l.bf16 %v2640_v16  ;;  %v419_v36 = vunpack.c.h.bf16 %v2640_v16  ;;  %vm754_vm9 = vcmask 1031168   ;;  %vm649_vm10 = vcmask 261120  }
  0x13   : > { %375 = vst.msk [vmem:[#allocation2 + $0x20] sm:$0xf] %vm370_vm0, %v366_v11  ;;  %v412_v52 = vunpack.c.l.bf16 %v2635_v15  ;;  %v413_v55 = vunpack.c.h.bf16 %v2635_v15  ;;  %vm824_vm11 = vcmask 900096   ;;  %vm894_vm12 = vcmask 891904  }
  0x14   : > { %383 = vst.msk [vmem:[%s2618_s20 + $0x20] sm:$0xf] %vm370_vm0, %v366_v11  ;;  %vm964_vm13 = vcmask 883712   ;;  %vm1034_vm14 = vcmask 752640   ;;  %vm1104_vm15 = vcmask 744448   ;;  %vm399_vm3 = vcmask 861880  }
  0x15   : > { %478 = vperm.xlu1 %2500, %v460_v4   ;;  %442 = vperm.xlu0 %2499, %v424_v5   ;;  %382 = vst [vmem:[%s2618_s20 + $0x18] sm:$0xff] %v2628_v12  ;;  %vm1467_vm4 = vcmask 1041560  }
  0x16   : > { %373 = vst.msk [vmem:[#allocation2 + $0x14] sm:$0xf] %vm370_vm0, %v364_v13 }
  0x17   : > { %432 = vperm.xlu2 %2501, %v422_v6   ;;  %381 = vst.msk [vmem:[%s2618_s20 + $0x14] sm:$0xf] %vm370_vm0, %v364_v13  ;;  %v402_v46 = vld [vmem:[#allocation2 + $0x8] sm:$0xf] }
  0x18   : > { %377 = vst.msk [vmem:[#allocation2 + $0x2c] sm:$0xf] %vm370_vm0, %v368_v14  ;;  %v411_v60 = vunpack.c.l.bf16 %v402_v46 }
  0x19   : > { %380 = vst [vmem:[%s2618_s20 + $0xc] sm:$0xff] %v2635_v15 }
  0x1a   : > { %385 = vst.msk [vmem:[%s2618_s20 + $0x2c] sm:$0xf] %vm370_vm0, %v368_v14  ;;  %v406_v17 = vld [vmem:[#allocation2 + $0x20] sm:$0xf]  ;;  %vm1174_vm0 = vcmask 736256  }
  0x1b   : > { %384 = vst [vmem:[%s2618_s20 + $0x24] sm:$0xff] %v2640_v16  ;;  %v417_v20 = vunpack.c.l.bf16 %v406_v17 }
  0x1c   : > { %389 = vst.msk [vmem:[#allocation3 + $0xc] sm:$0xf] %vm387_vm1, %v2510_v2 }
  0x1d   : > { %468 = vperm.xlu1 %2500, %v458_v7   ;;  %463 = vperm.xlu0 %2499, %v457_v8   ;;  %391 = vst.msk [vmem:[#allocation3 + $0x24] sm:$0xf] %vm387_vm1, %v2510_v2  ;;  %v404_v61 = vld [vmem:[#allocation2 + $0x14] sm:$0xf]  ;;  %vm1245_vm1 = vcmask 549888  }
  0x1e   : > { %v414_v11 = vunpack.c.l.bf16 %v404_v61  ;;  %397 = vst.msk [vmem:[#allocation3 + $0x20] sm:$0xf] %vm394_vm2, %v2510_v2 }
  0x1f   : > { %v408_v28 = vld [vmem:[#allocation2 + $0x2c] sm:$0xf]  ;;  %395 = vst.msk [vmem:[#allocation3 + $0x8] sm:$0xf] %vm394_vm2, %v2510_v2 }
  0x20   : > { %v420_v37 = vunpack.c.l.bf16 %v408_v28  ;;  %396 = vst.msk [vmem:[#allocation3 + $0x14] sm:$0xf] %vm394_vm2, %v2510_v2 }
  0x21   : > { %398 = vst.msk [vmem:[#allocation3 + $0x2c] sm:$0xf] %vm394_vm2, %v2510_v2  ;;  %vm392_vm2 = vcmask 148480  }
  0x22   : > { %393 = vst.msk [vmem:[#allocation3 + $0x30] sm:$0x3] %vm392_vm2, %v2510_v2 }
  0x23   : > { %400 = vst.msk [vmem:[#allocation3 + $0x38] sm:$0x3] %vm399_vm3, %v2510_v2 }
  0x69   : > { %v428_v24 = vpop.permute.xlu2 %427 }
  0x6a   : > { %v445_v1 = vmul.f32 %v428_v24, %v409_v51  ;;  %v446_v8 = vmul.f32 %v428_v24, %v410_v59  ;;  %v447_v10 = vmul.f32 %v428_v24, %v411_v60 }
  0x71   : > { %v433_v54 = vpop.permute.xlu2 %432 }
  0x72   : > { %v448_v3 = vmul.f32 %v433_v54, %v412_v52  ;;  %v449_v4 = vmul.f32 %v433_v54, %v413_v55 }
  0x7f   : > { %v474_v22 = vpop.permute.xlu1 %473  ;;  %v438_v23 = vpop.permute.xlu0 %437 }
  0x80   : > { %v451_v25 = vmul.f32 %v438_v23, %v415_v18  ;;  %v452_v26 = vmul.f32 %v438_v23, %v416_v19  ;;  %v453_v27 = vmul.f32 %v438_v23, %v417_v20 }
  0x82   : > { %v487_v31 = vadd.f32 %v474_v22, %v451_v25  ;;  %v488_v32 = vadd.f32 %v474_v22, %v452_v26  ;;  %v489_v33 = vadd.f32 %v474_v22, %v453_v27 }
  0x84   : > { %v501_v38 = vmax.f32 %v489_v33, 0.0  ;;  %v499_v39 = vmax.f32 %v487_v31, 0.0  ;;  %v500_v40 = vmax.f32 %v488_v32, 0.0  ;;  %v450_v32 = vmul.f32 %v433_v54, %v414_v11 }
  0x86   : > { %v520_v41 = vmul.f32 %v2655_v29, %v501_v38  ;;  %v518_v42 = vmul.f32 %v2657_v30, %v499_v39  ;;  %v519_v43 = vmul.f32 %v2659_v34, %v500_v40 }
  0x87   : > { %v479_v44 = vpop.permute.xlu1 %478  ;;  %v443_v45 = vpop.permute.xlu0 %442 }
  0x88   : > { %v454_v47 = vmul.f32 %v443_v45, %v418_v35  ;;  %v455_v48 = vmul.f32 %v443_v45, %v419_v36  ;;  %v456_v49 = vmul.f32 %v443_v45, %v420_v37  ;;  %v529_v50 = vpack.c.bf16 %v520_v41, %v520_v41 }
  0x89   : > { %v528_v53 = vpack.c.bf16 %v519_v43, %v518_v42 }
  0x8a   : > { %v490_v56 = vadd.f32 %v479_v44, %v454_v47  ;;  %v491_v57 = vadd.f32 %v479_v44, %v455_v48  ;;  %550 = vrot.lane.b32.xlu1 %v529_v50, %s2511_s22  ;;  %v492_v58 = vadd.f32 %v479_v44, %v456_v49 }
  0x8b   : > { %548 = vrot.lane.b32.xlu2 %v528_v53, %s2511_s22 }
  0x8c   : > { %v502_v62 = vmax.f32 %v490_v56, 0.0  ;;  %v503_v63 = vmax.f32 %v491_v57, 0.0  ;;  %v504_v0 = vmax.f32 %v492_v58, 0.0 }
  0x8e   : > { %v521_v5 = vmul.f32 %v2657_v30, %v502_v62  ;;  %v522_v6 = vmul.f32 %v2659_v34, %v503_v63  ;;  %v523_v7 = vmul.f32 %v2655_v29, %v504_v0 }
  0x8f   : > { %v469_v13 = vpop.permute.xlu1 %468  ;;  %v464_v14 = vpop.permute.xlu0 %463 }
  0x90   : > { %v484_v17 = vadd.f32 %v469_v13, %v448_v3  ;;  %v485_v20 = vadd.f32 %v469_v13, %v449_v4  ;;  %v481_v21 = vadd.f32 %v464_v14, %v445_v1  ;;  %v482_v22 = vadd.f32 %v464_v14, %v446_v8 }
  0x91   : > { %v483_v23 = vadd.f32 %v464_v14, %v447_v10  ;;  %v530_v25 = vpack.c.bf16 %v522_v6, %v521_v5  ;;  %v531_v26 = vpack.c.bf16 %v523_v7, %v523_v7  ;;  %v486_v39 = vadd.f32 %v469_v13, %v450_v32 }
  0x92   : > { %v496_v27 = vmax.f32 %v484_v17, 0.0  ;;  %v497_v28 = vmax.f32 %v485_v20, 0.0  ;;  %v493_v31 = vmax.f32 %v481_v21, 0.0  ;;  %v494_v33 = vmax.f32 %v482_v22, 0.0 }
  0x93   : > { %v495_v37 = vmax.f32 %v483_v23, 0.0  ;;  %552 = vrot.lane.b32.xlu0 %v530_v25, %s2511_s22  ;;  %554 = vrot.lane.b32.xlu2 %v531_v26, %s2511_s22  ;;  %v498_v44 = vmax.f32 %v486_v39, 0.0 }
  0x94   : > { %v515_v24 = vmul.f32 %v2657_v30, %v496_v27  ;;  %v516_v38 = vmul.f32 %v2659_v34, %v497_v28  ;;  %v512_v41 = vmul.f32 %v2657_v30, %v493_v31  ;;  %v513_v42 = vmul.f32 %v2659_v34, %v494_v33 }
  0x95   : > { %v514_v40 = vmul.f32 %v2655_v29, %v495_v37  ;;  %v517_v47 = vmul.f32 %v2655_v29, %v498_v44 }
  0x96   : > { %v526_v43 = vpack.c.bf16 %v516_v38, %v515_v24  ;;  %v524_v46 = vpack.c.bf16 %v513_v42, %v512_v41 }
  0x97   : > { %v525_v45 = vpack.c.bf16 %v514_v40, %v514_v40  ;;  %v527_v48 = vpack.c.bf16 %v517_v47, %v517_v47 }
  0x98   : > { %544 = vrot.lane.b32.xlu1 %v526_v43, %s2511_s22 }
  0x9b   : > { %542 = vrot.lane.b32.xlu2 %v525_v45, %s2511_s22  ;;  %540 = vrot.lane.b32.xlu0 %v524_v46, %s2511_s22 }
  0xa3   : > { %546 = vrot.lane.b32.xlu0 %v527_v48, %s2511_s22 }
  0xe5   : > { %v549_v49 = vpop.permute.xlu2 %548 }
  0xe6   : > { %v558_v53 = vrot.slane %v549_v49, 4 }
  0xe8   : > { %v565_v54 = vsel %vm560_vm5, %v558_v53, %v549_v49  ;;  %v589_v49 = vld [vmem:[%s3518_s4] sm:$0x3] }
  0xe9   : > { %585 = vst.msk [vmem:[#allocation3 + $0x18] sm:$0xff] %vm2707_vm6, %v565_v54 }
  0xed   : > { %v555_v58 = vpop.permute.xlu2 %554 }
  0xf0   : > { %v2470_v6 = vld [vmem:[#allocation3 + $0x1c] sm:$0xf]  ;;  %v2362_v8 = vld [vmem:[#allocation3 + $0x18] sm:$0xf] }
  0xf5   : > { %v543_v7 = vpop.permute.xlu2 %542 }
  0xfc   : > { %v551_v56 = vpop.permute.xlu1 %550 }
  0xfd   : > { %v566_v57 = vsel %vm560_vm5, %v558_v53, %v551_v56 }
  0xfe   : > { %586 = vst.msk [vmem:[#allocation3 + $0x20] sm:$0xf] %vm581_vm7, %v566_v57  ;;  %v2347_v57 = vld [vmem:[%s3518_s4 + $0x2] sm:$0x3] }
 0x105   : > { %v553_v60 = vpop.permute.xlu0 %552  ;;  %v2370_v17 = vld [vmem:[#allocation3 + $0x20] sm:$0xf] }
 0x106   : > { %v559_v61 = vrot.slane %v553_v60, 4 }
 0x108   : > { %v567_v62 = vsel %vm560_vm5, %v559_v61, %v553_v60  ;;  %v568_v63 = vsel %vm560_vm5, %v559_v61, %v555_v58  ;;  %v1230_v58 = vld [vmem:[%s3519_s5] sm:$0xf] }
 0x109   : > { %587 = vst.msk [vmem:[#allocation3 + $0x24] sm:$0xff] %vm2707_vm6, %v567_v62  ;;  %v1278_v60 = vld [vmem:[%s3520_s6 + $0x20] sm:$0xf] }
 0x10a   : > { %588 = vst.msk [vmem:[#allocation3 + $0x2c] sm:$0xf] %vm581_vm7, %v568_v63  ;;  %v545_v0 = vpop.permute.xlu1 %544 }
 0x10b   : > { %v557_v1 = vrot.slane %v545_v0, 4 }
 0x10d   : > { %v563_v3 = vsel %vm560_vm5, %v557_v1, %v545_v0  ;;  %v541_v4 = vpop.permute.xlu0 %540 }
 0x10e   : > { %583 = vst.msk [vmem:[#allocation3 + $0xc] sm:$0xff] %vm2707_vm6, %v563_v3  ;;  %v556_v5 = vrot.slane %v541_v4, 4  ;;  %v1323_v3 = vld [vmem:[%s3521_s7 + $0x20] sm:$0xf] }
 0x110   : > { %v2364_v10 = vld [vmem:[#allocation3 + $0x24] sm:$0xf0]  ;;  %v2471_v11 = vld [vmem:[#allocation3 + $0x20] sm:$0xf0]  ;;  %v561_v13 = vsel %vm560_vm5, %v556_v5, %v541_v4  ;;  %v562_v14 = vsel %vm560_vm5, %v556_v5, %v543_v7  ;;  %v1276_v4 = vld [vmem:[%s3520_s6 + $0x10] sm:$0xff] }
 0x111   : > { %v2726_v20 = vor.u32 %v2471_v11, %v2362_v8  ;;  %v2728_v21 = vor.u32 %v2470_v6, %v2364_v10  ;;  %580 = vst.msk [vmem:[#allocation3] sm:$0xff] %vm2707_vm6, %v561_v13  ;;  %v2472_v22 = vld [vmem:[#allocation3 + $0x28] sm:$0xf0]  ;;  %v1277_v5 = vld [vmem:[%s3520_s6 + $0x18] sm:$0xff]  ;;  %v1321_v11 = vld [vmem:[%s3521_s7 + $0x10] sm:$0xff] }
 0x112   : > { %582 = vst.msk [vmem:[#allocation3 + $0x8] sm:$0xf] %vm581_vm7, %v562_v14  ;;  %v2733_v23 = vor.u32 %v2472_v22, %v2370_v17  ;;  %v1322_v13 = vld [vmem:[%s3521_s7 + $0x18] sm:$0xff]  ;;  %v1274_v14 = vld [vmem:[%s3520_s6] sm:$0xff] }
 0x113   : > { %707 = vmatpush.bf16.msra.mxu3 %v2726_v20  ;;  %632 = vrot.lane.b32.xlu1 %v2726_v20, %s2512_s23 }
 0x114   : > { %634 = vrot.lane.b32.xlu2 %v2728_v21, %s2512_s23  ;;  %636 = vrot.lane.b32.xlu0 %v2733_v23, %s2512_s23 }
 0x115   : > { %v547_v25 = vpop.permute.xlu0 %546  ;;  %v2352_v27 = vld [vmem:[#allocation3 + $0xc] sm:$0xf0]  ;;  %v2468_v28 = vld [vmem:[#allocation3 + $0x8] sm:$0xf0] }
 0x116   : > { %v564_v26 = vsel %vm560_vm5, %v557_v1, %v547_v25 }
 0x117   : > { %584 = vst.msk [vmem:[#allocation3 + $0x14] sm:$0xf] %vm581_vm7, %v564_v26  ;;  %v1275_v26 = vld [vmem:[%s3520_s6 + $0x8] sm:$0xff] }
 0x118   : > { %v2467_v31 = vld [vmem:[#allocation3 + $0x4] sm:$0xf]  ;;  %v2350_v32 = vld [vmem:[#allocation3] sm:$0xf] }
 0x119   : > { %v2744_v33 = vor.u32 %v2468_v28, %v2350_v32  ;;  %v2746_v37 = vor.u32 %v2467_v31, %v2352_v27  ;;  %v2358_v24 = vld [vmem:[#allocation3 + $0x8] sm:$0xf]  ;;  %v1320_v28 = vld [vmem:[%s3521_s7 + $0x8] sm:$0xff] }
 0x11a   : > { %v1319_v27 = vld [vmem:[%s3521_s7] sm:$0xff] }
 0x11b   : > { %626 = vrot.lane.b32.xlu1 %v2744_v33, %s2512_s23  ;;  %708 = vmatpush.bf16.msra.mxu3 %v2744_v33 }
 0x11c   : > { %628 = vrot.lane.b32.xlu2 %v2746_v37, %s2512_s23 }
 0x11e   : > { %v2469_v38 = vld [vmem:[#allocation3 + $0x10] sm:$0xf0]  ;;  %2375 = vmatmul.msk.bf16.vlgmr.msra.gmra.mxu3 %vm649_vm10, %v589_v49 }
 0x11f   : > { %v2753_v39 = vor.u32 %v2469_v38, %v2358_v24 }
 0x121   : > { %630 = vrot.lane.b32.xlu0 %v2753_v39, %s2512_s23 }
 0x123   : > { %748 = vrot.lane.b32.xlu1 %v2726_v20, %s2513_s24 }
 0x124   : > { %750 = vrot.lane.b32.xlu2 %v2728_v21, %s2513_s24 }
 0x129   : > { %742 = vrot.lane.b32.xlu0 %v2744_v33, %s2513_s24 }
 0x12b   : > { %744 = vrot.lane.b32.xlu1 %v2746_v37, %s2513_s24 }
 0x12c   : > { %752 = vrot.lane.b32.xlu2 %v2733_v23, %s2513_s24 }
 0x131   : > { %818 = vrot.lane.b32.xlu0 %v2726_v20, %s2514_s25 }
 0x133   : > { %820 = vrot.lane.b32.xlu1 %v2728_v21, %s2514_s25 }
 0x134   : > { %822 = vrot.lane.b32.xlu2 %v2733_v23, %s2514_s25 }
 0x139   : > { %746 = vrot.lane.b32.xlu0 %v2753_v39, %s2513_s24 }
 0x13b   : > { %812 = vrot.lane.b32.xlu1 %v2744_v33, %s2514_s25 }
 0x13c   : > { %814 = vrot.lane.b32.xlu2 %v2746_v37, %s2514_s25 }
 0x141   : > { %816 = vrot.lane.b32.xlu0 %v2753_v39, %s2514_s25 }
 0x143   : > { %888 = vrot.lane.b32.xlu1 %v2726_v20, %s2515_s26 }
 0x144   : > { %890 = vrot.lane.b32.xlu2 %v2728_v21, %s2515_s26 }
 0x149   : > { %892 = vrot.lane.b32.xlu0 %v2733_v23, %s2515_s26 }
 0x14b   : > { %882 = vrot.lane.b32.xlu1 %v2744_v33, %s2515_s26 }
 0x14c   : > { %884 = vrot.lane.b32.xlu2 %v2746_v37, %s2515_s26 }
 0x151   : > { %886 = vrot.lane.b32.xlu0 %v2753_v39, %s2515_s26 }
 0x153   : > { %958 = vrot.lane.b32.xlu1 %v2726_v20, %s2516_s27 }
 0x154   : > { %960 = vrot.lane.b32.xlu2 %v2728_v21, %s2516_s27 }
 0x159   : > { %962 = vrot.lane.b32.xlu0 %v2733_v23, %s2516_s27 }
 0x15b   : > { %1028 = vrot.lane.b32.xlu1 %v2726_v20, %s2517_s28 }
 0x15c   : > { %1030 = vrot.lane.b32.xlu2 %v2728_v21, %s2517_s28 }
 0x161   : > { %952 = vrot.lane.b32.xlu0 %v2744_v33, %s2516_s27 }
 0x163   : > { %954 = vrot.lane.b32.xlu1 %v2746_v37, %s2516_s27 }
 0x164   : > { %956 = vrot.lane.b32.xlu2 %v2753_v39, %s2516_s27 }
 0x169   : > { %1022 = vrot.lane.b32.xlu0 %v2744_v33, %s2517_s28 }
 0x16b   : > { %1024 = vrot.lane.b32.xlu1 %v2746_v37, %s2517_s28 }
 0x16c   : > { %1032 = vrot.lane.b32.xlu2 %v2733_v23, %s2517_s28 }
 0x16e   : > { %v635_v40 = vpop.permute.xlu2 %634 }
 0x171   : > { %1098 = vrot.lane.b32.xlu0 %v2726_v20, %s2518_s29 }
 0x173   : > { %1100 = vrot.lane.b32.xlu1 %v2728_v21, %s2518_s29 }
 0x174   : > { %1102 = vrot.lane.b32.xlu2 %v2733_v23, %s2518_s29 }
 0x176   : > { %v629_v41 = vpop.permute.xlu2 %628 }
 0x179   : > { %1026 = vrot.lane.b32.xlu0 %v2753_v39, %s2517_s28 }
 0x17b   : > { %1092 = vrot.lane.b32.xlu1 %v2744_v33, %s2518_s29 }
 0x17c   : > { %1094 = vrot.lane.b32.xlu2 %v2746_v37, %s2518_s29 }
 0x17e   : > { %v751_v42 = vpop.permute.xlu2 %750 }
 0x181   : > { %1096 = vrot.lane.b32.xlu0 %v2753_v39, %s2518_s29 }
 0x183   : > { %1168 = vrot.lane.b32.xlu1 %v2726_v20, %s2519_s30 }
 0x184   : > { %1170 = vrot.lane.b32.xlu2 %v2728_v21, %s2519_s30 }
 0x185   : > { %v633_v43 = vpop.permute.xlu1 %632 }
 0x186   : > { %v753_v44 = vpop.permute.xlu2 %752  ;;  %v637_v45 = vpop.permute.xlu0 %636  ;;  %v641_v46 = vsel %vm638_vm8, %v633_v43, %v635_v40 }
 0x187   : > { %685 = vmatpush.bf16.msra.mxu2 %v637_v45  ;;  %659 = vmatpush.bf16.msra.mxu0 %v641_v46  ;;  %v642_v47 = vsel %vm638_vm8, %v635_v40, %v637_v45  ;;  %v758_v48 = vsel %vm754_vm9, %v751_v42, %v753_v44 }
 0x188   : > { %672 = vmatpush.bf16.msra.mxu1 %v642_v47  ;;  %787 = vmatpush.bf16.msrb.mxu3 %v758_v48  ;;  %v2386_v48 = vld [vmem:[%s3518_s4 + $0x8] sm:$0x3] }
 0x189   : > { %1172 = vrot.lane.b32.xlu0 %v2733_v23, %s2519_s30 }
 0x18b   : > { %1162 = vrot.lane.b32.xlu1 %v2744_v33, %s2519_s30 }
 0x18c   : > { %1164 = vrot.lane.b32.xlu2 %v2746_v37, %s2519_s30 }
 0x18d   : > { %v627_v53 = vpop.permute.xlu1 %626 }
 0x18e   : > { %v2846_v54 = vpop.permute.xlu2 %822  ;;  %v639_v56 = vsel %vm638_vm8, %v627_v53, %v629_v41 }
 0x18f   : > { %660 = vmatpush.bf16.msra.mxu0 %v639_v56 }
 0x191   : > { %1166 = vrot.lane.b32.xlu0 %v2753_v39, %s2519_s30 }
 0x192   : > { %2372 = vmatmul.msk.bf16.vlgmr.msra.gmra.mxu0 %vm649_vm10, %v2347_v57 }
 0x193   : > { %720 = vmatpush.bf16.msrb.mxu0 %v2728_v21  ;;  %1233 = vperm.xlu1 %2500, %v1230_v58   ;;  %v631_v61 = vpop.permute.xlu0 %630  ;;  %v2378_v21 = vld [vmem:[%s3518_s4 + $0x4] sm:$0x3] }
 0x194   : > { %1301 = vperm.xlu2 %2501, %v1278_v60   ;;  %686 = vmatpush.bf16.msra.mxu2 %v631_v61  ;;  %v640_v62 = vsel %vm638_vm8, %v629_v41, %v631_v61  ;;  %v2382_v41 = vld [vmem:[%s3518_s4 + $0x6] sm:$0x3] }
 0x195   : > { %v749_v63 = vpop.permute.xlu1 %748  ;;  %673 = vmatpush.bf16.msra.mxu1 %v640_v62 }
 0x196   : > { %v815_v0 = vpop.permute.xlu2 %814  ;;  %v757_v1 = vsel %vm754_vm9, %v749_v63, %v751_v42 }
 0x197   : > { %721 = vmatpush.bf16.msrb.mxu0 %v2746_v37  ;;  %2374 = vmatmul.msk.bf16.vlgmr.msra.gmra.mxu2 %vm649_vm10, %v2347_v57 }
 0x198   : > { %774 = vmatpush.bf16.msrb.mxu2 %v757_v1  ;;  %2373 = vmatmul.msk.bf16.vlgmr.msra.gmra.mxu1 %vm649_vm10, %v2347_v57 }
 0x199   : > { %733 = vmatpush.bf16.msrb.mxu1 %v2733_v23  ;;  %1346 = vperm.xlu0 %2499, %v1323_v3  }
 0x19b   : > { %800 = vmatpush.bf16.msra.mxu0 %v753_v44  ;;  %1291 = vperm.xlu1 %2500, %v1276_v4   ;;  %v743_v6 = vpop.permute.xlu0 %742 }
 0x19c   : > { %1296 = vperm.xlu2 %2501, %v1277_v5  }
 0x19d   : > { %734 = vmatpush.bf16.msrb.mxu1 %v2753_v39  ;;  %v745_v7 = vpop.permute.xlu1 %744 }
 0x19e   : > { %v891_v8 = vpop.permute.xlu2 %890  ;;  %v755_v10 = vsel %vm754_vm9, %v743_v6, %v745_v7  ;;  %v2390_v6 = vld [vmem:[%s3518_s4 + $0xa] sm:$0x3] }
 0x19f   : > { %775 = vmatpush.bf16.msrb.mxu2 %v755_v10 }
 0x1a1   : > { %1336 = vperm.xlu0 %2499, %v1321_v11  }
 0x1a2   : > { %2376 = vmatmul.msk.bf16.vlgmr.msrb.gmra.mxu0 %vm649_vm10, %v589_v49 }
 0x1a3   : > { %1341 = vperm.xlu1 %2500, %v1322_v13   ;;  %v819_v17 = vpop.permute.xlu0 %818  ;;  %v2394_v13 = vld [vmem:[%s3518_s4 + $0xc] sm:$0x3] }
 0x1a4   : > { %1281 = vperm.xlu2 %2501, %v1274_v14  }
 0x1a5   : > { %v821_v20 = vpop.permute.xlu1 %820 }
 0x1a6   : > { %v827_v22 = vsel %vm824_vm11, %v819_v17, %v821_v20  ;;  %v828_v23 = vsel %vm824_vm11, %v821_v20, %v2846_v54  ;;  %v885_v25 = vpop.permute.xlu2 %884 }
 0x1a7   : > { %844 = vmatpush.bf16.msra.mxu1 %v827_v22  ;;  %857 = vmatpush.bf16.msra.mxu2 %v828_v23 }
 0x1a8   : > { %2377 = vmatmul.msk.bf16.vlgmr.msrb.gmra.mxu1 %vm649_vm10, %v589_v49  ;;  %2379 = vmatmul.msk.bf16.vlgmr.msrb.gmra.mxu2 %vm649_vm10, %v2378_v21 }
 0x1a9   : > { %1286 = vperm.xlu0 %2499, %v1275_v26  }
 0x1ab   : > { %1326 = vperm.xlu1 %2500, %v1319_v27   ;;  %v747_v31 = vpop.permute.xlu0 %746 }
 0x1ac   : > { %1331 = vperm.xlu2 %2501, %v1320_v28   ;;  %801 = vmatpush.bf16.msra.mxu0 %v747_v31  ;;  %v756_v32 = vsel %vm754_vm9, %v745_v7, %v747_v31  ;;  %v2398_v31 = vld [vmem:[%s3518_s4 + $0xe] sm:$0x3] }
 0x1ad   : > { %v813_v33 = vpop.permute.xlu1 %812  ;;  %788 = vmatpush.bf16.msrb.mxu3 %v756_v32 }
 0x1ae   : > { %v961_v37 = vpop.permute.xlu2 %960  ;;  %v825_v24 = vsel %vm824_vm11, %v813_v33, %v815_v0 }
 0x1af   : > { %845 = vmatpush.bf16.msra.mxu1 %v825_v24 }
 0x1b0   : > { %2380 = vmatmul.msk.bf16.vlgmr.msrb.gmra.mxu3 %vm649_vm10, %v2378_v21 }
 0x1b1   : > { %870 = vmatpush.bf16.msra.mxu3 %v2846_v54 }
 0x1b2   : > { %2381 = vmatmul.msk.bf16.vlgmr.msra.gmra.mxu0 %vm649_vm10, %v2378_v21 }
 0x1b3   : > { %v817_v38 = vpop.permute.xlu0 %816 }
 0x1b4   : > { %v826_v39 = vsel %vm824_vm11, %v815_v0, %v817_v38 }
 0x1b5   : > { %871 = vmatpush.bf16.msra.mxu3 %v817_v38  ;;  %v889_v40 = vpop.permute.xlu1 %888  ;;  %858 = vmatpush.bf16.msra.mxu2 %v826_v39 }
 0x1b6   : > { %v897_v42 = vsel %vm894_vm12, %v889_v40, %v891_v8  ;;  %v1031_v43 = vpop.permute.xlu2 %1030 }
 0x1b7   : > { %914 = vmatpush.bf16.msrb.mxu0 %v897_v42 }
 0x1b8   : > { %2383 = vmatmul.msk.bf16.vlgmr.msra.gmra.mxu1 %vm649_vm10, %v2382_v41  ;;  %2384 = vmatmul.msk.bf16.vlgmr.msra.gmra.mxu2 %vm649_vm10, %v2382_v41 }
 0x1bb   : > { %v893_v44 = vpop.permute.xlu0 %892 }
 0x1bc   : > { %v898_v45 = vsel %vm894_vm12, %v891_v8, %v893_v44  ;;  %940 = vmatpush.bf16.msrb.mxu2 %v893_v44  ;;  %v2402_v44 = vld [vmem:[%s3518_s4 + $0x10] sm:$0x3] }
 0x1bd   : > { %v883_v46 = vpop.permute.xlu1 %882  ;;  %927 = vmatpush.bf16.msrb.mxu1 %v898_v45 }
 0x1be   : > { %v895_v47 = vsel %vm894_vm12, %v883_v46, %v885_v25  ;;  %v957_v49 = vpop.permute.xlu2 %956 }
 0x1bf   : > { %915 = vmatpush.bf16.msrb.mxu0 %v895_v47 }
 0x1c0   : > { %2385 = vmatmul.msk.bf16.vlgmr.msra.gmra.mxu3 %vm649_vm10, %v2382_v41 }
 0x1c2   : > { %2387 = vmatmul.msk.bf16.vlgmr.msrb.gmra.mxu0 %vm649_vm10, %v2386_v48 }
 0x1c3   : > { %v887_v53 = vpop.permute.xlu0 %886 }
 0x1c4   : > { %941 = vmatpush.bf16.msrb.mxu2 %v887_v53  ;;  %v896_v54 = vsel %vm894_vm12, %v885_v25, %v887_v53  ;;  %v1254_v53 = vld [vmem:[#allocation2 + $0x20] sm:$0xf] }
 0x1c5   : > { %v959_v56 = vpop.permute.xlu1 %958  ;;  %928 = vmatpush.bf16.msrb.mxu1 %v896_v54 }
 0x1c6   : > { %v967_v57 = vsel %vm964_vm13, %v959_v56, %v961_v37  ;;  %v1033_v60 = vpop.permute.xlu2 %1032  ;;  %v710_v56 = vpop.f32.mrf.mxu3 }
 0x1c7   : > { %984 = vmatpush.bf16.msrb.mxu3 %v967_v57  ;;  %v1038_v7 = vsel %vm1034_vm14, %v1031_v43, %v1033_v60  ;;  %v1267_v57 = vunpack.c.l.bf16 %v1254_v53 }
 0x1c8   : > { %2388 = vmatmul.msk.bf16.vlgmr.msrb.gmra.mxu1 %vm649_vm10, %v2386_v48  ;;  %2389 = vmatmul.msk.bf16.vlgmr.msrb.gmra.mxu2 %vm649_vm10, %v2386_v48 }
 0x1cb   : > { %v963_v58 = vpop.permute.xlu0 %962 }
 0x1cc   : > { %v968_v61 = vsel %vm964_vm13, %v961_v37, %v963_v58  ;;  %1010 = vmatpush.bf16.msra.mxu1 %v963_v58 }
 0x1cd   : > { %v1029_v62 = vpop.permute.xlu1 %1028  ;;  %997 = vmatpush.bf16.msra.mxu0 %v968_v61 }
 0x1ce   : > { %v1037_v63 = vsel %vm1034_vm14, %v1029_v62, %v1031_v43  ;;  %v1103_v3 = vpop.permute.xlu2 %1102  ;;  %v712_v12 = vpop.f32.mrf.mxu3 }
 0x1cf   : > { %1054 = vmatpush.bf16.msra.mxu2 %v1037_v63 }
 0x1d0   : > { %1011 = vmatpush.bf16.msra.mxu1 %v957_v49 }
 0x1d3   : > { %v953_v0 = vpop.permute.xlu0 %952 }
 0x1d5   : > { %v955_v1 = vpop.permute.xlu1 %954 }
 0x1d6   : > { %v965_v4 = vsel %vm964_vm13, %v953_v0, %v955_v1  ;;  %v966_v5 = vsel %vm964_vm13, %v955_v1, %v957_v49  ;;  %v1095_v14 = vpop.permute.xlu2 %1094 }
 0x1d7   : > { %985 = vmatpush.bf16.msrb.mxu3 %v965_v4  ;;  %998 = vmatpush.bf16.msra.mxu0 %v966_v5 }
 0x1d8   : > { %2393 = vmatmul.msk.bf16.vlgmr.msra.gmra.mxu1 %vm649_vm10, %v2390_v6 }
 0x1da   : > { %2391 = vmatmul.msk.bf16.vlgmr.msrb.gmra.mxu3 %vm649_vm10, %v2390_v6  ;;  %2392 = vmatmul.msk.bf16.vlgmr.msra.gmra.mxu0 %vm649_vm10, %v2390_v6 }
 0x1db   : > { %1067 = vmatpush.bf16.msra.mxu3 %v1038_v7  ;;  %1080 = vmatpush.bf16.msrb.mxu0 %v1033_v60  ;;  %v1023_v8 = vpop.permute.xlu0 %1022  ;;  %v1252_v7 = vld [vmem:[#allocation2 + $0x14] sm:$0xf] }
 0x1dd   : > { %v1025_v10 = vpop.permute.xlu1 %1024 }
 0x1de   : > { %v1035_v11 = vsel %vm1034_vm14, %v1023_v8, %v1025_v10  ;;  %v1171_v23 = vpop.permute.xlu2 %1170 }
 0x1df   : > { %1055 = vmatpush.bf16.msra.mxu2 %v1035_v11 }
 0x1e2   : > { %2395 = vmatmul.msk.bf16.vlgmr.msra.gmra.mxu2 %vm649_vm10, %v2394_v13 }
 0x1e3   : > { %v1099_v17 = vpop.permute.xlu0 %1098 }
 0x1e5   : > { %v1101_v20 = vpop.permute.xlu1 %1100 }
 0x1e6   : > { %v1107_v21 = vsel %vm1104_vm15, %v1099_v17, %v1101_v20  ;;  %v1108_v22 = vsel %vm1104_vm15, %v1101_v20, %v1103_v3  ;;  %v1165_v33 = vpop.permute.xlu2 %1164  ;;  %v1264_v20 = vunpack.c.l.bf16 %v1252_v7 }
 0x1e7   : > { %1124 = vmatpush.bf16.msrb.mxu1 %v1107_v21  ;;  %1137 = vmatpush.bf16.msrb.mxu2 %v1108_v22  ;;  %v1256_v22 = vld [vmem:[#allocation2 + $0x2c] sm:$0xf] }
 0x1eb   : > { %v1027_v25 = vpop.permute.xlu0 %1026 }
 0x1ec   : > { %1081 = vmatpush.bf16.msrb.mxu0 %v1027_v25  ;;  %v1036_v26 = vsel %vm1034_vm14, %v1025_v10, %v1027_v25 }
 0x1ed   : > { %v1093_v27 = vpop.permute.xlu1 %1092  ;;  %1068 = vmatpush.bf16.msra.mxu3 %v1036_v26 }
 0x1ee   : > { %v1105_v28 = vsel %vm1104_vm15, %v1093_v27, %v1095_v14  ;;  %v2959_v42 = vpop.permute.xlu2 %1301 }
 0x1ef   : > { %2397 = vmatmul.msk.bf16.vlgmr.msrb.gmra.mxu0 %vm649_vm10, %v2394_v13  ;;  %1125 = vmatpush.bf16.msrb.mxu1 %v1105_v28 }
 0x1f0   : > { %2396 = vmatmul.msk.bf16.vlgmr.msra.gmra.mxu3 %vm649_vm10, %v2394_v13 }
 0x1f1   : > { %1150 = vmatpush.bf16.msrb.mxu3 %v1103_v3 }
 0x1f2   : > { %2399 = vmatmul.msk.bf16.vlgmr.msrb.gmra.mxu1 %vm649_vm10, %v2398_v31 }
 0x1f3   : > { %v1097_v32 = vpop.permute.xlu0 %1096 }
 0x1f4   : > { %v1106_v37 = vsel %vm1104_vm15, %v1095_v14, %v1097_v32 }
 0x1f5   : > { %1151 = vmatpush.bf16.msrb.mxu3 %v1097_v32  ;;  %v1169_v24 = vpop.permute.xlu1 %1168  ;;  %1138 = vmatpush.bf16.msrb.mxu2 %v1106_v37  ;;  %v1270_v32 = vunpack.c.l.bf16 %v1256_v22 }
 0x1f6   : > { %v1177_v38 = vsel %vm1174_vm0, %v1169_v24, %v1171_v23  ;;  %v1297_v48 = vpop.permute.xlu2 %1296 }
 0x1f7   : > { %1194 = vmatpush.bf16.msra.mxu0 %v1177_v38  ;;  %v1313_v3 = vmul.f32 %v1297_v48, %v418_v35  ;;  %v1314_v8 = vmul.f32 %v1297_v48, %v419_v36 }
 0x1f8   : > { %2400 = vmatmul.msk.bf16.vlgmr.msrb.gmra.mxu2 %vm649_vm10, %v2398_v31 }
 0x1fb   : > { %v1173_v39 = vpop.permute.xlu0 %1172 }
 0x1fc   : > { %v1178_v40 = vsel %vm1174_vm0, %v1171_v23, %v1173_v39  ;;  %1220 = vmatpush.bf16.msra.mxu2 %v1173_v39  ;;  %v1250_v23 = vld [vmem:[#allocation2 + $0x8] sm:$0xf] }
 0x1fd   : > { %v1163_v41 = vpop.permute.xlu1 %1162  ;;  %1207 = vmatpush.bf16.msra.mxu1 %v1178_v40 }
 0x1fe   : > { %v1175_v43 = vsel %vm1174_vm0, %v1163_v41, %v1165_v33  ;;  %v1282_v61 = vpop.permute.xlu2 %1281 }
 0x1ff   : > { %1195 = vmatpush.bf16.msra.mxu0 %v1175_v43  ;;  %v1304_v37 = vmul.f32 %v1282_v61, %v409_v51 }
 0x200   : > { %2401 = vmatmul.msk.bf16.vlgmr.msrb.gmra.mxu3 %vm649_vm10, %v2398_v31 }
 0x202   : > { %2403 = vmatmul.msk.bf16.vlgmr.msra.gmra.mxu0 %vm649_vm10, %v2402_v44 }
 0x203   : > { %v1167_v45 = vpop.permute.xlu0 %1166 }
 0x204   : > { %1221 = vmatpush.bf16.msra.mxu2 %v1167_v45  ;;  %v1176_v46 = vsel %vm1174_vm0, %v1165_v33, %v1167_v45  ;;  %v1261_v33 = vunpack.c.l.bf16 %v1250_v23  ;;  %v1305_v45 = vmul.f32 %v1282_v61, %v410_v59 }
 0x205   : > { %v2968_v47 = vpop.permute.xlu1 %1233  ;;  %1208 = vmatpush.bf16.msra.mxu1 %v1176_v46 }
 0x206   : > { %v1332_v40 = vpop.permute.xlu2 %1331 }
 0x208   : > { %2404 = vmatmul.msk.bf16.vlgmr.msra.gmra.mxu1 %vm649_vm10, %v2402_v44  ;;  %2405 = vmatmul.msk.bf16.vlgmr.msra.gmra.mxu2 %vm649_vm10, %v2402_v44  ;;  %vm1471_vm10 = vcmask 705536  }
 0x20b   : > { %v2972_v49 = vpop.permute.xlu0 %1346 }
 0x20d   : > { %v1292_v54 = vpop.permute.xlu1 %1291 }
 0x20e   : > { %v1310_v62 = vmul.f32 %v1292_v54, %v415_v18  ;;  %v1311_v63 = vmul.f32 %v1292_v54, %v416_v19  ;;  %v1312_v0 = vmul.f32 %v1292_v54, %v1267_v57 }
 0x20f   : > { %v662_v58 = vpop.f32.mrf.mxu0 }
 0x210   : > { %v2974_v60 = vadd.f32 %v710_v56, %v662_v58 }
 0x213   : > { %v1337_v1 = vpop.permute.xlu0 %1336 }
 0x214   : > { %v1355_v4 = vadd.f32 %v1337_v1, %v1310_v62  ;;  %v1356_v5 = vadd.f32 %v1337_v1, %v1311_v63  ;;  %v1357_v6 = vadd.f32 %v1337_v1, %v1312_v0  ;;  %v1315_v62 = vmul.f32 %v1297_v48, %v1270_v32 }
 0x215   : > { %v1342_v10 = vpop.permute.xlu1 %1341  ;;  %v675_v11 = vpop.f32.mrf.mxu1 }
 0x216   : > { %v1370_v13 = vmax.f32 %v1355_v4, 0.0  ;;  %v1371_v14 = vmax.f32 %v1356_v5, 0.0  ;;  %v1372_v18 = vmax.f32 %v1357_v6, 0.0  ;;  %v1358_v17 = vadd.f32 %v1342_v10, %v1313_v3 }
 0x217   : > { %v1359_v19 = vadd.f32 %v1342_v10, %v1314_v8  ;;  %v664_v21 = vpop.f32.mrf.mxu0  ;;  %v1360_v4 = vadd.f32 %v1342_v10, %v1315_v62 }
 0x218   : > { %v1373_v35 = vmax.f32 %v1358_v17, 0.0  ;;  %v1387_v25 = vmul.f32 %v1372_v18, %v2655_v29  ;;  %v1385_v26 = vmul.f32 %v1370_v13, %v2657_v30  ;;  %v1386_v16 = vmul.f32 %v1371_v14, %v2659_v34 }
 0x219   : > { %v1374_v36 = vmax.f32 %v1359_v19, 0.0  ;;  %v1375_v17 = vmax.f32 %v1360_v4, 0.0 }
 0x21a   : > { %v1399_v27 = vpack.c.bf16 %v1387_v25, %v1387_v25  ;;  %v1398_v28 = vpack.c.bf16 %v1386_v16, %v1385_v26  ;;  %v1388_v31 = vmul.f32 %v1373_v35, %v2657_v30  ;;  %v688_v39 = vpop.f32.mrf.mxu2 }
 0x21b   : > { %v1287_v24 = vpop.permute.xlu0 %1286  ;;  %v1389_v38 = vmul.f32 %v1374_v36, %v2659_v34  ;;  %v1390_v21 = vmul.f32 %v1375_v17, %v2655_v29 }
 0x21c   : > { %v1307_v41 = vmul.f32 %v1287_v24, %v412_v52  ;;  %v1308_v43 = vmul.f32 %v1287_v24, %v413_v55  ;;  %v1309_v44 = vmul.f32 %v1287_v24, %v1264_v20  ;;  %1424 = vrot.lane.b32.xlu0 %v1399_v27, %s2511_s22  ;;  %1422 = vrot.lane.b32.xlu1 %v1398_v28, %s2511_s22 }
 0x21d   : > { %v1327_v51 = vpop.permute.xlu1 %1326  ;;  %v1400_v46 = vpack.c.bf16 %v1389_v38, %v1388_v31  ;;  %v677_v53 = vpop.f32.mrf.mxu1  ;;  %v1306_v52 = vmul.f32 %v1282_v61, %v1261_v33  ;;  %v1401_v25 = vpack.c.bf16 %v1390_v21, %v1390_v21 }
 0x21e   : > { %v1352_v54 = vadd.f32 %v1332_v40, %v1307_v41  ;;  %v1353_v56 = vadd.f32 %v1332_v40, %v1308_v43  ;;  %v1354_v57 = vadd.f32 %v1332_v40, %v1309_v44  ;;  %v1349_v58 = vadd.f32 %v1327_v51, %v1304_v37 }
 0x21f   : > { %v1350_v63 = vadd.f32 %v1327_v51, %v1305_v45  ;;  %1426 = vrot.lane.b32.xlu2 %v1400_v46, %s2511_s22  ;;  %v723_v15 = vpop.f32.mrf.mxu0  ;;  %v1351_v9 = vadd.f32 %v1327_v51, %v1306_v52 }
 0x220   : > { %v1367_v55 = vmax.f32 %v1352_v54, 0.0  ;;  %v1368_v0 = vmax.f32 %v1353_v56, 0.0  ;;  %v1369_v1 = vmax.f32 %v1354_v57, 0.0  ;;  %v1364_v3 = vmax.f32 %v1349_v58, 0.0 }
 0x221   : > { %v1365_v59 = vmax.f32 %v1350_v63, 0.0  ;;  %v724_v5 = vadd.f32 %v723_v15, %v675_v11  ;;  %v1366_v12 = vmax.f32 %v1351_v9, 0.0 }
 0x222   : > { %v1379_v6 = vmul.f32 %v1364_v3, %v2657_v30  ;;  %v1384_v7 = vmul.f32 %v1369_v1, %v2655_v29  ;;  %v1382_v8 = vmul.f32 %v1367_v55, %v2657_v30  ;;  %v1383_v48 = vmul.f32 %v1368_v0, %v2659_v34  ;;  %v690_v13 = vpop.f32.mrf.mxu2 }
 0x223   : > { %v1380_v61 = vmul.f32 %v1365_v59, %v2659_v34  ;;  %v1381_v22 = vmul.f32 %v1366_v12, %v2655_v29 }
 0x224   : > { %v1397_v14 = vpack.c.bf16 %v1384_v7, %v1384_v7  ;;  %v1396_v18 = vpack.c.bf16 %v1383_v48, %v1382_v8 }
 0x225   : > { %v1394_v19 = vpack.c.bf16 %v1380_v61, %v1379_v6  ;;  %v736_v10 = vpop.f32.mrf.mxu1  ;;  %v1395_v26 = vpack.c.bf16 %v1381_v22, %v1381_v22 }
 0x226   : > { %1420 = vrot.lane.b32.xlu0 %v1397_v14, %s2511_s22  ;;  %v737_v11 = vadd.f32 %v736_v10, %v688_v39 }
 0x227   : > { %1414 = vrot.lane.b32.xlu1 %v1394_v19, %s2511_s22  ;;  %1418 = vrot.lane.b32.xlu2 %v1396_v18, %s2511_s22  ;;  %v725_v20 = vpop.f32.mrf.mxu0 }
 0x22b   : > { %v777_v23 = vpop.f32.mrf.mxu2 }
 0x22c   : > { %v807_v35 = vadd.f32 %v777_v23, %v2974_v60 }
 0x22d   : > { %v738_v16 = vpop.f32.mrf.mxu1 }
 0x22f   : > { %1428 = vrot.lane.b32.xlu1 %v1401_v25, %s2511_s22  ;;  %1416 = vrot.lane.b32.xlu2 %v1395_v26, %s2511_s22  ;;  %v803_v36 = vpop.f32.mrf.mxu0 }
 0x230   : > { %v809_v27 = vadd.f32 %v803_v36, %v737_v11 }
 0x233   : > { %v779_v28 = vpop.f32.mrf.mxu2  ;;  %v790_v31 = vpop.f32.mrf.mxu3 }
 0x234   : > { %v808_v32 = vadd.f32 %v790_v31, %v724_v5 }
 0x235   : > { %v847_v33 = vpop.f32.mrf.mxu1 }
 0x236   : > { %v877_v37 = vadd.f32 %v847_v33, %v807_v35 }
 0x237   : > { %v805_v24 = vpop.f32.mrf.mxu0 }
 0x23b   : > { %v792_v38 = vpop.f32.mrf.mxu3  ;;  %v860_v39 = vpop.f32.mrf.mxu2 }
 0x23c   : > { %v878_v40 = vadd.f32 %v860_v39, %v808_v32 }
 0x23d   : > { %v849_v41 = vpop.f32.mrf.mxu1 }
 0x23f   : > { %v917_v60 = vpop.f32.mrf.mxu0 }
 0x240   : > { %v947_v6 = vadd.f32 %v917_v60, %v877_v37 }
 0x243   : > { %v862_v43 = vpop.f32.mrf.mxu2  ;;  %v873_v44 = vpop.f32.mrf.mxu3 }
 0x244   : > { %v879_v18 = vadd.f32 %v873_v44, %v809_v27 }
 0x245   : > { %v930_v45 = vpop.f32.mrf.mxu1 }
 0x246   : > { %v948_v14 = vadd.f32 %v930_v45, %v878_v40 }
 0x247   : > { %v919_v51 = vpop.f32.mrf.mxu0 }
 0x24b   : > { %v875_v46 = vpop.f32.mrf.mxu3  ;;  %v943_v53 = vpop.f32.mrf.mxu2 }
 0x24c   : > { %v949_v20 = vadd.f32 %v943_v53, %v879_v18 }
 0x24d   : > { %v932_v54 = vpop.f32.mrf.mxu1 }
 0x253   : > { %v945_v56 = vpop.f32.mrf.mxu2 }
 0x255   : > { %v1013_v57 = vpop.f32.mrf.mxu1 }
 0x256   : > { %v1019_v27 = vadd.f32 %v1013_v57, %v949_v20 }
 0x257   : > { %v1000_v58 = vpop.f32.mrf.mxu0 }
 0x258   : > { %v1018_v19 = vadd.f32 %v1000_v58, %v948_v14 }
 0x25d   : > { %v987_v62 = vpop.f32.mrf.mxu3  ;;  %v1015_v52 = vpop.f32.mrf.mxu1 }
 0x25e   : > { %v1017_v61 = vadd.f32 %v987_v62, %v947_v6 }
 0x25f   : > { %v1002_v63 = vpop.f32.mrf.mxu0 }
 0x265   : > { %v1057_v15 = vpop.f32.mrf.mxu2  ;;  %v989_v55 = vpop.f32.mrf.mxu3 }
 0x266   : > { %v1087_v17 = vadd.f32 %v1057_v15, %v1017_v61 }
 0x26c   : > { %v1083_v0 = vpop.f32.mrf.mxu0 }
 0x26d   : > { %v1059_v1 = vpop.f32.mrf.mxu2  ;;  %v1089_v33 = vadd.f32 %v1083_v0, %v1019_v27 }
 0x26f   : > { %v1127_v3 = vpop.f32.mrf.mxu1 }
 0x270   : > { %v1157_v10 = vadd.f32 %v1127_v3, %v1087_v17 }
 0x273   : > { %v1070_v4 = vpop.f32.mrf.mxu3 }
 0x274   : > { %v1085_v9 = vpop.f32.mrf.mxu0  ;;  %v1088_v21 = vadd.f32 %v1070_v4, %v1018_v19 }
 0x277   : > { %v1129_v59 = vpop.f32.mrf.mxu1 }
 0x279   : > { %v3013_v5 = vpop.permute.xlu2 %1426 }
 0x27a   : > { %v1437_v7 = vrot.slane %v3013_v5, 4 }
 0x27b   : > { %v1072_v8 = vpop.f32.mrf.mxu3  ;;  %v1140_v48 = vpop.f32.mrf.mxu2 }
 0x27c   : > { %v1445_v13 = vsel %vm560_vm5, %v1437_v7, %v3013_v5  ;;  %v1158_v26 = vadd.f32 %v1140_v48, %v1088_v21 }
 0x27d   : > { %1465 = vst.msk [vmem:[#allocation3 + $0x24] sm:$0xff] %vm2707_vm6, %v1445_v13 }
 0x27f   : > { %v1197_v12 = vpop.f32.mrf.mxu0 }
 0x280   : > { %v1227_v22 = vadd.f32 %v1197_v12, %v1157_v10 }
 0x281   : > { %v1419_v11 = vpop.permute.xlu2 %1418 }
 0x282   : > { %v1435_v23 = vrot.slane %v1419_v11, 4  ;;  %v1236_v28 = vadd.f32 %v2968_v47, %v1227_v22 }
 0x283   : > { %v1142_v35 = vpop.f32.mrf.mxu2  ;;  %v1153_v25 = vpop.f32.mrf.mxu3 }
 0x284   : > { %v1441_v16 = vsel %vm560_vm5, %v1435_v23, %v1419_v11  ;;  %v1239_v24 = vmul.f32 %v1236_v28, %v2657_v30  ;;  %v1159_v38 = vadd.f32 %v1153_v25, %v1089_v33  ;;  %v2477_v63 = vld [vmem:[#allocation3 + $0x20] sm:$0xf0] }
 0x285   : > { %1461 = vst.msk [vmem:[#allocation3 + $0xc] sm:$0xff] %vm2707_vm6, %v1441_v16  ;;  %v1210_v36 = vpop.f32.mrf.mxu1 }
 0x286   : > { %v1228_v31 = vadd.f32 %v1210_v36, %v1158_v26 }
 0x287   : > { %v1199_v32 = vpop.f32.mrf.mxu0 }
 0x288   : > { %v1237_v37 = vadd.f32 %v2968_v47, %v1228_v31 }
 0x289   : > { %v1417_v59 = vpop.permute.xlu2 %1416 }
 0x28a   : > { %v1240_v39 = vmul.f32 %v1237_v37, %v2659_v34 }
 0x28b   : > { %v1223_v40 = vpop.f32.mrf.mxu2  ;;  %v1155_v41 = vpop.f32.mrf.mxu3 }
 0x28c   : > { %v1242_v60 = vpack.c.bf16 %v1240_v39, %v1239_v24  ;;  %v1229_v43 = vadd.f32 %v1223_v40, %v1159_v38  ;;  %v2411_v13 = vld [vmem:[#allocation3 + $0xc] sm:$0xf0]  ;;  %v2474_v14 = vld [vmem:[#allocation3 + $0x8] sm:$0xf0] }
 0x28d   : > { %v1212_v44 = vpop.f32.mrf.mxu1 }
 0x28e   : > { %1244 = vst [vmem:[%s2618_s20 + $0x30] sm:$0x33] %v1242_v60  ;;  %v1238_v45 = vadd.f32 %v2968_v47, %v1229_v43  ;;  %v1423_v51 = vpop.permute.xlu1 %1422  ;;  %v1425_v54 = vpop.permute.xlu0 %1424  ;;  %v2423_v47 = vld [vmem:[#allocation3 + $0x24] sm:$0xf0] }
 0x28f   : > { %1247 = vst [vmem:[#allocation2 + $0x30] sm:$0x33] %v1242_v60  ;;  %v1436_v46 = vrot.slane %v1423_v51, 4 }
 0x290   : > { %v1241_v53 = vmul.f32 %v1238_v45, %v2655_v29 }
 0x291   : > { %v1443_v56 = vsel %vm560_vm5, %v1436_v46, %v1423_v51  ;;  %v1444_v57 = vsel %vm560_vm5, %v1436_v46, %v1425_v54 }
 0x292   : > { %v1243_v58 = vpack.c.bf16 %v1241_v53, %v1241_v53  ;;  %1463 = vst.msk [vmem:[#allocation3 + $0x18] sm:$0xff] %vm2707_vm6, %v1443_v56 }
 0x293   : > { %1464 = vst.msk [vmem:[#allocation3 + $0x20] sm:$0xf] %vm581_vm7, %v1444_v57  ;;  %v1225_v62 = vpop.f32.mrf.mxu2 }
 0x294   : > { %1246 = vst.msk [vmem:[%s2618_s20 + $0x38] sm:$0x3] %vm1245_vm1, %v1243_v58 }
 0x295   : > { %1248 = vst.msk [vmem:[#allocation2 + $0x38] sm:$0x3] %vm1245_vm1, %v1243_v58  ;;  %vm1554_vm1 = vcmask 1041408  }
 0x296   : > { %v1257_v10 = vld [vmem:[#allocation2 + $0x30] sm:$0x33] }
 0x297   : > { %v1271_v50 = vunpack.c.l.bf16 %v1257_v10  ;;  %v1272_v5 = vunpack.c.h.bf16 %v1257_v10 }
 0x298   : > { %v1421_v52 = vpop.permute.xlu0 %1420 }
 0x299   : > { %v2476_v15 = vld [vmem:[#allocation3 + $0x1c] sm:$0xf]  ;;  %v2421_v55 = vld [vmem:[#allocation3 + $0x18] sm:$0xf]  ;;  %v1415_v0 = vpop.permute.xlu1 %1414  ;;  %v1442_v1 = vsel %vm560_vm5, %v1435_v23, %v1421_v52  ;;  %v1316_v35 = vmul.f32 %v2959_v42, %v1271_v50  ;;  %v1317_v25 = vmul.f32 %v2959_v42, %v1272_v5 }
 0x29a   : > { %v1434_v3 = vrot.slane %v1415_v0, 4  ;;  %1462 = vst.msk [vmem:[#allocation3 + $0x14] sm:$0xf] %vm581_vm7, %v1442_v1  ;;  %v3040_v4 = vor.u32 %v2476_v15, %v2423_v47  ;;  %v3042_v9 = vor.u32 %v2477_v63, %v2421_v55 }
 0x29b   : > { %v1361_v16 = vadd.f32 %v2972_v49, %v1316_v35  ;;  %v1362_v36 = vadd.f32 %v2972_v49, %v1317_v25 }
 0x29c   : > { %v1439_v6 = vsel %vm560_vm5, %v1434_v3, %v1415_v0  ;;  %v1440_v8 = vsel %vm560_vm5, %v1434_v3, %v1417_v59  ;;  %1528 = vrot.lane.b32.xlu1 %v3040_v4, %s2512_s23  ;;  %1526 = vrot.lane.b32.xlu0 %v3042_v9, %s2512_s23  ;;  %v1258_v26 = vld [vmem:[#allocation2 + $0x38] sm:$0x3] }
 0x29d   : > { %1459 = vst.msk [vmem:[#allocation3] sm:$0xff] %vm2707_vm6, %v1439_v6  ;;  %v1273_v27 = vunpack.c.l.bf16 %v1258_v26  ;;  %v1376_v28 = vmax.f32 %v1361_v16, 0.0  ;;  %v1377_v31 = vmax.f32 %v1362_v36, 0.0  ;;  %vm1468_vm6 = vcmask 1045508  }
 0x29e   : > { %1460 = vst.msk [vmem:[#allocation3 + $0x8] sm:$0xf] %vm581_vm7, %v1440_v8 }
 0x29f   : > { %v1318_v32 = vmul.f32 %v2959_v42, %v1273_v27  ;;  %v1391_v33 = vmul.f32 %v1376_v28, %v2657_v30  ;;  %v1392_v37 = vmul.f32 %v1377_v31, %v2659_v34 }
 0x2a1   : > { %v1429_v48 = vpop.permute.xlu1 %1428  ;;  %v2475_v22 = vld [vmem:[#allocation3 + $0x10] sm:$0xf0]  ;;  %v1363_v24 = vadd.f32 %v2972_v49, %v1318_v32  ;;  %v1402_v38 = vpack.c.bf16 %v1392_v37, %v1391_v33 }
 0x2a2   : > { %v1446_v61 = vsel %vm560_vm5, %v1437_v7, %v1429_v48  ;;  %v2429_v7 = vld [vmem:[#allocation3 + $0x20] sm:$0xf] }
 0x2a3   : > { %1466 = vst.msk [vmem:[#allocation3 + $0x2c] sm:$0xf] %vm581_vm7, %v1446_v61  ;;  %v1378_v39 = vmax.f32 %v1363_v24, 0.0  ;;  %vm1469_vm7 = vmor %vm1468_vm6, %vm1467_vm4 }
 0x2a4   : > { %v2473_v18 = vld [vmem:[#allocation3 + $0x4] sm:$0xf]  ;;  %v2409_v17 = vld [vmem:[#allocation3] sm:$0xf] }
 0x2a5   : > { %v3057_v12 = vor.u32 %v2474_v14, %v2409_v17  ;;  %v3059_v19 = vor.u32 %v2473_v18, %v2411_v13  ;;  %v2417_v11 = vld [vmem:[#allocation3 + $0x8] sm:$0xf]  ;;  %v1393_v42 = vmul.f32 %v1378_v39, %v2655_v29 }
 0x2a6   : > { %v3067_v23 = vor.u32 %v2475_v22, %v2417_v11 }
 0x2a7   : > { %1520 = vrot.lane.b32.xlu0 %v3057_v12, %s2512_s23  ;;  %1522 = vrot.lane.b32.xlu1 %v3059_v19, %s2512_s23  ;;  %v1403_v40 = vpack.c.bf16 %v1393_v42, %v1393_v42 }
 0x2aa   : > { %v2478_v20 = vld [vmem:[#allocation3 + $0x28] sm:$0xf0] }
 0x2ab   : > { %v3065_v21 = vor.u32 %v2478_v20, %v2429_v7 }
 0x2ad   : > { %1530 = vrot.lane.b32.xlu2 %v3065_v21, %s2512_s23 }
 0x2af   : > { %1670 = vrot.lane.b32.xlu1 %v3040_v4, %s2513_s24  ;;  %1524 = vrot.lane.b32.xlu0 %v3067_v23, %s2512_s23 }
 0x2b5   : > { %1672 = vrot.lane.b32.xlu2 %v3065_v21, %s2513_s24 }
 0x2b7   : > { %1664 = vrot.lane.b32.xlu1 %v3059_v19, %s2513_s24  ;;  %1668 = vrot.lane.b32.xlu0 %v3042_v9, %s2513_s24 }
 0x2bd   : > { %1756 = vrot.lane.b32.xlu2 %v3040_v4, %s2514_s25 }
 0x2bf   : > { %1754 = vrot.lane.b32.xlu1 %v3042_v9, %s2514_s25  ;;  %1430 = vrot.lane.b32.xlu0 %v1402_v38, %s2511_s22 }
 0x2c5   : > { %1750 = vrot.lane.b32.xlu2 %v3059_v19, %s2514_s25 }
 0x2c7   : > { %1748 = vrot.lane.b32.xlu1 %v3057_v12, %s2514_s25  ;;  %1432 = vrot.lane.b32.xlu0 %v1403_v40, %s2511_s22 }
 0x2cd   : > { %1844 = vrot.lane.b32.xlu2 %v3065_v21, %s2515_s26 }
 0x2cf   : > { %1842 = vrot.lane.b32.xlu1 %v3040_v4, %s2515_s26  ;;  %1662 = vrot.lane.b32.xlu0 %v3057_v12, %s2513_s24 }
 0x2d5   : > { %1838 = vrot.lane.b32.xlu2 %v3067_v23, %s2515_s26 }
 0x2d7   : > { %1836 = vrot.lane.b32.xlu1 %v3059_v19, %s2515_s26  ;;  %1666 = vrot.lane.b32.xlu0 %v3067_v23, %s2513_s24 }
 0x2dd   : > { %1928 = vrot.lane.b32.xlu2 %v3040_v4, %s2516_s27 }
 0x2df   : > { %1926 = vrot.lane.b32.xlu1 %v3042_v9, %s2516_s27  ;;  %1758 = vrot.lane.b32.xlu0 %v3065_v21, %s2514_s25 }
 0x2e7   : > { %1752 = vrot.lane.b32.xlu0 %v3067_v23, %s2514_s25 }
 0x2ef   : > { %1840 = vrot.lane.b32.xlu0 %v3042_v9, %s2515_s26 }
 0x2f7   : > { %1834 = vrot.lane.b32.xlu0 %v3057_v12, %s2515_s26 }
 0x2ff   : > { %1930 = vrot.lane.b32.xlu0 %v3065_v21, %s2516_s27 }
 0x307   : > { %v3182_v48 = vpop.permute.xlu2 %1530 }
 0x30e   : > { %v3126_v49 = vpop.permute.xlu1 %1528  ;;  %v1527_v41 = vpop.permute.xlu0 %1526 }
 0x30f   : > { %v3130_v60 = vsel %vm638_vm8, %v1527_v41, %v3126_v49  ;;  %v3192_v13 = vpop.permute.xlu2 %1672  ;;  %v2262_v41 = vld [vmem:[%s3523_s9] sm:$0xf] }
 0x317   : > { %v3206_v14 = vpop.permute.xlu2 %1756 }
 0x319   : > { %v3133_v43 = vpop.permute.xlu1 %1522  ;;  %v1521_v44 = vpop.permute.xlu0 %1520 }
 0x31a   : > { %v3137_v45 = vsel %vm638_vm8, %v1521_v44, %v3133_v43  ;;  %v1541_v44 = vsel %vm638_vm8, %v3126_v49, %v3182_v48 }
 0x31f   : > { %v3214_v18 = vpop.permute.xlu2 %1750 }
 0x321   : > { %v3140_v51 = vpop.permute.xlu0 %1524  ;;  %v3142_v46 = vpop.permute.xlu1 %1670 }
 0x327   : > { %v3224_v10 = vpop.permute.xlu2 %1844 }
 0x329   : > { %v1669_v53 = vpop.permute.xlu0 %1668  ;;  %v3154_v0 = vpop.permute.xlu1 %1664 }
 0x32a   : > { %v3146_v54 = vsel %vm754_vm9, %v1669_v53, %v3142_v46 }
 0x32f   : > { %v3236_v7 = vpop.permute.xlu2 %1838 }
 0x331   : > { %v1431_v56 = vpop.permute.xlu0 %1430  ;;  %v3234_v5 = vpop.permute.xlu1 %1754 }
 0x332   : > { %v1438_v57 = vrot.slane %v1431_v56, 4 }
 0x334   : > { %v1447_v58 = vsel %vm560_vm5, %v1438_v57, %v1431_v56 }
 0x335   : > { %1470 = vst.msk [vmem:[#allocation3 + $0x30] sm:$0x33] %vm1469_vm7, %v1447_v58 }
 0x337   : > { %v3254_v22 = vpop.permute.xlu2 %1928 }
 0x339   : > { %v1433_v62 = vpop.permute.xlu0 %1432  ;;  %v3246_v20 = vpop.permute.xlu1 %1748 }
 0x33a   : > { %v1448_v2 = vsel %vm560_vm5, %v1438_v57, %v1433_v62  ;;  %vm1550_vm5 = vcmask 293888   ;;  %v1539_v62 = vsel %vm638_vm8, %v3133_v43, %v3140_v51 }
 0x33b   : > { %1472 = vst.msk [vmem:[#allocation3 + $0x38] sm:$0x3] %vm1471_vm10, %v1448_v2 }
 0x33c   : > { %v1482_v47 = vld [vmem:[#allocation3 + $0x30] sm:$0x33] }
 0x33d   : > { %v1508_v52 = vunpack.c.l.b16 %v1482_v47  ;;  %v1509_v63 = vunpack.c.h.b16 %v1482_v47 }
 0x33f   : > { %v3150_v15 = vpack.c.b16 %v1508_v52, %v1508_v52  ;;  %v3152_v55 = vpack.c.b16 %v1509_v63, %v1509_v63 }
 0x341   : > { %1534 = vrot.lane.b32.xlu2 %v3152_v55, %s2512_s23  ;;  %1760 = vrot.lane.b32.xlu0 %v3150_v15, %s2514_s25  ;;  %v1663_v1 = vpop.permute.xlu0 %1662  ;;  %v1613_v3 = vsel %vm1554_vm1, %v3150_v15, 0  ;;  %v3258_v25 = vpop.permute.xlu1 %1842  ;;  %v1616_v2 = vsel %vm1554_vm1, %v3152_v55, 0 }
 0x342   : > { %1532 = vrot.lane.b32.xlu1 %v3150_v15, %s2512_s23  ;;  %1626 = vmatpush.bf16.msrb.mxu2 %v1613_v3  ;;  %v3166_v59 = vsel %vm754_vm9, %v1663_v1, %v3154_v0  ;;  %v1483_v6 = vld [vmem:[#allocation3 + $0x38] sm:$0x3]  ;;  %v1768_v1 = vsel %vm824_vm11, %v3234_v5, %v3206_v14 }
 0x343   : > { %v1510_v8 = vunpack.c.l.b16 %v1483_v6  ;;  %v1683_v6 = vsel %vm754_vm9, %v3142_v46, %v3192_v13 }
 0x345   : > { %v3184_v61 = vpack.c.b16 %v1510_v8, %v1510_v8 }
 0x346   : > { %1627 = vmatpush.bf16.msrb.mxu2 %v3042_v9 }
 0x347   : > { %v1619_v47 = vsel %vm1554_vm1, %v3184_v61, 0 }
 0x349   : > { %1676 = vrot.lane.b32.xlu2 %v3152_v55, %s2513_s24  ;;  %1932 = vrot.lane.b32.xlu0 %v3150_v15, %s2516_s27  ;;  %v3216_v17 = vpop.permute.xlu0 %1666 }
 0x34a   : > { %1674 = vrot.lane.b32.xlu1 %v3150_v15, %s2513_s24  ;;  %1628 = vmatpush.bf16.msrb.mxu2 %v3057_v12 }
 0x351   : > { %1848 = vrot.lane.b32.xlu2 %v3152_v55, %s2515_s26  ;;  %1920 = vrot.lane.b32.xlu0 %v3057_v12, %s2516_s27  ;;  %v3232_v50 = vpop.permute.xlu0 %1758 }
 0x352   : > { %1762 = vrot.lane.b32.xlu1 %v3152_v55, %s2514_s25 }
 0x359   : > { %2012 = vrot.lane.b32.xlu0 %v3042_v9, %s2517_s28  ;;  %1536 = vrot.lane.b32.xlu2 %v3184_v61, %s2512_s23  ;;  %v3244_v11 = vpop.permute.xlu0 %1752 }
 0x35a   : > { %1846 = vrot.lane.b32.xlu1 %v3150_v15, %s2515_s26 }
 0x361   : > { %2006 = vrot.lane.b32.xlu0 %v3057_v12, %s2517_s28  ;;  %2020 = vrot.lane.b32.xlu2 %v3152_v55, %s2517_s28  ;;  %v3256_v35 = vpop.permute.xlu0 %1840 }
 0x362   : > { %1934 = vrot.lane.b32.xlu1 %v3152_v55, %s2516_s27 }
 0x369   : > { %2104 = vrot.lane.b32.xlu0 %v3150_v15, %s2518_s29  ;;  %1924 = vrot.lane.b32.xlu2 %v3067_v23, %s2516_s27  ;;  %v3266_v16 = vpop.permute.xlu0 %1834 }
 0x36a   : > { %2018 = vrot.lane.b32.xlu1 %v3150_v15, %s2517_s28 }
 0x371   : > { %1936 = vrot.lane.b32.xlu0 %v3184_v61, %s2516_s27  ;;  %1678 = vrot.lane.b32.xlu2 %v3184_v61, %s2513_s24  ;;  %v3289_v27 = vpop.permute.xlu0 %1930 }
 0x372   : > { %1922 = vrot.lane.b32.xlu1 %v3059_v19, %s2516_s27 }
 0x379   : > { %2010 = vrot.lane.b32.xlu0 %v3067_v23, %s2517_s28  ;;  %1764 = vrot.lane.b32.xlu2 %v3184_v61, %s2514_s25 }
 0x37a   : > { %2014 = vrot.lane.b32.xlu1 %v3040_v4, %s2517_s28 }
 0x381   : > { %2102 = vrot.lane.b32.xlu0 %v3065_v21, %s2518_s29  ;;  %2016 = vrot.lane.b32.xlu2 %v3065_v21, %s2517_s28 }
 0x382   : > { %2008 = vrot.lane.b32.xlu1 %v3059_v19, %s2517_s28 }
 0x389   : > { %2096 = vrot.lane.b32.xlu0 %v3067_v23, %s2518_s29  ;;  %1850 = vrot.lane.b32.xlu2 %v3184_v61, %s2515_s26 }
 0x38a   : > { %2106 = vrot.lane.b32.xlu1 %v3152_v55, %s2518_s29 }
 0x391   : > { %2184 = vrot.lane.b32.xlu0 %v3042_v9, %s2519_s30  ;;  %2100 = vrot.lane.b32.xlu2 %v3040_v4, %s2518_s29 }
 0x392   : > { %2098 = vrot.lane.b32.xlu1 %v3042_v9, %s2518_s29  ;;  %v3272_v9 = vpop.permute.xlu1 %1836 }
 0x399   : > { %2178 = vrot.lane.b32.xlu0 %v3057_v12, %s2519_s30  ;;  %2094 = vrot.lane.b32.xlu2 %v3059_v19, %s2518_s29 }
 0x39a   : > { %2092 = vrot.lane.b32.xlu1 %v3057_v12, %s2518_s29  ;;  %v3283_v12 = vld [vmem:[%s3522_s8] sm:$0x3]  ;;  %v3293_v31 = vpop.permute.xlu1 %1926 }
 0x39b   : > { %v1535_v26 = vpop.permute.xlu2 %1534  ;;  %2434 = vmatmul.msk.bf16.vlgmr.msrb.gmra.mxu2 %vm1550_vm5, %v3283_v12 }
 0x3a1   : > { %2182 = vrot.lane.b32.xlu0 %v3067_v23, %s2519_s30  ;;  %2022 = vrot.lane.b32.xlu2 %v3184_v61, %s2517_s28 }
 0x3a2   : > { %2190 = vrot.lane.b32.xlu1 %v3150_v15, %s2519_s30 }
 0x3a3   : > { %v3276_v36 = vpop.permute.xlu2 %1676 }
 0x3a9   : > { %2108 = vrot.lane.b32.xlu2 %v3184_v61, %s2518_s29 }
 0x3aa   : > { %2186 = vrot.lane.b32.xlu1 %v3040_v4, %s2519_s30 }
 0x3ab   : > { %v3291_v28 = vpop.permute.xlu2 %1848 }
 0x3b1   : > { %2192 = vrot.lane.b32.xlu2 %v3152_v55, %s2519_s30 }
 0x3b2   : > { %2180 = vrot.lane.b32.xlu1 %v3059_v19, %s2519_s30 }
 0x3b3   : > { %v1537_v32 = vpop.permute.xlu2 %1536  ;;  %v1761_v33 = vpop.permute.xlu0 %1760 }
 0x3b4   : > { %v1533_v37 = vpop.permute.xlu1 %1532  ;;  %v1543_v24 = vsel %vm638_vm8, %v1535_v26, %v1537_v32  ;;  %v1562_v38 = vsel %vm1554_vm1, %v1537_v32, 0 }
 0x3b5   : > { %v1542_v39 = vsel %vm638_vm8, %v1533_v37, %v1535_v26  ;;  %v1559_v42 = vsel %vm1554_vm1, %v1543_v24, 0  ;;  %1595 = vmatpush.bf16.msrb.mxu1 %v1562_v38  ;;  %v2441_v37 = vld [vmem:[%s3522_s8 + $0x6] sm:$0x3]  ;;  %vm2283_vm8 = vcmask 551938  }
 0x3b6   : > { %v1556_v40 = vsel %vm1554_vm1, %v1542_v39, 0  ;;  %1582 = vmatpush.bf16.msrb.mxu0 %v1559_v42 }
 0x3b7   : > { %1569 = vmatpush.bf16.msra.mxu3 %v1556_v40 }
 0x3b9   : > { %2194 = vrot.lane.b32.xlu2 %v3184_v61, %s2519_s30  ;;  %1596 = vmatpush.bf16.msrb.mxu1 %v3182_v48 }
 0x3ba   : > { %2265 = vperm.xlu1 %2500, %v2262_v41   ;;  %1583 = vmatpush.bf16.msrb.mxu0 %v1541_v44 }
 0x3bb   : > { %1570 = vmatpush.bf16.msra.mxu3 %v3130_v60  ;;  %v3314_v53 = vpop.permute.xlu2 %2020  ;;  %v3316_v56 = vpop.permute.xlu0 %1932  ;;  %v2406_v60 = vld [vmem:[%s3522_s8 + $0x2] sm:$0x3] }
 0x3bc   : > { %v1675_v57 = vpop.permute.xlu1 %1674 }
 0x3bd   : > { %v1684_v58 = vsel %vm754_vm9, %v1675_v57, %v3276_v36  ;;  %1597 = vmatpush.bf16.msrb.mxu1 %v3140_v51 }
 0x3be   : > { %v1696_v49 = vsel %vm1554_vm1, %v1684_v58, 0  ;;  %1584 = vmatpush.bf16.msrb.mxu0 %v1539_v62 }
 0x3bf   : > { %1571 = vmatpush.bf16.msra.mxu3 %v3137_v45 }
 0x3c0   : > { %2433 = vmatmul.msk.bf16.vlgmr.msrb.gmra.mxu1 %vm1550_vm5, %v2406_v60 }
 0x3c1   : > { %1709 = vmatpush.bf16.msra.mxu1 %v1696_v49  ;;  %2188 = vrot.lane.b32.xlu2 %v3065_v21, %s2519_s30 }
 0x3c2   : > { %1652 = vmatpush.bf16.msra.mxu0 %v1619_v47  ;;  %2431 = vmatmul.msk.bf16.vlgmr.msra.gmra.mxu3 %vm1550_vm5, %v2406_v60 }
 0x3c3   : > { %1639 = vmatpush.bf16.msrb.mxu3 %v1616_v2  ;;  %2432 = vmatmul.msk.bf16.vlgmr.msrb.gmra.mxu0 %vm1550_vm5, %v2406_v60  ;;  %v3339_v43 = vpop.permute.xlu2 %1924  ;;  %v3341_v45 = vpop.permute.xlu0 %1920 }
 0x3c4   : > { %v1763_v51 = vpop.permute.xlu1 %1762 }
 0x3c5   : > { %1710 = vmatpush.bf16.msra.mxu1 %v3146_v54  ;;  %v1770_v52 = vsel %vm824_vm11, %v1761_v33, %v1763_v51 }
 0x3c6   : > { %1653 = vmatpush.bf16.msra.mxu0 %v3065_v21  ;;  %v1782_v63 = vsel %vm1554_vm1, %v1770_v52, 0 }
 0x3c7   : > { %1640 = vmatpush.bf16.msrb.mxu3 %v3040_v4 }
 0x3c9   : > { %1711 = vmatpush.bf16.msra.mxu1 %v3166_v59 }
 0x3ca   : > { %1654 = vmatpush.bf16.msra.mxu0 %v3067_v23  ;;  %v2437_v23 = vld [vmem:[%s3522_s8 + $0x4] sm:$0x3] }
 0x3cb   : > { %1641 = vmatpush.bf16.msrb.mxu3 %v3059_v19  ;;  %v1679_v54 = vpop.permute.xlu2 %1678  ;;  %v3350_v15 = vpop.permute.xlu0 %2012  ;;  %v1766_v19 = vsel %vm824_vm11, %v3246_v20, %v3214_v18 }
 0x3cc   : > { %v1847_v55 = vpop.permute.xlu1 %1846  ;;  %v1685_v4 = vsel %vm754_vm9, %v3276_v36, %v1679_v54  ;;  %v1702_v21 = vsel %vm1554_vm1, %v1679_v54, 0  ;;  %v1681_v36 = vsel %vm754_vm9, %v3154_v0, %v3216_v17 }
 0x3cd   : > { %v1699_v3 = vsel %vm1554_vm1, %v1685_v4, 0  ;;  %v1856_v59 = vsel %vm894_vm12, %v1847_v55, %v3291_v28  ;;  %v2453_v4 = vld [vmem:[%s3522_s8 + $0xc] sm:$0x3] }
 0x3ce   : > { %1795 = vmatpush.bf16.msrb.mxu0 %v1782_v63  ;;  %1722 = vmatpush.bf16.msra.mxu2 %v1699_v3  ;;  %v1868_v20 = vsel %vm1554_vm1, %v1856_v59, 0 }
 0x3cf   : > { %1735 = vmatpush.bf16.msra.mxu3 %v1702_v21 }
 0x3d0   : > { %2438 = vmatmul.msk.bf16.vlgmr.msra.gmra.mxu1 %vm1550_vm5, %v2437_v23 }
 0x3d2   : > { %1796 = vmatpush.bf16.msrb.mxu0 %v1768_v1  ;;  %2435 = vmatmul.msk.bf16.vlgmr.msrb.gmra.mxu3 %vm1550_vm5, %v3283_v12 }
 0x3d3   : > { %1736 = vmatpush.bf16.msra.mxu3 %v3192_v13  ;;  %2436 = vmatmul.msk.bf16.vlgmr.msra.gmra.mxu0 %vm1550_vm5, %v3283_v12  ;;  %v1765_v8 = vpop.permute.xlu2 %1764  ;;  %v3376_v48 = vpop.permute.xlu0 %2006  ;;  %v1769_v13 = vsel %vm824_vm11, %v3206_v14, %v3232_v50  ;;  %v1854_v12 = vsel %vm894_vm12, %v3256_v35, %v3258_v25  ;;  %v1767_v14 = vsel %vm824_vm11, %v3214_v18, %v3244_v11 }
 0x3d4   : > { %1723 = vmatpush.bf16.msra.mxu2 %v1683_v6  ;;  %v1935_v61 = vpop.permute.xlu1 %1934  ;;  %v1771_v5 = vsel %vm824_vm11, %v1763_v51, %v1765_v8  ;;  %v1788_v46 = vsel %vm1554_vm1, %v1765_v8, 0  ;;  %v1852_v35 = vsel %vm894_vm12, %v3266_v16, %v3272_v9  ;;  %v2449_v51 = vld [vmem:[%s3522_s8 + $0xa] sm:$0x3] }
 0x3d5   : > { %v1785_v26 = vsel %vm1554_vm1, %v1771_v5, 0  ;;  %v1942_v33 = vsel %vm964_vm13, %v3316_v56, %v1935_v61  ;;  %v1941_v56 = vsel %vm964_vm13, %v3254_v22, %v3289_v27 }
 0x3d6   : > { %1797 = vmatpush.bf16.msrb.mxu0 %v1766_v19  ;;  %1808 = vmatpush.bf16.msrb.mxu1 %v1785_v26  ;;  %v1954_v24 = vsel %vm1554_vm1, %v1942_v33, 0 }
 0x3d7   : > { %1737 = vmatpush.bf16.msra.mxu3 %v3216_v17 }
 0x3d8   : > { %1724 = vmatpush.bf16.msra.mxu2 %v1681_v36 }
 0x3da   : > { %1809 = vmatpush.bf16.msrb.mxu1 %v1769_v13 }
 0x3db   : > { %1881 = vmatpush.bf16.msrb.mxu3 %v1868_v20  ;;  %2439 = vmatmul.msk.bf16.vlgmr.msra.gmra.mxu2 %vm1550_vm5, %v2437_v23  ;;  %v3393_v32 = vpop.permute.xlu2 %2016  ;;  %v3395_v0 = vpop.permute.xlu0 %2104 }
 0x3dc   : > { %1821 = vmatpush.bf16.msrb.mxu2 %v1788_v46  ;;  %v2019_v17 = vpop.permute.xlu1 %2018  ;;  %v2457_v46 = vld [vmem:[%s3522_s8 + $0xe] sm:$0x3] }
 0x3de   : > { %1810 = vmatpush.bf16.msrb.mxu1 %v1767_v14 }
 0x3df   : > { %1882 = vmatpush.bf16.msrb.mxu3 %v1854_v12 }
 0x3e0   : > { %1822 = vmatpush.bf16.msrb.mxu2 %v3232_v50 }
 0x3e1   : > { %2443 = vmatmul.msk.bf16.vlgmr.msrb.gmra.mxu1 %vm1550_vm5, %v2441_v37 }
 0x3e2   : > { %2440 = vmatmul.msk.bf16.vlgmr.msra.gmra.mxu3 %vm1550_vm5, %v2437_v23 }
 0x3e3   : > { %1883 = vmatpush.bf16.msrb.mxu3 %v1852_v35  ;;  %2442 = vmatmul.msk.bf16.vlgmr.msrb.gmra.mxu0 %vm1550_vm5, %v2441_v37  ;;  %v1851_v18 = vpop.permute.xlu2 %1850  ;;  %v1937_v50 = vpop.permute.xlu0 %1936 }
 0x3e4   : > { %1823 = vmatpush.bf16.msrb.mxu2 %v3244_v11  ;;  %v1923_v38 = vpop.permute.xlu1 %1922  ;;  %v1857_v16 = vsel %vm894_vm12, %v3291_v28, %v1851_v18  ;;  %v1874_v39 = vsel %vm1554_vm1, %v1851_v18, 0  ;;  %v1943_v42 = vsel %vm964_vm13, %v1935_v61, %v1937_v50  ;;  %v1940_v11 = vsel %vm964_vm13, %v3293_v31, %v3254_v22  ;;  %v2445_v22 = vld [vmem:[%s3522_s8 + $0x8] sm:$0x3] }
 0x3e5   : > { %v1871_v40 = vsel %vm1554_vm1, %v1857_v16, 0  ;;  %v1957_v41 = vsel %vm1554_vm1, %v1943_v42, 0  ;;  %1907 = vmatpush.bf16.msra.mxu1 %v1874_v39  ;;  %v1938_v44 = vsel %vm964_vm13, %v3341_v45, %v1923_v38  ;;  %v1855_v28 = vsel %vm894_vm12, %v3258_v25, %v3224_v10  ;;  %v2461_v16 = vld [vmem:[%s3522_s8 + $0x10] sm:$0x3] }
 0x3e6   : > { %1894 = vmatpush.bf16.msra.mxu0 %v1871_v40  ;;  %v2028_v31 = vsel %vm1034_vm14, %v2019_v17, %v3314_v53  ;;  %v1960_v25 = vsel %vm1554_vm1, %v1937_v50, 0  ;;  %v1939_v60 = vsel %vm964_vm13, %v1923_v38, %v3339_v43 }
 0x3e7   : > { %1980 = vmatpush.bf16.msra.mxu3 %v1957_v41  ;;  %v2040_v62 = vsel %vm1554_vm1, %v2028_v31, 0 }
 0x3e8   : > { %1967 = vmatpush.bf16.msra.mxu2 %v1954_v24 }
 0x3e9   : > { %1908 = vmatpush.bf16.msra.mxu1 %v3224_v10  ;;  %v1853_v10 = vsel %vm894_vm12, %v3272_v9, %v3236_v7 }
 0x3ea   : > { %1895 = vmatpush.bf16.msra.mxu0 %v1855_v28 }
 0x3eb   : > { %2444 = vmatmul.msk.bf16.vlgmr.msrb.gmra.mxu2 %vm1550_vm5, %v2441_v37  ;;  %1981 = vmatpush.bf16.msra.mxu3 %v1941_v56  ;;  %v2101_v57 = vpop.permute.xlu2 %2100  ;;  %v2011_v49 = vpop.permute.xlu0 %2010 }
 0x3ec   : > { %1968 = vmatpush.bf16.msra.mxu2 %v1940_v11  ;;  %v2015_v58 = vpop.permute.xlu1 %2014 }
 0x3ed   : > { %1909 = vmatpush.bf16.msra.mxu1 %v3236_v7  ;;  %v2026_v7 = vsel %vm1034_vm14, %v3350_v15, %v2015_v58 }
 0x3ee   : > { %1896 = vmatpush.bf16.msra.mxu0 %v1853_v10 }
 0x3ef   : > { %1982 = vmatpush.bf16.msra.mxu3 %v1939_v60 }
 0x3f0   : > { %1969 = vmatpush.bf16.msra.mxu2 %v1938_v44 }
 0x3f1   : > { %2053 = vmatpush.bf16.msrb.mxu1 %v2040_v62 }
 0x3f2   : > { %1993 = vmatpush.bf16.msrb.mxu0 %v1960_v25  ;;  %2446 = vmatmul.msk.bf16.vlgmr.msrb.gmra.mxu3 %vm1550_vm5, %v2445_v22 }
 0x3f3   : > { %2447 = vmatmul.msk.bf16.vlgmr.msra.gmra.mxu0 %vm1550_vm5, %v2445_v22  ;;  %2448 = vmatmul.msk.bf16.vlgmr.msra.gmra.mxu1 %vm1550_vm5, %v2445_v22  ;;  %v2095_v9 = vpop.permute.xlu2 %2094  ;;  %v2103_v45 = vpop.permute.xlu0 %2102 }
 0x3f4   : > { %v2009_v2 = vpop.permute.xlu1 %2008 }
 0x3f5   : > { %2054 = vmatpush.bf16.msrb.mxu1 %v2026_v7  ;;  %v2024_v47 = vsel %vm1034_vm14, %v3376_v48, %v2009_v2  ;;  %v2025_v6 = vsel %vm1034_vm14, %v2009_v2, %v2011_v49  ;;  %v2113_v48 = vsel %vm1104_vm15, %v2101_v57, %v2103_v45 }
 0x3f6   : > { %1994 = vmatpush.bf16.msrb.mxu0 %v3289_v27 }
 0x3f9   : > { %2055 = vmatpush.bf16.msrb.mxu1 %v2024_v47 }
 0x3fa   : > { %1995 = vmatpush.bf16.msrb.mxu0 %v3339_v43 }
 0x3fb   : > { %2450 = vmatmul.msk.bf16.vlgmr.msra.gmra.mxu2 %vm1550_vm5, %v2449_v51  ;;  %v2023_v52 = vpop.permute.xlu2 %2022  ;;  %v2097_v21 = vpop.permute.xlu0 %2096 }
 0x3fc   : > { %v2107_v63 = vpop.permute.xlu1 %2106  ;;  %v2029_v27 = vsel %vm1034_vm14, %v3314_v53, %v2023_v52  ;;  %v2046_v54 = vsel %vm1554_vm1, %v2023_v52, 0  ;;  %v2027_v53 = vsel %vm1034_vm14, %v2015_v58, %v3393_v32  ;;  %v2111_v36 = vsel %vm1104_vm15, %v2095_v9, %v2097_v21 }
 0x3fd   : > { %v2114_v15 = vsel %vm1104_vm15, %v3395_v0, %v2107_v63  ;;  %v2043_v55 = vsel %vm1554_vm1, %v2029_v27, 0  ;;  %2079 = vmatpush.bf16.msrb.mxu3 %v2046_v54 }
 0x3fe   : > { %v2126_v43 = vsel %vm1554_vm1, %v2114_v15, 0  ;;  %2066 = vmatpush.bf16.msrb.mxu2 %v2043_v55 }
 0x3ff   : > { %2139 = vmatpush.bf16.msra.mxu0 %v2126_v43 }
 0x401   : > { %2080 = vmatpush.bf16.msrb.mxu3 %v3393_v32 }
 0x402   : > { %2451 = vmatmul.msk.bf16.vlgmr.msra.gmra.mxu3 %vm1550_vm5, %v2449_v51  ;;  %2067 = vmatpush.bf16.msrb.mxu2 %v2027_v53 }
 0x403   : > { %2452 = vmatmul.msk.bf16.vlgmr.msrb.gmra.mxu0 %vm1550_vm5, %v2449_v51  ;;  %2454 = vmatmul.msk.bf16.vlgmr.msrb.gmra.mxu1 %vm1550_vm5, %v2453_v4  ;;  %v2109_v1 = vpop.permute.xlu2 %2108  ;;  %v2185_v61 = vpop.permute.xlu0 %2184 }
 0x404   : > { %v2099_v3 = vpop.permute.xlu1 %2098  ;;  %v2115_v19 = vsel %vm1104_vm15, %v2107_v63, %v2109_v1  ;;  %v2132_v8 = vsel %vm1554_vm1, %v2109_v1, 0 }
 0x405   : > { %v2129_v23 = vsel %vm1554_vm1, %v2115_v19, 0  ;;  %2081 = vmatpush.bf16.msrb.mxu3 %v2011_v49  ;;  %v2112_v59 = vsel %vm1104_vm15, %v2099_v3, %v2101_v57 }
 0x406   : > { %2140 = vmatpush.bf16.msra.mxu0 %v2112_v59  ;;  %2152 = vmatpush.bf16.msra.mxu1 %v2129_v23 }
 0x407   : > { %2068 = vmatpush.bf16.msrb.mxu2 %v2025_v6 }
 0x40a   : > { %2153 = vmatpush.bf16.msra.mxu1 %v2113_v48 }
 0x40b   : > { %2165 = vmatpush.bf16.msra.mxu2 %v2132_v8  ;;  %v2193_v5 = vpop.permute.xlu2 %2192  ;;  %v2179_v17 = vpop.permute.xlu0 %2178 }
 0x40c   : > { %2455 = vmatmul.msk.bf16.vlgmr.msrb.gmra.mxu2 %vm1550_vm5, %v2453_v4  ;;  %v2093_v20 = vpop.permute.xlu1 %2092 }
 0x40d   : > { %v2110_v26 = vsel %vm1104_vm15, %v2093_v20, %v2095_v9 }
 0x40e   : > { %2141 = vmatpush.bf16.msra.mxu0 %v2110_v26  ;;  %2154 = vmatpush.bf16.msra.mxu1 %v2111_v36 }
 0x40f   : > { %2166 = vmatpush.bf16.msra.mxu2 %v2103_v45 }
 0x412   : > { %2456 = vmatmul.msk.bf16.vlgmr.msrb.gmra.mxu3 %vm1550_vm5, %v2453_v4 }
 0x413   : > { %2167 = vmatpush.bf16.msra.mxu2 %v2097_v21  ;;  %2458 = vmatmul.msk.bf16.vlgmr.msra.gmra.mxu0 %vm1550_vm5, %v2457_v46  ;;  %v2195_v13 = vpop.permute.xlu2 %2194  ;;  %v2183_v38 = vpop.permute.xlu0 %2182 }
 0x414   : > { %2459 = vmatmul.msk.bf16.vlgmr.msra.gmra.mxu1 %vm1550_vm5, %v2457_v46  ;;  %v2191_v12 = vpop.permute.xlu1 %2190  ;;  %v2201_v32 = vsel %vm1174_vm0, %v2193_v5, %v2195_v13  ;;  %v2218_v0 = vsel %vm1554_vm1, %v2195_v13, 0 }
 0x415   : > { %v2200_v33 = vsel %vm1174_vm0, %v2191_v12, %v2193_v5  ;;  %v2215_v14 = vsel %vm1554_vm1, %v2201_v32, 0  ;;  %2251 = vmatpush.bf16.msrb.mxu1 %v2218_v0 }
 0x416   : > { %v2212_v35 = vsel %vm1554_vm1, %v2200_v33, 0  ;;  %2238 = vmatpush.bf16.msrb.mxu0 %v2215_v14 }
 0x417   : > { %2225 = vmatpush.bf16.msra.mxu3 %v2212_v35 }
 0x41b   : > { %v2189_v37 = vpop.permute.xlu2 %2188 }
 0x41c   : > { %2460 = vmatmul.msk.bf16.vlgmr.msra.gmra.mxu2 %vm1550_vm5, %v2457_v46  ;;  %v2187_v24 = vpop.permute.xlu1 %2186  ;;  %2252 = vmatpush.bf16.msrb.mxu1 %v2189_v37 }
 0x41d   : > { %v2198_v18 = vsel %vm1174_vm0, %v2185_v61, %v2187_v24  ;;  %v2199_v50 = vsel %vm1174_vm0, %v2187_v24, %v2189_v37 }
 0x41e   : > { %2226 = vmatpush.bf16.msra.mxu3 %v2198_v18  ;;  %2239 = vmatpush.bf16.msrb.mxu0 %v2199_v50  ;;  %v1630_v40 = vpop.f32.mrf.mxu2 }
 0x420   : > { %2253 = vmatpush.bf16.msrb.mxu1 %v2183_v38 }
 0x424   : > { %2464 = vmatmul.msk.bf16.vlgmr.msrb.gmra.mxu1 %vm1550_vm5, %v2461_v16  ;;  %v2181_v39 = vpop.permute.xlu1 %2180 }
 0x425   : > { %v2196_v42 = vsel %vm1174_vm0, %v2179_v17, %v2181_v39  ;;  %v2197_v11 = vsel %vm1174_vm0, %v2181_v39, %v2183_v38 }
 0x426   : > { %2227 = vmatpush.bf16.msra.mxu3 %v2196_v42  ;;  %2240 = vmatpush.bf16.msrb.mxu0 %v2197_v11  ;;  %v1632_v41 = vpop.f32.mrf.mxu2 }
 0x429   : > { %2462 = vmatmul.msk.bf16.vlgmr.msra.gmra.mxu3 %vm1550_vm5, %v2461_v16  ;;  %2463 = vmatmul.msk.bf16.vlgmr.msrb.gmra.mxu0 %vm1550_vm5, %v2461_v16 }
 0x43d   : > { %v1599_v28 = vpop.f32.mrf.mxu1 }
 0x440   : > { %v1586_v44 = vpop.f32.mrf.mxu0 }
 0x445   : > { %v1573_v31 = vpop.f32.mrf.mxu3  ;;  %v1601_v58 = vpop.f32.mrf.mxu1 }
 0x446   : > { %v1631_v57 = vadd.f32 %v1630_v40, %v1573_v31 }
 0x448   : > { %v1588_v56 = vpop.f32.mrf.mxu0 }
 0x44d   : > { %v1575_v62 = vpop.f32.mrf.mxu3  ;;  %v1713_v25 = vpop.f32.mrf.mxu1 }
 0x44e   : > { %v1743_v60 = vadd.f32 %v1713_v25, %v1631_v57 }
 0x450   : > { %v1656_v49 = vpop.f32.mrf.mxu0 }
 0x451   : > { %v1657_v10 = vadd.f32 %v1656_v49, %v1599_v28  ;;  %v2266_v28 = vpop.permute.xlu1 %2265 }
 0x455   : > { %v1643_v22 = vpop.f32.mrf.mxu3  ;;  %v1715_v2 = vpop.f32.mrf.mxu1 }
 0x456   : > { %v1644_v7 = vadd.f32 %v1643_v22, %v1586_v44 }
 0x458   : > { %v1658_v9 = vpop.f32.mrf.mxu0 }
 0x45d   : > { %v1645_v47 = vpop.f32.mrf.mxu3 }
 0x45e   : > { %v1726_v45 = vpop.f32.mrf.mxu2  ;;  %v1812_v27 = vpop.f32.mrf.mxu1 }
 0x45f   : > { %v1744_v51 = vadd.f32 %v1726_v45, %v1644_v7 }
 0x460   : > { %v1799_v52 = vpop.f32.mrf.mxu0 }
 0x461   : > { %v1829_v63 = vadd.f32 %v1799_v52, %v1743_v60  ;;  %v1830_v54 = vadd.f32 %v1812_v27, %v1744_v51 }
 0x465   : > { %v1739_v55 = vpop.f32.mrf.mxu3 }
 0x466   : > { %v1728_v15 = vpop.f32.mrf.mxu2  ;;  %v1814_v4 = vpop.f32.mrf.mxu1  ;;  %v1745_v17 = vadd.f32 %v1739_v55, %v1657_v10 }
 0x468   : > { %v1801_v43 = vpop.f32.mrf.mxu0 }
 0x46d   : > { %v1741_v21 = vpop.f32.mrf.mxu3 }
 0x46e   : > { %v1825_v53 = vpop.f32.mrf.mxu2 }
 0x46f   : > { %v1831_v33 = vadd.f32 %v1825_v53, %v1745_v17 }
 0x470   : > { %v1898_v1 = vpop.f32.mrf.mxu0  ;;  %v1911_v3 = vpop.f32.mrf.mxu1 }
 0x471   : > { %v1917_v18 = vadd.f32 %v1911_v3, %v1831_v33  ;;  %v1916_v42 = vadd.f32 %v1898_v1, %v1830_v54 }
 0x475   : > { %v1885_v23 = vpop.f32.mrf.mxu3 }
 0x476   : > { %v1827_v19 = vpop.f32.mrf.mxu2  ;;  %v1915_v31 = vadd.f32 %v1885_v23, %v1829_v63 }
 0x478   : > { %v1900_v59 = vpop.f32.mrf.mxu0  ;;  %v1913_v6 = vpop.f32.mrf.mxu1 }
 0x47d   : > { %v1887_v8 = vpop.f32.mrf.mxu3 }
 0x47e   : > { %v1971_v48 = vpop.f32.mrf.mxu2 }
 0x47f   : > { %v2001_v58 = vadd.f32 %v1971_v48, %v1915_v31 }
 0x480   : > { %v1997_v61 = vpop.f32.mrf.mxu0  ;;  %v2057_v5 = vpop.f32.mrf.mxu1 }
 0x481   : > { %v2003_v50 = vadd.f32 %v1997_v61, %v1917_v18  ;;  %v2087_v7 = vadd.f32 %v2057_v5, %v2001_v58 }
 0x485   : > { %v1984_v26 = vpop.f32.mrf.mxu3 }
 0x486   : > { %v1973_v20 = vpop.f32.mrf.mxu2  ;;  %v2002_v41 = vadd.f32 %v1984_v26, %v1916_v42 }
 0x488   : > { %v1999_v36 = vpop.f32.mrf.mxu0  ;;  %v2059_v46 = vpop.f32.mrf.mxu1 }
 0x48d   : > { %v1986_v13 = vpop.f32.mrf.mxu3 }
 0x48f   : > { %v2070_v12 = vpop.f32.mrf.mxu2 }
 0x490   : > { %v2143_v32 = vpop.f32.mrf.mxu0  ;;  %v2088_v56 = vadd.f32 %v2070_v12, %v2002_v41 }
 0x491   : > { %v2156_v0 = vpop.f32.mrf.mxu1  ;;  %v2173_v47 = vadd.f32 %v2143_v32, %v2087_v7 }
 0x492   : > { %v2174_v25 = vadd.f32 %v2156_v0, %v2088_v56 }
 0x495   : > { %v2083_v35 = vpop.f32.mrf.mxu3 }
 0x496   : > { %v2089_v38 = vadd.f32 %v2083_v35, %v2003_v50 }
 0x497   : > { %v2072_v14 = vpop.f32.mrf.mxu2 }
 0x498   : > { %v2145_v37 = vpop.f32.mrf.mxu0 }
 0x499   : > { %v2158_v24 = vpop.f32.mrf.mxu1 }
 0x49d   : > { %v2085_v39 = vpop.f32.mrf.mxu3 }
 0x49f   : > { %v2169_v16 = vpop.f32.mrf.mxu2 }
 0x4a0   : > { %v2175_v11 = vadd.f32 %v2169_v16, %v2089_v38 }
 0x4a1   : > { %v2255_v40 = vpop.f32.mrf.mxu1 }
 0x4a2   : > { %v2261_v44 = vadd.f32 %v2255_v40, %v2175_v11 }
 0x4a4   : > { %v2270_v57 = vadd.f32 %v2266_v28, %v2261_v44 }
 0x4a6   : > { %v2273_v62 = vmul.f32 %v2270_v57, %v2655_v29  ;;  %v2242_v10 = vpop.f32.mrf.mxu0 }
 0x4a7   : > { %v2171_v49 = vpop.f32.mrf.mxu2  ;;  %v2260_v2 = vadd.f32 %v2242_v10, %v2174_v25 }
 0x4a8   : > { %v2275_v60 = vpack.c.bf16 %v2273_v62, %v2273_v62 }
 0x4a9   : > { %v2257_v22 = vpop.f32.mrf.mxu1  ;;  %v2269_v51 = vadd.f32 %v2266_v28, %v2260_v2 }
 0x4aa   : > { %v2279_v9 = vrot.slane %v2275_v60, 6 }
 0x4ab   : > { %v2272_v54 = vmul.f32 %v2269_v51, %v2659_v34 }
 0x4ac   : > { %2284 = vst.msk [vmem:[%s2618_s20 + $0x38] sm:$0xc] %vm2283_vm8, %v2279_v9  ;;  %v2229_v45 = vpop.f32.mrf.mxu3 }
 0x4ad   : > { %v2259_v52 = vadd.f32 %v2229_v45, %v2173_v47 }
 0x4ae   : > { %v2244_v63 = vpop.f32.mrf.mxu0 }
 0x4af   : > { %v2268_v27 = vadd.f32 %v2266_v28, %v2259_v52 }
 0x4b1   : > { %v2271_v29 = vmul.f32 %v2268_v27, %v2657_v30 }
 0x4b3   : > { %v2274_v15 = vpack.c.bf16 %v2272_v54, %v2271_v29 }
 0x4b4   : > { %v2231_v55 = vpop.f32.mrf.mxu3 }
 0x4b5   : > { %v2278_v43 = vrot.slane %v2274_v15, 6 }
 0x4b7   : > { %2282 = vst [vmem:[%s2618_s20 + $0x30] sm:$0xcc] %v2278_v43 }
 0x4b8 PF: > { %s20_s13 = sadd.s32 1, %s2508_s13  }
 0x4b9   : > { %p17_p4 = scmp.ge.s32.totalorder %s20_s13, 4  }
 0x4bb   :  { %19 = sbr.rel (!%p17_p4) target bundleno = 1 (0x1), region = 106 }

</bundles_post_ra>
